<compile_context>
chip_gen: v6e
topology: v6e:2x2x1
jax: 0.10.0
libtpu: 0.0.40
codegen_flags: <defaults>
</compile_context>

<pallas_src>
import functools

import numpy as np
import jax
import jax.numpy as jnp
from jax.experimental import pallas as pl
from jax.experimental.pallas import tpu as pltpu

# ----------------------------------------------------------------------------
# Synthetic small config (Swin-tiny-like, scaled down).
# ----------------------------------------------------------------------------
CFG = dict(
    in_chans=3,
    patch_size=4,
    embed_dim=32,
    depths=(2, 2),
    num_heads=(2, 4),
    window_size=4,
    mlp_ratio=4,
    out_indices=(0, 1),
    fpn_out_channels=32,
    fpn_num_outs=3,
    rpn_feat_channels=32,
    rpn_num_anchors=3,
)

LN_EPS = 1e-5


def _num_tensorcores():
    """1 TensorCore per chip on v5e/v6e, 2 on v4/v5p/v7x (megacore)."""
    try:
        d = jax.devices()[0]
        if d.platform != "tpu":
            return 1
        kind = getattr(d, "device_kind", "").lower()
        if "lite" in kind or "v5e" in kind or "v6" in kind:
            return 1
        return 2
    except Exception:  # pragma: no cover - conservative fallback
        return 1


NUM_TC = _num_tensorcores()


def _choose_rows(M):
    """Padded row count and row tile.  Single grid step on 1-TC chips (grid
    steps are pure per-step overhead there); >=2 parallel steps on 2-TC chips
    so both TensorCores get work."""
    Mp8 = -(-M // 8) * 8
    if NUM_TC <= 1 or Mp8 <= 64:
        return Mp8, Mp8
    n_tiles = 2
    while -(-Mp8 // n_tiles) > 256:
        n_tiles *= 2
    tm = -(-(-(-M // n_tiles)) // 16) * 16         # tile multiple of 16
    return tm * n_tiles, tm


def _choose_group(B_, nW, masked):
    """Windows per attention grid step.  Must divide nW when the shift mask is
    present (so the mask can be indexed modulo the per-image window count)."""
    limit = nW if masked else B_
    for g in (16, 8, 4, 2, 1):
        if limit % g or B_ % g:
            continue
        if NUM_TC <= 1 or B_ // g >= 2:
            return g
    return 1


# ----------------------------------------------------------------------------
# Fused [pre-LN] -> bf16 matmul -> +bias -> [act] -> [post-LN]
# ----------------------------------------------------------------------------
def _fused_mm_kernel(*refs, pre_ln, post_ln, act, eps):
    i = 0
    x_ref = refs[i]; i += 1
    if pre_ln:
        gi_ref, bi_ref = refs[i], refs[i + 1]; i += 2
    w_ref, b_ref = refs[i], refs[i + 1]; i += 2
    if post_ln:
        go_ref, bo_ref = refs[i], refs[i + 1]; i += 2
    o_ref = refs[i]

    x = x_ref[...]
    if pre_ln:
        x = x.astype(jnp.float32)
        mu = jnp.mean(x, axis=-1, keepdims=True)
        var = jnp.mean(jnp.square(x - mu), axis=-1, keepdims=True)
        x = (x - mu) * jax.lax.rsqrt(var + eps) * gi_ref[...] + bi_ref[...]
    acc = jnp.dot(x.astype(jnp.bfloat16), w_ref[...],      # bf16 MXU, f32 acc
                  preferred_element_type=jnp.float32)
    acc = acc + b_ref[...]
    if act == "relu":
        acc = jnp.maximum(acc, 0.0)
    elif act == "gelu":
        acc = jax.nn.gelu(acc, approximate=True)            # tanh GELU -> EUP
    if post_ln:
        mu = jnp.mean(acc, axis=-1, keepdims=True)
        var = jnp.mean(jnp.square(acc - mu), axis=-1, keepdims=True)
        acc = (acc - mu) * jax.lax.rsqrt(var + eps) * go_ref[...] + bo_ref[...]
    o_ref[...] = acc.astype(o_ref.dtype)


def fused_matmul(x, w, bias=None, pre_ln=None, post_ln=None, act=None,
                 out_dtype=jnp.float32, eps=LN_EPS):
    """(M, K) @ (K, N) with optional fused pre-LN / activation / post-LN.
    Weight expected bf16 (stored that way at init), accumulate f32."""
    M, K = x.shape
    N = w.shape[1]
    Mp, tm = _choose_rows(M)
    if Mp != M:
        x = jnp.pad(x, ((0, Mp - M), (0, 0)))
    if bias is None:
        bias = jnp.zeros((1, N), jnp.float32)

    inputs = [x]
    in_specs = [pl.BlockSpec((tm, K), lambda i: (i, 0))]
    if pre_ln is not None:
        g, b = pre_ln
        inputs += [g, b]
        in_specs += [pl.BlockSpec((1, K), lambda i: (0, 0))] * 2
    inputs += [w.astype(jnp.bfloat16), bias]
    in_specs += [pl.BlockSpec((K, N), lambda i: (0, 0)),
                 pl.BlockSpec((1, N), lambda i: (0, 0))]
    if post_ln is not None:
        g, b = post_ln
        inputs += [g, b]
        in_specs += [pl.BlockSpec((1, N), lambda i: (0, 0))] * 2

    out = pl.pallas_call(
        functools.partial(_fused_mm_kernel, pre_ln=pre_ln is not None,
                          post_ln=post_ln is not None, act=act, eps=eps),
        out_shape=jax.ShapeDtypeStruct((Mp, N), out_dtype),
        grid=(Mp // tm,),
        in_specs=in_specs,
        out_specs=pl.BlockSpec((tm, N), lambda i: (i, 0)),
        compiler_params=pltpu.CompilerParams(dimension_semantics=("parallel",)),
    )(*inputs)
    return out[:M] if Mp != M else out


# ----------------------------------------------------------------------------
# Fused two-matmul kernel:  [pre-LN] -> mm1 -> act -> mm2 -> [+residual]
# (Swin MLP: LN2 -> fc1 -> GELU -> fc2 -> +x; RPN: conv3x3 -> ReLU -> heads)
# ----------------------------------------------------------------------------
def _mlp_kernel(*refs, pre_ln, act, residual, eps):
    i = 0
    x_ref = refs[i]; i += 1
    if pre_ln:
        gi_ref, bi_ref = refs[i], refs[i + 1]; i += 2
    w1_ref, b1_ref, w2_ref, b2_ref = refs[i:i + 4]; i += 4
    o_ref = refs[i]

    x = x_ref[...].astype(jnp.float32)
    h = x
    if pre_ln:
        mu = jnp.mean(x, axis=-1, keepdims=True)
        var = jnp.mean(jnp.square(x - mu), axis=-1, keepdims=True)
        h = (x - mu) * jax.lax.rsqrt(var + eps) * gi_ref[...] + bi_ref[...]
    h = jnp.dot(h.astype(jnp.bfloat16), w1_ref[...],
                preferred_element_type=jnp.float32) + b1_ref[...]
    if act == "relu":
        h = jnp.maximum(h, 0.0)
    elif act == "gelu":
        h = jax.nn.gelu(h, approximate=True)
    y = jnp.dot(h.astype(jnp.bfloat16), w2_ref[...],
                preferred_element_type=jnp.float32) + b2_ref[...]
    if residual:
        y = y + x
    o_ref[...] = y.astype(o_ref.dtype)


def fused_mlp(x, w1, b1, w2, b2, pre_ln=None, act=None, residual=False,
              out_dtype=jnp.float32, eps=LN_EPS):
    M, K = x.shape
    H = w1.shape[1]
    N = w2.shape[1]
    Mp, tm = _choose_rows(M)
    if Mp != M:
        x = jnp.pad(x, ((0, Mp - M), (0, 0)))
    if b1 is None:
        b1 = jnp.zeros((1, H), jnp.float32)
    if b2 is None:
        b2 = jnp.zeros((1, N), jnp.float32)

    inputs = [x]
    in_specs = [pl.BlockSpec((tm, K), lambda i: (i, 0))]
    if pre_ln is not None:
        g, b = pre_ln
        inputs += [g, b]
        in_specs += [pl.BlockSpec((1, K), lambda i: (0, 0))] * 2
    inputs += [w1.astype(jnp.bfloat16), b1, w2.astype(jnp.bfloat16), b2]
    in_specs += [pl.BlockSpec((K, H), lambda i: (0, 0)),
                 pl.BlockSpec((1, H), lambda i: (0, 0)),
                 pl.BlockSpec((H, N), lambda i: (0, 0)),
                 pl.BlockSpec((1, N), lambda i: (0, 0))]

    out = pl.pallas_call(
        functools.partial(_mlp_kernel, pre_ln=pre_ln is not None, act=act,
                          residual=residual, eps=eps),
        out_shape=jax.ShapeDtypeStruct((Mp, N), out_dtype),
        grid=(Mp // tm,),
        in_specs=in_specs,
        out_specs=pl.BlockSpec((tm, N), lambda i: (i, 0)),
        compiler_params=pltpu.CompilerParams(dimension_semantics=("parallel",)),
    )(*inputs)
    return out[:M] if Mp != M else out


# ----------------------------------------------------------------------------
# Window multi-head attention, fully fused:
#   per-head q/k/v slice of the (G, N, 3C) QKV slab -> scores (+rel-bias,
#   +shift-mask) -> softmax -> @v -> per-head slice of the out-projection,
#   accumulated into a lane-dense (G, N, C) block.
# ----------------------------------------------------------------------------
def _attn_kernel(*refs, nH, hd, has_mask):
    if has_mask:
        qkv_ref, rb_ref, m_ref, wp_ref, bp_ref, o_ref = refs
    else:
        qkv_ref, rb_ref, wp_ref, bp_ref, o_ref = refs
    qkv = qkv_ref[...]                              # (G, N, 3C) bf16
    rb = rb_ref[...]                                # (nH, N, N) f32
    C = nH * hd
    acc = jnp.zeros(o_ref.shape, jnp.float32)       # (G, N, C)
    for h in range(nH):                             # static loop over heads
        q = qkv[:, :, h * hd:(h + 1) * hd]          # scale folded into qkv_w
        k = qkv[:, :, C + h * hd:C + (h + 1) * hd]
        v = qkv[:, :, 2 * C + h * hd:2 * C + (h + 1) * hd]
        s = jnp.einsum("gnd,gmd->gnm", q, k,        # K transposed by MXU
                       preferred_element_type=jnp.float32)
        s = s + rb[h]
        if has_mask:
            s = s + m_ref[...]
        s = s - jnp.max(s, axis=-1, keepdims=True)
        e = jnp.exp(s)
        p = e * pl.reciprocal(jnp.sum(e, axis=-1, keepdims=True), approx=True)
        oh = jnp.einsum("gnm,gmd->gnd", p.astype(jnp.bfloat16), v,
                        preferred_element_type=jnp.float32)
        # per-head slice of the out-projection == concat(heads) @ proj_w
        acc = acc + jnp.einsum("gnd,dc->gnc", oh.astype(jnp.bfloat16),
                               wp_ref[h * hd:(h + 1) * hd, :],
                               preferred_element_type=jnp.float32)
    o_ref[...] = acc + bp_ref[...]


def attn_pallas(qkv, rel_bias, mask, proj_w, proj_b, nH):
    """qkv: (B_, N, 3C) bf16; rel_bias: (nH, N, N); mask: (nW, N, N)|None;
       proj_w: (C, C) bf16; proj_b: (1, C)  ->  (B_, N, C) f32."""
    B_, N, threeC = qkv.shape
    C = threeC // 3
    hd = C // nH
    nW = mask.shape[0] if mask is not None else B_
    G = _choose_group(B_, nW, mask is not None)

    inputs = [qkv, rel_bias.astype(jnp.float32)]
    in_specs = [pl.BlockSpec((G, N, threeC), lambda g: (g, 0, 0)),
                pl.BlockSpec((nH, N, N), lambda g: (0, 0, 0))]
    if mask is not None:
        nblk = nW // G
        inputs.append(mask.astype(jnp.float32))
        in_specs.append(pl.BlockSpec((G, N, N), lambda g: (g % nblk, 0, 0)))
    inputs += [proj_w.astype(jnp.bfloat16), proj_b]
    in_specs += [pl.BlockSpec((C, C), lambda g: (0, 0)),
                 pl.BlockSpec((1, C), lambda g: (0, 0))]

    return pl.pallas_call(
        functools.partial(_attn_kernel, nH=nH, hd=hd, has_mask=mask is not None),
        out_shape=jax.ShapeDtypeStruct((B_, N, C), jnp.float32),
        grid=(B_ // G,),
        in_specs=in_specs,
        out_specs=pl.BlockSpec((G, N, C), lambda g: (g, 0, 0)),
        compiler_params=pltpu.CompilerParams(dimension_semantics=("parallel",)),
    )(*inputs)


# ----------------------------------------------------------------------------
# Conv helpers (NHWC; 3x3 conv == im2col + matmul)
# ----------------------------------------------------------------------------
def _im2col3x3(x):
    # TODO(synk): still a wrapper-side 9x slab; an in-kernel im2col (DMA the
    # padded row tile once, build the (tm, 9*Cin) slab in VMEM) only pays once
    # the spatial dims grow beyond this toy config.
    N, H, W, C = x.shape
    xp = jnp.pad(x, ((0, 0), (1, 1), (1, 1), (0, 0)))
    cols = jnp.concatenate(
        [xp[:, dy:dy + H, dx:dx + W, :] for dy in range(3) for dx in range(3)],
        axis=-1)
    return cols.reshape(N * H * W, 9 * C)


# ----------------------------------------------------------------------------
# Swin helpers (plain-JAX / numpy glue)
# ----------------------------------------------------------------------------
def window_partition(x, ws):
    B, H, W, C = x.shape
    x = x.reshape(B, H // ws, ws, W // ws, ws, C)
    return x.transpose(0, 1, 3, 2, 4, 5).reshape(-1, ws, ws, C)


def window_reverse(windows, ws, H, W):
    B = windows.shape[0] // ((H // ws) * (W // ws))
    x = windows.reshape(B, H // ws, W // ws, ws, ws, -1)
    return x.transpose(0, 1, 3, 2, 4, 5).reshape(B, H, W, -1)


def relative_position_index(ws):
    coords = np.stack(np.meshgrid(np.arange(ws), np.arange(ws), indexing="ij"))
    cf = coords.reshape(2, -1)
    rel = (cf[:, :, None] - cf[:, None, :]).transpose(1, 2, 0).astype(np.int64)
    rel[:, :, 0] += ws - 1
    rel[:, :, 1] += ws - 1
    rel[:, :, 0] *= 2 * ws - 1
    return rel.sum(-1)                               # (ws*ws, ws*ws)


def compute_attn_mask(Hp, Wp, ws, shift):
    img_mask = np.zeros((1, Hp, Wp, 1), np.float32)
    slices = (slice(0, -ws), slice(-ws, -shift), slice(-shift, None))
    cnt = 0
    for hs in slices:
        for ws_ in slices:
            img_mask[:, hs, ws_, :] = cnt
            cnt += 1
    m = img_mask.reshape(1, Hp // ws, ws, Wp // ws, ws, 1)
    m = m.transpose(0, 1, 3, 2, 4, 5).reshape(-1, ws * ws)
    diff = m[:, None, :] - m[:, :, None]
    return jnp.asarray(np.where(diff != 0, -100.0, 0.0).astype(np.float32))


# ----------------------------------------------------------------------------
# Swin Transformer backbone
# ----------------------------------------------------------------------------
def swin_block_forward(x, H, W, bp, nH, ws, shift, attn_mask):
    B, L, C = x.shape
    shortcut = x
    h = x.reshape(B, H, W, C)
    if shift > 0:
        h = jnp.roll(h, (-shift, -shift), axis=(1, 2))
    xw = window_partition(h, ws).reshape(-1, ws * ws, C)        # (B_, N, C)
    B_, N, _ = xw.shape
    # launch 1: LN1 + QKV projection, emitted bf16 (q-scale folded at init)
    qkv = fused_matmul(xw.reshape(B_ * N, C), bp["qkv_w"], bp["qkv_b"],
                       pre_ln=(bp["norm1_g"], bp["norm1_b"]),
                       out_dtype=jnp.bfloat16).reshape(B_, N, 3 * C)
    mask = attn_mask if shift > 0 else None
    # launch 2: per-head attention + softmax + out-projection
    o = attn_pallas(qkv, bp["rel_bias"], mask, bp["proj_w"], bp["proj_b"], nH)
    hw = window_reverse(o.reshape(-1, ws, ws, C), ws, H, W)
    if shift > 0:
        hw = jnp.roll(hw, (shift, shift), axis=(1, 2))
    x = shortcut + hw.reshape(B, L, C)                           # drop_path == id
    # launch 3: LN2 + fc1 + GELU + fc2 + residual, hidden stays on-chip
    y = fused_mlp(x.reshape(B * L, C), bp["fc1_w"], bp["fc1_b"],
                  bp["fc2_w"], bp["fc2_b"],
                  pre_ln=(bp["norm2_g"], bp["norm2_b"]), act="gelu",
                  residual=True)
    return y.reshape(B, L, C)


def patch_merging(x, H, W, dp):
    B, L, C = x.shape
    xr = x.reshape(B, H, W, C)
    x0 = xr[:, 0::2, 0::2, :]
    x1 = xr[:, 1::2, 0::2, :]
    x2 = xr[:, 0::2, 1::2, :]
    x3 = xr[:, 1::2, 1::2, :]
    xc = jnp.concatenate([x0, x1, x2, x3], axis=-1).reshape(-1, 4 * C)
    # fused LN + Linear(4C -> 2C, bias=False)
    y = fused_matmul(xc, dp["red_w"], None, pre_ln=(dp["norm_g"], dp["norm_b"]))
    return y.reshape(B, -1, 2 * C)


def basic_layer_forward(x, H, W, lp, nH, ws, has_downsample):
    assert H % ws == 0 and W % ws == 0   # chosen shapes avoid window padding
    shift = ws // 2
    attn_mask = compute_attn_mask(H, W, ws, shift)               # (nW, N, N)
    for bidx, bp in enumerate(lp["blocks"]):
        s = 0 if bidx % 2 == 0 else shift
        x = swin_block_forward(x, H, W, bp, nH, ws, s, attn_mask)
    x_out = x
    if has_downsample:
        x_down = patch_merging(x, H, W, lp["downsample"])
        return x_out, H, W, x_down, (H + 1) // 2, (W + 1) // 2
    return x_out, H, W, x, H, W


def swin_forward(img, p):
    pe = p["patch_embed"]
    N, C, H, W = img.shape
    ps, ed = CFG["patch_size"], CFG["embed_dim"]
    Wh, Ww = H // ps, W // ps
    # non-overlapping patchify (no duplication) + fused matmul + post-LN
    xp = img.reshape(N, C, Wh, ps, Ww, ps).transpose(0, 2, 4, 1, 3, 5)
    xp = xp.reshape(N * Wh * Ww, C * ps * ps)
    x = fused_matmul(xp, pe["w"], pe["b"], post_ln=(pe["norm_g"], pe["norm_b"]))
    x = x.reshape(N, Wh * Ww, ed)

    outs = []
    H_, W_ = Wh, Ww
    for i, lp in enumerate(p["layers"]):
        has_down = i < len(p["layers"]) - 1
        x_out, Ho, Wo, x, H_, W_ = basic_layer_forward(
            x, H_, W_, lp, CFG["num_heads"][i], CFG["window_size"], has_down)
        if i in CFG["out_indices"]:
            outs.append((x_out, Ho, Wo))      # out-norm fused into FPN lateral
    return outs


# ----------------------------------------------------------------------------
# FPN neck and RPN head (NHWC internally)
# ----------------------------------------------------------------------------
def fpn_forward(feats, out_norms, p):
    oc = CFG["fpn_out_channels"]
    laterals = []
    for i, (tok, Ho, Wo) in enumerate(feats):
        B, dim = tok.shape[0], tok.shape[-1]
        # backbone out-LayerNorm fused with the FPN lateral 1x1 conv (== matmul)
        y = fused_matmul(tok.reshape(-1, dim), p["lateral_w"][i],
                         p["lateral_b"][i],
                         pre_ln=(out_norms[i]["g"], out_norms[i]["b"]))
        laterals.append(y.reshape(B, Ho, Wo, oc))
    for i in range(len(laterals) - 1, 0, -1):
        up = jnp.repeat(jnp.repeat(laterals[i], 2, axis=1), 2, axis=2)  # nearest
        laterals[i - 1] = laterals[i - 1] + up
    outs = []
    for i, lat in enumerate(laterals):
        y = fused_matmul(_im2col3x3(lat), p["fpn_w"][i], p["fpn_b"][i])
        outs.append(y.reshape(lat.shape[0], lat.shape[1], lat.shape[2], oc))
    while len(outs) < CFG["fpn_num_outs"]:
        outs.append(outs[-1][:, ::2, ::2, :])                # max_pool(1, stride=2)
    return outs


def rpn_forward(feats, p):
    na = CFG["rpn_num_anchors"]
    shapes = [(f.shape[0], f.shape[1], f.shape[2]) for f in feats]
    rows = [b * h * w for (b, h, w) in shapes]
    # conv_w and the merged cls/reg 1x1 weights are shared across levels, so
    # all FPN levels run as ONE kernel: 3x3-conv -> ReLU -> merged heads.
    cols = jnp.concatenate([_im2col3x3(f) for f in feats], axis=0)
    y = fused_mlp(cols, p["conv_w"], p["conv_b"], p["head_w"], p["head_b"],
                  act="relu")
    cls_scores, bbox_preds = [], []
    off = 0
    for (B, H, W), r in zip(shapes, rows):
        yl = y[off:off + r].reshape(B, H, W, 5 * na)
        off += r
        cls_scores.append(yl[..., :na])
        bbox_preds.append(yl[..., na:])
    return cls_scores, bbox_preds


def model_forward(img, params):
    feats = swin_forward(img, params)                                   # backbone
    fpn_nhwc = fpn_forward(feats, params["out_norms"], params["fpn"])   # neck
    cls_nhwc, reg_nhwc = rpn_forward(fpn_nhwc, params["rpn"])           # rpn
    to_nchw = lambda t: t.transpose(0, 3, 1, 2)
    # TODO(synk): RPN proposal NMS + CascadeRoIHead (RoIAlign, bbox/mask heads)
    # have no clean Pallas equivalent; returning dense outputs instead.
    return dict(fpn_feats=tuple(to_nchw(t) for t in fpn_nhwc),
                rpn_cls_scores=tuple(to_nchw(t) for t in cls_nhwc),
                rpn_bbox_preds=tuple(to_nchw(t) for t in reg_nhwc))


# ----------------------------------------------------------------------------
# Deterministic parameter init (weights stored matmul-ready, MXU weights bf16;
# a real checkpoint loader would do these reshapes/casts once at load time)
# ----------------------------------------------------------------------------
def init_params(key):
    keys = iter(jax.random.split(key, 256))

    def nrm(shape, std=0.02, dtype=jnp.bfloat16):
        return (jax.random.normal(next(keys), shape, jnp.float32) * std).astype(dtype)

    ed, ws = CFG["embed_dim"], CFG["window_size"]
    ps, ic = CFG["patch_size"], CFG["in_chans"]
    N = ws * ws
    rel_idx = relative_position_index(ws).reshape(-1)       # static numpy
    p = dict()
    p["patch_embed"] = dict(
        w=nrm((ic * ps * ps, ed)),                          # conv as matmul
        b=jnp.zeros((1, ed), jnp.float32),
        norm_g=jnp.ones((1, ed), jnp.float32),
        norm_b=jnp.zeros((1, ed), jnp.float32))

    layers = []
    for i, (depth, nH) in enumerate(zip(CFG["depths"], CFG["num_heads"])):
        dim = ed * 2 ** i
        hd = dim // nH
        scale = hd ** -0.5
        blocks = []
        for _ in range(depth):
            table = nrm(((2 * ws - 1) ** 2, nH), dtype=jnp.float32)
            # rel-pos gather hoisted to init: expanded (nH, N, N) bias
            rel_bias = table[rel_idx].reshape(N, N, nH).transpose(2, 0, 1)
            qkv_w = nrm((dim, 3 * dim), dtype=jnp.float32)
            qkv_b = jnp.zeros((3 * dim,), jnp.float32)
            # fold the attention scale into the q projection (exact: 0.25)
            qscale = jnp.concatenate([jnp.full((dim,), scale, jnp.float32),
                                      jnp.ones((2 * dim,), jnp.float32)])
            qkv_w = qkv_w * qscale[None, :]
            qkv_b = qkv_b * qscale
            blocks.append(dict(
                norm1_g=jnp.ones((1, dim), jnp.float32),
                norm1_b=jnp.zeros((1, dim), jnp.float32),
                qkv_w=qkv_w.astype(jnp.bfloat16),
                qkv_b=qkv_b.reshape(1, 3 * dim),
                rel_bias=rel_bias,
                proj_w=nrm((dim, dim)),
                proj_b=jnp.zeros((1, dim), jnp.float32),
                norm2_g=jnp.ones((1, dim), jnp.float32),
                norm2_b=jnp.zeros((1, dim), jnp.float32),
                fc1_w=nrm((dim, CFG["mlp_ratio"] * dim)),
                fc1_b=jnp.zeros((1, CFG["mlp_ratio"] * dim), jnp.float32),
                fc2_w=nrm((CFG["mlp_ratio"] * dim, dim)),
                fc2_b=jnp.zeros((1, dim), jnp.float32),
            ))
        layer = dict(blocks=blocks)
        if i < len(CFG["depths"]) - 1:
            layer["downsample"] = dict(
                norm_g=jnp.ones((1, 4 * dim), jnp.float32),
                norm_b=jnp.zeros((1, 4 * dim), jnp.float32),
                red_w=nrm((4 * dim, 2 * dim)))
        layers.append(layer)
    p["layers"] = layers
    p["out_norms"] = [dict(g=jnp.ones((1, ed * 2 ** i), jnp.float32),
                           b=jnp.zeros((1, ed * 2 ** i), jnp.float32))
                      for i in CFG["out_indices"]]

    in_chs = [ed * 2 ** i for i in CFG["out_indices"]]
    oc = CFG["fpn_out_channels"]
    p["fpn"] = dict(
        lateral_w=[nrm((c, oc)) for c in in_chs],
        lateral_b=[jnp.zeros((1, oc), jnp.float32) for _ in in_chs],
        fpn_w=[nrm((9 * oc, oc)) for _ in in_chs],
        fpn_b=[jnp.zeros((1, oc), jnp.float32) for _ in in_chs],
    )
    fc, na = CFG["rpn_feat_channels"], CFG["rpn_num_anchors"]
    p["rpn"] = dict(
        conv_w=nrm((9 * oc, fc)), conv_b=jnp.zeros((1, fc), jnp.float32),
        # merged cls (na) + reg (4*na) 1x1 heads
        head_w=nrm((fc, 5 * na)), head_b=jnp.zeros((1, 5 * na), jnp.float32),
    )
    return p


# ----------------------------------------------------------------------------
if __name__ == "__main__":
    key = jax.random.PRNGKey(0)
    pkey, xkey = jax.random.split(key)
    params = init_params(pkey)
    img = jax.random.normal(xkey, (2, 3, 32, 32), jnp.float32)   # NCHW

    fwd = jax.jit(model_forward)
    out = fwd(img, params)
    out = jax.block_until_ready(out)

    # sanity-check shapes implied by the module's forward pass
    assert out["fpn_feats"][0].shape == (2, 32, 8, 8)
    assert out["fpn_feats"][1].shape == (2, 32, 4, 4)
    assert out["fpn_feats"][2].shape == (2, 32, 2, 2)
    assert out["rpn_cls_scores"][0].shape == (2, 3, 8, 8)
    assert out["rpn_bbox_preds"][0].shape == (2, 12, 8, 8)
    assert all(jnp.all(jnp.isfinite(v)) for v in jax.tree_util.tree_leaves(out))

    print("KERNEL_OK")
</pallas_src>

<mosaic_0001>
module attributes {stable_mosaic.version = 11 : i64} {
  func.func @_fused_mm_kernel(%arg0: i32, %arg1: memref<128x32xf32, #tpu.memory_space<vmem>>, %arg2: memref<1x32xf32, #tpu.memory_space<vmem>>, %arg3: memref<1x32xf32, #tpu.memory_space<vmem>>, %arg4: memref<32x96xbf16, #tpu.memory_space<vmem>>, %arg5: memref<1x96xf32, #tpu.memory_space<vmem>>, %arg6: memref<128x96xbf16, #tpu.memory_space<vmem>>) attributes {dimension_semantics = [#tpu.dimension_semantics<parallel>], iteration_bounds = array<i64: 1>, scalar_prefetch = 0 : i64, scratch_operands = 0 : i64, tpu.core_type = #tpu.core_type<tc>, window_params = [{transform_indices = @transform_0, window_bounds = array<i64: 128, 32>}, {pipeline_mode = #tpu.pipeline_mode<synchronous>, transform_indices = @transform_1, window_bounds = array<i64: 1, 32>}, {pipeline_mode = #tpu.pipeline_mode<synchronous>, transform_indices = @transform_2, window_bounds = array<i64: 1, 32>}, {pipeline_mode = #tpu.pipeline_mode<synchronous>, transform_indices = @transform_3, window_bounds = array<i64: 32, 96>}, {pipeline_mode = #tpu.pipeline_mode<synchronous>, transform_indices = @transform_4, window_bounds = array<i64: 1, 96>}, {transform_indices = @transform_5, window_bounds = array<i64: 128, 96>}]} {
    %c0 = arith.constant 0 : index
    %c0_0 = arith.constant 0 : index
    %0 = vector.load %arg1[%c0, %c0_0] : memref<128x32xf32, #tpu.memory_space<vmem>>, vector<128x32xf32>
    %cst = arith.constant dense<0.000000e+00> : vector<128xf32>
    %1 = vector.multi_reduction <add>, %0, %cst [1] : vector<128x32xf32> to vector<128xf32>
    %2 = vector.shape_cast %1 : vector<128xf32> to vector<128x1xf32>
    %cst_1 = arith.constant 3.200000e+01 : f32
    %3 = vector.broadcast %cst_1 : f32 to vector<128x1xf32>
    %4 = arith.divf %2, %3 : vector<128x1xf32>
    %5 = vector.broadcast %4 : vector<128x1xf32> to vector<128x32xf32>
    %6 = arith.subf %0, %5 : vector<128x32xf32>
    %7 = arith.mulf %6, %6 : vector<128x32xf32>
    %cst_2 = arith.constant dense<0.000000e+00> : vector<128xf32>
    %8 = vector.multi_reduction <add>, %7, %cst_2 [1] : vector<128x32xf32> to vector<128xf32>
    %9 = vector.shape_cast %8 : vector<128xf32> to vector<128x1xf32>
    %cst_3 = arith.constant 3.200000e+01 : f32
    %10 = vector.broadcast %cst_3 : f32 to vector<128x1xf32>
    %11 = arith.divf %9, %10 : vector<128x1xf32>
    %12 = vector.broadcast %4 : vector<128x1xf32> to vector<128x32xf32>
    %13 = arith.subf %0, %12 : vector<128x32xf32>
    %cst_4 = arith.constant 9.99999974E-6 : f32
    %14 = vector.broadcast %cst_4 : f32 to vector<128x1xf32>
    %15 = arith.addf %11, %14 : vector<128x1xf32>
    %16 = math.rsqrt %15 : vector<128x1xf32>
    %17 = vector.broadcast %16 : vector<128x1xf32> to vector<128x32xf32>
    %18 = arith.mulf %13, %17 : vector<128x32xf32>
    %c0_5 = arith.constant 0 : index
    %c0_6 = arith.constant 0 : index
    %19 = vector.load %arg2[%c0_5, %c0_6] : memref<1x32xf32, #tpu.memory_space<vmem>>, vector<1x32xf32>
    %20 = vector.broadcast %19 : vector<1x32xf32> to vector<128x32xf32>
    %21 = arith.mulf %18, %20 : vector<128x32xf32>
    %c0_7 = arith.constant 0 : index
    %c0_8 = arith.constant 0 : index
    %22 = vector.load %arg3[%c0_7, %c0_8] : memref<1x32xf32, #tpu.memory_space<vmem>>, vector<1x32xf32>
    %23 = vector.broadcast %22 : vector<1x32xf32> to vector<128x32xf32>
    %24 = arith.addf %21, %23 : vector<128x32xf32>
    %25 = arith.truncf %24 : vector<128x32xf32> to vector<128x32xbf16>
    %c0_9 = arith.constant 0 : index
    %c0_10 = arith.constant 0 : index
    %26 = vector.load %arg4[%c0_9, %c0_10] : memref<32x96xbf16, #tpu.memory_space<vmem>>, vector<32x96xbf16>
    %cst_11 = arith.constant dense<0.000000e+00> : vector<128x96xf32>
    %27 = tpu.matmul %25, %26, %cst_11 {dimension_numbers = #tpu.dot_dimension_numbers<[1], [0], [0], [1], [0, 0, 1, 1], [], []>} : vector<128x32xbf16>, vector<32x96xbf16>, vector<128x96xf32> -> vector<128x96xf32>
    %c0_12 = arith.constant 0 : index
    %c0_13 = arith.constant 0 : index
    %28 = vector.load %arg5[%c0_12, %c0_13] : memref<1x96xf32, #tpu.memory_space<vmem>>, vector<1x96xf32>
    %29 = vector.broadcast %28 : vector<1x96xf32> to vector<128x96xf32>
    %30 = arith.addf %27, %29 : vector<128x96xf32>
    %31 = arith.truncf %30 : vector<128x96xf32> to vector<128x96xbf16>
    %c0_14 = arith.constant 0 : index
    %c0_15 = arith.constant 0 : index
    %32 = vector.load %arg6[%c0_14, %c0_15] : memref<128x96xbf16, #tpu.memory_space<vmem>>, vector<128x96xbf16>
    tpu.vector_store %arg6[%c0_14, %c0_15], %31 {strides = array<i32>} : memref<128x96xbf16, #tpu.memory_space<vmem>>, vector<128x96xbf16>,
    return
  }
  func.func @transform_0(%arg0: i32) -> (i32, i32) {
    %c0_i32 = arith.constant 0 : i32
    %c0_i32_0 = arith.constant 0 : i32
    return %arg0, %c0_i32 : i32, i32
  }
  func.func @transform_1(%arg0: i32) -> (i32, i32) {
    %c0_i32 = arith.constant 0 : i32
    %c0_i32_0 = arith.constant 0 : i32
    %c0_i32_1 = arith.constant 0 : i32
    return %c0_i32, %c0_i32_0 : i32, i32
  }
  func.func @transform_2(%arg0: i32) -> (i32, i32) {
    %c0_i32 = arith.constant 0 : i32
    %c0_i32_0 = arith.constant 0 : i32
    %c0_i32_1 = arith.constant 0 : i32
    return %c0_i32, %c0_i32_0 : i32, i32
  }
  func.func @transform_3(%arg0: i32) -> (i32, i32) {
    %c0_i32 = arith.constant 0 : i32
    %c0_i32_0 = arith.constant 0 : i32
    %c0_i32_1 = arith.constant 0 : i32
    return %c0_i32, %c0_i32_0 : i32, i32
  }
  func.func @transform_4(%arg0: i32) -> (i32, i32) {
    %c0_i32 = arith.constant 0 : i32
    %c0_i32_0 = arith.constant 0 : i32
    %c0_i32_1 = arith.constant 0 : i32
    return %c0_i32, %c0_i32_0 : i32, i32
  }
  func.func @transform_5(%arg0: i32) -> (i32, i32) {
    %c0_i32 = arith.constant 0 : i32
    %c0_i32_0 = arith.constant 0 : i32
    return %arg0, %c0_i32 : i32, i32
  }
}

module attributes {stable_mosaic.version = 11 : i64} {
  func.func @_fused_mm_kernel(%arg0: i32, %arg1: memref<128x48xf32, #tpu.memory_space<vmem>>, %arg2: memref<48x32xbf16, #tpu.memory_space<vmem>>, %arg3: memref<1x32xf32, #tpu.memory_space<vmem>>, %arg4: memref<1x32xf32, #tpu.memory_space<vmem>>, %arg5: memref<1x32xf32, #tpu.memory_space<vmem>>, %arg6: memref<128x32xf32, #tpu.memory_space<vmem>>) attributes {dimension_semantics = [#tpu.dimension_semantics<parallel>], iteration_bounds = array<i64: 1>, scalar_prefetch = 0 : i64, scratch_operands = 0 : i64, tpu.core_type = #tpu.core_type<tc>, window_params = [{transform_indices = @transform_0, window_bounds = array<i64: 128, 48>}, {pipeline_mode = #tpu.pipeline_mode<synchronous>, transform_indices = @transform_1, window_bounds = array<i64: 48, 32>}, {pipeline_mode = #tpu.pipeline_mode<synchronous>, transform_indices = @transform_2, window_bounds = array<i64: 1, 32>}, {pipeline_mode = #tpu.pipeline_mode<synchronous>, transform_indices = @transform_3, window_bounds = array<i64: 1, 32>}, {pipeline_mode = #tpu.pipeline_mode<synchronous>, transform_indices = @transform_4, window_bounds = array<i64: 1, 32>}, {transform_indices = @transform_5, window_bounds = array<i64: 128, 32>}]} {
    %c0 = arith.constant 0 : index
    %c0_0 = arith.constant 0 : index
    %0 = vector.load %arg1[%c0, %c0_0] : memref<128x48xf32, #tpu.memory_space<vmem>>, vector<128x48xf32>
    %1 = arith.truncf %0 : vector<128x48xf32> to vector<128x48xbf16>
    %c0_1 = arith.constant 0 : index
    %c0_2 = arith.constant 0 : index
    %2 = vector.load %arg2[%c0_1, %c0_2] : memref<48x32xbf16, #tpu.memory_space<vmem>>, vector<48x32xbf16>
    %cst = arith.constant dense<0.000000e+00> : vector<128x32xf32>
    %3 = tpu.matmul %1, %2, %cst {dimension_numbers = #tpu.dot_dimension_numbers<[1], [0], [0], [1], [0, 0, 1, 1], [], []>} : vector<128x48xbf16>, vector<48x32xbf16>, vector<128x32xf32> -> vector<128x32xf32>
    %c0_3 = arith.constant 0 : index
    %c0_4 = arith.constant 0 : index
    %4 = vector.load %arg3[%c0_3, %c0_4] : memref<1x32xf32, #tpu.memory_space<vmem>>, vector<1x32xf32>
    %5 = vector.broadcast %4 : vector<1x32xf32> to vector<128x32xf32>
    %6 = arith.addf %3, %5 : vector<128x32xf32>
    %cst_5 = arith.constant dense<0.000000e+00> : vector<128xf32>
    %7 = vector.multi_reduction <add>, %6, %cst_5 [1] : vector<128x32xf32> to vector<128xf32>
    %8 = vector.shape_cast %7 : vector<128xf32> to vector<128x1xf32>
    %cst_6 = arith.constant 3.200000e+01 : f32
    %9 = vector.broadcast %cst_6 : f32 to vector<128x1xf32>
    %10 = arith.divf %8, %9 : vector<128x1xf32>
    %11 = vector.broadcast %10 : vector<128x1xf32> to vector<128x32xf32>
    %12 = arith.subf %6, %11 : vector<128x32xf32>
    %13 = arith.mulf %12, %12 : vector<128x32xf32>
    %cst_7 = arith.constant dense<0.000000e+00> : vector<128xf32>
    %14 = vector.multi_reduction <add>, %13, %cst_7 [1] : vector<128x32xf32> to vector<128xf32>
    %15 = vector.shape_cast %14 : vector<128xf32> to vector<128x1xf32>
    %cst_8 = arith.constant 3.200000e+01 : f32
    %16 = vector.broadcast %cst_8 : f32 to vector<128x1xf32>
    %17 = arith.divf %15, %16 : vector<128x1xf32>
    %18 = vector.broadcast %10 : vector<128x1xf32> to vector<128x32xf32>
    %19 = arith.subf %6, %18 : vector<128x32xf32>
    %cst_9 = arith.constant 9.99999974E-6 : f32
    %20 = vector.broadcast %cst_9 : f32 to vector<128x1xf32>
    %21 = arith.addf %17, %20 : vector<128x1xf32>
    %22 = math.rsqrt %21 : vector<128x1xf32>
    %23 = vector.broadcast %22 : vector<128x1xf32> to vector<128x32xf32>
    %24 = arith.mulf %19, %23 : vector<128x32xf32>
    %c0_10 = arith.constant 0 : index
    %c0_11 = arith.constant 0 : index
    %25 = vector.load %arg4[%c0_10, %c0_11] : memref<1x32xf32, #tpu.memory_space<vmem>>, vector<1x32xf32>
    %26 = vector.broadcast %25 : vector<1x32xf32> to vector<128x32xf32>
    %27 = arith.mulf %24, %26 : vector<128x32xf32>
    %c0_12 = arith.constant 0 : index
    %c0_13 = arith.constant 0 : index
    %28 = vector.load %arg5[%c0_12, %c0_13] : memref<1x32xf32, #tpu.memory_space<vmem>>, vector<1x32xf32>
    %29 = vector.broadcast %28 : vector<1x32xf32> to vector<128x32xf32>
    %30 = arith.addf %27, %29 : vector<128x32xf32>
    %c0_14 = arith.constant 0 : index
    %c0_15 = arith.constant 0 : index
    %31 = vector.load %arg6[%c0_14, %c0_15] : memref<128x32xf32, #tpu.memory_space<vmem>>, vector<128x32xf32>
    tpu.vector_store %arg6[%c0_14, %c0_15], %30 {strides = array<i32>} : memref<128x32xf32, #tpu.memory_space<vmem>>, vector<128x32xf32>,
    return
  }
  func.func @transform_0(%arg0: i32) -> (i32, i32) {
    %c0_i32 = arith.constant 0 : i32
    %c0_i32_0 = arith.constant 0 : i32
    return %arg0, %c0_i32 : i32, i32
  }
  func.func @transform_1(%arg0: i32) -> (i32, i32) {
    %c0_i32 = arith.constant 0 : i32
    %c0_i32_0 = arith.constant 0 : i32
    %c0_i32_1 = arith.constant 0 : i32
    return %c0_i32, %c0_i32_0 : i32, i32
  }
  func.func @transform_2(%arg0: i32) -> (i32, i32) {
    %c0_i32 = arith.constant 0 : i32
    %c0_i32_0 = arith.constant 0 : i32
    %c0_i32_1 = arith.constant 0 : i32
    return %c0_i32, %c0_i32_0 : i32, i32
  }
  func.func @transform_3(%arg0: i32) -> (i32, i32) {
    %c0_i32 = arith.constant 0 : i32
    %c0_i32_0 = arith.constant 0 : i32
    %c0_i32_1 = arith.constant 0 : i32
    return %c0_i32, %c0_i32_0 : i32, i32
  }
  func.func @transform_4(%arg0: i32) -> (i32, i32) {
    %c0_i32 = arith.constant 0 : i32
    %c0_i32_0 = arith.constant 0 : i32
    %c0_i32_1 = arith.constant 0 : i32
    return %c0_i32, %c0_i32_0 : i32, i32
  }
  func.func @transform_5(%arg0: i32) -> (i32, i32) {
    %c0_i32 = arith.constant 0 : i32
    %c0_i32_0 = arith.constant 0 : i32
    return %arg0, %c0_i32 : i32, i32
  }
}

module attributes {stable_mosaic.version = 11 : i64} {
  func.func @_attn_kernel(%arg0: i32, %arg1: memref<8x16x96xbf16, #tpu.memory_space<vmem>>, %arg2: memref<2x16x16xf32, #tpu.memory_space<vmem>>, %arg3: memref<32x32xbf16, #tpu.memory_space<vmem>>, %arg4: memref<1x32xf32, #tpu.memory_space<vmem>>, %arg5: memref<8x16x32xf32, #tpu.memory_space<vmem>>) attributes {dimension_semantics = [#tpu.dimension_semantics<parallel>], iteration_bounds = array<i64: 1>, scalar_prefetch = 0 : i64, scratch_operands = 0 : i64, tpu.core_type = #tpu.core_type<tc>, window_params = [{transform_indices = @transform_0, window_bounds = array<i64: 8, 16, 96>}, {pipeline_mode = #tpu.pipeline_mode<synchronous>, transform_indices = @transform_1, window_bounds = array<i64: 2, 16, 16>}, {pipeline_mode = #tpu.pipeline_mode<synchronous>, transform_indices = @transform_2, window_bounds = array<i64: 32, 32>}, {pipeline_mode = #tpu.pipeline_mode<synchronous>, transform_indices = @transform_3, window_bounds = array<i64: 1, 32>}, {transform_indices = @transform_4, window_bounds = array<i64: 8, 16, 32>}]} {
    %c0 = arith.constant 0 : index
    %c0_0 = arith.constant 0 : index
    %c0_1 = arith.constant 0 : index
    %0 = vector.load %arg1[%c0, %c0_0, %c0_1] : memref<8x16x96xbf16, #tpu.memory_space<vmem>>, vector<8x16x96xbf16>
    %c0_2 = arith.constant 0 : index
    %c0_3 = arith.constant 0 : index
    %c0_4 = arith.constant 0 : index
    %1 = vector.load %arg2[%c0_2, %c0_3, %c0_4] : memref<2x16x16xf32, #tpu.memory_space<vmem>>, vector<2x16x16xf32>
    %cst = arith.constant 0.000000e+00 : f32
    %2 = vector.broadcast %cst : f32 to vector<8x16x32xf32>
    %3 = vector.extract_strided_slice %0 {offsets = [0, 0, 0], sizes = [8, 16, 16], strides = [1, 1, 1]} : vector<8x16x96xbf16> to vector<8x16x16xbf16>
    %4 = vector.extract_strided_slice %0 {offsets = [0, 0, 32], sizes = [8, 16, 16], strides = [1, 1, 1]} : vector<8x16x96xbf16> to vector<8x16x16xbf16>
    %5 = vector.extract_strided_slice %0 {offsets = [0, 0, 64], sizes = [8, 16, 16], strides = [1, 1, 1]} : vector<8x16x96xbf16> to vector<8x16x16xbf16>
    "tpu.trace_start"() <{level = 10 : i32, message = "gnd,gmd->gnm"}> : () -> ()
    %cst_5 = arith.constant dense<0.000000e+00> : vector<8x16x16xf32>
    %6 = tpu.matmul %3, %4, %cst_5 {dimension_numbers = #tpu.dot_dimension_numbers<[2], [2], [1], [1], [0, 0, 0, 1, 1, 1], [0], [0]>} : vector<8x16x16xbf16>, vector<8x16x16xbf16>, vector<8x16x16xf32> -> vector<8x16x16xf32>
    "tpu.trace_stop"() : () -> ()
    %7 = vector.extract_strided_slice %1 {offsets = [0, 0, 0], sizes = [1, 16, 16], strides = [1, 1, 1]} : vector<2x16x16xf32> to vector<1x16x16xf32>
    %8 = vector.shape_cast %7 : vector<1x16x16xf32> to vector<16x16xf32>
    %9 = vector.shape_cast %8 : vector<16x16xf32> to vector<1x16x16xf32>
    %10 = vector.broadcast %9 : vector<1x16x16xf32> to vector<8x16x16xf32>
    %11 = arith.addf %6, %10 : vector<8x16x16xf32>
    %cst_6 = arith.constant dense<0xFF800000> : vector<8x16xf32>
    %12 = vector.multi_reduction <maximumf>, %11, %cst_6 [2] : vector<8x16x16xf32> to vector<8x16xf32>
    %13 = vector.shape_cast %12 : vector<8x16xf32> to vector<8x16x1xf32>
    %14 = vector.broadcast %13 : vector<8x16x1xf32> to vector<8x16x16xf32>
    %15 = arith.subf %11, %14 : vector<8x16x16xf32>
    %16 = math.exp %15 : vector<8x16x16xf32>
    %cst_7 = arith.constant dense<0.000000e+00> : vector<8x16xf32>
    %17 = vector.multi_reduction <add>, %16, %cst_7 [2] : vector<8x16x16xf32> to vector<8x16xf32>
    %18 = vector.shape_cast %17 : vector<8x16xf32> to vector<8x16x1xf32>
    %19 = tpu.reciprocal %18 {approx = true} : vector<8x16x1xf32> -> vector<8x16x1xf32>
    %20 = vector.broadcast %19 : vector<8x16x1xf32> to vector<8x16x16xf32>
    %21 = arith.mulf %16, %20 : vector<8x16x16xf32>
    %22 = arith.truncf %21 : vector<8x16x16xf32> to vector<8x16x16xbf16>
    "tpu.trace_start"() <{level = 10 : i32, message = "gnm,gmd->gnd"}> : () -> ()
    %cst_8 = arith.constant dense<0.000000e+00> : vector<8x16x16xf32>
    %23 = tpu.matmul %22, %5, %cst_8 {dimension_numbers = #tpu.dot_dimension_numbers<[2], [1], [1], [2], [0, 0, 0, 1, 1, 2], [0], [0]>} : vector<8x16x16xbf16>, vector<8x16x16xbf16>, vector<8x16x16xf32> -> vector<8x16x16xf32>
    "tpu.trace_stop"() : () -> ()
    %24 = arith.truncf %23 : vector<8x16x16xf32> to vector<8x16x16xbf16>
    %c0_9 = arith.constant 0 : index
    %c0_10 = arith.constant 0 : index
    %25 = vector.load %arg3[%c0_9, %c0_10] : memref<32x32xbf16, #tpu.memory_space<vmem>>, vector<16x32xbf16>
    "tpu.trace_start"() <{level = 10 : i32, message = "gnd,dc->gnc"}> : () -> ()
    %cst_11 = arith.constant dense<0.000000e+00> : vector<8x16x32xf32>
    %26 = tpu.matmul %24, %25, %cst_11 {dimension_numbers = #tpu.dot_dimension_numbers<[2], [0], [0, 1], [1], [0, 0, 0, 1, 1, 1], [], []>} : vector<8x16x16xbf16>, vector<16x32xbf16>, vector<8x16x32xf32> -> vector<8x16x32xf32>
    "tpu.trace_stop"() : () -> ()
    %27 = arith.addf %2, %26 : vector<8x16x32xf32>
    %28 = vector.extract_strided_slice %0 {offsets = [0, 0, 16], sizes = [8, 16, 16], strides = [1, 1, 1]} : vector<8x16x96xbf16> to vector<8x16x16xbf16>
    %29 = vector.extract_strided_slice %0 {offsets = [0, 0, 48], sizes = [8, 16, 16], strides = [1, 1, 1]} : vector<8x16x96xbf16> to vector<8x16x16xbf16>
    %30 = vector.extract_strided_slice %0 {offsets = [0, 0, 80], sizes = [8, 16, 16], strides = [1, 1, 1]} : vector<8x16x96xbf16> to vector<8x16x16xbf16>
    "tpu.trace_start"() <{level = 10 : i32, message = "gnd,gmd->gnm"}> : () -> ()
    %cst_12 = arith.constant dense<0.000000e+00> : vector<8x16x16xf32>
    %31 = tpu.matmul %28, %29, %cst_12 {dimension_numbers = #tpu.dot_dimension_numbers<[2], [2], [1], [1], [0, 0, 0, 1, 1, 1], [0], [0]>} : vector<8x16x16xbf16>, vector<8x16x16xbf16>, vector<8x16x16xf32> -> vector<8x16x16xf32>
    "tpu.trace_stop"() : () -> ()
    %32 = vector.extract_strided_slice %1 {offsets = [1, 0, 0], sizes = [1, 16, 16], strides = [1, 1, 1]} : vector<2x16x16xf32> to vector<1x16x16xf32>
    %33 = vector.shape_cast %32 : vector<1x16x16xf32> to vector<16x16xf32>
    %34 = vector.shape_cast %33 : vector<16x16xf32> to vector<1x16x16xf32>
    %35 = vector.broadcast %34 : vector<1x16x16xf32> to vector<8x16x16xf32>
    %36 = arith.addf %31, %35 : vector<8x16x16xf32>
    %cst_13 = arith.constant dense<0xFF800000> : vector<8x16xf32>
    %37 = vector.multi_reduction <maximumf>, %36, %cst_13 [2] : vector<8x16x16xf32> to vector<8x16xf32>
    %38 = vector.shape_cast %37 : vector<8x16xf32> to vector<8x16x1xf32>
    %39 = vector.broadcast %38 : vector<8x16x1xf32> to vector<8x16x16xf32>
    %40 = arith.subf %36, %39 : vector<8x16x16xf32>
    %41 = math.exp %40 : vector<8x16x16xf32>
    %cst_14 = arith.constant dense<0.000000e+00> : vector<8x16xf32>
    %42 = vector.multi_reduction <add>, %41, %cst_14 [2] : vector<8x16x16xf32> to vector<8x16xf32>
    %43 = vector.shape_cast %42 : vector<8x16xf32> to vector<8x16x1xf32>
    %44 = tpu.reciprocal %43 {approx = true} : vector<8x16x1xf32> -> vector<8x16x1xf32>
    %45 = vector.broadcast %44 : vector<8x16x1xf32> to vector<8x16x16xf32>
    %46 = arith.mulf %41, %45 : vector<8x16x16xf32>
    %47 = arith.truncf %46 : vector<8x16x16xf32> to vector<8x16x16xbf16>
    "tpu.trace_start"() <{level = 10 : i32, message = "gnm,gmd->gnd"}> : () -> ()
    %cst_15 = arith.constant dense<0.000000e+00> : vector<8x16x16xf32>
    %48 = tpu.matmul %47, %30, %cst_15 {dimension_numbers = #tpu.dot_dimension_numbers<[2], [1], [1], [2], [0, 0, 0, 1, 1, 2], [0], [0]>} : vector<8x16x16xbf16>, vector<8x16x16xbf16>, vector<8x16x16xf32> -> vector<8x16x16xf32>
    "tpu.trace_stop"() : () -> ()
    %49 = arith.truncf %48 : vector<8x16x16xf32> to vector<8x16x16xbf16>
    %c16 = arith.constant 16 : index
    %c0_16 = arith.constant 0 : index
    %50 = vector.load %arg3[%c16, %c0_16] : memref<32x32xbf16, #tpu.memory_space<vmem>>, vector<16x32xbf16>
    "tpu.trace_start"() <{level = 10 : i32, message = "gnd,dc->gnc"}> : () -> ()
    %cst_17 = arith.constant dense<0.000000e+00> : vector<8x16x32xf32>
    %51 = tpu.matmul %49, %50, %cst_17 {dimension_numbers = #tpu.dot_dimension_numbers<[2], [0], [0, 1], [1], [0, 0, 0, 1, 1, 1], [], []>} : vector<8x16x16xbf16>, vector<16x32xbf16>, vector<8x16x32xf32> -> vector<8x16x32xf32>
    "tpu.trace_stop"() : () -> ()
    %52 = arith.addf %27, %51 : vector<8x16x32xf32>
    %c0_18 = arith.constant 0 : index
    %c0_19 = arith.constant 0 : index
    %53 = vector.load %arg4[%c0_18, %c0_19] : memref<1x32xf32, #tpu.memory_space<vmem>>, vector<1x32xf32>
    %54 = vector.shape_cast %53 : vector<1x32xf32> to vector<1x1x32xf32>
    %55 = vector.broadcast %54 : vector<1x1x32xf32> to vector<8x16x32xf32>
    %56 = arith.addf %52, %55 : vector<8x16x32xf32>
    %c0_20 = arith.constant 0 : index
    %c0_21 = arith.constant 0 : index
    %c0_22 = arith.constant 0 : index
    %57 = vector.load %arg5[%c0_20, %c0_21, %c0_22] : memref<8x16x32xf32, #tpu.memory_space<vmem>>, vector<8x16x32xf32>
    tpu.vector_store %arg5[%c0_20, %c0_21, %c0_22], %56 {strides = array<i32>} : memref<8x16x32xf32, #tpu.memory_space<vmem>>, vector<8x16x32xf32>,
    return
  }
  func.func @transform_0(%arg0: i32) -> (i32, i32, i32) {
    %c0_i32 = arith.constant 0 : i32
    %c0_i32_0 = arith.constant 0 : i32
    %c0_i32_1 = arith.constant 0 : i32
    return %arg0, %c0_i32, %c0_i32_0 : i32, i32, i32
  }
  func.func @transform_1(%arg0: i32) -> (i32, i32, i32) {
    %c0_i32 = arith.constant 0 : i32
    %c0_i32_0 = arith.constant 0 : i32
    %c0_i32_1 = arith.constant 0 : i32
    %c0_i32_2 = arith.constant 0 : i32
    return %c0_i32, %c0_i32_0, %c0_i32_1 : i32, i32, i32
  }
  func.func @transform_2(%arg0: i32) -> (i32, i32) {
    %c0_i32 = arith.constant 0 : i32
    %c0_i32_0 = arith.constant 0 : i32
    %c0_i32_1 = arith.constant 0 : i32
    return %c0_i32, %c0_i32_0 : i32, i32
  }
  func.func @transform_3(%arg0: i32) -> (i32, i32) {
    %c0_i32 = arith.constant 0 : i32
    %c0_i32_0 = arith.constant 0 : i32
    %c0_i32_1 = arith.constant 0 : i32
    return %c0_i32, %c0_i32_0 : i32, i32
  }
  func.func @transform_4(%arg0: i32) -> (i32, i32, i32) {
    %c0_i32 = arith.constant 0 : i32
    %c0_i32_0 = arith.constant 0 : i32
    %c0_i32_1 = arith.constant 0 : i32
    return %arg0, %c0_i32, %c0_i32_0 : i32, i32, i32
  }
}

module attributes {stable_mosaic.version = 11 : i64} {
  func.func @_mlp_kernel(%arg0: i32, %arg1: memref<128x32xf32, #tpu.memory_space<vmem>>, %arg2: memref<1x32xf32, #tpu.memory_space<vmem>>, %arg3: memref<1x32xf32, #tpu.memory_space<vmem>>, %arg4: memref<32x128xbf16, #tpu.memory_space<vmem>>, %arg5: memref<1x128xf32, #tpu.memory_space<vmem>>, %arg6: memref<128x32xbf16, #tpu.memory_space<vmem>>, %arg7: memref<1x32xf32, #tpu.memory_space<vmem>>, %arg8: memref<128x32xf32, #tpu.memory_space<vmem>>) attributes {dimension_semantics = [#tpu.dimension_semantics<parallel>], iteration_bounds = array<i64: 1>, scalar_prefetch = 0 : i64, scratch_operands = 0 : i64, tpu.core_type = #tpu.core_type<tc>, window_params = [{transform_indices = @transform_0, window_bounds = array<i64: 128, 32>}, {pipeline_mode = #tpu.pipeline_mode<synchronous>, transform_indices = @transform_1, window_bounds = array<i64: 1, 32>}, {pipeline_mode = #tpu.pipeline_mode<synchronous>, transform_indices = @transform_2, window_bounds = array<i64: 1, 32>}, {pipeline_mode = #tpu.pipeline_mode<synchronous>, transform_indices = @transform_3, window_bounds = array<i64: 32, 128>}, {pipeline_mode = #tpu.pipeline_mode<synchronous>, transform_indices = @transform_4, window_bounds = array<i64: 1, 128>}, {pipeline_mode = #tpu.pipeline_mode<synchronous>, transform_indices = @transform_5, window_bounds = array<i64: 128, 32>}, {pipeline_mode = #tpu.pipeline_mode<synchronous>, transform_indices = @transform_6, window_bounds = array<i64: 1, 32>}, {transform_indices = @transform_7, window_bounds = array<i64: 128, 32>}]} {
    %c0 = arith.constant 0 : index
    %c0_0 = arith.constant 0 : index
    %0 = vector.load %arg1[%c0, %c0_0] : memref<128x32xf32, #tpu.memory_space<vmem>>, vector<128x32xf32>
    %cst = arith.constant dense<0.000000e+00> : vector<128xf32>
    %1 = vector.multi_reduction <add>, %0, %cst [1] : vector<128x32xf32> to vector<128xf32>
    %2 = vector.shape_cast %1 : vector<128xf32> to vector<128x1xf32>
    %cst_1 = arith.constant 3.200000e+01 : f32
    %3 = vector.broadcast %cst_1 : f32 to vector<128x1xf32>
    %4 = arith.divf %2, %3 : vector<128x1xf32>
    %5 = vector.broadcast %4 : vector<128x1xf32> to vector<128x32xf32>
    %6 = arith.subf %0, %5 : vector<128x32xf32>
    %7 = arith.mulf %6, %6 : vector<128x32xf32>
    %cst_2 = arith.constant dense<0.000000e+00> : vector<128xf32>
    %8 = vector.multi_reduction <add>, %7, %cst_2 [1] : vector<128x32xf32> to vector<128xf32>
    %9 = vector.shape_cast %8 : vector<128xf32> to vector<128x1xf32>
    %cst_3 = arith.constant 3.200000e+01 : f32
    %10 = vector.broadcast %cst_3 : f32 to vector<128x1xf32>
    %11 = arith.divf %9, %10 : vector<128x1xf32>
    %12 = vector.broadcast %4 : vector<128x1xf32> to vector<128x32xf32>
    %13 = arith.subf %0, %12 : vector<128x32xf32>
    %cst_4 = arith.constant 9.99999974E-6 : f32
    %14 = vector.broadcast %cst_4 : f32 to vector<128x1xf32>
    %15 = arith.addf %11, %14 : vector<128x1xf32>
    %16 = math.rsqrt %15 : vector<128x1xf32>
    %17 = vector.broadcast %16 : vector<128x1xf32> to vector<128x32xf32>
    %18 = arith.mulf %13, %17 : vector<128x32xf32>
    %c0_5 = arith.constant 0 : index
    %c0_6 = arith.constant 0 : index
    %19 = vector.load %arg2[%c0_5, %c0_6] : memref<1x32xf32, #tpu.memory_space<vmem>>, vector<1x32xf32>
    %20 = vector.broadcast %19 : vector<1x32xf32> to vector<128x32xf32>
    %21 = arith.mulf %18, %20 : vector<128x32xf32>
    %c0_7 = arith.constant 0 : index
    %c0_8 = arith.constant 0 : index
    %22 = vector.load %arg3[%c0_7, %c0_8] : memref<1x32xf32, #tpu.memory_space<vmem>>, vector<1x32xf32>
    %23 = vector.broadcast %22 : vector<1x32xf32> to vector<128x32xf32>
    %24 = arith.addf %21, %23 : vector<128x32xf32>
    %25 = arith.truncf %24 : vector<128x32xf32> to vector<128x32xbf16>
    %c0_9 = arith.constant 0 : index
    %c0_10 = arith.constant 0 : index
    %26 = vector.load %arg4[%c0_9, %c0_10] : memref<32x128xbf16, #tpu.memory_space<vmem>>, vector<32x128xbf16>
    %cst_11 = arith.constant dense<0.000000e+00> : vector<128x128xf32>
    %27 = tpu.matmul %25, %26, %cst_11 {dimension_numbers = #tpu.dot_dimension_numbers<[1], [0], [0], [1], [0, 0, 1, 1], [], []>} : vector<128x32xbf16>, vector<32x128xbf16>, vector<128x128xf32> -> vector<128x128xf32>
    %c0_12 = arith.constant 0 : index
    %c0_13 = arith.constant 0 : index
    %28 = vector.load %arg5[%c0_12, %c0_13] : memref<1x128xf32, #tpu.memory_space<vmem>>, vector<1x128xf32>
    %29 = vector.broadcast %28 : vector<1x128xf32> to vector<128x128xf32>
    %30 = arith.addf %27, %29 : vector<128x128xf32>
    %31 = arith.mulf %30, %30 : vector<128x128xf32>
    %32 = arith.mulf %30, %31 : vector<128x128xf32>
    %cst_14 = arith.constant 4.471500e-02 : f32
    %33 = vector.broadcast %cst_14 : f32 to vector<128x128xf32>
    %34 = arith.mulf %33, %32 : vector<128x128xf32>
    %35 = arith.addf %30, %34 : vector<128x128xf32>
    %cst_15 = arith.constant 0.797884583 : f32
    %36 = vector.broadcast %cst_15 : f32 to vector<128x128xf32>
    %37 = arith.mulf %36, %35 : vector<128x128xf32>
    %38 = math.tanh %37 : vector<128x128xf32>
    %cst_16 = arith.constant 1.000000e+00 : f32
    %39 = vector.broadcast %cst_16 : f32 to vector<128x128xf32>
    %40 = arith.addf %39, %38 : vector<128x128xf32>
    %cst_17 = arith.constant 5.000000e-01 : f32
    %41 = vector.broadcast %cst_17 : f32 to vector<128x128xf32>
    %42 = arith.mulf %41, %40 : vector<128x128xf32>
    %43 = arith.mulf %30, %42 : vector<128x128xf32>
    %44 = arith.truncf %43 : vector<128x128xf32> to vector<128x128xbf16>
    %c0_18 = arith.constant 0 : index
    %c0_19 = arith.constant 0 : index
    %45 = vector.load %arg6[%c0_18, %c0_19] : memref<128x32xbf16, #tpu.memory_space<vmem>>, vector<128x32xbf16>
    %cst_20 = arith.constant dense<0.000000e+00> : vector<128x32xf32>
    %46 = tpu.matmul %44, %45, %cst_20 {dimension_numbers = #tpu.dot_dimension_numbers<[1], [0], [0], [1], [0, 0, 1, 1], [], []>} : vector<128x128xbf16>, vector<128x32xbf16>, vector<128x32xf32> -> vector<128x32xf32>
    %c0_21 = arith.constant 0 : index
    %c0_22 = arith.constant 0 : index
    %47 = vector.load %arg7[%c0_21, %c0_22] : memref<1x32xf32, #tpu.memory_space<vmem>>, vector<1x32xf32>
    %48 = vector.broadcast %47 : vector<1x32xf32> to vector<128x32xf32>
    %49 = arith.addf %46, %48 : vector<128x32xf32>
    %50 = arith.addf %49, %0 : vector<128x32xf32>
    %c0_23 = arith.constant 0 : index
    %c0_24 = arith.constant 0 : index
    %51 = vector.load %arg8[%c0_23, %c0_24] : memref<128x32xf32, #tpu.memory_space<vmem>>, vector<128x32xf32>
    tpu.vector_store %arg8[%c0_23, %c0_24], %50 {strides = array<i32>} : memref<128x32xf32, #tpu.memory_space<vmem>>, vector<128x32xf32>,
    return
  }
  func.func @transform_0(%arg0: i32) -> (i32, i32) {
    %c0_i32 = arith.constant 0 : i32
    %c0_i32_0 = arith.constant 0 : i32
    return %arg0, %c0_i32 : i32, i32
  }
  func.func @transform_1(%arg0: i32) -> (i32, i32) {
    %c0_i32 = arith.constant 0 : i32
    %c0_i32_0 = arith.constant 0 : i32
    %c0_i32_1 = arith.constant 0 : i32
    return %c0_i32, %c0_i32_0 : i32, i32
  }
  func.func @transform_2(%arg0: i32) -> (i32, i32) {
    %c0_i32 = arith.constant 0 : i32
    %c0_i32_0 = arith.constant 0 : i32
    %c0_i32_1 = arith.constant 0 : i32
    return %c0_i32, %c0_i32_0 : i32, i32
  }
  func.func @transform_3(%arg0: i32) -> (i32, i32) {
    %c0_i32 = arith.constant 0 : i32
    %c0_i32_0 = arith.constant 0 : i32
    %c0_i32_1 = arith.constant 0 : i32
    return %c0_i32, %c0_i32_0 : i32, i32
  }
  func.func @transform_4(%arg0: i32) -> (i32, i32) {
    %c0_i32 = arith.constant 0 : i32
    %c0_i32_0 = arith.constant 0 : i32
    %c0_i32_1 = arith.constant 0 : i32
    return %c0_i32, %c0_i32_0 : i32, i32
  }
  func.func @transform_5(%arg0: i32) -> (i32, i32) {
    %c0_i32 = arith.constant 0 : i32
    %c0_i32_0 = arith.constant 0 : i32
    %c0_i32_1 = arith.constant 0 : i32
    return %c0_i32, %c0_i32_0 : i32, i32
  }
  func.func @transform_6(%arg0: i32) -> (i32, i32) {
    %c0_i32 = arith.constant 0 : i32
    %c0_i32_0 = arith.constant 0 : i32
    %c0_i32_1 = arith.constant 0 : i32
    return %c0_i32, %c0_i32_0 : i32, i32
  }
  func.func @transform_7(%arg0: i32) -> (i32, i32) {
    %c0_i32 = arith.constant 0 : i32
    %c0_i32_0 = arith.constant 0 : i32
    return %arg0, %c0_i32 : i32, i32
  }
}

module attributes {stable_mosaic.version = 11 : i64} {
  func.func @_attn_kernel(%arg0: i32, %arg1: memref<4x16x96xbf16, #tpu.memory_space<vmem>>, %arg2: memref<2x16x16xf32, #tpu.memory_space<vmem>>, %arg3: memref<4x16x16xf32, #tpu.memory_space<vmem>>, %arg4: memref<32x32xbf16, #tpu.memory_space<vmem>>, %arg5: memref<1x32xf32, #tpu.memory_space<vmem>>, %arg6: memref<4x16x32xf32, #tpu.memory_space<vmem>>) attributes {dimension_semantics = [#tpu.dimension_semantics<parallel>], iteration_bounds = array<i64: 2>, scalar_prefetch = 0 : i64, scratch_operands = 0 : i64, tpu.core_type = #tpu.core_type<tc>, window_params = [{transform_indices = @transform_0, window_bounds = array<i64: 4, 16, 96>}, {pipeline_mode = #tpu.pipeline_mode<synchronous>, transform_indices = @transform_1, window_bounds = array<i64: 2, 16, 16>}, {transform_indices = @transform_2, window_bounds = array<i64: 4, 16, 16>}, {pipeline_mode = #tpu.pipeline_mode<synchronous>, transform_indices = @transform_3, window_bounds = array<i64: 32, 32>}, {pipeline_mode = #tpu.pipeline_mode<synchronous>, transform_indices = @transform_4, window_bounds = array<i64: 1, 32>}, {transform_indices = @transform_5, window_bounds = array<i64: 4, 16, 32>}]} {
    %c0 = arith.constant 0 : index
    %c0_0 = arith.constant 0 : index
    %c0_1 = arith.constant 0 : index
    %0 = vector.load %arg1[%c0, %c0_0, %c0_1] : memref<4x16x96xbf16, #tpu.memory_space<vmem>>, vector<4x16x96xbf16>
    %c0_2 = arith.constant 0 : index
    %c0_3 = arith.constant 0 : index
    %c0_4 = arith.constant 0 : index
    %1 = vector.load %arg2[%c0_2, %c0_3, %c0_4] : memref<2x16x16xf32, #tpu.memory_space<vmem>>, vector<2x16x16xf32>
    %cst = arith.constant 0.000000e+00 : f32
    %2 = vector.broadcast %cst : f32 to vector<4x16x32xf32>
    %3 = vector.extract_strided_slice %0 {offsets = [0, 0, 0], sizes = [4, 16, 16], strides = [1, 1, 1]} : vector<4x16x96xbf16> to vector<4x16x16xbf16>
    %4 = vector.extract_strided_slice %0 {offsets = [0, 0, 32], sizes = [4, 16, 16], strides = [1, 1, 1]} : vector<4x16x96xbf16> to vector<4x16x16xbf16>
    %5 = vector.extract_strided_slice %0 {offsets = [0, 0, 64], sizes = [4, 16, 16], strides = [1, 1, 1]} : vector<4x16x96xbf16> to vector<4x16x16xbf16>
    "tpu.trace_start"() <{level = 10 : i32, message = "gnd,gmd->gnm"}> : () -> ()
    %cst_5 = arith.constant dense<0.000000e+00> : vector<4x16x16xf32>
    %6 = tpu.matmul %3, %4, %cst_5 {dimension_numbers = #tpu.dot_dimension_numbers<[2], [2], [1], [1], [0, 0, 0, 1, 1, 1], [0], [0]>} : vector<4x16x16xbf16>, vector<4x16x16xbf16>, vector<4x16x16xf32> -> vector<4x16x16xf32>
    "tpu.trace_stop"() : () -> ()
    %7 = vector.extract_strided_slice %1 {offsets = [0, 0, 0], sizes = [1, 16, 16], strides = [1, 1, 1]} : vector<2x16x16xf32> to vector<1x16x16xf32>
    %8 = vector.shape_cast %7 : vector<1x16x16xf32> to vector<16x16xf32>
    %9 = vector.shape_cast %8 : vector<16x16xf32> to vector<1x16x16xf32>
    %10 = vector.broadcast %9 : vector<1x16x16xf32> to vector<4x16x16xf32>
    %11 = arith.addf %6, %10 : vector<4x16x16xf32>
    %c0_6 = arith.constant 0 : index
    %c0_7 = arith.constant 0 : index
    %c0_8 = arith.constant 0 : index
    %12 = vector.load %arg3[%c0_6, %c0_7, %c0_8] : memref<4x16x16xf32, #tpu.memory_space<vmem>>, vector<4x16x16xf32>
    %13 = arith.addf %11, %12 : vector<4x16x16xf32>
    %cst_9 = arith.constant dense<0xFF800000> : vector<4x16xf32>
    %14 = vector.multi_reduction <maximumf>, %13, %cst_9 [2] : vector<4x16x16xf32> to vector<4x16xf32>
    %15 = vector.shape_cast %14 : vector<4x16xf32> to vector<4x16x1xf32>
    %16 = vector.broadcast %15 : vector<4x16x1xf32> to vector<4x16x16xf32>
    %17 = arith.subf %13, %16 : vector<4x16x16xf32>
    %18 = math.exp %17 : vector<4x16x16xf32>
    %cst_10 = arith.constant dense<0.000000e+00> : vector<4x16xf32>
    %19 = vector.multi_reduction <add>, %18, %cst_10 [2] : vector<4x16x16xf32> to vector<4x16xf32>
    %20 = vector.shape_cast %19 : vector<4x16xf32> to vector<4x16x1xf32>
    %21 = tpu.reciprocal %20 {approx = true} : vector<4x16x1xf32> -> vector<4x16x1xf32>
    %22 = vector.broadcast %21 : vector<4x16x1xf32> to vector<4x16x16xf32>
    %23 = arith.mulf %18, %22 : vector<4x16x16xf32>
    %24 = arith.truncf %23 : vector<4x16x16xf32> to vector<4x16x16xbf16>
    "tpu.trace_start"() <{level = 10 : i32, message = "gnm,gmd->gnd"}> : () -> ()
    %cst_11 = arith.constant dense<0.000000e+00> : vector<4x16x16xf32>
    %25 = tpu.matmul %24, %5, %cst_11 {dimension_numbers = #tpu.dot_dimension_numbers<[2], [1], [1], [2], [0, 0, 0, 1, 1, 2], [0], [0]>} : vector<4x16x16xbf16>, vector<4x16x16xbf16>, vector<4x16x16xf32> -> vector<4x16x16xf32>
    "tpu.trace_stop"() : () -> ()
    %26 = arith.truncf %25 : vector<4x16x16xf32> to vector<4x16x16xbf16>
    %c0_12 = arith.constant 0 : index
    %c0_13 = arith.constant 0 : index
    %27 = vector.load %arg4[%c0_12, %c0_13] : memref<32x32xbf16, #tpu.memory_space<vmem>>, vector<16x32xbf16>
    "tpu.trace_start"() <{level = 10 : i32, message = "gnd,dc->gnc"}> : () -> ()
    %cst_14 = arith.constant dense<0.000000e+00> : vector<4x16x32xf32>
    %28 = tpu.matmul %26, %27, %cst_14 {dimension_numbers = #tpu.dot_dimension_numbers<[2], [0], [0, 1], [1], [0, 0, 0, 1, 1, 1], [], []>} : vector<4x16x16xbf16>, vector<16x32xbf16>, vector<4x16x32xf32> -> vector<4x16x32xf32>
    "tpu.trace_stop"() : () -> ()
    %29 = arith.addf %2, %28 : vector<4x16x32xf32>
    %30 = vector.extract_strided_slice %0 {offsets = [0, 0, 16], sizes = [4, 16, 16], strides = [1, 1, 1]} : vector<4x16x96xbf16> to vector<4x16x16xbf16>
    %31 = vector.extract_strided_slice %0 {offsets = [0, 0, 48], sizes = [4, 16, 16], strides = [1, 1, 1]} : vector<4x16x96xbf16> to vector<4x16x16xbf16>
    %32 = vector.extract_strided_slice %0 {offsets = [0, 0, 80], sizes = [4, 16, 16], strides = [1, 1, 1]} : vector<4x16x96xbf16> to vector<4x16x16xbf16>
    "tpu.trace_start"() <{level = 10 : i32, message = "gnd,gmd->gnm"}> : () -> ()
    %cst_15 = arith.constant dense<0.000000e+00> : vector<4x16x16xf32>
    %33 = tpu.matmul %30, %31, %cst_15 {dimension_numbers = #tpu.dot_dimension_numbers<[2], [2], [1], [1], [0, 0, 0, 1, 1, 1], [0], [0]>} : vector<4x16x16xbf16>, vector<4x16x16xbf16>, vector<4x16x16xf32> -> vector<4x16x16xf32>
    "tpu.trace_stop"() : () -> ()
    %34 = vector.extract_strided_slice %1 {offsets = [1, 0, 0], sizes = [1, 16, 16], strides = [1, 1, 1]} : vector<2x16x16xf32> to vector<1x16x16xf32>
    %35 = vector.shape_cast %34 : vector<1x16x16xf32> to vector<16x16xf32>
    %36 = vector.shape_cast %35 : vector<16x16xf32> to vector<1x16x16xf32>
    %37 = vector.broadcast %36 : vector<1x16x16xf32> to vector<4x16x16xf32>
    %38 = arith.addf %33, %37 : vector<4x16x16xf32>
    %c0_16 = arith.constant 0 : index
    %c0_17 = arith.constant 0 : index
    %c0_18 = arith.constant 0 : index
    %39 = vector.load %arg3[%c0_16, %c0_17, %c0_18] : memref<4x16x16xf32, #tpu.memory_space<vmem>>, vector<4x16x16xf32>
    %40 = arith.addf %38, %39 : vector<4x16x16xf32>
    %cst_19 = arith.constant dense<0xFF800000> : vector<4x16xf32>
    %41 = vector.multi_reduction <maximumf>, %40, %cst_19 [2] : vector<4x16x16xf32> to vector<4x16xf32>
    %42 = vector.shape_cast %41 : vector<4x16xf32> to vector<4x16x1xf32>
    %43 = vector.broadcast %42 : vector<4x16x1xf32> to vector<4x16x16xf32>
    %44 = arith.subf %40, %43 : vector<4x16x16xf32>
    %45 = math.exp %44 : vector<4x16x16xf32>
    %cst_20 = arith.constant dense<0.000000e+00> : vector<4x16xf32>
    %46 = vector.multi_reduction <add>, %45, %cst_20 [2] : vector<4x16x16xf32> to vector<4x16xf32>
    %47 = vector.shape_cast %46 : vector<4x16xf32> to vector<4x16x1xf32>
    %48 = tpu.reciprocal %47 {approx = true} : vector<4x16x1xf32> -> vector<4x16x1xf32>
    %49 = vector.broadcast %48 : vector<4x16x1xf32> to vector<4x16x16xf32>
    %50 = arith.mulf %45, %49 : vector<4x16x16xf32>
    %51 = arith.truncf %50 : vector<4x16x16xf32> to vector<4x16x16xbf16>
    "tpu.trace_start"() <{level = 10 : i32, message = "gnm,gmd->gnd"}> : () -> ()
    %cst_21 = arith.constant dense<0.000000e+00> : vector<4x16x16xf32>
    %52 = tpu.matmul %51, %32, %cst_21 {dimension_numbers = #tpu.dot_dimension_numbers<[2], [1], [1], [2], [0, 0, 0, 1, 1, 2], [0], [0]>} : vector<4x16x16xbf16>, vector<4x16x16xbf16>, vector<4x16x16xf32> -> vector<4x16x16xf32>
    "tpu.trace_stop"() : () -> ()
    %53 = arith.truncf %52 : vector<4x16x16xf32> to vector<4x16x16xbf16>
    %c16 = arith.constant 16 : index
    %c0_22 = arith.constant 0 : index
    %54 = vector.load %arg4[%c16, %c0_22] : memref<32x32xbf16, #tpu.memory_space<vmem>>, vector<16x32xbf16>
    "tpu.trace_start"() <{level = 10 : i32, message = "gnd,dc->gnc"}> : () -> ()
    %cst_23 = arith.constant dense<0.000000e+00> : vector<4x16x32xf32>
    %55 = tpu.matmul %53, %54, %cst_23 {dimension_numbers = #tpu.dot_dimension_numbers<[2], [0], [0, 1], [1], [0, 0, 0, 1, 1, 1], [], []>} : vector<4x16x16xbf16>, vector<16x32xbf16>, vector<4x16x32xf32> -> vector<4x16x32xf32>
    "tpu.trace_stop"() : () -> ()
    %56 = arith.addf %29, %55 : vector<4x16x32xf32>
    %c0_24 = arith.constant 0 : index
    %c0_25 = arith.constant 0 : index
    %57 = vector.load %arg5[%c0_24, %c0_25] : memref<1x32xf32, #tpu.memory_space<vmem>>, vector<1x32xf32>
    %58 = vector.shape_cast %57 : vector<1x32xf32> to vector<1x1x32xf32>
    %59 = vector.broadcast %58 : vector<1x1x32xf32> to vector<4x16x32xf32>
    %60 = arith.addf %56, %59 : vector<4x16x32xf32>
    %c0_26 = arith.constant 0 : index
    %c0_27 = arith.constant 0 : index
    %c0_28 = arith.constant 0 : index
    %61 = vector.load %arg6[%c0_26, %c0_27, %c0_28] : memref<4x16x32xf32, #tpu.memory_space<vmem>>, vector<4x16x32xf32>
    tpu.vector_store %arg6[%c0_26, %c0_27, %c0_28], %60 {strides = array<i32>} : memref<4x16x32xf32, #tpu.memory_space<vmem>>, vector<4x16x32xf32>,
    return
  }
  func.func @transform_0(%arg0: i32) -> (i32, i32, i32) {
    %c0_i32 = arith.constant 0 : i32
    %c0_i32_0 = arith.constant 0 : i32
    %c0_i32_1 = arith.constant 0 : i32
    return %arg0, %c0_i32, %c0_i32_0 : i32, i32, i32
  }
  func.func @transform_1(%arg0: i32) -> (i32, i32, i32) {
    %c0_i32 = arith.constant 0 : i32
    %c0_i32_0 = arith.constant 0 : i32
    %c0_i32_1 = arith.constant 0 : i32
    %c0_i32_2 = arith.constant 0 : i32
    return %c0_i32, %c0_i32_0, %c0_i32_1 : i32, i32, i32
  }
  func.func @transform_2(%arg0: i32) -> (i32, i32, i32) {
    %c1_i32 = arith.constant 1 : i32
    %c0_i32 = arith.constant 0 : i32
    %0 = arith.cmpi eq, %c1_i32, %c0_i32 : i32
    %c1_i32_0 = arith.constant 1 : i32
    %1 = arith.select %0, %c1_i32_0, %c1_i32 : i32
    %2 = arith.remsi %arg0, %1 : i32
    %c0_i32_1 = arith.constant 0 : i32
    %3 = arith.cmpi ne, %2, %c0_i32_1 : i32
    %c0_i32_2 = arith.constant 0 : i32
    %4 = arith.cmpi slt, %2, %c0_i32_2 : i32
    %c0_i32_3 = arith.constant 0 : i32
    %5 = arith.cmpi slt, %1, %c0_i32_3 : i32
    %6 = arith.xori %4, %5 : i1
    %7 = arith.andi %6, %3 : i1
    %8 = arith.addi %2, %1 : i32
    %9 = arith.select %7, %8, %2 : i32
    %c0_i32_4 = arith.constant 0 : i32
    %c0_i32_5 = arith.constant 0 : i32
    %c0_i32_6 = arith.constant 0 : i32
    return %9, %c0_i32_4, %c0_i32_5 : i32, i32, i32
  }
  func.func @transform_3(%arg0: i32) -> (i32, i32) {
    %c0_i32 = arith.constant 0 : i32
    %c0_i32_0 = arith.constant 0 : i32
    %c0_i32_1 = arith.constant 0 : i32
    return %c0_i32, %c0_i32_0 : i32, i32
  }
  func.func @transform_4(%arg0: i32) -> (i32, i32) {
    %c0_i32 = arith.constant 0 : i32
    %c0_i32_0 = arith.constant 0 : i32
    %c0_i32_1 = arith.constant 0 : i32
    return %c0_i32, %c0_i32_0 : i32, i32
  }
  func.func @transform_5(%arg0: i32) -> (i32, i32, i32) {
    %c0_i32 = arith.constant 0 : i32
    %c0_i32_0 = arith.constant 0 : i32
    %c0_i32_1 = arith.constant 0 : i32
    return %arg0, %c0_i32, %c0_i32_0 : i32, i32, i32
  }
}

module attributes {stable_mosaic.version = 11 : i64} {
  func.func @_fused_mm_kernel(%arg0: i32, %arg1: memref<32x128xf32, #tpu.memory_space<vmem>>, %arg2: memref<1x128xf32, #tpu.memory_space<vmem>>, %arg3: memref<1x128xf32, #tpu.memory_space<vmem>>, %arg4: memref<128x64xbf16, #tpu.memory_space<vmem>>, %arg5: memref<1x64xf32, #tpu.memory_space<vmem>>, %arg6: memref<32x64xf32, #tpu.memory_space<vmem>>) attributes {dimension_semantics = [#tpu.dimension_semantics<parallel>], iteration_bounds = array<i64: 1>, scalar_prefetch = 0 : i64, scratch_operands = 0 : i64, tpu.core_type = #tpu.core_type<tc>, window_params = [{transform_indices = @transform_0, window_bounds = array<i64: 32, 128>}, {pipeline_mode = #tpu.pipeline_mode<synchronous>, transform_indices = @transform_1, window_bounds = array<i64: 1, 128>}, {pipeline_mode = #tpu.pipeline_mode<synchronous>, transform_indices = @transform_2, window_bounds = array<i64: 1, 128>}, {pipeline_mode = #tpu.pipeline_mode<synchronous>, transform_indices = @transform_3, window_bounds = array<i64: 128, 64>}, {pipeline_mode = #tpu.pipeline_mode<synchronous>, transform_indices = @transform_4, window_bounds = array<i64: 1, 64>}, {transform_indices = @transform_5, window_bounds = array<i64: 32, 64>}]} {
    %c0 = arith.constant 0 : index
    %c0_0 = arith.constant 0 : index
    %0 = vector.load %arg1[%c0, %c0_0] : memref<32x128xf32, #tpu.memory_space<vmem>>, vector<32x128xf32>
    %cst = arith.constant dense<0.000000e+00> : vector<32xf32>
    %1 = vector.multi_reduction <add>, %0, %cst [1] : vector<32x128xf32> to vector<32xf32>
    %2 = vector.shape_cast %1 : vector<32xf32> to vector<32x1xf32>
    %cst_1 = arith.constant 1.280000e+02 : f32
    %3 = vector.broadcast %cst_1 : f32 to vector<32x1xf32>
    %4 = arith.divf %2, %3 : vector<32x1xf32>
    %5 = vector.broadcast %4 : vector<32x1xf32> to vector<32x128xf32>
    %6 = arith.subf %0, %5 : vector<32x128xf32>
    %7 = arith.mulf %6, %6 : vector<32x128xf32>
    %cst_2 = arith.constant dense<0.000000e+00> : vector<32xf32>
    %8 = vector.multi_reduction <add>, %7, %cst_2 [1] : vector<32x128xf32> to vector<32xf32>
    %9 = vector.shape_cast %8 : vector<32xf32> to vector<32x1xf32>
    %cst_3 = arith.constant 1.280000e+02 : f32
    %10 = vector.broadcast %cst_3 : f32 to vector<32x1xf32>
    %11 = arith.divf %9, %10 : vector<32x1xf32>
    %12 = vector.broadcast %4 : vector<32x1xf32> to vector<32x128xf32>
    %13 = arith.subf %0, %12 : vector<32x128xf32>
    %cst_4 = arith.constant 9.99999974E-6 : f32
    %14 = vector.broadcast %cst_4 : f32 to vector<32x1xf32>
    %15 = arith.addf %11, %14 : vector<32x1xf32>
    %16 = math.rsqrt %15 : vector<32x1xf32>
    %17 = vector.broadcast %16 : vector<32x1xf32> to vector<32x128xf32>
    %18 = arith.mulf %13, %17 : vector<32x128xf32>
    %c0_5 = arith.constant 0 : index
    %c0_6 = arith.constant 0 : index
    %19 = vector.load %arg2[%c0_5, %c0_6] : memref<1x128xf32, #tpu.memory_space<vmem>>, vector<1x128xf32>
    %20 = vector.broadcast %19 : vector<1x128xf32> to vector<32x128xf32>
    %21 = arith.mulf %18, %20 : vector<32x128xf32>
    %c0_7 = arith.constant 0 : index
    %c0_8 = arith.constant 0 : index
    %22 = vector.load %arg3[%c0_7, %c0_8] : memref<1x128xf32, #tpu.memory_space<vmem>>, vector<1x128xf32>
    %23 = vector.broadcast %22 : vector<1x128xf32> to vector<32x128xf32>
    %24 = arith.addf %21, %23 : vector<32x128xf32>
    %25 = arith.truncf %24 : vector<32x128xf32> to vector<32x128xbf16>
    %c0_9 = arith.constant 0 : index
    %c0_10 = arith.constant 0 : index
    %26 = vector.load %arg4[%c0_9, %c0_10] : memref<128x64xbf16, #tpu.memory_space<vmem>>, vector<128x64xbf16>
    %cst_11 = arith.constant dense<0.000000e+00> : vector<32x64xf32>
    %27 = tpu.matmul %25, %26, %cst_11 {dimension_numbers = #tpu.dot_dimension_numbers<[1], [0], [0], [1], [0, 0, 1, 1], [], []>} : vector<32x128xbf16>, vector<128x64xbf16>, vector<32x64xf32> -> vector<32x64xf32>
    %c0_12 = arith.constant 0 : index
    %c0_13 = arith.constant 0 : index
    %28 = vector.load %arg5[%c0_12, %c0_13] : memref<1x64xf32, #tpu.memory_space<vmem>>, vector<1x64xf32>
    %29 = vector.broadcast %28 : vector<1x64xf32> to vector<32x64xf32>
    %30 = arith.addf %27, %29 : vector<32x64xf32>
    %c0_14 = arith.constant 0 : index
    %c0_15 = arith.constant 0 : index
    %31 = vector.load %arg6[%c0_14, %c0_15] : memref<32x64xf32, #tpu.memory_space<vmem>>, vector<32x64xf32>
    tpu.vector_store %arg6[%c0_14, %c0_15], %30 {strides = array<i32>} : memref<32x64xf32, #tpu.memory_space<vmem>>, vector<32x64xf32>,
    return
  }
  func.func @transform_0(%arg0: i32) -> (i32, i32) {
    %c0_i32 = arith.constant 0 : i32
    %c0_i32_0 = arith.constant 0 : i32
    return %arg0, %c0_i32 : i32, i32
  }
  func.func @transform_1(%arg0: i32) -> (i32, i32) {
    %c0_i32 = arith.constant 0 : i32
    %c0_i32_0 = arith.constant 0 : i32
    %c0_i32_1 = arith.constant 0 : i32
    return %c0_i32, %c0_i32_0 : i32, i32
  }
  func.func @transform_2(%arg0: i32) -> (i32, i32) {
    %c0_i32 = arith.constant 0 : i32
    %c0_i32_0 = arith.constant 0 : i32
    %c0_i32_1 = arith.constant 0 : i32
    return %c0_i32, %c0_i32_0 : i32, i32
  }
  func.func @transform_3(%arg0: i32) -> (i32, i32) {
    %c0_i32 = arith.constant 0 : i32
    %c0_i32_0 = arith.constant 0 : i32
    %c0_i32_1 = arith.constant 0 : i32
    return %c0_i32, %c0_i32_0 : i32, i32
  }
  func.func @transform_4(%arg0: i32) -> (i32, i32) {
    %c0_i32 = arith.constant 0 : i32
    %c0_i32_0 = arith.constant 0 : i32
    %c0_i32_1 = arith.constant 0 : i32
    return %c0_i32, %c0_i32_0 : i32, i32
  }
  func.func @transform_5(%arg0: i32) -> (i32, i32) {
    %c0_i32 = arith.constant 0 : i32
    %c0_i32_0 = arith.constant 0 : i32
    return %arg0, %c0_i32 : i32, i32
  }
}

module attributes {stable_mosaic.version = 11 : i64} {
  func.func @_attn_kernel(%arg0: i32, %arg1: memref<2x16x192xbf16, #tpu.memory_space<vmem>>, %arg2: memref<4x16x16xf32, #tpu.memory_space<vmem>>, %arg3: memref<64x64xbf16, #tpu.memory_space<vmem>>, %arg4: memref<1x64xf32, #tpu.memory_space<vmem>>, %arg5: memref<2x16x64xf32, #tpu.memory_space<vmem>>) attributes {dimension_semantics = [#tpu.dimension_semantics<parallel>], iteration_bounds = array<i64: 1>, scalar_prefetch = 0 : i64, scratch_operands = 0 : i64, tpu.core_type = #tpu.core_type<tc>, window_params = [{transform_indices = @transform_0, window_bounds = array<i64: 2, 16, 192>}, {pipeline_mode = #tpu.pipeline_mode<synchronous>, transform_indices = @transform_1, window_bounds = array<i64: 4, 16, 16>}, {pipeline_mode = #tpu.pipeline_mode<synchronous>, transform_indices = @transform_2, window_bounds = array<i64: 64, 64>}, {pipeline_mode = #tpu.pipeline_mode<synchronous>, transform_indices = @transform_3, window_bounds = array<i64: 1, 64>}, {transform_indices = @transform_4, window_bounds = array<i64: 2, 16, 64>}]} {
    %c0 = arith.constant 0 : index
    %c0_0 = arith.constant 0 : index
    %c0_1 = arith.constant 0 : index
    %0 = vector.load %arg1[%c0, %c0_0, %c0_1] : memref<2x16x192xbf16, #tpu.memory_space<vmem>>, vector<2x16x192xbf16>
    %c0_2 = arith.constant 0 : index
    %c0_3 = arith.constant 0 : index
    %c0_4 = arith.constant 0 : index
    %1 = vector.load %arg2[%c0_2, %c0_3, %c0_4] : memref<4x16x16xf32, #tpu.memory_space<vmem>>, vector<4x16x16xf32>
    %cst = arith.constant 0.000000e+00 : f32
    %2 = vector.broadcast %cst : f32 to vector<2x16x64xf32>
    %3 = vector.extract_strided_slice %0 {offsets = [0, 0, 0], sizes = [2, 16, 16], strides = [1, 1, 1]} : vector<2x16x192xbf16> to vector<2x16x16xbf16>
    %4 = vector.extract_strided_slice %0 {offsets = [0, 0, 64], sizes = [2, 16, 16], strides = [1, 1, 1]} : vector<2x16x192xbf16> to vector<2x16x16xbf16>
    %5 = vector.extract_strided_slice %0 {offsets = [0, 0, 128], sizes = [2, 16, 16], strides = [1, 1, 1]} : vector<2x16x192xbf16> to vector<2x16x16xbf16>
    "tpu.trace_start"() <{level = 10 : i32, message = "gnd,gmd->gnm"}> : () -> ()
    %cst_5 = arith.constant dense<0.000000e+00> : vector<2x16x16xf32>
    %6 = tpu.matmul %3, %4, %cst_5 {dimension_numbers = #tpu.dot_dimension_numbers<[2], [2], [1], [1], [0, 0, 0, 1, 1, 1], [0], [0]>} : vector<2x16x16xbf16>, vector<2x16x16xbf16>, vector<2x16x16xf32> -> vector<2x16x16xf32>
    "tpu.trace_stop"() : () -> ()
    %7 = vector.extract_strided_slice %1 {offsets = [0, 0, 0], sizes = [1, 16, 16], strides = [1, 1, 1]} : vector<4x16x16xf32> to vector<1x16x16xf32>
    %8 = vector.shape_cast %7 : vector<1x16x16xf32> to vector<16x16xf32>
    %9 = vector.shape_cast %8 : vector<16x16xf32> to vector<1x16x16xf32>
    %10 = vector.broadcast %9 : vector<1x16x16xf32> to vector<2x16x16xf32>
    %11 = arith.addf %6, %10 : vector<2x16x16xf32>
    %cst_6 = arith.constant dense<0xFF800000> : vector<2x16xf32>
    %12 = vector.multi_reduction <maximumf>, %11, %cst_6 [2] : vector<2x16x16xf32> to vector<2x16xf32>
    %13 = vector.shape_cast %12 : vector<2x16xf32> to vector<2x16x1xf32>
    %14 = vector.broadcast %13 : vector<2x16x1xf32> to vector<2x16x16xf32>
    %15 = arith.subf %11, %14 : vector<2x16x16xf32>
    %16 = math.exp %15 : vector<2x16x16xf32>
    %cst_7 = arith.constant dense<0.000000e+00> : vector<2x16xf32>
    %17 = vector.multi_reduction <add>, %16, %cst_7 [2] : vector<2x16x16xf32> to vector<2x16xf32>
    %18 = vector.shape_cast %17 : vector<2x16xf32> to vector<2x16x1xf32>
    %19 = tpu.reciprocal %18 {approx = true} : vector<2x16x1xf32> -> vector<2x16x1xf32>
    %20 = vector.broadcast %19 : vector<2x16x1xf32> to vector<2x16x16xf32>
    %21 = arith.mulf %16, %20 : vector<2x16x16xf32>
    %22 = arith.truncf %21 : vector<2x16x16xf32> to vector<2x16x16xbf16>
    "tpu.trace_start"() <{level = 10 : i32, message = "gnm,gmd->gnd"}> : () -> ()
    %cst_8 = arith.constant dense<0.000000e+00> : vector<2x16x16xf32>
    %23 = tpu.matmul %22, %5, %cst_8 {dimension_numbers = #tpu.dot_dimension_numbers<[2], [1], [1], [2], [0, 0, 0, 1, 1, 2], [0], [0]>} : vector<2x16x16xbf16>, vector<2x16x16xbf16>, vector<2x16x16xf32> -> vector<2x16x16xf32>
    "tpu.trace_stop"() : () -> ()
    %24 = arith.truncf %23 : vector<2x16x16xf32> to vector<2x16x16xbf16>
    %c0_9 = arith.constant 0 : index
    %c0_10 = arith.constant 0 : index
    %25 = vector.load %arg3[%c0_9, %c0_10] : memref<64x64xbf16, #tpu.memory_space<vmem>>, vector<16x64xbf16>
    "tpu.trace_start"() <{level = 10 : i32, message = "gnd,dc->gnc"}> : () -> ()
    %cst_11 = arith.constant dense<0.000000e+00> : vector<2x16x64xf32>
    %26 = tpu.matmul %24, %25, %cst_11 {dimension_numbers = #tpu.dot_dimension_numbers<[2], [0], [0, 1], [1], [0, 0, 0, 1, 1, 1], [], []>} : vector<2x16x16xbf16>, vector<16x64xbf16>, vector<2x16x64xf32> -> vector<2x16x64xf32>
    "tpu.trace_stop"() : () -> ()
    %27 = arith.addf %2, %26 : vector<2x16x64xf32>
    %28 = vector.extract_strided_slice %0 {offsets = [0, 0, 16], sizes = [2, 16, 16], strides = [1, 1, 1]} : vector<2x16x192xbf16> to vector<2x16x16xbf16>
    %29 = vector.extract_strided_slice %0 {offsets = [0, 0, 80], sizes = [2, 16, 16], strides = [1, 1, 1]} : vector<2x16x192xbf16> to vector<2x16x16xbf16>
    %30 = vector.extract_strided_slice %0 {offsets = [0, 0, 144], sizes = [2, 16, 16], strides = [1, 1, 1]} : vector<2x16x192xbf16> to vector<2x16x16xbf16>
    "tpu.trace_start"() <{level = 10 : i32, message = "gnd,gmd->gnm"}> : () -> ()
    %cst_12 = arith.constant dense<0.000000e+00> : vector<2x16x16xf32>
    %31 = tpu.matmul %28, %29, %cst_12 {dimension_numbers = #tpu.dot_dimension_numbers<[2], [2], [1], [1], [0, 0, 0, 1, 1, 1], [0], [0]>} : vector<2x16x16xbf16>, vector<2x16x16xbf16>, vector<2x16x16xf32> -> vector<2x16x16xf32>
    "tpu.trace_stop"() : () -> ()
    %32 = vector.extract_strided_slice %1 {offsets = [1, 0, 0], sizes = [1, 16, 16], strides = [1, 1, 1]} : vector<4x16x16xf32> to vector<1x16x16xf32>
    %33 = vector.shape_cast %32 : vector<1x16x16xf32> to vector<16x16xf32>
    %34 = vector.shape_cast %33 : vector<16x16xf32> to vector<1x16x16xf32>
    %35 = vector.broadcast %34 : vector<1x16x16xf32> to vector<2x16x16xf32>
    %36 = arith.addf %31, %35 : vector<2x16x16xf32>
    %cst_13 = arith.constant dense<0xFF800000> : vector<2x16xf32>
    %37 = vector.multi_reduction <maximumf>, %36, %cst_13 [2] : vector<2x16x16xf32> to vector<2x16xf32>
    %38 = vector.shape_cast %37 : vector<2x16xf32> to vector<2x16x1xf32>
    %39 = vector.broadcast %38 : vector<2x16x1xf32> to vector<2x16x16xf32>
    %40 = arith.subf %36, %39 : vector<2x16x16xf32>
    %41 = math.exp %40 : vector<2x16x16xf32>
    %cst_14 = arith.constant dense<0.000000e+00> : vector<2x16xf32>
    %42 = vector.multi_reduction <add>, %41, %cst_14 [2] : vector<2x16x16xf32> to vector<2x16xf32>
    %43 = vector.shape_cast %42 : vector<2x16xf32> to vector<2x16x1xf32>
    %44 = tpu.reciprocal %43 {approx = true} : vector<2x16x1xf32> -> vector<2x16x1xf32>
    %45 = vector.broadcast %44 : vector<2x16x1xf32> to vector<2x16x16xf32>
    %46 = arith.mulf %41, %45 : vector<2x16x16xf32>
    %47 = arith.truncf %46 : vector<2x16x16xf32> to vector<2x16x16xbf16>
    "tpu.trace_start"() <{level = 10 : i32, message = "gnm,gmd->gnd"}> : () -> ()
    %cst_15 = arith.constant dense<0.000000e+00> : vector<2x16x16xf32>
    %48 = tpu.matmul %47, %30, %cst_15 {dimension_numbers = #tpu.dot_dimension_numbers<[2], [1], [1], [2], [0, 0, 0, 1, 1, 2], [0], [0]>} : vector<2x16x16xbf16>, vector<2x16x16xbf16>, vector<2x16x16xf32> -> vector<2x16x16xf32>
    "tpu.trace_stop"() : () -> ()
    %49 = arith.truncf %48 : vector<2x16x16xf32> to vector<2x16x16xbf16>
    %c16 = arith.constant 16 : index
    %c0_16 = arith.constant 0 : index
    %50 = vector.load %arg3[%c16, %c0_16] : memref<64x64xbf16, #tpu.memory_space<vmem>>, vector<16x64xbf16>
    "tpu.trace_start"() <{level = 10 : i32, message = "gnd,dc->gnc"}> : () -> ()
    %cst_17 = arith.constant dense<0.000000e+00> : vector<2x16x64xf32>
    %51 = tpu.matmul %49, %50, %cst_17 {dimension_numbers = #tpu.dot_dimension_numbers<[2], [0], [0, 1], [1], [0, 0, 0, 1, 1, 1], [], []>} : vector<2x16x16xbf16>, vector<16x64xbf16>, vector<2x16x64xf32> -> vector<2x16x64xf32>
    "tpu.trace_stop"() : () -> ()
    %52 = arith.addf %27, %51 : vector<2x16x64xf32>
    %53 = vector.extract_strided_slice %0 {offsets = [0, 0, 32], sizes = [2, 16, 16], strides = [1, 1, 1]} : vector<2x16x192xbf16> to vector<2x16x16xbf16>
    %54 = vector.extract_strided_slice %0 {offsets = [0, 0, 96], sizes = [2, 16, 16], strides = [1, 1, 1]} : vector<2x16x192xbf16> to vector<2x16x16xbf16>
    %55 = vector.extract_strided_slice %0 {offsets = [0, 0, 160], sizes = [2, 16, 16], strides = [1, 1, 1]} : vector<2x16x192xbf16> to vector<2x16x16xbf16>
    "tpu.trace_start"() <{level = 10 : i32, message = "gnd,gmd->gnm"}> : () -> ()
    %cst_18 = arith.constant dense<0.000000e+00> : vector<2x16x16xf32>
    %56 = tpu.matmul %53, %54, %cst_18 {dimension_numbers = #tpu.dot_dimension_numbers<[2], [2], [1], [1], [0, 0, 0, 1, 1, 1], [0], [0]>} : vector<2x16x16xbf16>, vector<2x16x16xbf16>, vector<2x16x16xf32> -> vector<2x16x16xf32>
    "tpu.trace_stop"() : () -> ()
    %57 = vector.extract_strided_slice %1 {offsets = [2, 0, 0], sizes = [1, 16, 16], strides = [1, 1, 1]} : vector<4x16x16xf32> to vector<1x16x16xf32>
    %58 = vector.shape_cast %57 : vector<1x16x16xf32> to vector<16x16xf32>
    %59 = vector.shape_cast %58 : vector<16x16xf32> to vector<1x16x16xf32>
    %60 = vector.broadcast %59 : vector<1x16x16xf32> to vector<2x16x16xf32>
    %61 = arith.addf %56, %60 : vector<2x16x16xf32>
    %cst_19 = arith.constant dense<0xFF800000> : vector<2x16xf32>
    %62 = vector.multi_reduction <maximumf>, %61, %cst_19 [2] : vector<2x16x16xf32> to vector<2x16xf32>
    %63 = vector.shape_cast %62 : vector<2x16xf32> to vector<2x16x1xf32>
    %64 = vector.broadcast %63 : vector<2x16x1xf32> to vector<2x16x16xf32>
    %65 = arith.subf %61, %64 : vector<2x16x16xf32>
    %66 = math.exp %65 : vector<2x16x16xf32>
    %cst_20 = arith.constant dense<0.000000e+00> : vector<2x16xf32>
    %67 = vector.multi_reduction <add>, %66, %cst_20 [2] : vector<2x16x16xf32> to vector<2x16xf32>
    %68 = vector.shape_cast %67 : vector<2x16xf32> to vector<2x16x1xf32>
    %69 = tpu.reciprocal %68 {approx = true} : vector<2x16x1xf32> -> vector<2x16x1xf32>
    %70 = vector.broadcast %69 : vector<2x16x1xf32> to vector<2x16x16xf32>
    %71 = arith.mulf %66, %70 : vector<2x16x16xf32>
    %72 = arith.truncf %71 : vector<2x16x16xf32> to vector<2x16x16xbf16>
    "tpu.trace_start"() <{level = 10 : i32, message = "gnm,gmd->gnd"}> : () -> ()
    %cst_21 = arith.constant dense<0.000000e+00> : vector<2x16x16xf32>
    %73 = tpu.matmul %72, %55, %cst_21 {dimension_numbers = #tpu.dot_dimension_numbers<[2], [1], [1], [2], [0, 0, 0, 1, 1, 2], [0], [0]>} : vector<2x16x16xbf16>, vector<2x16x16xbf16>, vector<2x16x16xf32> -> vector<2x16x16xf32>
    "tpu.trace_stop"() : () -> ()
    %74 = arith.truncf %73 : vector<2x16x16xf32> to vector<2x16x16xbf16>
    %c32 = arith.constant 32 : index
    %c0_22 = arith.constant 0 : index
    %75 = vector.load %arg3[%c32, %c0_22] : memref<64x64xbf16, #tpu.memory_space<vmem>>, vector<16x64xbf16>
    "tpu.trace_start"() <{level = 10 : i32, message = "gnd,dc->gnc"}> : () -> ()
    %cst_23 = arith.constant dense<0.000000e+00> : vector<2x16x64xf32>
    %76 = tpu.matmul %74, %75, %cst_23 {dimension_numbers = #tpu.dot_dimension_numbers<[2], [0], [0, 1], [1], [0, 0, 0, 1, 1, 1], [], []>} : vector<2x16x16xbf16>, vector<16x64xbf16>, vector<2x16x64xf32> -> vector<2x16x64xf32>
    "tpu.trace_stop"() : () -> ()
    %77 = arith.addf %52, %76 : vector<2x16x64xf32>
    %78 = vector.extract_strided_slice %0 {offsets = [0, 0, 48], sizes = [2, 16, 16], strides = [1, 1, 1]} : vector<2x16x192xbf16> to vector<2x16x16xbf16>
    %79 = vector.extract_strided_slice %0 {offsets = [0, 0, 112], sizes = [2, 16, 16], strides = [1, 1, 1]} : vector<2x16x192xbf16> to vector<2x16x16xbf16>
    %80 = vector.extract_strided_slice %0 {offsets = [0, 0, 176], sizes = [2, 16, 16], strides = [1, 1, 1]} : vector<2x16x192xbf16> to vector<2x16x16xbf16>
    "tpu.trace_start"() <{level = 10 : i32, message = "gnd,gmd->gnm"}> : () -> ()
    %cst_24 = arith.constant dense<0.000000e+00> : vector<2x16x16xf32>
    %81 = tpu.matmul %78, %79, %cst_24 {dimension_numbers = #tpu.dot_dimension_numbers<[2], [2], [1], [1], [0, 0, 0, 1, 1, 1], [0], [0]>} : vector<2x16x16xbf16>, vector<2x16x16xbf16>, vector<2x16x16xf32> -> vector<2x16x16xf32>
    "tpu.trace_stop"() : () -> ()
    %82 = vector.extract_strided_slice %1 {offsets = [3, 0, 0], sizes = [1, 16, 16], strides = [1, 1, 1]} : vector<4x16x16xf32> to vector<1x16x16xf32>
    %83 = vector.shape_cast %82 : vector<1x16x16xf32> to vector<16x16xf32>
    %84 = vector.shape_cast %83 : vector<16x16xf32> to vector<1x16x16xf32>
    %85 = vector.broadcast %84 : vector<1x16x16xf32> to vector<2x16x16xf32>
    %86 = arith.addf %81, %85 : vector<2x16x16xf32>
    %cst_25 = arith.constant dense<0xFF800000> : vector<2x16xf32>
    %87 = vector.multi_reduction <maximumf>, %86, %cst_25 [2] : vector<2x16x16xf32> to vector<2x16xf32>
    %88 = vector.shape_cast %87 : vector<2x16xf32> to vector<2x16x1xf32>
    %89 = vector.broadcast %88 : vector<2x16x1xf32> to vector<2x16x16xf32>
    %90 = arith.subf %86, %89 : vector<2x16x16xf32>
    %91 = math.exp %90 : vector<2x16x16xf32>
    %cst_26 = arith.constant dense<0.000000e+00> : vector<2x16xf32>
    %92 = vector.multi_reduction <add>, %91, %cst_26 [2] : vector<2x16x16xf32> to vector<2x16xf32>
    %93 = vector.shape_cast %92 : vector<2x16xf32> to vector<2x16x1xf32>
    %94 = tpu.reciprocal %93 {approx = true} : vector<2x16x1xf32> -> vector<2x16x1xf32>
    %95 = vector.broadcast %94 : vector<2x16x1xf32> to vector<2x16x16xf32>
    %96 = arith.mulf %91, %95 : vector<2x16x16xf32>
    %97 = arith.truncf %96 : vector<2x16x16xf32> to vector<2x16x16xbf16>
    "tpu.trace_start"() <{level = 10 : i32, message = "gnm,gmd->gnd"}> : () -> ()
    %cst_27 = arith.constant dense<0.000000e+00> : vector<2x16x16xf32>
    %98 = tpu.matmul %97, %80, %cst_27 {dimension_numbers = #tpu.dot_dimension_numbers<[2], [1], [1], [2], [0, 0, 0, 1, 1, 2], [0], [0]>} : vector<2x16x16xbf16>, vector<2x16x16xbf16>, vector<2x16x16xf32> -> vector<2x16x16xf32>
    "tpu.trace_stop"() : () -> ()
    %99 = arith.truncf %98 : vector<2x16x16xf32> to vector<2x16x16xbf16>
    %c48 = arith.constant 48 : index
    %c0_28 = arith.constant 0 : index
    %100 = vector.load %arg3[%c48, %c0_28] : memref<64x64xbf16, #tpu.memory_space<vmem>>, vector<16x64xbf16>
    "tpu.trace_start"() <{level = 10 : i32, message = "gnd,dc->gnc"}> : () -> ()
    %cst_29 = arith.constant dense<0.000000e+00> : vector<2x16x64xf32>
    %101 = tpu.matmul %99, %100, %cst_29 {dimension_numbers = #tpu.dot_dimension_numbers<[2], [0], [0, 1], [1], [0, 0, 0, 1, 1, 1], [], []>} : vector<2x16x16xbf16>, vector<16x64xbf16>, vector<2x16x64xf32> -> vector<2x16x64xf32>
    "tpu.trace_stop"() : () -> ()
    %102 = arith.addf %77, %101 : vector<2x16x64xf32>
    %c0_30 = arith.constant 0 : index
    %c0_31 = arith.constant 0 : index
    %103 = vector.load %arg4[%c0_30, %c0_31] : memref<1x64xf32, #tpu.memory_space<vmem>>, vector<1x64xf32>
    %104 = vector.shape_cast %103 : vector<1x64xf32> to vector<1x1x64xf32>
    %105 = vector.broadcast %104 : vector<1x1x64xf32> to vector<2x16x64xf32>
    %106 = arith.addf %102, %105 : vector<2x16x64xf32>
    %c0_32 = arith.constant 0 : index
    %c0_33 = arith.constant 0 : index
    %c0_34 = arith.constant 0 : index
    %107 = vector.load %arg5[%c0_32, %c0_33, %c0_34] : memref<2x16x64xf32, #tpu.memory_space<vmem>>, vector<2x16x64xf32>
    tpu.vector_store %arg5[%c0_32, %c0_33, %c0_34], %106 {strides = array<i32>} : memref<2x16x64xf32, #tpu.memory_space<vmem>>, vector<2x16x64xf32>,
    return
  }
  func.func @transform_0(%arg0: i32) -> (i32, i32, i32) {
    %c0_i32 = arith.constant 0 : i32
    %c0_i32_0 = arith.constant 0 : i32
    %c0_i32_1 = arith.constant 0 : i32
    return %arg0, %c0_i32, %c0_i32_0 : i32, i32, i32
  }
  func.func @transform_1(%arg0: i32) -> (i32, i32, i32) {
    %c0_i32 = arith.constant 0 : i32
    %c0_i32_0 = arith.constant 0 : i32
    %c0_i32_1 = arith.constant 0 : i32
    %c0_i32_2 = arith.constant 0 : i32
    return %c0_i32, %c0_i32_0, %c0_i32_1 : i32, i32, i32
  }
  func.func @transform_2(%arg0: i32) -> (i32, i32) {
    %c0_i32 = arith.constant 0 : i32
    %c0_i32_0 = arith.constant 0 : i32
    %c0_i32_1 = arith.constant 0 : i32
    return %c0_i32, %c0_i32_0 : i32, i32
  }
  func.func @transform_3(%arg0: i32) -> (i32, i32) {
    %c0_i32 = arith.constant 0 : i32
    %c0_i32_0 = arith.constant 0 : i32
    %c0_i32_1 = arith.constant 0 : i32
    return %c0_i32, %c0_i32_0 : i32, i32
  }
  func.func @transform_4(%arg0: i32) -> (i32, i32, i32) {
    %c0_i32 = arith.constant 0 : i32
    %c0_i32_0 = arith.constant 0 : i32
    %c0_i32_1 = arith.constant 0 : i32
    return %arg0, %c0_i32, %c0_i32_0 : i32, i32, i32
  }
}

module attributes {stable_mosaic.version = 11 : i64} {
  func.func @_fused_mm_kernel(%arg0: i32, %arg1: memref<32x64xf32, #tpu.memory_space<vmem>>, %arg2: memref<1x64xf32, #tpu.memory_space<vmem>>, %arg3: memref<1x64xf32, #tpu.memory_space<vmem>>, %arg4: memref<64x192xbf16, #tpu.memory_space<vmem>>, %arg5: memref<1x192xf32, #tpu.memory_space<vmem>>, %arg6: memref<32x192xbf16, #tpu.memory_space<vmem>>) attributes {dimension_semantics = [#tpu.dimension_semantics<parallel>], iteration_bounds = array<i64: 1>, scalar_prefetch = 0 : i64, scratch_operands = 0 : i64, tpu.core_type = #tpu.core_type<tc>, window_params = [{transform_indices = @transform_0, window_bounds = array<i64: 32, 64>}, {pipeline_mode = #tpu.pipeline_mode<synchronous>, transform_indices = @transform_1, window_bounds = array<i64: 1, 64>}, {pipeline_mode = #tpu.pipeline_mode<synchronous>, transform_indices = @transform_2, window_bounds = array<i64: 1, 64>}, {pipeline_mode = #tpu.pipeline_mode<synchronous>, transform_indices = @transform_3, window_bounds = array<i64: 64, 192>}, {pipeline_mode = #tpu.pipeline_mode<synchronous>, transform_indices = @transform_4, window_bounds = array<i64: 1, 192>}, {transform_indices = @transform_5, window_bounds = array<i64: 32, 192>}]} {
    %c0 = arith.constant 0 : index
    %c0_0 = arith.constant 0 : index
    %0 = vector.load %arg1[%c0, %c0_0] : memref<32x64xf32, #tpu.memory_space<vmem>>, vector<32x64xf32>
    %cst = arith.constant dense<0.000000e+00> : vector<32xf32>
    %1 = vector.multi_reduction <add>, %0, %cst [1] : vector<32x64xf32> to vector<32xf32>
    %2 = vector.shape_cast %1 : vector<32xf32> to vector<32x1xf32>
    %cst_1 = arith.constant 6.400000e+01 : f32
    %3 = vector.broadcast %cst_1 : f32 to vector<32x1xf32>
    %4 = arith.divf %2, %3 : vector<32x1xf32>
    %5 = vector.broadcast %4 : vector<32x1xf32> to vector<32x64xf32>
    %6 = arith.subf %0, %5 : vector<32x64xf32>
    %7 = arith.mulf %6, %6 : vector<32x64xf32>
    %cst_2 = arith.constant dense<0.000000e+00> : vector<32xf32>
    %8 = vector.multi_reduction <add>, %7, %cst_2 [1] : vector<32x64xf32> to vector<32xf32>
    %9 = vector.shape_cast %8 : vector<32xf32> to vector<32x1xf32>
    %cst_3 = arith.constant 6.400000e+01 : f32
    %10 = vector.broadcast %cst_3 : f32 to vector<32x1xf32>
    %11 = arith.divf %9, %10 : vector<32x1xf32>
    %12 = vector.broadcast %4 : vector<32x1xf32> to vector<32x64xf32>
    %13 = arith.subf %0, %12 : vector<32x64xf32>
    %cst_4 = arith.constant 9.99999974E-6 : f32
    %14 = vector.broadcast %cst_4 : f32 to vector<32x1xf32>
    %15 = arith.addf %11, %14 : vector<32x1xf32>
    %16 = math.rsqrt %15 : vector<32x1xf32>
    %17 = vector.broadcast %16 : vector<32x1xf32> to vector<32x64xf32>
    %18 = arith.mulf %13, %17 : vector<32x64xf32>
    %c0_5 = arith.constant 0 : index
    %c0_6 = arith.constant 0 : index
    %19 = vector.load %arg2[%c0_5, %c0_6] : memref<1x64xf32, #tpu.memory_space<vmem>>, vector<1x64xf32>
    %20 = vector.broadcast %19 : vector<1x64xf32> to vector<32x64xf32>
    %21 = arith.mulf %18, %20 : vector<32x64xf32>
    %c0_7 = arith.constant 0 : index
    %c0_8 = arith.constant 0 : index
    %22 = vector.load %arg3[%c0_7, %c0_8] : memref<1x64xf32, #tpu.memory_space<vmem>>, vector<1x64xf32>
    %23 = vector.broadcast %22 : vector<1x64xf32> to vector<32x64xf32>
    %24 = arith.addf %21, %23 : vector<32x64xf32>
    %25 = arith.truncf %24 : vector<32x64xf32> to vector<32x64xbf16>
    %c0_9 = arith.constant 0 : index
    %c0_10 = arith.constant 0 : index
    %26 = vector.load %arg4[%c0_9, %c0_10] : memref<64x192xbf16, #tpu.memory_space<vmem>>, vector<64x192xbf16>
    %cst_11 = arith.constant dense<0.000000e+00> : vector<32x192xf32>
    %27 = tpu.matmul %25, %26, %cst_11 {dimension_numbers = #tpu.dot_dimension_numbers<[1], [0], [0], [1], [0, 0, 1, 1], [], []>} : vector<32x64xbf16>, vector<64x192xbf16>, vector<32x192xf32> -> vector<32x192xf32>
    %c0_12 = arith.constant 0 : index
    %c0_13 = arith.constant 0 : index
    %28 = vector.load %arg5[%c0_12, %c0_13] : memref<1x192xf32, #tpu.memory_space<vmem>>, vector<1x192xf32>
    %29 = vector.broadcast %28 : vector<1x192xf32> to vector<32x192xf32>
    %30 = arith.addf %27, %29 : vector<32x192xf32>
    %31 = arith.truncf %30 : vector<32x192xf32> to vector<32x192xbf16>
    %c0_14 = arith.constant 0 : index
    %c0_15 = arith.constant 0 : index
    %32 = vector.load %arg6[%c0_14, %c0_15] : memref<32x192xbf16, #tpu.memory_space<vmem>>, vector<32x192xbf16>
    tpu.vector_store %arg6[%c0_14, %c0_15], %31 {strides = array<i32>} : memref<32x192xbf16, #tpu.memory_space<vmem>>, vector<32x192xbf16>,
    return
  }
  func.func @transform_0(%arg0: i32) -> (i32, i32) {
    %c0_i32 = arith.constant 0 : i32
    %c0_i32_0 = arith.constant 0 : i32
    return %arg0, %c0_i32 : i32, i32
  }
  func.func @transform_1(%arg0: i32) -> (i32, i32) {
    %c0_i32 = arith.constant 0 : i32
    %c0_i32_0 = arith.constant 0 : i32
    %c0_i32_1 = arith.constant 0 : i32
    return %c0_i32, %c0_i32_0 : i32, i32
  }
  func.func @transform_2(%arg0: i32) -> (i32, i32) {
    %c0_i32 = arith.constant 0 : i32
    %c0_i32_0 = arith.constant 0 : i32
    %c0_i32_1 = arith.constant 0 : i32
    return %c0_i32, %c0_i32_0 : i32, i32
  }
  func.func @transform_3(%arg0: i32) -> (i32, i32) {
    %c0_i32 = arith.constant 0 : i32
    %c0_i32_0 = arith.constant 0 : i32
    %c0_i32_1 = arith.constant 0 : i32
    return %c0_i32, %c0_i32_0 : i32, i32
  }
  func.func @transform_4(%arg0: i32) -> (i32, i32) {
    %c0_i32 = arith.constant 0 : i32
    %c0_i32_0 = arith.constant 0 : i32
    %c0_i32_1 = arith.constant 0 : i32
    return %c0_i32, %c0_i32_0 : i32, i32
  }
  func.func @transform_5(%arg0: i32) -> (i32, i32) {
    %c0_i32 = arith.constant 0 : i32
    %c0_i32_0 = arith.constant 0 : i32
    return %arg0, %c0_i32 : i32, i32
  }
}

module attributes {stable_mosaic.version = 11 : i64} {
  func.func @_mlp_kernel(%arg0: i32, %arg1: memref<32x64xf32, #tpu.memory_space<vmem>>, %arg2: memref<1x64xf32, #tpu.memory_space<vmem>>, %arg3: memref<1x64xf32, #tpu.memory_space<vmem>>, %arg4: memref<64x256xbf16, #tpu.memory_space<vmem>>, %arg5: memref<1x256xf32, #tpu.memory_space<vmem>>, %arg6: memref<256x64xbf16, #tpu.memory_space<vmem>>, %arg7: memref<1x64xf32, #tpu.memory_space<vmem>>, %arg8: memref<32x64xf32, #tpu.memory_space<vmem>>) attributes {dimension_semantics = [#tpu.dimension_semantics<parallel>], iteration_bounds = array<i64: 1>, scalar_prefetch = 0 : i64, scratch_operands = 0 : i64, tpu.core_type = #tpu.core_type<tc>, window_params = [{transform_indices = @transform_0, window_bounds = array<i64: 32, 64>}, {pipeline_mode = #tpu.pipeline_mode<synchronous>, transform_indices = @transform_1, window_bounds = array<i64: 1, 64>}, {pipeline_mode = #tpu.pipeline_mode<synchronous>, transform_indices = @transform_2, window_bounds = array<i64: 1, 64>}, {pipeline_mode = #tpu.pipeline_mode<synchronous>, transform_indices = @transform_3, window_bounds = array<i64: 64, 256>}, {pipeline_mode = #tpu.pipeline_mode<synchronous>, transform_indices = @transform_4, window_bounds = array<i64: 1, 256>}, {pipeline_mode = #tpu.pipeline_mode<synchronous>, transform_indices = @transform_5, window_bounds = array<i64: 256, 64>}, {pipeline_mode = #tpu.pipeline_mode<synchronous>, transform_indices = @transform_6, window_bounds = array<i64: 1, 64>}, {transform_indices = @transform_7, window_bounds = array<i64: 32, 64>}]} {
    %c0 = arith.constant 0 : index
    %c0_0 = arith.constant 0 : index
    %0 = vector.load %arg1[%c0, %c0_0] : memref<32x64xf32, #tpu.memory_space<vmem>>, vector<32x64xf32>
    %cst = arith.constant dense<0.000000e+00> : vector<32xf32>
    %1 = vector.multi_reduction <add>, %0, %cst [1] : vector<32x64xf32> to vector<32xf32>
    %2 = vector.shape_cast %1 : vector<32xf32> to vector<32x1xf32>
    %cst_1 = arith.constant 6.400000e+01 : f32
    %3 = vector.broadcast %cst_1 : f32 to vector<32x1xf32>
    %4 = arith.divf %2, %3 : vector<32x1xf32>
    %5 = vector.broadcast %4 : vector<32x1xf32> to vector<32x64xf32>
    %6 = arith.subf %0, %5 : vector<32x64xf32>
    %7 = arith.mulf %6, %6 : vector<32x64xf32>
    %cst_2 = arith.constant dense<0.000000e+00> : vector<32xf32>
    %8 = vector.multi_reduction <add>, %7, %cst_2 [1] : vector<32x64xf32> to vector<32xf32>
    %9 = vector.shape_cast %8 : vector<32xf32> to vector<32x1xf32>
    %cst_3 = arith.constant 6.400000e+01 : f32
    %10 = vector.broadcast %cst_3 : f32 to vector<32x1xf32>
    %11 = arith.divf %9, %10 : vector<32x1xf32>
    %12 = vector.broadcast %4 : vector<32x1xf32> to vector<32x64xf32>
    %13 = arith.subf %0, %12 : vector<32x64xf32>
    %cst_4 = arith.constant 9.99999974E-6 : f32
    %14 = vector.broadcast %cst_4 : f32 to vector<32x1xf32>
    %15 = arith.addf %11, %14 : vector<32x1xf32>
    %16 = math.rsqrt %15 : vector<32x1xf32>
    %17 = vector.broadcast %16 : vector<32x1xf32> to vector<32x64xf32>
    %18 = arith.mulf %13, %17 : vector<32x64xf32>
    %c0_5 = arith.constant 0 : index
    %c0_6 = arith.constant 0 : index
    %19 = vector.load %arg2[%c0_5, %c0_6] : memref<1x64xf32, #tpu.memory_space<vmem>>, vector<1x64xf32>
    %20 = vector.broadcast %19 : vector<1x64xf32> to vector<32x64xf32>
    %21 = arith.mulf %18, %20 : vector<32x64xf32>
    %c0_7 = arith.constant 0 : index
    %c0_8 = arith.constant 0 : index
    %22 = vector.load %arg3[%c0_7, %c0_8] : memref<1x64xf32, #tpu.memory_space<vmem>>, vector<1x64xf32>
    %23 = vector.broadcast %22 : vector<1x64xf32> to vector<32x64xf32>
    %24 = arith.addf %21, %23 : vector<32x64xf32>
    %25 = arith.truncf %24 : vector<32x64xf32> to vector<32x64xbf16>
    %c0_9 = arith.constant 0 : index
    %c0_10 = arith.constant 0 : index
    %26 = vector.load %arg4[%c0_9, %c0_10] : memref<64x256xbf16, #tpu.memory_space<vmem>>, vector<64x256xbf16>
    %cst_11 = arith.constant dense<0.000000e+00> : vector<32x256xf32>
    %27 = tpu.matmul %25, %26, %cst_11 {dimension_numbers = #tpu.dot_dimension_numbers<[1], [0], [0], [1], [0, 0, 1, 1], [], []>} : vector<32x64xbf16>, vector<64x256xbf16>, vector<32x256xf32> -> vector<32x256xf32>
    %c0_12 = arith.constant 0 : index
    %c0_13 = arith.constant 0 : index
    %28 = vector.load %arg5[%c0_12, %c0_13] : memref<1x256xf32, #tpu.memory_space<vmem>>, vector<1x256xf32>
    %29 = vector.broadcast %28 : vector<1x256xf32> to vector<32x256xf32>
    %30 = arith.addf %27, %29 : vector<32x256xf32>
    %31 = arith.mulf %30, %30 : vector<32x256xf32>
    %32 = arith.mulf %30, %31 : vector<32x256xf32>
    %cst_14 = arith.constant 4.471500e-02 : f32
    %33 = vector.broadcast %cst_14 : f32 to vector<32x256xf32>
    %34 = arith.mulf %33, %32 : vector<32x256xf32>
    %35 = arith.addf %30, %34 : vector<32x256xf32>
    %cst_15 = arith.constant 0.797884583 : f32
    %36 = vector.broadcast %cst_15 : f32 to vector<32x256xf32>
    %37 = arith.mulf %36, %35 : vector<32x256xf32>
    %38 = math.tanh %37 : vector<32x256xf32>
    %cst_16 = arith.constant 1.000000e+00 : f32
    %39 = vector.broadcast %cst_16 : f32 to vector<32x256xf32>
    %40 = arith.addf %39, %38 : vector<32x256xf32>
    %cst_17 = arith.constant 5.000000e-01 : f32
    %41 = vector.broadcast %cst_17 : f32 to vector<32x256xf32>
    %42 = arith.mulf %41, %40 : vector<32x256xf32>
    %43 = arith.mulf %30, %42 : vector<32x256xf32>
    %44 = arith.truncf %43 : vector<32x256xf32> to vector<32x256xbf16>
    %c0_18 = arith.constant 0 : index
    %c0_19 = arith.constant 0 : index
    %45 = vector.load %arg6[%c0_18, %c0_19] : memref<256x64xbf16, #tpu.memory_space<vmem>>, vector<256x64xbf16>
    %cst_20 = arith.constant dense<0.000000e+00> : vector<32x64xf32>
    %46 = tpu.matmul %44, %45, %cst_20 {dimension_numbers = #tpu.dot_dimension_numbers<[1], [0], [0], [1], [0, 0, 1, 1], [], []>} : vector<32x256xbf16>, vector<256x64xbf16>, vector<32x64xf32> -> vector<32x64xf32>
    %c0_21 = arith.constant 0 : index
    %c0_22 = arith.constant 0 : index
    %47 = vector.load %arg7[%c0_21, %c0_22] : memref<1x64xf32, #tpu.memory_space<vmem>>, vector<1x64xf32>
    %48 = vector.broadcast %47 : vector<1x64xf32> to vector<32x64xf32>
    %49 = arith.addf %46, %48 : vector<32x64xf32>
    %50 = arith.addf %49, %0 : vector<32x64xf32>
    %c0_23 = arith.constant 0 : index
    %c0_24 = arith.constant 0 : index
    %51 = vector.load %arg8[%c0_23, %c0_24] : memref<32x64xf32, #tpu.memory_space<vmem>>, vector<32x64xf32>
    tpu.vector_store %arg8[%c0_23, %c0_24], %50 {strides = array<i32>} : memref<32x64xf32, #tpu.memory_space<vmem>>, vector<32x64xf32>,
    return
  }
  func.func @transform_0(%arg0: i32) -> (i32, i32) {
    %c0_i32 = arith.constant 0 : i32
    %c0_i32_0 = arith.constant 0 : i32
    return %arg0, %c0_i32 : i32, i32
  }
  func.func @transform_1(%arg0: i32) -> (i32, i32) {
    %c0_i32 = arith.constant 0 : i32
    %c0_i32_0 = arith.constant 0 : i32
    %c0_i32_1 = arith.constant 0 : i32
    return %c0_i32, %c0_i32_0 : i32, i32
  }
  func.func @transform_2(%arg0: i32) -> (i32, i32) {
    %c0_i32 = arith.constant 0 : i32
    %c0_i32_0 = arith.constant 0 : i32
    %c0_i32_1 = arith.constant 0 : i32
    return %c0_i32, %c0_i32_0 : i32, i32
  }
  func.func @transform_3(%arg0: i32) -> (i32, i32) {
    %c0_i32 = arith.constant 0 : i32
    %c0_i32_0 = arith.constant 0 : i32
    %c0_i32_1 = arith.constant 0 : i32
    return %c0_i32, %c0_i32_0 : i32, i32
  }
  func.func @transform_4(%arg0: i32) -> (i32, i32) {
    %c0_i32 = arith.constant 0 : i32
    %c0_i32_0 = arith.constant 0 : i32
    %c0_i32_1 = arith.constant 0 : i32
    return %c0_i32, %c0_i32_0 : i32, i32
  }
  func.func @transform_5(%arg0: i32) -> (i32, i32) {
    %c0_i32 = arith.constant 0 : i32
    %c0_i32_0 = arith.constant 0 : i32
    %c0_i32_1 = arith.constant 0 : i32
    return %c0_i32, %c0_i32_0 : i32, i32
  }
  func.func @transform_6(%arg0: i32) -> (i32, i32) {
    %c0_i32 = arith.constant 0 : i32
    %c0_i32_0 = arith.constant 0 : i32
    %c0_i32_1 = arith.constant 0 : i32
    return %c0_i32, %c0_i32_0 : i32, i32
  }
  func.func @transform_7(%arg0: i32) -> (i32, i32) {
    %c0_i32 = arith.constant 0 : i32
    %c0_i32_0 = arith.constant 0 : i32
    return %arg0, %c0_i32 : i32, i32
  }
}

module attributes {stable_mosaic.version = 11 : i64} {
  func.func @_attn_kernel(%arg0: i32, %arg1: memref<1x16x192xbf16, #tpu.memory_space<vmem>>, %arg2: memref<4x16x16xf32, #tpu.memory_space<vmem>>, %arg3: memref<1x16x16xf32, #tpu.memory_space<vmem>>, %arg4: memref<64x64xbf16, #tpu.memory_space<vmem>>, %arg5: memref<1x64xf32, #tpu.memory_space<vmem>>, %arg6: memref<1x16x64xf32, #tpu.memory_space<vmem>>) attributes {dimension_semantics = [#tpu.dimension_semantics<parallel>], iteration_bounds = array<i64: 2>, scalar_prefetch = 0 : i64, scratch_operands = 0 : i64, tpu.core_type = #tpu.core_type<tc>, window_params = [{transform_indices = @transform_0, window_bounds = array<i64: 1, 16, 192>}, {pipeline_mode = #tpu.pipeline_mode<synchronous>, transform_indices = @transform_1, window_bounds = array<i64: 4, 16, 16>}, {transform_indices = @transform_2, window_bounds = array<i64: 1, 16, 16>}, {pipeline_mode = #tpu.pipeline_mode<synchronous>, transform_indices = @transform_3, window_bounds = array<i64: 64, 64>}, {pipeline_mode = #tpu.pipeline_mode<synchronous>, transform_indices = @transform_4, window_bounds = array<i64: 1, 64>}, {transform_indices = @transform_5, window_bounds = array<i64: 1, 16, 64>}]} {
    %c0 = arith.constant 0 : index
    %c0_0 = arith.constant 0 : index
    %c0_1 = arith.constant 0 : index
    %0 = vector.load %arg1[%c0, %c0_0, %c0_1] : memref<1x16x192xbf16, #tpu.memory_space<vmem>>, vector<1x16x192xbf16>
    %c0_2 = arith.constant 0 : index
    %c0_3 = arith.constant 0 : index
    %c0_4 = arith.constant 0 : index
    %1 = vector.load %arg2[%c0_2, %c0_3, %c0_4] : memref<4x16x16xf32, #tpu.memory_space<vmem>>, vector<4x16x16xf32>
    %cst = arith.constant 0.000000e+00 : f32
    %2 = vector.broadcast %cst : f32 to vector<1x16x64xf32>
    %3 = vector.extract_strided_slice %0 {offsets = [0, 0, 0], sizes = [1, 16, 16], strides = [1, 1, 1]} : vector<1x16x192xbf16> to vector<1x16x16xbf16>
    %4 = vector.extract_strided_slice %0 {offsets = [0, 0, 64], sizes = [1, 16, 16], strides = [1, 1, 1]} : vector<1x16x192xbf16> to vector<1x16x16xbf16>
    %5 = vector.extract_strided_slice %0 {offsets = [0, 0, 128], sizes = [1, 16, 16], strides = [1, 1, 1]} : vector<1x16x192xbf16> to vector<1x16x16xbf16>
    "tpu.trace_start"() <{level = 10 : i32, message = "gnd,gmd->gnm"}> : () -> ()
    %cst_5 = arith.constant dense<0.000000e+00> : vector<1x16x16xf32>
    %6 = tpu.matmul %3, %4, %cst_5 {dimension_numbers = #tpu.dot_dimension_numbers<[2], [2], [1], [1], [0, 0, 0, 1, 1, 1], [0], [0]>} : vector<1x16x16xbf16>, vector<1x16x16xbf16>, vector<1x16x16xf32> -> vector<1x16x16xf32>
    "tpu.trace_stop"() : () -> ()
    %7 = vector.extract_strided_slice %1 {offsets = [0, 0, 0], sizes = [1, 16, 16], strides = [1, 1, 1]} : vector<4x16x16xf32> to vector<1x16x16xf32>
    %8 = vector.shape_cast %7 : vector<1x16x16xf32> to vector<16x16xf32>
    %9 = vector.shape_cast %8 : vector<16x16xf32> to vector<1x16x16xf32>
    %10 = arith.addf %6, %9 : vector<1x16x16xf32>
    %c0_6 = arith.constant 0 : index
    %c0_7 = arith.constant 0 : index
    %c0_8 = arith.constant 0 : index
    %11 = vector.load %arg3[%c0_6, %c0_7, %c0_8] : memref<1x16x16xf32, #tpu.memory_space<vmem>>, vector<1x16x16xf32>
    %12 = arith.addf %10, %11 : vector<1x16x16xf32>
    %cst_9 = arith.constant dense<0xFF800000> : vector<1x16xf32>
    %13 = vector.multi_reduction <maximumf>, %12, %cst_9 [2] : vector<1x16x16xf32> to vector<1x16xf32>
    %14 = vector.shape_cast %13 : vector<1x16xf32> to vector<1x16x1xf32>
    %15 = vector.broadcast %14 : vector<1x16x1xf32> to vector<1x16x16xf32>
    %16 = arith.subf %12, %15 : vector<1x16x16xf32>
    %17 = math.exp %16 : vector<1x16x16xf32>
    %cst_10 = arith.constant dense<0.000000e+00> : vector<1x16xf32>
    %18 = vector.multi_reduction <add>, %17, %cst_10 [2] : vector<1x16x16xf32> to vector<1x16xf32>
    %19 = vector.shape_cast %18 : vector<1x16xf32> to vector<1x16x1xf32>
    %20 = tpu.reciprocal %19 {approx = true} : vector<1x16x1xf32> -> vector<1x16x1xf32>
    %21 = vector.broadcast %20 : vector<1x16x1xf32> to vector<1x16x16xf32>
    %22 = arith.mulf %17, %21 : vector<1x16x16xf32>
    %23 = arith.truncf %22 : vector<1x16x16xf32> to vector<1x16x16xbf16>
    "tpu.trace_start"() <{level = 10 : i32, message = "gnm,gmd->gnd"}> : () -> ()
    %cst_11 = arith.constant dense<0.000000e+00> : vector<1x16x16xf32>
    %24 = tpu.matmul %23, %5, %cst_11 {dimension_numbers = #tpu.dot_dimension_numbers<[2], [1], [1], [2], [0, 0, 0, 1, 1, 2], [0], [0]>} : vector<1x16x16xbf16>, vector<1x16x16xbf16>, vector<1x16x16xf32> -> vector<1x16x16xf32>
    "tpu.trace_stop"() : () -> ()
    %25 = arith.truncf %24 : vector<1x16x16xf32> to vector<1x16x16xbf16>
    %c0_12 = arith.constant 0 : index
    %c0_13 = arith.constant 0 : index
    %26 = vector.load %arg4[%c0_12, %c0_13] : memref<64x64xbf16, #tpu.memory_space<vmem>>, vector<16x64xbf16>
    "tpu.trace_start"() <{level = 10 : i32, message = "gnd,dc->gnc"}> : () -> ()
    %cst_14 = arith.constant dense<0.000000e+00> : vector<1x16x64xf32>
    %27 = tpu.matmul %25, %26, %cst_14 {dimension_numbers = #tpu.dot_dimension_numbers<[2], [0], [0, 1], [1], [0, 0, 0, 1, 1, 1], [], []>} : vector<1x16x16xbf16>, vector<16x64xbf16>, vector<1x16x64xf32> -> vector<1x16x64xf32>
    "tpu.trace_stop"() : () -> ()
    %28 = arith.addf %2, %27 : vector<1x16x64xf32>
    %29 = vector.extract_strided_slice %0 {offsets = [0, 0, 16], sizes = [1, 16, 16], strides = [1, 1, 1]} : vector<1x16x192xbf16> to vector<1x16x16xbf16>
    %30 = vector.extract_strided_slice %0 {offsets = [0, 0, 80], sizes = [1, 16, 16], strides = [1, 1, 1]} : vector<1x16x192xbf16> to vector<1x16x16xbf16>
    %31 = vector.extract_strided_slice %0 {offsets = [0, 0, 144], sizes = [1, 16, 16], strides = [1, 1, 1]} : vector<1x16x192xbf16> to vector<1x16x16xbf16>
    "tpu.trace_start"() <{level = 10 : i32, message = "gnd,gmd->gnm"}> : () -> ()
    %cst_15 = arith.constant dense<0.000000e+00> : vector<1x16x16xf32>
    %32 = tpu.matmul %29, %30, %cst_15 {dimension_numbers = #tpu.dot_dimension_numbers<[2], [2], [1], [1], [0, 0, 0, 1, 1, 1], [0], [0]>} : vector<1x16x16xbf16>, vector<1x16x16xbf16>, vector<1x16x16xf32> -> vector<1x16x16xf32>
    "tpu.trace_stop"() : () -> ()
    %33 = vector.extract_strided_slice %1 {offsets = [1, 0, 0], sizes = [1, 16, 16], strides = [1, 1, 1]} : vector<4x16x16xf32> to vector<1x16x16xf32>
    %34 = vector.shape_cast %33 : vector<1x16x16xf32> to vector<16x16xf32>
    %35 = vector.shape_cast %34 : vector<16x16xf32> to vector<1x16x16xf32>
    %36 = arith.addf %32, %35 : vector<1x16x16xf32>
    %c0_16 = arith.constant 0 : index
    %c0_17 = arith.constant 0 : index
    %c0_18 = arith.constant 0 : index
    %37 = vector.load %arg3[%c0_16, %c0_17, %c0_18] : memref<1x16x16xf32, #tpu.memory_space<vmem>>, vector<1x16x16xf32>
    %38 = arith.addf %36, %37 : vector<1x16x16xf32>
    %cst_19 = arith.constant dense<0xFF800000> : vector<1x16xf32>
    %39 = vector.multi_reduction <maximumf>, %38, %cst_19 [2] : vector<1x16x16xf32> to vector<1x16xf32>
    %40 = vector.shape_cast %39 : vector<1x16xf32> to vector<1x16x1xf32>
    %41 = vector.broadcast %40 : vector<1x16x1xf32> to vector<1x16x16xf32>
    %42 = arith.subf %38, %41 : vector<1x16x16xf32>
    %43 = math.exp %42 : vector<1x16x16xf32>
    %cst_20 = arith.constant dense<0.000000e+00> : vector<1x16xf32>
    %44 = vector.multi_reduction <add>, %43, %cst_20 [2] : vector<1x16x16xf32> to vector<1x16xf32>
    %45 = vector.shape_cast %44 : vector<1x16xf32> to vector<1x16x1xf32>
    %46 = tpu.reciprocal %45 {approx = true} : vector<1x16x1xf32> -> vector<1x16x1xf32>
    %47 = vector.broadcast %46 : vector<1x16x1xf32> to vector<1x16x16xf32>
    %48 = arith.mulf %43, %47 : vector<1x16x16xf32>
    %49 = arith.truncf %48 : vector<1x16x16xf32> to vector<1x16x16xbf16>
    "tpu.trace_start"() <{level = 10 : i32, message = "gnm,gmd->gnd"}> : () -> ()
    %cst_21 = arith.constant dense<0.000000e+00> : vector<1x16x16xf32>
    %50 = tpu.matmul %49, %31, %cst_21 {dimension_numbers = #tpu.dot_dimension_numbers<[2], [1], [1], [2], [0, 0, 0, 1, 1, 2], [0], [0]>} : vector<1x16x16xbf16>, vector<1x16x16xbf16>, vector<1x16x16xf32> -> vector<1x16x16xf32>
    "tpu.trace_stop"() : () -> ()
    %51 = arith.truncf %50 : vector<1x16x16xf32> to vector<1x16x16xbf16>
    %c16 = arith.constant 16 : index
    %c0_22 = arith.constant 0 : index
    %52 = vector.load %arg4[%c16, %c0_22] : memref<64x64xbf16, #tpu.memory_space<vmem>>, vector<16x64xbf16>
    "tpu.trace_start"() <{level = 10 : i32, message = "gnd,dc->gnc"}> : () -> ()
    %cst_23 = arith.constant dense<0.000000e+00> : vector<1x16x64xf32>
    %53 = tpu.matmul %51, %52, %cst_23 {dimension_numbers = #tpu.dot_dimension_numbers<[2], [0], [0, 1], [1], [0, 0, 0, 1, 1, 1], [], []>} : vector<1x16x16xbf16>, vector<16x64xbf16>, vector<1x16x64xf32> -> vector<1x16x64xf32>
    "tpu.trace_stop"() : () -> ()
    %54 = arith.addf %28, %53 : vector<1x16x64xf32>
    %55 = vector.extract_strided_slice %0 {offsets = [0, 0, 32], sizes = [1, 16, 16], strides = [1, 1, 1]} : vector<1x16x192xbf16> to vector<1x16x16xbf16>
    %56 = vector.extract_strided_slice %0 {offsets = [0, 0, 96], sizes = [1, 16, 16], strides = [1, 1, 1]} : vector<1x16x192xbf16> to vector<1x16x16xbf16>
    %57 = vector.extract_strided_slice %0 {offsets = [0, 0, 160], sizes = [1, 16, 16], strides = [1, 1, 1]} : vector<1x16x192xbf16> to vector<1x16x16xbf16>
    "tpu.trace_start"() <{level = 10 : i32, message = "gnd,gmd->gnm"}> : () -> ()
    %cst_24 = arith.constant dense<0.000000e+00> : vector<1x16x16xf32>
    %58 = tpu.matmul %55, %56, %cst_24 {dimension_numbers = #tpu.dot_dimension_numbers<[2], [2], [1], [1], [0, 0, 0, 1, 1, 1], [0], [0]>} : vector<1x16x16xbf16>, vector<1x16x16xbf16>, vector<1x16x16xf32> -> vector<1x16x16xf32>
    "tpu.trace_stop"() : () -> ()
    %59 = vector.extract_strided_slice %1 {offsets = [2, 0, 0], sizes = [1, 16, 16], strides = [1, 1, 1]} : vector<4x16x16xf32> to vector<1x16x16xf32>
    %60 = vector.shape_cast %59 : vector<1x16x16xf32> to vector<16x16xf32>
    %61 = vector.shape_cast %60 : vector<16x16xf32> to vector<1x16x16xf32>
    %62 = arith.addf %58, %61 : vector<1x16x16xf32>
    %c0_25 = arith.constant 0 : index
    %c0_26 = arith.constant 0 : index
    %c0_27 = arith.constant 0 : index
    %63 = vector.load %arg3[%c0_25, %c0_26, %c0_27] : memref<1x16x16xf32, #tpu.memory_space<vmem>>, vector<1x16x16xf32>
    %64 = arith.addf %62, %63 : vector<1x16x16xf32>
    %cst_28 = arith.constant dense<0xFF800000> : vector<1x16xf32>
    %65 = vector.multi_reduction <maximumf>, %64, %cst_28 [2] : vector<1x16x16xf32> to vector<1x16xf32>
    %66 = vector.shape_cast %65 : vector<1x16xf32> to vector<1x16x1xf32>
    %67 = vector.broadcast %66 : vector<1x16x1xf32> to vector<1x16x16xf32>
    %68 = arith.subf %64, %67 : vector<1x16x16xf32>
    %69 = math.exp %68 : vector<1x16x16xf32>
    %cst_29 = arith.constant dense<0.000000e+00> : vector<1x16xf32>
    %70 = vector.multi_reduction <add>, %69, %cst_29 [2] : vector<1x16x16xf32> to vector<1x16xf32>
    %71 = vector.shape_cast %70 : vector<1x16xf32> to vector<1x16x1xf32>
    %72 = tpu.reciprocal %71 {approx = true} : vector<1x16x1xf32> -> vector<1x16x1xf32>
    %73 = vector.broadcast %72 : vector<1x16x1xf32> to vector<1x16x16xf32>
    %74 = arith.mulf %69, %73 : vector<1x16x16xf32>
    %75 = arith.truncf %74 : vector<1x16x16xf32> to vector<1x16x16xbf16>
    "tpu.trace_start"() <{level = 10 : i32, message = "gnm,gmd->gnd"}> : () -> ()
    %cst_30 = arith.constant dense<0.000000e+00> : vector<1x16x16xf32>
    %76 = tpu.matmul %75, %57, %cst_30 {dimension_numbers = #tpu.dot_dimension_numbers<[2], [1], [1], [2], [0, 0, 0, 1, 1, 2], [0], [0]>} : vector<1x16x16xbf16>, vector<1x16x16xbf16>, vector<1x16x16xf32> -> vector<1x16x16xf32>
    "tpu.trace_stop"() : () -> ()
    %77 = arith.truncf %76 : vector<1x16x16xf32> to vector<1x16x16xbf16>
    %c32 = arith.constant 32 : index
    %c0_31 = arith.constant 0 : index
    %78 = vector.load %arg4[%c32, %c0_31] : memref<64x64xbf16, #tpu.memory_space<vmem>>, vector<16x64xbf16>
    "tpu.trace_start"() <{level = 10 : i32, message = "gnd,dc->gnc"}> : () -> ()
    %cst_32 = arith.constant dense<0.000000e+00> : vector<1x16x64xf32>
    %79 = tpu.matmul %77, %78, %cst_32 {dimension_numbers = #tpu.dot_dimension_numbers<[2], [0], [0, 1], [1], [0, 0, 0, 1, 1, 1], [], []>} : vector<1x16x16xbf16>, vector<16x64xbf16>, vector<1x16x64xf32> -> vector<1x16x64xf32>
    "tpu.trace_stop"() : () -> ()
    %80 = arith.addf %54, %79 : vector<1x16x64xf32>
    %81 = vector.extract_strided_slice %0 {offsets = [0, 0, 48], sizes = [1, 16, 16], strides = [1, 1, 1]} : vector<1x16x192xbf16> to vector<1x16x16xbf16>
    %82 = vector.extract_strided_slice %0 {offsets = [0, 0, 112], sizes = [1, 16, 16], strides = [1, 1, 1]} : vector<1x16x192xbf16> to vector<1x16x16xbf16>
    %83 = vector.extract_strided_slice %0 {offsets = [0, 0, 176], sizes = [1, 16, 16], strides = [1, 1, 1]} : vector<1x16x192xbf16> to vector<1x16x16xbf16>
    "tpu.trace_start"() <{level = 10 : i32, message = "gnd,gmd->gnm"}> : () -> ()
    %cst_33 = arith.constant dense<0.000000e+00> : vector<1x16x16xf32>
    %84 = tpu.matmul %81, %82, %cst_33 {dimension_numbers = #tpu.dot_dimension_numbers<[2], [2], [1], [1], [0, 0, 0, 1, 1, 1], [0], [0]>} : vector<1x16x16xbf16>, vector<1x16x16xbf16>, vector<1x16x16xf32> -> vector<1x16x16xf32>
    "tpu.trace_stop"() : () -> ()
    %85 = vector.extract_strided_slice %1 {offsets = [3, 0, 0], sizes = [1, 16, 16], strides = [1, 1, 1]} : vector<4x16x16xf32> to vector<1x16x16xf32>
    %86 = vector.shape_cast %85 : vector<1x16x16xf32> to vector<16x16xf32>
    %87 = vector.shape_cast %86 : vector<16x16xf32> to vector<1x16x16xf32>
    %88 = arith.addf %84, %87 : vector<1x16x16xf32>
    %c0_34 = arith.constant 0 : index
    %c0_35 = arith.constant 0 : index
    %c0_36 = arith.constant 0 : index
    %89 = vector.load %arg3[%c0_34, %c0_35, %c0_36] : memref<1x16x16xf32, #tpu.memory_space<vmem>>, vector<1x16x16xf32>
    %90 = arith.addf %88, %89 : vector<1x16x16xf32>
    %cst_37 = arith.constant dense<0xFF800000> : vector<1x16xf32>
    %91 = vector.multi_reduction <maximumf>, %90, %cst_37 [2] : vector<1x16x16xf32> to vector<1x16xf32>
    %92 = vector.shape_cast %91 : vector<1x16xf32> to vector<1x16x1xf32>
    %93 = vector.broadcast %92 : vector<1x16x1xf32> to vector<1x16x16xf32>
    %94 = arith.subf %90, %93 : vector<1x16x16xf32>
    %95 = math.exp %94 : vector<1x16x16xf32>
    %cst_38 = arith.constant dense<0.000000e+00> : vector<1x16xf32>
    %96 = vector.multi_reduction <add>, %95, %cst_38 [2] : vector<1x16x16xf32> to vector<1x16xf32>
    %97 = vector.shape_cast %96 : vector<1x16xf32> to vector<1x16x1xf32>
    %98 = tpu.reciprocal %97 {approx = true} : vector<1x16x1xf32> -> vector<1x16x1xf32>
    %99 = vector.broadcast %98 : vector<1x16x1xf32> to vector<1x16x16xf32>
    %100 = arith.mulf %95, %99 : vector<1x16x16xf32>
    %101 = arith.truncf %100 : vector<1x16x16xf32> to vector<1x16x16xbf16>
    "tpu.trace_start"() <{level = 10 : i32, message = "gnm,gmd->gnd"}> : () -> ()
    %cst_39 = arith.constant dense<0.000000e+00> : vector<1x16x16xf32>
    %102 = tpu.matmul %101, %83, %cst_39 {dimension_numbers = #tpu.dot_dimension_numbers<[2], [1], [1], [2], [0, 0, 0, 1, 1, 2], [0], [0]>} : vector<1x16x16xbf16>, vector<1x16x16xbf16>, vector<1x16x16xf32> -> vector<1x16x16xf32>
    "tpu.trace_stop"() : () -> ()
    %103 = arith.truncf %102 : vector<1x16x16xf32> to vector<1x16x16xbf16>
    %c48 = arith.constant 48 : index
    %c0_40 = arith.constant 0 : index
    %104 = vector.load %arg4[%c48, %c0_40] : memref<64x64xbf16, #tpu.memory_space<vmem>>, vector<16x64xbf16>
    "tpu.trace_start"() <{level = 10 : i32, message = "gnd,dc->gnc"}> : () -> ()
    %cst_41 = arith.constant dense<0.000000e+00> : vector<1x16x64xf32>
    %105 = tpu.matmul %103, %104, %cst_41 {dimension_numbers = #tpu.dot_dimension_numbers<[2], [0], [0, 1], [1], [0, 0, 0, 1, 1, 1], [], []>} : vector<1x16x16xbf16>, vector<16x64xbf16>, vector<1x16x64xf32> -> vector<1x16x64xf32>
    "tpu.trace_stop"() : () -> ()
    %106 = arith.addf %80, %105 : vector<1x16x64xf32>
    %c0_42 = arith.constant 0 : index
    %c0_43 = arith.constant 0 : index
    %107 = vector.load %arg5[%c0_42, %c0_43] : memref<1x64xf32, #tpu.memory_space<vmem>>, vector<1x64xf32>
    %108 = vector.shape_cast %107 : vector<1x64xf32> to vector<1x1x64xf32>
    %109 = vector.broadcast %108 : vector<1x1x64xf32> to vector<1x16x64xf32>
    %110 = arith.addf %106, %109 : vector<1x16x64xf32>
    %c0_44 = arith.constant 0 : index
    %c0_45 = arith.constant 0 : index
    %c0_46 = arith.constant 0 : index
    %111 = vector.load %arg6[%c0_44, %c0_45, %c0_46] : memref<1x16x64xf32, #tpu.memory_space<vmem>>, vector<1x16x64xf32>
    tpu.vector_store %arg6[%c0_44, %c0_45, %c0_46], %110 {strides = array<i32>} : memref<1x16x64xf32, #tpu.memory_space<vmem>>, vector<1x16x64xf32>,
    return
  }
  func.func @transform_0(%arg0: i32) -> (i32, i32, i32) {
    %c0_i32 = arith.constant 0 : i32
    %c0_i32_0 = arith.constant 0 : i32
    %c0_i32_1 = arith.constant 0 : i32
    return %arg0, %c0_i32, %c0_i32_0 : i32, i32, i32
  }
  func.func @transform_1(%arg0: i32) -> (i32, i32, i32) {
    %c0_i32 = arith.constant 0 : i32
    %c0_i32_0 = arith.constant 0 : i32
    %c0_i32_1 = arith.constant 0 : i32
    %c0_i32_2 = arith.constant 0 : i32
    return %c0_i32, %c0_i32_0, %c0_i32_1 : i32, i32, i32
  }
  func.func @transform_2(%arg0: i32) -> (i32, i32, i32) {
    %c1_i32 = arith.constant 1 : i32
    %c0_i32 = arith.constant 0 : i32
    %0 = arith.cmpi eq, %c1_i32, %c0_i32 : i32
    %c1_i32_0 = arith.constant 1 : i32
    %1 = arith.select %0, %c1_i32_0, %c1_i32 : i32
    %2 = arith.remsi %arg0, %1 : i32
    %c0_i32_1 = arith.constant 0 : i32
    %3 = arith.cmpi ne, %2, %c0_i32_1 : i32
    %c0_i32_2 = arith.constant 0 : i32
    %4 = arith.cmpi slt, %2, %c0_i32_2 : i32
    %c0_i32_3 = arith.constant 0 : i32
    %5 = arith.cmpi slt, %1, %c0_i32_3 : i32
    %6 = arith.xori %4, %5 : i1
    %7 = arith.andi %6, %3 : i1
    %8 = arith.addi %2, %1 : i32
    %9 = arith.select %7, %8, %2 : i32
    %c0_i32_4 = arith.constant 0 : i32
    %c0_i32_5 = arith.constant 0 : i32
    %c0_i32_6 = arith.constant 0 : i32
    return %9, %c0_i32_4, %c0_i32_5 : i32, i32, i32
  }
  func.func @transform_3(%arg0: i32) -> (i32, i32) {
    %c0_i32 = arith.constant 0 : i32
    %c0_i32_0 = arith.constant 0 : i32
    %c0_i32_1 = arith.constant 0 : i32
    return %c0_i32, %c0_i32_0 : i32, i32
  }
  func.func @transform_4(%arg0: i32) -> (i32, i32) {
    %c0_i32 = arith.constant 0 : i32
    %c0_i32_0 = arith.constant 0 : i32
    %c0_i32_1 = arith.constant 0 : i32
    return %c0_i32, %c0_i32_0 : i32, i32
  }
  func.func @transform_5(%arg0: i32) -> (i32, i32, i32) {
    %c0_i32 = arith.constant 0 : i32
    %c0_i32_0 = arith.constant 0 : i32
    %c0_i32_1 = arith.constant 0 : i32
    return %arg0, %c0_i32, %c0_i32_0 : i32, i32, i32
  }
}

module attributes {stable_mosaic.version = 11 : i64} {
  func.func @_fused_mm_kernel(%arg0: i32, %arg1: memref<32x64xf32, #tpu.memory_space<vmem>>, %arg2: memref<1x64xf32, #tpu.memory_space<vmem>>, %arg3: memref<1x64xf32, #tpu.memory_space<vmem>>, %arg4: memref<64x32xbf16, #tpu.memory_space<vmem>>, %arg5: memref<1x32xf32, #tpu.memory_space<vmem>>, %arg6: memref<32x32xf32, #tpu.memory_space<vmem>>) attributes {dimension_semantics = [#tpu.dimension_semantics<parallel>], iteration_bounds = array<i64: 1>, scalar_prefetch = 0 : i64, scratch_operands = 0 : i64, tpu.core_type = #tpu.core_type<tc>, window_params = [{transform_indices = @transform_0, window_bounds = array<i64: 32, 64>}, {pipeline_mode = #tpu.pipeline_mode<synchronous>, transform_indices = @transform_1, window_bounds = array<i64: 1, 64>}, {pipeline_mode = #tpu.pipeline_mode<synchronous>, transform_indices = @transform_2, window_bounds = array<i64: 1, 64>}, {pipeline_mode = #tpu.pipeline_mode<synchronous>, transform_indices = @transform_3, window_bounds = array<i64: 64, 32>}, {pipeline_mode = #tpu.pipeline_mode<synchronous>, transform_indices = @transform_4, window_bounds = array<i64: 1, 32>}, {transform_indices = @transform_5, window_bounds = array<i64: 32, 32>}]} {
    %c0 = arith.constant 0 : index
    %c0_0 = arith.constant 0 : index
    %0 = vector.load %arg1[%c0, %c0_0] : memref<32x64xf32, #tpu.memory_space<vmem>>, vector<32x64xf32>
    %cst = arith.constant dense<0.000000e+00> : vector<32xf32>
    %1 = vector.multi_reduction <add>, %0, %cst [1] : vector<32x64xf32> to vector<32xf32>
    %2 = vector.shape_cast %1 : vector<32xf32> to vector<32x1xf32>
    %cst_1 = arith.constant 6.400000e+01 : f32
    %3 = vector.broadcast %cst_1 : f32 to vector<32x1xf32>
    %4 = arith.divf %2, %3 : vector<32x1xf32>
    %5 = vector.broadcast %4 : vector<32x1xf32> to vector<32x64xf32>
    %6 = arith.subf %0, %5 : vector<32x64xf32>
    %7 = arith.mulf %6, %6 : vector<32x64xf32>
    %cst_2 = arith.constant dense<0.000000e+00> : vector<32xf32>
    %8 = vector.multi_reduction <add>, %7, %cst_2 [1] : vector<32x64xf32> to vector<32xf32>
    %9 = vector.shape_cast %8 : vector<32xf32> to vector<32x1xf32>
    %cst_3 = arith.constant 6.400000e+01 : f32
    %10 = vector.broadcast %cst_3 : f32 to vector<32x1xf32>
    %11 = arith.divf %9, %10 : vector<32x1xf32>
    %12 = vector.broadcast %4 : vector<32x1xf32> to vector<32x64xf32>
    %13 = arith.subf %0, %12 : vector<32x64xf32>
    %cst_4 = arith.constant 9.99999974E-6 : f32
    %14 = vector.broadcast %cst_4 : f32 to vector<32x1xf32>
    %15 = arith.addf %11, %14 : vector<32x1xf32>
    %16 = math.rsqrt %15 : vector<32x1xf32>
    %17 = vector.broadcast %16 : vector<32x1xf32> to vector<32x64xf32>
    %18 = arith.mulf %13, %17 : vector<32x64xf32>
    %c0_5 = arith.constant 0 : index
    %c0_6 = arith.constant 0 : index
    %19 = vector.load %arg2[%c0_5, %c0_6] : memref<1x64xf32, #tpu.memory_space<vmem>>, vector<1x64xf32>
    %20 = vector.broadcast %19 : vector<1x64xf32> to vector<32x64xf32>
    %21 = arith.mulf %18, %20 : vector<32x64xf32>
    %c0_7 = arith.constant 0 : index
    %c0_8 = arith.constant 0 : index
    %22 = vector.load %arg3[%c0_7, %c0_8] : memref<1x64xf32, #tpu.memory_space<vmem>>, vector<1x64xf32>
    %23 = vector.broadcast %22 : vector<1x64xf32> to vector<32x64xf32>
    %24 = arith.addf %21, %23 : vector<32x64xf32>
    %25 = arith.truncf %24 : vector<32x64xf32> to vector<32x64xbf16>
    %c0_9 = arith.constant 0 : index
    %c0_10 = arith.constant 0 : index
    %26 = vector.load %arg4[%c0_9, %c0_10] : memref<64x32xbf16, #tpu.memory_space<vmem>>, vector<64x32xbf16>
    %cst_11 = arith.constant dense<0.000000e+00> : vector<32x32xf32>
    %27 = tpu.matmul %25, %26, %cst_11 {dimension_numbers = #tpu.dot_dimension_numbers<[1], [0], [0], [1], [0, 0, 1, 1], [], []>} : vector<32x64xbf16>, vector<64x32xbf16>, vector<32x32xf32> -> vector<32x32xf32>
    %c0_12 = arith.constant 0 : index
    %c0_13 = arith.constant 0 : index
    %28 = vector.load %arg5[%c0_12, %c0_13] : memref<1x32xf32, #tpu.memory_space<vmem>>, vector<1x32xf32>
    %29 = vector.broadcast %28 : vector<1x32xf32> to vector<32x32xf32>
    %30 = arith.addf %27, %29 : vector<32x32xf32>
    %c0_14 = arith.constant 0 : index
    %c0_15 = arith.constant 0 : index
    %31 = vector.load %arg6[%c0_14, %c0_15] : memref<32x32xf32, #tpu.memory_space<vmem>>, vector<32x32xf32>
    tpu.vector_store %arg6[%c0_14, %c0_15], %30 {strides = array<i32>} : memref<32x32xf32, #tpu.memory_space<vmem>>, vector<32x32xf32>,
    return
  }
  func.func @transform_0(%arg0: i32) -> (i32, i32) {
    %c0_i32 = arith.constant 0 : i32
    %c0_i32_0 = arith.constant 0 : i32
    return %arg0, %c0_i32 : i32, i32
  }
  func.func @transform_1(%arg0: i32) -> (i32, i32) {
    %c0_i32 = arith.constant 0 : i32
    %c0_i32_0 = arith.constant 0 : i32
    %c0_i32_1 = arith.constant 0 : i32
    return %c0_i32, %c0_i32_0 : i32, i32
  }
  func.func @transform_2(%arg0: i32) -> (i32, i32) {
    %c0_i32 = arith.constant 0 : i32
    %c0_i32_0 = arith.constant 0 : i32
    %c0_i32_1 = arith.constant 0 : i32
    return %c0_i32, %c0_i32_0 : i32, i32
  }
  func.func @transform_3(%arg0: i32) -> (i32, i32) {
    %c0_i32 = arith.constant 0 : i32
    %c0_i32_0 = arith.constant 0 : i32
    %c0_i32_1 = arith.constant 0 : i32
    return %c0_i32, %c0_i32_0 : i32, i32
  }
  func.func @transform_4(%arg0: i32) -> (i32, i32) {
    %c0_i32 = arith.constant 0 : i32
    %c0_i32_0 = arith.constant 0 : i32
    %c0_i32_1 = arith.constant 0 : i32
    return %c0_i32, %c0_i32_0 : i32, i32
  }
  func.func @transform_5(%arg0: i32) -> (i32, i32) {
    %c0_i32 = arith.constant 0 : i32
    %c0_i32_0 = arith.constant 0 : i32
    return %arg0, %c0_i32 : i32, i32
  }
}

module attributes {stable_mosaic.version = 11 : i64} {
  func.func @_fused_mm_kernel(%arg0: i32, %arg1: memref<128x32xf32, #tpu.memory_space<vmem>>, %arg2: memref<1x32xf32, #tpu.memory_space<vmem>>, %arg3: memref<1x32xf32, #tpu.memory_space<vmem>>, %arg4: memref<32x32xbf16, #tpu.memory_space<vmem>>, %arg5: memref<1x32xf32, #tpu.memory_space<vmem>>, %arg6: memref<128x32xf32, #tpu.memory_space<vmem>>) attributes {dimension_semantics = [#tpu.dimension_semantics<parallel>], iteration_bounds = array<i64: 1>, scalar_prefetch = 0 : i64, scratch_operands = 0 : i64, tpu.core_type = #tpu.core_type<tc>, window_params = [{transform_indices = @transform_0, window_bounds = array<i64: 128, 32>}, {pipeline_mode = #tpu.pipeline_mode<synchronous>, transform_indices = @transform_1, window_bounds = array<i64: 1, 32>}, {pipeline_mode = #tpu.pipeline_mode<synchronous>, transform_indices = @transform_2, window_bounds = array<i64: 1, 32>}, {pipeline_mode = #tpu.pipeline_mode<synchronous>, transform_indices = @transform_3, window_bounds = array<i64: 32, 32>}, {pipeline_mode = #tpu.pipeline_mode<synchronous>, transform_indices = @transform_4, window_bounds = array<i64: 1, 32>}, {transform_indices = @transform_5, window_bounds = array<i64: 128, 32>}]} {
    %c0 = arith.constant 0 : index
    %c0_0 = arith.constant 0 : index
    %0 = vector.load %arg1[%c0, %c0_0] : memref<128x32xf32, #tpu.memory_space<vmem>>, vector<128x32xf32>
    %cst = arith.constant dense<0.000000e+00> : vector<128xf32>
    %1 = vector.multi_reduction <add>, %0, %cst [1] : vector<128x32xf32> to vector<128xf32>
    %2 = vector.shape_cast %1 : vector<128xf32> to vector<128x1xf32>
    %cst_1 = arith.constant 3.200000e+01 : f32
    %3 = vector.broadcast %cst_1 : f32 to vector<128x1xf32>
    %4 = arith.divf %2, %3 : vector<128x1xf32>
    %5 = vector.broadcast %4 : vector<128x1xf32> to vector<128x32xf32>
    %6 = arith.subf %0, %5 : vector<128x32xf32>
    %7 = arith.mulf %6, %6 : vector<128x32xf32>
    %cst_2 = arith.constant dense<0.000000e+00> : vector<128xf32>
    %8 = vector.multi_reduction <add>, %7, %cst_2 [1] : vector<128x32xf32> to vector<128xf32>
    %9 = vector.shape_cast %8 : vector<128xf32> to vector<128x1xf32>
    %cst_3 = arith.constant 3.200000e+01 : f32
    %10 = vector.broadcast %cst_3 : f32 to vector<128x1xf32>
    %11 = arith.divf %9, %10 : vector<128x1xf32>
    %12 = vector.broadcast %4 : vector<128x1xf32> to vector<128x32xf32>
    %13 = arith.subf %0, %12 : vector<128x32xf32>
    %cst_4 = arith.constant 9.99999974E-6 : f32
    %14 = vector.broadcast %cst_4 : f32 to vector<128x1xf32>
    %15 = arith.addf %11, %14 : vector<128x1xf32>
    %16 = math.rsqrt %15 : vector<128x1xf32>
    %17 = vector.broadcast %16 : vector<128x1xf32> to vector<128x32xf32>
    %18 = arith.mulf %13, %17 : vector<128x32xf32>
    %c0_5 = arith.constant 0 : index
    %c0_6 = arith.constant 0 : index
    %19 = vector.load %arg2[%c0_5, %c0_6] : memref<1x32xf32, #tpu.memory_space<vmem>>, vector<1x32xf32>
    %20 = vector.broadcast %19 : vector<1x32xf32> to vector<128x32xf32>
    %21 = arith.mulf %18, %20 : vector<128x32xf32>
    %c0_7 = arith.constant 0 : index
    %c0_8 = arith.constant 0 : index
    %22 = vector.load %arg3[%c0_7, %c0_8] : memref<1x32xf32, #tpu.memory_space<vmem>>, vector<1x32xf32>
    %23 = vector.broadcast %22 : vector<1x32xf32> to vector<128x32xf32>
    %24 = arith.addf %21, %23 : vector<128x32xf32>
    %25 = arith.truncf %24 : vector<128x32xf32> to vector<128x32xbf16>
    %c0_9 = arith.constant 0 : index
    %c0_10 = arith.constant 0 : index
    %26 = vector.load %arg4[%c0_9, %c0_10] : memref<32x32xbf16, #tpu.memory_space<vmem>>, vector<32x32xbf16>
    %cst_11 = arith.constant dense<0.000000e+00> : vector<128x32xf32>
    %27 = tpu.matmul %25, %26, %cst_11 {dimension_numbers = #tpu.dot_dimension_numbers<[1], [0], [0], [1], [0, 0, 1, 1], [], []>} : vector<128x32xbf16>, vector<32x32xbf16>, vector<128x32xf32> -> vector<128x32xf32>
    %c0_12 = arith.constant 0 : index
    %c0_13 = arith.constant 0 : index
    %28 = vector.load %arg5[%c0_12, %c0_13] : memref<1x32xf32, #tpu.memory_space<vmem>>, vector<1x32xf32>
    %29 = vector.broadcast %28 : vector<1x32xf32> to vector<128x32xf32>
    %30 = arith.addf %27, %29 : vector<128x32xf32>
    %c0_14 = arith.constant 0 : index
    %c0_15 = arith.constant 0 : index
    %31 = vector.load %arg6[%c0_14, %c0_15] : memref<128x32xf32, #tpu.memory_space<vmem>>, vector<128x32xf32>
    tpu.vector_store %arg6[%c0_14, %c0_15], %30 {strides = array<i32>} : memref<128x32xf32, #tpu.memory_space<vmem>>, vector<128x32xf32>,
    return
  }
  func.func @transform_0(%arg0: i32) -> (i32, i32) {
    %c0_i32 = arith.constant 0 : i32
    %c0_i32_0 = arith.constant 0 : i32
    return %arg0, %c0_i32 : i32, i32
  }
  func.func @transform_1(%arg0: i32) -> (i32, i32) {
    %c0_i32 = arith.constant 0 : i32
    %c0_i32_0 = arith.constant 0 : i32
    %c0_i32_1 = arith.constant 0 : i32
    return %c0_i32, %c0_i32_0 : i32, i32
  }
  func.func @transform_2(%arg0: i32) -> (i32, i32) {
    %c0_i32 = arith.constant 0 : i32
    %c0_i32_0 = arith.constant 0 : i32
    %c0_i32_1 = arith.constant 0 : i32
    return %c0_i32, %c0_i32_0 : i32, i32
  }
  func.func @transform_3(%arg0: i32) -> (i32, i32) {
    %c0_i32 = arith.constant 0 : i32
    %c0_i32_0 = arith.constant 0 : i32
    %c0_i32_1 = arith.constant 0 : i32
    return %c0_i32, %c0_i32_0 : i32, i32
  }
  func.func @transform_4(%arg0: i32) -> (i32, i32) {
    %c0_i32 = arith.constant 0 : i32
    %c0_i32_0 = arith.constant 0 : i32
    %c0_i32_1 = arith.constant 0 : i32
    return %c0_i32, %c0_i32_0 : i32, i32
  }
  func.func @transform_5(%arg0: i32) -> (i32, i32) {
    %c0_i32 = arith.constant 0 : i32
    %c0_i32_0 = arith.constant 0 : i32
    return %arg0, %c0_i32 : i32, i32
  }
}

module attributes {stable_mosaic.version = 11 : i64} {
  func.func @_fused_mm_kernel(%arg0: i32, %arg1: memref<128x288xf32, #tpu.memory_space<vmem>>, %arg2: memref<288x32xbf16, #tpu.memory_space<vmem>>, %arg3: memref<1x32xf32, #tpu.memory_space<vmem>>, %arg4: memref<128x32xf32, #tpu.memory_space<vmem>>) attributes {dimension_semantics = [#tpu.dimension_semantics<parallel>], iteration_bounds = array<i64: 1>, scalar_prefetch = 0 : i64, scratch_operands = 0 : i64, tpu.core_type = #tpu.core_type<tc>, window_params = [{transform_indices = @transform_0, window_bounds = array<i64: 128, 288>}, {pipeline_mode = #tpu.pipeline_mode<synchronous>, transform_indices = @transform_1, window_bounds = array<i64: 288, 32>}, {pipeline_mode = #tpu.pipeline_mode<synchronous>, transform_indices = @transform_2, window_bounds = array<i64: 1, 32>}, {transform_indices = @transform_3, window_bounds = array<i64: 128, 32>}]} {
    %c0 = arith.constant 0 : index
    %c0_0 = arith.constant 0 : index
    %0 = vector.load %arg1[%c0, %c0_0] : memref<128x288xf32, #tpu.memory_space<vmem>>, vector<128x288xf32>
    %1 = arith.truncf %0 : vector<128x288xf32> to vector<128x288xbf16>
    %c0_1 = arith.constant 0 : index
    %c0_2 = arith.constant 0 : index
    %2 = vector.load %arg2[%c0_1, %c0_2] : memref<288x32xbf16, #tpu.memory_space<vmem>>, vector<288x32xbf16>
    %cst = arith.constant dense<0.000000e+00> : vector<128x32xf32>
    %3 = tpu.matmul %1, %2, %cst {dimension_numbers = #tpu.dot_dimension_numbers<[1], [0], [0], [1], [0, 0, 1, 1], [], []>} : vector<128x288xbf16>, vector<288x32xbf16>, vector<128x32xf32> -> vector<128x32xf32>
    %c0_3 = arith.constant 0 : index
    %c0_4 = arith.constant 0 : index
    %4 = vector.load %arg3[%c0_3, %c0_4] : memref<1x32xf32, #tpu.memory_space<vmem>>, vector<1x32xf32>
    %5 = vector.broadcast %4 : vector<1x32xf32> to vector<128x32xf32>
    %6 = arith.addf %3, %5 : vector<128x32xf32>
    %c0_5 = arith.constant 0 : index
    %c0_6 = arith.constant 0 : index
    %7 = vector.load %arg4[%c0_5, %c0_6] : memref<128x32xf32, #tpu.memory_space<vmem>>, vector<128x32xf32>
    tpu.vector_store %arg4[%c0_5, %c0_6], %6 {strides = array<i32>} : memref<128x32xf32, #tpu.memory_space<vmem>>, vector<128x32xf32>,
    return
  }
  func.func @transform_0(%arg0: i32) -> (i32, i32) {
    %c0_i32 = arith.constant 0 : i32
    %c0_i32_0 = arith.constant 0 : i32
    return %arg0, %c0_i32 : i32, i32
  }
  func.func @transform_1(%arg0: i32) -> (i32, i32) {
    %c0_i32 = arith.constant 0 : i32
    %c0_i32_0 = arith.constant 0 : i32
    %c0_i32_1 = arith.constant 0 : i32
    return %c0_i32, %c0_i32_0 : i32, i32
  }
  func.func @transform_2(%arg0: i32) -> (i32, i32) {
    %c0_i32 = arith.constant 0 : i32
    %c0_i32_0 = arith.constant 0 : i32
    %c0_i32_1 = arith.constant 0 : i32
    return %c0_i32, %c0_i32_0 : i32, i32
  }
  func.func @transform_3(%arg0: i32) -> (i32, i32) {
    %c0_i32 = arith.constant 0 : i32
    %c0_i32_0 = arith.constant 0 : i32
    return %arg0, %c0_i32 : i32, i32
  }
}

module attributes {stable_mosaic.version = 11 : i64} {
  func.func @_fused_mm_kernel(%arg0: i32, %arg1: memref<32x288xf32, #tpu.memory_space<vmem>>, %arg2: memref<288x32xbf16, #tpu.memory_space<vmem>>, %arg3: memref<1x32xf32, #tpu.memory_space<vmem>>, %arg4: memref<32x32xf32, #tpu.memory_space<vmem>>) attributes {dimension_semantics = [#tpu.dimension_semantics<parallel>], iteration_bounds = array<i64: 1>, scalar_prefetch = 0 : i64, scratch_operands = 0 : i64, tpu.core_type = #tpu.core_type<tc>, window_params = [{transform_indices = @transform_0, window_bounds = array<i64: 32, 288>}, {pipeline_mode = #tpu.pipeline_mode<synchronous>, transform_indices = @transform_1, window_bounds = array<i64: 288, 32>}, {pipeline_mode = #tpu.pipeline_mode<synchronous>, transform_indices = @transform_2, window_bounds = array<i64: 1, 32>}, {transform_indices = @transform_3, window_bounds = array<i64: 32, 32>}]} {
    %c0 = arith.constant 0 : index
    %c0_0 = arith.constant 0 : index
    %0 = vector.load %arg1[%c0, %c0_0] : memref<32x288xf32, #tpu.memory_space<vmem>>, vector<32x288xf32>
    %1 = arith.truncf %0 : vector<32x288xf32> to vector<32x288xbf16>
    %c0_1 = arith.constant 0 : index
    %c0_2 = arith.constant 0 : index
    %2 = vector.load %arg2[%c0_1, %c0_2] : memref<288x32xbf16, #tpu.memory_space<vmem>>, vector<288x32xbf16>
    %cst = arith.constant dense<0.000000e+00> : vector<32x32xf32>
    %3 = tpu.matmul %1, %2, %cst {dimension_numbers = #tpu.dot_dimension_numbers<[1], [0], [0], [1], [0, 0, 1, 1], [], []>} : vector<32x288xbf16>, vector<288x32xbf16>, vector<32x32xf32> -> vector<32x32xf32>
    %c0_3 = arith.constant 0 : index
    %c0_4 = arith.constant 0 : index
    %4 = vector.load %arg3[%c0_3, %c0_4] : memref<1x32xf32, #tpu.memory_space<vmem>>, vector<1x32xf32>
    %5 = vector.broadcast %4 : vector<1x32xf32> to vector<32x32xf32>
    %6 = arith.addf %3, %5 : vector<32x32xf32>
    %c0_5 = arith.constant 0 : index
    %c0_6 = arith.constant 0 : index
    %7 = vector.load %arg4[%c0_5, %c0_6] : memref<32x32xf32, #tpu.memory_space<vmem>>, vector<32x32xf32>
    tpu.vector_store %arg4[%c0_5, %c0_6], %6 {strides = array<i32>} : memref<32x32xf32, #tpu.memory_space<vmem>>, vector<32x32xf32>,
    return
  }
  func.func @transform_0(%arg0: i32) -> (i32, i32) {
    %c0_i32 = arith.constant 0 : i32
    %c0_i32_0 = arith.constant 0 : i32
    return %arg0, %c0_i32 : i32, i32
  }
  func.func @transform_1(%arg0: i32) -> (i32, i32) {
    %c0_i32 = arith.constant 0 : i32
    %c0_i32_0 = arith.constant 0 : i32
    %c0_i32_1 = arith.constant 0 : i32
    return %c0_i32, %c0_i32_0 : i32, i32
  }
  func.func @transform_2(%arg0: i32) -> (i32, i32) {
    %c0_i32 = arith.constant 0 : i32
    %c0_i32_0 = arith.constant 0 : i32
    %c0_i32_1 = arith.constant 0 : i32
    return %c0_i32, %c0_i32_0 : i32, i32
  }
  func.func @transform_3(%arg0: i32) -> (i32, i32) {
    %c0_i32 = arith.constant 0 : i32
    %c0_i32_0 = arith.constant 0 : i32
    return %arg0, %c0_i32 : i32, i32
  }
}

module attributes {stable_mosaic.version = 11 : i64} {
  func.func @_mlp_kernel(%arg0: i32, %arg1: memref<168x288xf32, #tpu.memory_space<vmem>>, %arg2: memref<288x32xbf16, #tpu.memory_space<vmem>>, %arg3: memref<1x32xf32, #tpu.memory_space<vmem>>, %arg4: memref<32x15xbf16, #tpu.memory_space<vmem>>, %arg5: memref<1x15xf32, #tpu.memory_space<vmem>>, %arg6: memref<168x15xf32, #tpu.memory_space<vmem>>) attributes {dimension_semantics = [#tpu.dimension_semantics<parallel>], iteration_bounds = array<i64: 1>, scalar_prefetch = 0 : i64, scratch_operands = 0 : i64, tpu.core_type = #tpu.core_type<tc>, window_params = [{transform_indices = @transform_0, window_bounds = array<i64: 168, 288>}, {pipeline_mode = #tpu.pipeline_mode<synchronous>, transform_indices = @transform_1, window_bounds = array<i64: 288, 32>}, {pipeline_mode = #tpu.pipeline_mode<synchronous>, transform_indices = @transform_2, window_bounds = array<i64: 1, 32>}, {pipeline_mode = #tpu.pipeline_mode<synchronous>, transform_indices = @transform_3, window_bounds = array<i64: 32, 15>}, {pipeline_mode = #tpu.pipeline_mode<synchronous>, transform_indices = @transform_4, window_bounds = array<i64: 1, 15>}, {transform_indices = @transform_5, window_bounds = array<i64: 168, 15>}]} {
    %c0 = arith.constant 0 : index
    %c0_0 = arith.constant 0 : index
    %0 = vector.load %arg1[%c0, %c0_0] : memref<168x288xf32, #tpu.memory_space<vmem>>, vector<168x288xf32>
    %1 = arith.truncf %0 : vector<168x288xf32> to vector<168x288xbf16>
    %c0_1 = arith.constant 0 : index
    %c0_2 = arith.constant 0 : index
    %2 = vector.load %arg2[%c0_1, %c0_2] : memref<288x32xbf16, #tpu.memory_space<vmem>>, vector<288x32xbf16>
    %cst = arith.constant dense<0.000000e+00> : vector<168x32xf32>
    %3 = tpu.matmul %1, %2, %cst {dimension_numbers = #tpu.dot_dimension_numbers<[1], [0], [0], [1], [0, 0, 1, 1], [], []>} : vector<168x288xbf16>, vector<288x32xbf16>, vector<168x32xf32> -> vector<168x32xf32>
    %c0_3 = arith.constant 0 : index
    %c0_4 = arith.constant 0 : index
    %4 = vector.load %arg3[%c0_3, %c0_4] : memref<1x32xf32, #tpu.memory_space<vmem>>, vector<1x32xf32>
    %5 = vector.broadcast %4 : vector<1x32xf32> to vector<168x32xf32>
    %6 = arith.addf %3, %5 : vector<168x32xf32>
    %cst_5 = arith.constant 0.000000e+00 : f32
    %7 = vector.broadcast %cst_5 : f32 to vector<168x32xf32>
    %8 = arith.maximumf %6, %7 : vector<168x32xf32>
    %9 = arith.truncf %8 : vector<168x32xf32> to vector<168x32xbf16>
    %c0_6 = arith.constant 0 : index
    %c0_7 = arith.constant 0 : index
    %10 = vector.load %arg4[%c0_6, %c0_7] : memref<32x15xbf16, #tpu.memory_space<vmem>>, vector<32x15xbf16>
    %cst_8 = arith.constant dense<0.000000e+00> : vector<168x15xf32>
    %11 = tpu.matmul %9, %10, %cst_8 {dimension_numbers = #tpu.dot_dimension_numbers<[1], [0], [0], [1], [0, 0, 1, 1], [], []>} : vector<168x32xbf16>, vector<32x15xbf16>, vector<168x15xf32> -> vector<168x15xf32>
    %c0_9 = arith.constant 0 : index
    %c0_10 = arith.constant 0 : index
    %12 = vector.load %arg5[%c0_9, %c0_10] : memref<1x15xf32, #tpu.memory_space<vmem>>, vector<1x15xf32>
    %13 = vector.broadcast %12 : vector<1x15xf32> to vector<168x15xf32>
    %14 = arith.addf %11, %13 : vector<168x15xf32>
    %c0_11 = arith.constant 0 : index
    %c0_12 = arith.constant 0 : index
    %15 = vector.load %arg6[%c0_11, %c0_12] : memref<168x15xf32, #tpu.memory_space<vmem>>, vector<168x15xf32>
    tpu.vector_store %arg6[%c0_11, %c0_12], %14 {strides = array<i32>} : memref<168x15xf32, #tpu.memory_space<vmem>>, vector<168x15xf32>,
    return
  }
  func.func @transform_0(%arg0: i32) -> (i32, i32) {
    %c0_i32 = arith.constant 0 : i32
    %c0_i32_0 = arith.constant 0 : i32
    return %arg0, %c0_i32 : i32, i32
  }
  func.func @transform_1(%arg0: i32) -> (i32, i32) {
    %c0_i32 = arith.constant 0 : i32
    %c0_i32_0 = arith.constant 0 : i32
    %c0_i32_1 = arith.constant 0 : i32
    return %c0_i32, %c0_i32_0 : i32, i32
  }
  func.func @transform_2(%arg0: i32) -> (i32, i32) {
    %c0_i32 = arith.constant 0 : i32
    %c0_i32_0 = arith.constant 0 : i32
    %c0_i32_1 = arith.constant 0 : i32
    return %c0_i32, %c0_i32_0 : i32, i32
  }
  func.func @transform_3(%arg0: i32) -> (i32, i32) {
    %c0_i32 = arith.constant 0 : i32
    %c0_i32_0 = arith.constant 0 : i32
    %c0_i32_1 = arith.constant 0 : i32
    return %c0_i32, %c0_i32_0 : i32, i32
  }
  func.func @transform_4(%arg0: i32) -> (i32, i32) {
    %c0_i32 = arith.constant 0 : i32
    %c0_i32_0 = arith.constant 0 : i32
    %c0_i32_1 = arith.constant 0 : i32
    return %c0_i32, %c0_i32_0 : i32, i32
  }
  func.func @transform_5(%arg0: i32) -> (i32, i32) {
    %c0_i32 = arith.constant 0 : i32
    %c0_i32_0 = arith.constant 0 : i32
    return %arg0, %c0_i32 : i32, i32
  }
}

</mosaic_0001>

<bundles_post_ra>
// kernel: model_forward.19
= control target key start
LH: loop header
LB: loop body
LE: loop exit
PB: predicated region body
PF: predicated region fallthrough
CT: control target
= control target key end

     0   :  { %vm76_vm0 = vcmask 392192   ;;  %vm198_vm1 = vcmask 261120   ;;  %s938_s1 = inlined_call_operand.vmem [shape: bf16[48,32], index: 1, kind: input, shape index: {}]   ;;  %s939_s0 = inlined_call_operand.vmem [shape: f32[128,48], index: 0, kind: input, shape index: {}]   ;;  %s940_s2 = inlined_call_operand.vmem [shape: f32[1,32], index: 2, kind: input, shape index: {}]   ;;  %s941_s3 = inlined_call_operand.vmem [shape: f32[1,32], index: 3, kind: input, shape index: {}]   ;;  %s942_s4 = inlined_call_operand.vmem [shape: f32[1,32], index: 4, kind: input, shape index: {}]   ;;  %s943_s5 = inlined_call_operand.vmem [shape: f32[128,32], index: 5, kind: output, shape index: {}]  }
   0x1   :  { %v527_v0 = vld [vmem:[%s938_s1 + $0x10] sm:$0xff]   ;;  %v528_v1 = vld [vmem:[%s938_s1 + $0x8] sm:$0xff]   ;;  %v21_v2 = vld [vmem:[%s939_s0] sm:$0xff] }
   0x2   :  { %499 = vmatprep.subr.bf16.mxu0 %v527_v0  ;;  %521 = vmatprep.subr.bf16.mxu1 %v527_v0  ;;  %v22_v3 = vld [vmem:[%s939_s0 + $0x8] sm:$0xff]  ;;  %v29_v4 = vld [vmem:[%s939_s0 + $0x40] sm:$0xff]  ;;  %v23_v9 = vld [vmem:[%s939_s0 + $0x10] sm:$0xff] }
   0x3   :  { %500 = vmatpush3.bf16.msra.mxu0 %v527_v0  ;;  %524 = vmatpush3.bf16.msra.mxu1 %v527_v0  ;;  %v529_v5 = vld [vmem:[%s938_s1] sm:$0xff]   ;;  %v37_v6 = vpack.c.bf16 %v22_v3, %v21_v2  ;;  %v30_v7 = vld [vmem:[%s939_s0 + $0x48] sm:$0xff]  ;;  %v24_v10 = vld [vmem:[%s939_s0 + $0x18] sm:$0xff] }
   0x4   :  { %501 = vmatprep.subr.bf16.mxu0 %v528_v1  ;;  %522 = vmatprep.subr.bf16.mxu1 %v528_v1  ;;  %v41_v8 = vpack.c.bf16 %v30_v7, %v29_v4  ;;  %v31_v11 = vld [vmem:[%s939_s0 + $0x50] sm:$0xff]  ;;  %v32_v12 = vld [vmem:[%s939_s0 + $0x58] sm:$0xff]  ;;  %v25_v13 = vld [vmem:[%s939_s0 + $0x20] sm:$0xff]  ;;  %v38_v17 = vpack.c.bf16 %v24_v10, %v23_v9 }
   0x5   :  { %505 = vmatprep.mubr.msk.bf16.mxu0 %vm76_vm0, %v37_v6  ;;  %v26_v14 = vld [vmem:[%s939_s0 + $0x28] sm:$0xff]  ;;  %v33_v15 = vld [vmem:[%s939_s0 + $0x60] sm:$0xff]  ;;  %v42_v18 = vpack.c.bf16 %v32_v12, %v31_v11  ;;  %v27_v21 = vld [vmem:[%s939_s0 + $0x30] sm:$0xff] }
   0x6   :  { %v34_v16 = vld [vmem:[%s939_s0 + $0x68] sm:$0xff]  ;;  %513 = vmatprep.mubr.msk.bf16.mxu1 %vm76_vm0, %v41_v8  ;;  %v39_v19 = vpack.c.bf16 %v26_v14, %v25_v13  ;;  %v28_v22 = vld [vmem:[%s939_s0 + $0x38] sm:$0xff]  ;;  %v35_v23 = vld [vmem:[%s939_s0 + $0x70] sm:$0xff] }
   0x7   :  { %502 = vmatpush3.bf16.msra.mxu0 %v528_v1  ;;  %525 = vmatpush3.bf16.msra.mxu1 %v528_v1  ;;  %v43_v20 = vpack.c.bf16 %v34_v16, %v33_v15  ;;  %v36_v24 = vld [vmem:[%s939_s0 + $0x78] sm:$0xff]  ;;  %v40_v25 = vpack.c.bf16 %v28_v22, %v27_v21  ;;  %v474_v27 = vld [vmem:[%s940_s2] ss:$0 sm:$0xff] }
   0x8   :  { %503 = vmatprep.subr.bf16.mxu0 %v529_v5  ;;  %523 = vmatprep.subr.bf16.mxu1 %v529_v5  ;;  %v44_v26 = vpack.c.bf16 %v36_v24, %v35_v23 }
   0xb   :  { %504 = vmatpush3.bf16.msra.mxu0 %v529_v5  ;;  %526 = vmatpush3.bf16.msra.mxu1 %v529_v5 }
   0xe   :  { %506 = vmatmul.mubr.msk.bf16.vlgmr.msra.gmra.mxu0 %vm76_vm0, %v38_v17  ;;  %514 = vmatmul.mubr.msk.bf16.vlgmr.msra.gmra.mxu1 %vm76_vm0, %v42_v18 }
   0xf   :  { %509 = vmatprep.mubr.msk.bf16.mxu0 %vm76_vm0, %v39_v19  ;;  %517 = vmatprep.mubr.msk.bf16.mxu1 %vm76_vm0, %v43_v20 }
  0x16   :  { %510 = vmatmul.mubr.msk.bf16.gmra.mxu0 %vm76_vm0, %v40_v25  ;;  %518 = vmatmul.mubr.msk.bf16.gmra.mxu1 %vm76_vm0, %v44_v26 }
  0xce   :  { %v507_v28 = vpop.f32.mrf.mxu0  ;;  %v515_v29 = vpop.f32.mrf.mxu1 }
  0xcf   :  { %v660_v30 = vadd.f32 %v507_v28, %v474_v27  ;;  %v662_v31 = vadd.f32 %v515_v29, %v474_v27 }
  0xd0   :  { %v135_v32 = vpop.f32.mrf.mxu0  ;;  %v167_v33 = vpop.f32.mrf.mxu1 }
  0xd1   :  { %v664_v34 = vadd.f32 %v474_v27, %v135_v32  ;;  %v229_v35 = vsel %vm198_vm1, %v662_v31, 0.0  ;;  %v205_v36 = vsel %vm198_vm1, %v660_v30, 0.0  ;;  %v670_v42 = vadd.f32 %v474_v27, %v167_v33 }
  0xd2   :  { %230 = vadd.xlane.f32.xlu0 %v229_v35  ;;  %v516_v37 = vpop.f32.mrf.mxu1  ;;  %206 = vadd.xlane.f32.xlu1 %v205_v36  ;;  %v508_v38 = vpop.f32.mrf.mxu0 }
  0xd3   :  { %v147_v39 = vadd.f32 %v508_v38, %v474_v27  ;;  %v672_v43 = vadd.f32 %v516_v37, %v474_v27  ;;  %v199_v45 = vsel %vm198_vm1, %v664_v34, 0.0  ;;  %v223_v52 = vsel %vm198_vm1, %v670_v42, 0.0 }
  0xd4   :  { %v138_v40 = vpop.f32.mrf.mxu0  ;;  %v170_v41 = vpop.f32.mrf.mxu1 }
  0xd5   :  { %v208_v44 = vsel %vm198_vm1, %v147_v39, 0.0  ;;  %v677_v49 = vadd.f32 %v474_v27, %v138_v40  ;;  %v679_v50 = vadd.f32 %v474_v27, %v170_v41  ;;  %v232_v51 = vsel %vm198_vm1, %v672_v43, 0.0 }
  0xd6   :  { %209 = vadd.xlane.f32.xlu1 %v208_v44  ;;  %200 = vadd.xlane.f32.xlu0 %v199_v45  ;;  %v511_v46 = vpop.f32.mrf.mxu0  ;;  %v519_v47 = vpop.f32.mrf.mxu1 }
  0xd7   :  { %v685_v55 = vadd.f32 %v511_v46, %v474_v27  ;;  %v226_v57 = vsel %vm198_vm1, %v679_v50, 0.0  ;;  %v202_v58 = vsel %vm198_vm1, %v677_v49, 0.0  ;;  %v709_v6 = vadd.f32 %v519_v47, %v474_v27 }
  0xd8   :  { %v151_v48 = vpop.f32.mrf.mxu0  ;;  %v183_v54 = vpop.f32.mrf.mxu1 }
  0xd9   :  { %v217_v62 = vsel %vm198_vm1, %v685_v55, 0.0  ;;  %v697_v63 = vadd.f32 %v474_v27, %v151_v48  ;;  %v701_v2 = vadd.f32 %v474_v27, %v183_v54  ;;  %v241_v11 = vsel %vm198_vm1, %v709_v6, 0.0 }
  0xda   :  { %233 = vadd.xlane.f32.xlu1 %v232_v51  ;;  %224 = vadd.xlane.f32.xlu0 %v223_v52  ;;  %v512_v53 = vpop.f32.mrf.mxu0  ;;  %v520_v60 = vpop.f32.mrf.mxu1 }
  0xdb   :  { %v687_v56 = vadd.f32 %v512_v53, %v474_v27  ;;  %v211_v5 = vsel %vm198_vm1, %v697_v63, 0.0  ;;  %v711_v7 = vadd.f32 %v520_v60, %v474_v27  ;;  %v235_v9 = vsel %vm198_vm1, %v701_v2, 0.0 }
  0xdc   :  { %v154_v59 = vpop.f32.mrf.mxu0  ;;  %v186_v1 = vpop.f32.mrf.mxu1 }
  0xdd   :  { %v220_v61 = vsel %vm198_vm1, %v687_v56, 0.0  ;;  %v699_v0 = vadd.f32 %v474_v27, %v154_v59  ;;  %v703_v3 = vadd.f32 %v474_v27, %v186_v1  ;;  %v244_v10 = vsel %vm198_vm1, %v711_v7, 0.0 }
  0xde   :  { %227 = vadd.xlane.f32.xlu1 %v226_v57  ;;  %203 = vadd.xlane.f32.xlu0 %v202_v58 }
  0xdf   :  { %v214_v4 = vsel %vm198_vm1, %v699_v0, 0.0  ;;  %v238_v8 = vsel %vm198_vm1, %v703_v3, 0.0 }
  0xe2   :  { %221 = vadd.xlane.f32.xlu1 %v220_v61  ;;  %218 = vadd.xlane.f32.xlu0 %v217_v62 }
  0xe6   :  { %215 = vadd.xlane.f32.xlu1 %v214_v4  ;;  %212 = vadd.xlane.f32.xlu0 %v211_v5 }
  0xea   :  { %239 = vadd.xlane.f32.xlu1 %v238_v8  ;;  %236 = vadd.xlane.f32.xlu0 %v235_v9 }
  0xee   :  { %245 = vadd.xlane.f32.xlu1 %v244_v10  ;;  %242 = vadd.xlane.f32.xlu0 %v241_v11 }
 0x15b   :  { %v231_v12 = vpop.xlane.xlu0 %230  ;;  %v207_v13 = vpop.xlane.xlu1 %206 }
 0x15c   :  { %v258_v14 = vmul.f32 0.03125, %v231_v12  ;;  %v250_v15 = vmul.f32 0.03125, %v207_v13 }
 0x15e   :  { %v722_v16 = vsub.f32 %v662_v31, %v258_v14  ;;  %v725_v17 = vsub.f32 %v660_v30, %v250_v15 }
 0x15f   :  { %v210_v18 = vpop.xlane.xlu1 %209  ;;  %v201_v19 = vpop.xlane.xlu0 %200 }
 0x160   :  { %v251_v20 = vmul.f32 0.03125, %v210_v18  ;;  %v248_v21 = vmul.f32 0.03125, %v201_v19  ;;  %v282_v22 = vmul.f32 %v725_v17, %v725_v17  ;;  %v290_v26 = vmul.f32 %v722_v16, %v722_v16 }
 0x162   :  { %v729_v23 = vsub.f32 %v147_v39, %v251_v20  ;;  %v732_v24 = vsub.f32 %v664_v34, %v248_v21  ;;  %v302_v25 = vsel %vm198_vm1, %v282_v22, 0.0  ;;  %v326_v36 = vsel %vm198_vm1, %v290_v26, 0.0 }
 0x163   :  { %v234_v27 = vpop.xlane.xlu1 %233  ;;  %303 = vadd.xlane.f32.xlu0 %v302_v25  ;;  %v225_v28 = vpop.xlane.xlu0 %224 }
 0x164   :  { %v259_v29 = vmul.f32 0.03125, %v234_v27  ;;  %v256_v30 = vmul.f32 0.03125, %v225_v28  ;;  %v283_v31 = vmul.f32 %v729_v23, %v729_v23  ;;  %v280_v32 = vmul.f32 %v732_v24, %v732_v24 }
 0x166   :  { %v742_v33 = vsub.f32 %v672_v43, %v259_v29  ;;  %v745_v34 = vsub.f32 %v670_v42, %v256_v30  ;;  %v305_v35 = vsel %vm198_vm1, %v283_v31, 0.0  ;;  %v296_v44 = vsel %vm198_vm1, %v280_v32, 0.0 }
 0x167   :  { %v228_v37 = vpop.xlane.xlu1 %227  ;;  %306 = vadd.xlane.f32.xlu1 %v305_v35  ;;  %327 = vadd.xlane.f32.xlu0 %v326_v36  ;;  %v204_v38 = vpop.xlane.xlu0 %203 }
 0x168   :  { %v257_v39 = vmul.f32 0.03125, %v228_v37  ;;  %v249_v40 = vmul.f32 0.03125, %v204_v38  ;;  %v291_v41 = vmul.f32 %v742_v33, %v742_v33  ;;  %v288_v46 = vmul.f32 %v745_v34, %v745_v34 }
 0x16a   :  { %v753_v43 = vsub.f32 %v679_v50, %v257_v39  ;;  %v756_v42 = vsub.f32 %v677_v49, %v249_v40  ;;  %v329_v45 = vsel %vm198_vm1, %v291_v41, 0.0  ;;  %v320_v57 = vsel %vm198_vm1, %v288_v46, 0.0 }
 0x16b   :  { %v222_v47 = vpop.xlane.xlu1 %221  ;;  %330 = vadd.xlane.f32.xlu1 %v329_v45  ;;  %297 = vadd.xlane.f32.xlu0 %v296_v44  ;;  %v219_v48 = vpop.xlane.xlu0 %218 }
 0x16c   :  { %v255_v51 = vmul.f32 0.03125, %v222_v47  ;;  %v254_v52 = vmul.f32 0.03125, %v219_v48  ;;  %v281_v53 = vmul.f32 %v756_v42, %v756_v42  ;;  %v289_v50 = vmul.f32 %v753_v43, %v753_v43 }
 0x16e   :  { %v766_v49 = vsub.f32 %v687_v56, %v255_v51  ;;  %v769_v54 = vsub.f32 %v685_v55, %v254_v52  ;;  %v299_v58 = vsel %vm198_vm1, %v281_v53, 0.0  ;;  %v323_v4 = vsel %vm198_vm1, %v289_v50, 0.0 }
 0x16f   :  { %v216_v59 = vpop.xlane.xlu1 %215  ;;  %321 = vadd.xlane.f32.xlu0 %v320_v57  ;;  %300 = vadd.xlane.f32.xlu1 %v299_v58  ;;  %v213_v60 = vpop.xlane.xlu0 %212 }
 0x170   :  { %v253_v61 = vmul.f32 0.03125, %v216_v59  ;;  %v252_v62 = vmul.f32 0.03125, %v213_v60  ;;  %v286_v1 = vmul.f32 %v769_v54, %v769_v54  ;;  %v287_v8 = vmul.f32 %v766_v49, %v766_v49 }
 0x172   :  { %v777_v56 = vsub.f32 %v699_v0, %v253_v61  ;;  %v780_v55 = vsub.f32 %v697_v63, %v252_v62  ;;  %v314_v5 = vsel %vm198_vm1, %v286_v1, 0.0  ;;  %v317_v15 = vsel %vm198_vm1, %v287_v8, 0.0  ;;  %v819_v8 = vld [vmem:[%s941_s3] ss:$0 sm:$0xff] }
 0x173   :  { %v240_v9 = vpop.xlane.xlu1 %239  ;;  %324 = vadd.xlane.f32.xlu1 %v323_v4  ;;  %315 = vadd.xlane.f32.xlu0 %v314_v5  ;;  %v237_v10 = vpop.xlane.xlu0 %236 }
 0x174   :  { %v261_v11 = vmul.f32 0.03125, %v240_v9  ;;  %v260_v12 = vmul.f32 0.03125, %v237_v10  ;;  %v284_v13 = vmul.f32 %v780_v55, %v780_v55  ;;  %v285_v0 = vmul.f32 %v777_v56, %v777_v56 }
 0x176   :  { %v790_v63 = vsub.f32 %v703_v3, %v261_v11  ;;  %v793_v14 = vsub.f32 %v701_v2, %v260_v12  ;;  %v308_v18 = vsel %vm198_vm1, %v284_v13, 0.0  ;;  %v311_v26 = vsel %vm198_vm1, %v285_v0, 0.0  ;;  %v825_v12 = vld [vmem:[%s942_s4] ss:$0 sm:$0xff] }
 0x177   :  { %v246_v19 = vpop.xlane.xlu1 %245  ;;  %318 = vadd.xlane.f32.xlu1 %v317_v15  ;;  %309 = vadd.xlane.f32.xlu0 %v308_v18  ;;  %v243_v20 = vpop.xlane.xlu0 %242 }
 0x178   :  { %v263_v21 = vmul.f32 0.03125, %v246_v19  ;;  %v262_v22 = vmul.f32 0.03125, %v243_v20  ;;  %v292_v25 = vmul.f32 %v793_v14, %v793_v14  ;;  %v293_v28 = vmul.f32 %v790_v63, %v790_v63 }
 0x17a   :  { %v801_v3 = vsub.f32 %v711_v7, %v263_v21  ;;  %v804_v2 = vsub.f32 %v709_v6, %v262_v22  ;;  %v332_v27 = vsel %vm198_vm1, %v292_v25, 0.0  ;;  %v335_v30 = vsel %vm198_vm1, %v293_v28, 0.0 }
 0x17b   :  { %312 = vadd.xlane.f32.xlu1 %v311_v26  ;;  %333 = vadd.xlane.f32.xlu0 %v332_v27 }
 0x17c   :  { %v294_v29 = vmul.f32 %v804_v2, %v804_v2  ;;  %v295_v7 = vmul.f32 %v801_v3, %v801_v3 }
 0x17e   :  { %v338_v31 = vsel %vm198_vm1, %v294_v29, 0.0  ;;  %v341_v6 = vsel %vm198_vm1, %v295_v7, 0.0 }
 0x17f   :  { %336 = vadd.xlane.f32.xlu1 %v335_v30  ;;  %339 = vadd.xlane.f32.xlu0 %v338_v31 }
 0x183   :  { %342 = vadd.xlane.f32.xlu1 %v341_v6 }
 0x1ec   :  { %v304_v32 = vpop.xlane.xlu0 %303 }
 0x1ed   :  { %v346_v35 = vmul.f32 0.03125, %v304_v32 }
 0x1ef   :  { %v362_v36 = vadd.f32 1e-05, %v346_v35 }
 0x1f0   :  { %v307_v37 = vpop.xlane.xlu1 %306  ;;  %v328_v38 = vpop.xlane.xlu0 %327 }
 0x1f1   :  { %530 = vrsqrt.f32 %v362_v36  ;;  %v347_v39 = vmul.f32 0.03125, %v307_v37  ;;  %v354_v40 = vmul.f32 0.03125, %v328_v38 }
 0x1f3   :  { %v363_v41 = vadd.f32 1e-05, %v347_v39  ;;  %v370_v44 = vadd.f32 1e-05, %v354_v40 }
 0x1f4   :  { %v331_v45 = vpop.xlane.xlu1 %330  ;;  %v298_v46 = vpop.xlane.xlu0 %297 }
 0x1f5   :  { %532 = vrsqrt.f32 %v363_v41  ;;  %v355_v47 = vmul.f32 0.03125, %v331_v45  ;;  %v344_v48 = vmul.f32 0.03125, %v298_v46 }
 0x1f6   :  { %534 = vrsqrt.f32 %v370_v44 }
 0x1f7   :  { %v371_v51 = vadd.f32 1e-05, %v355_v47  ;;  %v360_v52 = vadd.f32 1e-05, %v344_v48 }
 0x1f8   :  { %v301_v53 = vpop.xlane.xlu1 %300  ;;  %v322_v50 = vpop.xlane.xlu0 %321 }
 0x1f9   :  { %536 = vrsqrt.f32 %v371_v51  ;;  %v345_v57 = vmul.f32 0.03125, %v301_v53  ;;  %v352_v58 = vmul.f32 0.03125, %v322_v50 }
 0x1fa   :  { %538 = vrsqrt.f32 %v360_v52 }
 0x1fb   :  { %v361_v59 = vadd.f32 1e-05, %v345_v57  ;;  %v368_v60 = vadd.f32 1e-05, %v352_v58 }
 0x1fc   :  { %v325_v61 = vpop.xlane.xlu1 %324  ;;  %v316_v62 = vpop.xlane.xlu0 %315 }
 0x1fd   :  { %540 = vrsqrt.f32 %v361_v59  ;;  %v353_v1 = vmul.f32 0.03125, %v325_v61  ;;  %v350_v4 = vmul.f32 0.03125, %v316_v62 }
 0x1fe   :  { %v531_v5 = vpop.eup %530  ;;  %542 = vrsqrt.f32 %v368_v60 }
 0x1ff   :  { %v394_v9 = vmul.f32 %v531_v5, %v725_v17  ;;  %v369_v10 = vadd.f32 1e-05, %v353_v1  ;;  %v366_v11 = vadd.f32 1e-05, %v350_v4 }
 0x200   :  { %v319_v13 = vpop.xlane.xlu1 %318  ;;  %v310_v0 = vpop.xlane.xlu0 %309 }
 0x201   :  { %v417_v15 = vmul.f32 %v819_v8, %v394_v9  ;;  %544 = vrsqrt.f32 %v369_v10  ;;  %v351_v18 = vmul.f32 0.03125, %v319_v13  ;;  %v348_v19 = vmul.f32 0.03125, %v310_v0 }
 0x202   :  { %v533_v20 = vpop.eup %532  ;;  %546 = vrsqrt.f32 %v366_v11 }
 0x203   :  { %v535_v21 = vpop.eup %534  ;;  %v440_v22 = vadd.f32 %v825_v12, %v417_v15  ;;  %v395_v17 = vmul.f32 %v533_v20, %v729_v23  ;;  %v367_v25 = vadd.f32 1e-05, %v351_v18  ;;  %v364_v26 = vadd.f32 1e-05, %v348_v19 }
 0x204   :  { %v402_v27 = vmul.f32 %v535_v21, %v722_v16  ;;  %v313_v28 = vpop.xlane.xlu1 %312  ;;  %v334_v29 = vpop.xlane.xlu0 %333 }
 0x205   :  { %456 = vst.msk [vmem:[%s943_s5 + $0x10] sm:$0xff] %vm198_vm1, %v440_v22  ;;  %v418_v30 = vmul.f32 %v819_v8, %v395_v17  ;;  %548 = vrsqrt.f32 %v367_v25  ;;  %v349_v31 = vmul.f32 0.03125, %v313_v28  ;;  %v356_v7 = vmul.f32 0.03125, %v334_v29 }
 0x206   :  { %v537_v6 = vpop.eup %536  ;;  %v425_v32 = vmul.f32 %v819_v8, %v402_v27  ;;  %550 = vrsqrt.f32 %v364_v26 }
 0x207   :  { %v539_v23 = vpop.eup %538  ;;  %v441_v35 = vadd.f32 %v825_v12, %v418_v30  ;;  %v403_v16 = vmul.f32 %v537_v6, %v742_v33  ;;  %v365_v36 = vadd.f32 1e-05, %v349_v31  ;;  %v372_v37 = vadd.f32 1e-05, %v356_v7 }
 0x208   :  { %v448_v38 = vadd.f32 %v825_v12, %v425_v32  ;;  %v392_v39 = vmul.f32 %v539_v23, %v732_v24  ;;  %v337_v40 = vpop.xlane.xlu1 %336  ;;  %v340_v41 = vpop.xlane.xlu0 %339 }
 0x209   :  { %457 = vst.msk [vmem:[%s943_s5 + $0x18] sm:$0xff] %vm198_vm1, %v441_v35  ;;  %v426_v44 = vmul.f32 %v819_v8, %v403_v16  ;;  %552 = vrsqrt.f32 %v365_v36  ;;  %v357_v45 = vmul.f32 0.03125, %v337_v40  ;;  %v358_v46 = vmul.f32 0.03125, %v340_v41 }
 0x20a   :  { %v541_v47 = vpop.eup %540  ;;  %464 = vst.msk [vmem:[%s943_s5 + $0x50] sm:$0xff] %vm198_vm1, %v448_v38  ;;  %v415_v24 = vmul.f32 %v819_v8, %v392_v39  ;;  %554 = vrsqrt.f32 %v372_v37 }
 0x20b   :  { %v543_v33 = vpop.eup %542  ;;  %v449_v48 = vadd.f32 %v825_v12, %v426_v44  ;;  %v393_v51 = vmul.f32 %v541_v47, %v756_v42  ;;  %v373_v52 = vadd.f32 1e-05, %v357_v45  ;;  %v374_v53 = vadd.f32 1e-05, %v358_v46 }
 0x20c   :  { %v438_v50 = vadd.f32 %v825_v12, %v415_v24  ;;  %v400_v57 = vmul.f32 %v543_v33, %v745_v34  ;;  %v343_v58 = vpop.xlane.xlu1 %342 }
 0x20d   :  { %465 = vst.msk [vmem:[%s943_s5 + $0x58] sm:$0xff] %vm198_vm1, %v449_v48  ;;  %v416_v59 = vmul.f32 %v819_v8, %v393_v51  ;;  %556 = vrsqrt.f32 %v373_v52  ;;  %v359_v60 = vmul.f32 0.03125, %v343_v58 }
 0x20e   :  { %v545_v61 = vpop.eup %544  ;;  %454 = vst.msk [vmem:[%s943_s5] sm:$0xff] %vm198_vm1, %v438_v50  ;;  %v423_v42 = vmul.f32 %v819_v8, %v400_v57  ;;  %558 = vrsqrt.f32 %v374_v53 }
 0x20f   :  { %v547_v34 = vpop.eup %546  ;;  %v439_v62 = vadd.f32 %v825_v12, %v416_v59  ;;  %v401_v1 = vmul.f32 %v545_v61, %v753_v43  ;;  %v375_v4 = vadd.f32 1e-05, %v359_v60 }
 0x210   :  { %v446_v5 = vadd.f32 %v825_v12, %v423_v42  ;;  %v398_v9 = vmul.f32 %v547_v34, %v769_v54 }
 0x211   :  { %455 = vst.msk [vmem:[%s943_s5 + $0x8] sm:$0xff] %vm198_vm1, %v439_v62  ;;  %v424_v10 = vmul.f32 %v819_v8, %v401_v1  ;;  %560 = vrsqrt.f32 %v375_v4 }
 0x212   :  { %v549_v11 = vpop.eup %548  ;;  %462 = vst.msk [vmem:[%s943_s5 + $0x40] sm:$0xff] %vm198_vm1, %v446_v5  ;;  %v421_v43 = vmul.f32 %v819_v8, %v398_v9 }
 0x213   :  { %v551_v13 = vpop.eup %550  ;;  %v447_v0 = vadd.f32 %v825_v12, %v424_v10  ;;  %v399_v54 = vmul.f32 %v549_v11, %v766_v49 }
 0x214   :  { %v444_v15 = vadd.f32 %v825_v12, %v421_v43  ;;  %v396_v18 = vmul.f32 %v551_v13, %v780_v55 }
 0x215   :  { %463 = vst.msk [vmem:[%s943_s5 + $0x48] sm:$0xff] %vm198_vm1, %v447_v0  ;;  %v422_v19 = vmul.f32 %v819_v8, %v399_v54 }
 0x216   :  { %v553_v20 = vpop.eup %552  ;;  %460 = vst.msk [vmem:[%s943_s5 + $0x30] sm:$0xff] %vm198_vm1, %v444_v15  ;;  %v419_v21 = vmul.f32 %v819_v8, %v396_v18 }
 0x217   :  { %v555_v49 = vpop.eup %554  ;;  %v445_v22 = vadd.f32 %v825_v12, %v422_v19  ;;  %v397_v55 = vmul.f32 %v553_v20, %v777_v56 }
 0x218   :  { %v442_v17 = vadd.f32 %v825_v12, %v419_v21  ;;  %v404_v25 = vmul.f32 %v555_v49, %v793_v14 }
 0x219   :  { %461 = vst.msk [vmem:[%s943_s5 + $0x38] sm:$0xff] %vm198_vm1, %v445_v22  ;;  %v420_v26 = vmul.f32 %v819_v8, %v397_v55 }
 0x21a   :  { %v557_v27 = vpop.eup %556  ;;  %458 = vst.msk [vmem:[%s943_s5 + $0x20] sm:$0xff] %vm198_vm1, %v442_v17  ;;  %v427_v28 = vmul.f32 %v819_v8, %v404_v25 }
 0x21b   :  { %v559_v56 = vpop.eup %558  ;;  %v443_v29 = vadd.f32 %v825_v12, %v420_v26  ;;  %v405_v14 = vmul.f32 %v557_v27, %v790_v63 }
 0x21c   :  { %v450_v30 = vadd.f32 %v825_v12, %v427_v28  ;;  %v406_v31 = vmul.f32 %v559_v56, %v804_v2 }
 0x21d   :  { %459 = vst.msk [vmem:[%s943_s5 + $0x28] sm:$0xff] %vm198_vm1, %v443_v29  ;;  %v428_v7 = vmul.f32 %v819_v8, %v405_v14 }
 0x21e   :  { %v561_v6 = vpop.eup %560  ;;  %466 = vst.msk [vmem:[%s943_s5 + $0x60] sm:$0xff] %vm198_vm1, %v450_v30  ;;  %v429_v32 = vmul.f32 %v819_v8, %v406_v31 }
 0x21f   :  { %v451_v63 = vadd.f32 %v825_v12, %v428_v7  ;;  %v407_v23 = vmul.f32 %v561_v6, %v801_v3 }
 0x220   :  { %v452_v2 = vadd.f32 %v825_v12, %v429_v32 }
 0x221   :  { %467 = vst.msk [vmem:[%s943_s5 + $0x68] sm:$0xff] %vm198_vm1, %v451_v63  ;;  %v430_v35 = vmul.f32 %v819_v8, %v407_v23 }
 0x222   :  { %468 = vst.msk [vmem:[%s943_s5 + $0x70] sm:$0xff] %vm198_vm1, %v452_v2 }
 0x223   :  { %v453_v16 = vadd.f32 %v825_v12, %v430_v35 }
 0x225   :  { %469 = vst.msk [vmem:[%s943_s5 + $0x78] sm:$0xff] %vm198_vm1, %v453_v16 }

// kernel: model_forward.20
= control target key start
LH: loop header
LB: loop body
LE: loop exit
PB: predicated region body
PF: predicated region fallthrough
CT: control target
= control target key end

     0   :  { %vm37_vm0 = vcmask 261120   ;;  %vm509_vm1 = vcmask 781312   ;;  %s1014_s0 = inlined_call_operand.vmem [shape: f32[128,32], index: 0, kind: input, shape index: {}]   ;;  %s1015_s3 = inlined_call_operand.vmem [shape: bf16[32,96], index: 3, kind: input, shape index: {}]   ;;  %s1016_s1 = inlined_call_operand.vmem [shape: f32[1,32], index: 1, kind: input, shape index: {}]   ;;  %s1017_s2 = inlined_call_operand.vmem [shape: f32[1,32], index: 2, kind: input, shape index: {}]   ;;  %s1018_s4 = inlined_call_operand.vmem [shape: f32[1,96], index: 4, kind: input, shape index: {}]   ;;  %s1019_s5 = inlined_call_operand.vmem [shape: bf16[128,96], index: 5, kind: output, shape index: {}]  }
   0x1   :  { %v21_v0 = vld [vmem:[%s1014_s0] sm:$0xff]  ;;  %v22_v2 = vld [vmem:[%s1014_s0 + $0x8] sm:$0xff]  ;;  %v23_v8 = vld [vmem:[%s1014_s0 + $0x10] sm:$0xff] }
   0x2   :  { %v29_v1 = vld [vmem:[%s1014_s0 + $0x40] sm:$0xff]  ;;  %v38_v3 = vsel %vm37_vm0, %v21_v0, 0.0  ;;  %v30_v5 = vld [vmem:[%s1014_s0 + $0x48] sm:$0xff]  ;;  %v41_v6 = vsel %vm37_vm0, %v22_v2, 0.0  ;;  %v24_v9 = vld [vmem:[%s1014_s0 + $0x18] sm:$0xff]  ;;  %v44_v10 = vsel %vm37_vm0, %v23_v8, 0.0 }
   0x3   :  { %v62_v4 = vsel %vm37_vm0, %v29_v1, 0.0  ;;  %39 = vadd.xlane.f32.xlu0 %v38_v3  ;;  %v65_v7 = vsel %vm37_vm0, %v30_v5, 0.0  ;;  %v47_v11 = vsel %vm37_vm0, %v24_v9, 0.0  ;;  %v700_v12 = vld [vmem:[%s1014_s0 + $0x50] sm:$0xff]  ;;  %v705_v13 = vld [vmem:[%s1014_s0 + $0x58] sm:$0xff]  ;;  %v714_v16 = vld [vmem:[%s1014_s0 + $0x20] sm:$0xff] }
   0x4   :  { %63 = vadd.xlane.f32.xlu1 %v62_v4  ;;  %v68_v14 = vsel %vm37_vm0, %v700_v12, 0.0  ;;  %v71_v15 = vsel %vm37_vm0, %v705_v13, 0.0  ;;  %v719_v17 = vld [vmem:[%s1014_s0 + $0x28] sm:$0xff]  ;;  %v50_v18 = vsel %vm37_vm0, %v714_v16, 0.0  ;;  %v728_v20 = vld [vmem:[%s1014_s0 + $0x60] sm:$0xff]  ;;  %v742_v24 = vld [vmem:[%s1014_s0 + $0x30] sm:$0xff] }
   0x5   :  { %v53_v19 = vsel %vm37_vm0, %v719_v17, 0.0  ;;  %v733_v21 = vld [vmem:[%s1014_s0 + $0x68] sm:$0xff]  ;;  %v74_v22 = vsel %vm37_vm0, %v728_v20, 0.0  ;;  %v747_v25 = vld [vmem:[%s1014_s0 + $0x38] sm:$0xff]  ;;  %v56_v26 = vsel %vm37_vm0, %v742_v24, 0.0  ;;  %v756_v28 = vld [vmem:[%s1014_s0 + $0x70] sm:$0xff] }
   0x6   :  { %v77_v23 = vsel %vm37_vm0, %v733_v21, 0.0  ;;  %v59_v27 = vsel %vm37_vm0, %v747_v25, 0.0  ;;  %v761_v29 = vld [vmem:[%s1014_s0 + $0x78] sm:$0xff]  ;;  %v80_v30 = vsel %vm37_vm0, %v756_v28, 0.0 }
   0x7   :  { %42 = vadd.xlane.f32.xlu0 %v41_v6  ;;  %v83_v31 = vsel %vm37_vm0, %v761_v29, 0.0 }
   0x8   :  { %66 = vadd.xlane.f32.xlu1 %v65_v7 }
   0xb   :  { %45 = vadd.xlane.f32.xlu0 %v44_v10 }
   0xc   :  { %48 = vadd.xlane.f32.xlu1 %v47_v11 }
   0xf   :  { %69 = vadd.xlane.f32.xlu0 %v68_v14 }
  0x10   :  { %72 = vadd.xlane.f32.xlu1 %v71_v15 }
  0x13   :  { %51 = vadd.xlane.f32.xlu0 %v50_v18 }
  0x14   :  { %54 = vadd.xlane.f32.xlu1 %v53_v19 }
  0x17   :  { %75 = vadd.xlane.f32.xlu0 %v74_v22 }
  0x18   :  { %78 = vadd.xlane.f32.xlu1 %v77_v23 }
  0x1b   :  { %57 = vadd.xlane.f32.xlu0 %v56_v26 }
  0x1c   :  { %60 = vadd.xlane.f32.xlu1 %v59_v27 }
  0x1f   :  { %81 = vadd.xlane.f32.xlu0 %v80_v30 }
  0x20   :  { %84 = vadd.xlane.f32.xlu1 %v83_v31 }
  0x8c   :  { %v40_v32 = vpop.xlane.xlu0 %39 }
  0x8d   :  { %v64_v33 = vpop.xlane.xlu1 %63  ;;  %v87_v34 = vmul.f32 0.03125, %v40_v32 }
  0x8e   :  { %v95_v35 = vmul.f32 0.03125, %v64_v33 }
  0x8f   :  { %v767_v36 = vsub.f32 %v21_v0, %v87_v34 }
  0x90   :  { %v769_v37 = vsub.f32 %v29_v1, %v95_v35  ;;  %v43_v38 = vpop.xlane.xlu0 %42 }
  0x91   :  { %v67_v39 = vpop.xlane.xlu1 %66  ;;  %v88_v40 = vmul.f32 0.03125, %v43_v38  ;;  %v119_v42 = vmul.f32 %v767_v36, %v767_v36 }
  0x92   :  { %v96_v41 = vmul.f32 0.03125, %v67_v39  ;;  %v127_v43 = vmul.f32 %v769_v37, %v769_v37 }
  0x93   :  { %v775_v44 = vsub.f32 %v22_v2, %v88_v40  ;;  %v135_v46 = vsel %vm37_vm0, %v119_v42, 0.0 }
  0x94   :  { %v777_v45 = vsub.f32 %v30_v5, %v96_v41  ;;  %136 = vadd.xlane.f32.xlu0 %v135_v46  ;;  %v46_v47 = vpop.xlane.xlu0 %45  ;;  %v159_v49 = vsel %vm37_vm0, %v127_v43, 0.0 }
  0x95   :  { %v49_v48 = vpop.xlane.xlu1 %48  ;;  %v89_v50 = vmul.f32 0.03125, %v46_v47  ;;  %v120_v52 = vmul.f32 %v775_v44, %v775_v44 }
  0x96   :  { %v90_v51 = vmul.f32 0.03125, %v49_v48  ;;  %v128_v53 = vmul.f32 %v777_v45, %v777_v45 }
  0x97   :  { %v785_v54 = vsub.f32 %v23_v8, %v89_v50  ;;  %v138_v56 = vsel %vm37_vm0, %v120_v52, 0.0 }
  0x98   :  { %v787_v55 = vsub.f32 %v24_v9, %v90_v51  ;;  %160 = vadd.xlane.f32.xlu0 %v159_v49  ;;  %139 = vadd.xlane.f32.xlu1 %v138_v56  ;;  %v70_v57 = vpop.xlane.xlu0 %69  ;;  %v162_v59 = vsel %vm37_vm0, %v128_v53, 0.0  ;;  %v610_v53 = vld [vmem:[%s1015_s3] sm:$0xff]  }
  0x99   :  { %v73_v58 = vpop.xlane.xlu1 %72  ;;  %v97_v60 = vmul.f32 0.03125, %v70_v57  ;;  %v121_v62 = vmul.f32 %v785_v54, %v785_v54 }
  0x9a   :  { %v98_v61 = vmul.f32 0.03125, %v73_v58  ;;  %v122_v63 = vmul.f32 %v787_v55, %v787_v55 }
  0x9b   :  { %v796_v0 = vsub.f32 %v700_v12, %v97_v60  ;;  %v141_v2 = vsel %vm37_vm0, %v121_v62, 0.0 }
  0x9c   :  { %v799_v1 = vsub.f32 %v705_v13, %v98_v61  ;;  %163 = vadd.xlane.f32.xlu1 %v162_v59  ;;  %142 = vadd.xlane.f32.xlu0 %v141_v2  ;;  %v52_v3 = vpop.xlane.xlu0 %51  ;;  %v144_v5 = vsel %vm37_vm0, %v122_v63, 0.0 }
  0x9d   :  { %v55_v4 = vpop.xlane.xlu1 %54  ;;  %v91_v6 = vmul.f32 0.03125, %v52_v3  ;;  %v129_v8 = vmul.f32 %v796_v0, %v796_v0 }
  0x9e   :  { %v92_v7 = vmul.f32 0.03125, %v55_v4  ;;  %v130_v9 = vmul.f32 %v799_v1, %v799_v1 }
  0x9f   :  { %v808_v10 = vsub.f32 %v714_v16, %v91_v6  ;;  %v165_v12 = vsel %vm37_vm0, %v129_v8, 0.0 }
  0xa0   :  { %v811_v11 = vsub.f32 %v719_v17, %v92_v7  ;;  %145 = vadd.xlane.f32.xlu1 %v144_v5  ;;  %166 = vadd.xlane.f32.xlu0 %v165_v12  ;;  %v76_v13 = vpop.xlane.xlu0 %75  ;;  %v168_v15 = vsel %vm37_vm0, %v130_v9, 0.0 }
  0xa1   :  { %v79_v14 = vpop.xlane.xlu1 %78  ;;  %v99_v18 = vmul.f32 0.03125, %v76_v13  ;;  %v123_v22 = vmul.f32 %v808_v10, %v808_v10 }
  0xa2   :  { %v100_v19 = vmul.f32 0.03125, %v79_v14  ;;  %v124_v16 = vmul.f32 %v811_v11, %v811_v11 }
  0xa3   :  { %v820_v23 = vsub.f32 %v728_v20, %v99_v18  ;;  %v147_v26 = vsel %vm37_vm0, %v123_v22, 0.0 }
  0xa4   :  { %v823_v17 = vsub.f32 %v733_v21, %v100_v19  ;;  %169 = vadd.xlane.f32.xlu1 %v168_v15  ;;  %148 = vadd.xlane.f32.xlu0 %v147_v26  ;;  %v58_v27 = vpop.xlane.xlu0 %57  ;;  %v150_v31 = vsel %vm37_vm0, %v124_v16, 0.0 }
  0xa5   :  { %v61_v30 = vpop.xlane.xlu1 %60  ;;  %v93_v32 = vmul.f32 0.03125, %v58_v27  ;;  %v131_v34 = vmul.f32 %v820_v23, %v820_v23 }
  0xa6   :  { %v94_v33 = vmul.f32 0.03125, %v61_v30  ;;  %v132_v20 = vmul.f32 %v823_v17, %v823_v17 }
  0xa7   :  { %v832_v35 = vsub.f32 %v742_v24, %v93_v32  ;;  %v171_v38 = vsel %vm37_vm0, %v131_v34, 0.0 }
  0xa8   :  { %v835_v21 = vsub.f32 %v747_v25, %v94_v33  ;;  %151 = vadd.xlane.f32.xlu1 %v150_v31  ;;  %172 = vadd.xlane.f32.xlu0 %v171_v38  ;;  %v82_v39 = vpop.xlane.xlu0 %81  ;;  %v174_v41 = vsel %vm37_vm0, %v132_v20, 0.0  ;;  %v867_v33 = vld [vmem:[%s1016_s1] ss:$0 sm:$0xff] }
  0xa9   :  { %v85_v40 = vpop.xlane.xlu1 %84  ;;  %v101_v42 = vmul.f32 0.03125, %v82_v39  ;;  %v125_v46 = vmul.f32 %v832_v35, %v832_v35 }
  0xaa   :  { %v102_v43 = vmul.f32 0.03125, %v85_v40  ;;  %v126_v24 = vmul.f32 %v835_v21, %v835_v21 }
  0xab   :  { %v844_v47 = vsub.f32 %v756_v28, %v101_v42  ;;  %v153_v48 = vsel %vm37_vm0, %v125_v46, 0.0 }
  0xac   :  { %v847_v25 = vsub.f32 %v761_v29, %v102_v43  ;;  %175 = vadd.xlane.f32.xlu1 %v174_v41  ;;  %154 = vadd.xlane.f32.xlu0 %v153_v48  ;;  %v156_v49 = vsel %vm37_vm0, %v126_v24, 0.0  ;;  %v609_v29 = vld [vmem:[%s1015_s3 + $0x8] sm:$0xff]  }
  0xad   :  { %v133_v50 = vmul.f32 %v844_v47, %v844_v47  ;;  %585 = vmatprep.subr.bf16.mxu0 %v609_v29  ;;  %605 = vmatprep.subr.bf16.mxu1 %v609_v29 }
  0xae   :  { %v134_v51 = vmul.f32 %v847_v25, %v847_v25  ;;  %586 = vmatpush3.bf16.msra.mxu0 %v609_v29  ;;  %607 = vmatpush3.bf16.msra.mxu1 %v609_v29 }
  0xaf   :  { %v177_v52 = vsel %vm37_vm0, %v133_v50, 0.0  ;;  %587 = vmatprep.subr.bf16.mxu0 %v610_v53  ;;  %606 = vmatprep.subr.bf16.mxu1 %v610_v53 }
  0xb0   :  { %157 = vadd.xlane.f32.xlu1 %v156_v49  ;;  %178 = vadd.xlane.f32.xlu0 %v177_v52  ;;  %v180_v28 = vsel %vm37_vm0, %v134_v51, 0.0 }
  0xb2   :  { %588 = vmatpush3.bf16.msra.mxu0 %v610_v53  ;;  %608 = vmatpush3.bf16.msra.mxu1 %v610_v53 }
  0xb4   :  { %181 = vadd.xlane.f32.xlu1 %v180_v28 }
 0x11d   :  { %v137_v56 = vpop.xlane.xlu0 %136 }
 0x11e   :  { %v183_v57 = vmul.f32 0.03125, %v137_v56 }
 0x120   :  { %v199_v58 = vadd.f32 1e-05, %v183_v57 }
 0x121   :  { %v140_v59 = vpop.xlane.xlu1 %139  ;;  %v161_v60 = vpop.xlane.xlu0 %160 }
 0x122   :  { %611 = vrsqrt.f32 %v199_v58  ;;  %v184_v61 = vmul.f32 0.03125, %v140_v59  ;;  %v191_v62 = vmul.f32 0.03125, %v161_v60 }
 0x124   :  { %v200_v63 = vadd.f32 1e-05, %v184_v61  ;;  %v207_v2 = vadd.f32 1e-05, %v191_v62 }
 0x125   :  { %v164_v3 = vpop.xlane.xlu1 %163  ;;  %v143_v4 = vpop.xlane.xlu0 %142 }
 0x126   :  { %613 = vrsqrt.f32 %v200_v63  ;;  %v192_v5 = vmul.f32 0.03125, %v164_v3  ;;  %v185_v6 = vmul.f32 0.03125, %v143_v4 }
 0x127   :  { %615 = vrsqrt.f32 %v207_v2 }
 0x128   :  { %v208_v7 = vadd.f32 1e-05, %v192_v5  ;;  %v201_v8 = vadd.f32 1e-05, %v185_v6 }
 0x129   :  { %v146_v9 = vpop.xlane.xlu1 %145  ;;  %v167_v12 = vpop.xlane.xlu0 %166 }
 0x12a   :  { %617 = vrsqrt.f32 %v208_v7  ;;  %v186_v13 = vmul.f32 0.03125, %v146_v9  ;;  %v193_v14 = vmul.f32 0.03125, %v167_v12 }
 0x12b   :  { %619 = vrsqrt.f32 %v201_v8 }
 0x12c   :  { %v202_v15 = vadd.f32 1e-05, %v186_v13  ;;  %v209_v18 = vadd.f32 1e-05, %v193_v14 }
 0x12d   :  { %v170_v19 = vpop.xlane.xlu1 %169  ;;  %v149_v22 = vpop.xlane.xlu0 %148 }
 0x12e   :  { %621 = vrsqrt.f32 %v202_v15  ;;  %v194_v16 = vmul.f32 0.03125, %v170_v19  ;;  %v187_v26 = vmul.f32 0.03125, %v149_v22 }
 0x12f   :  { %v612_v27 = vpop.eup %611  ;;  %623 = vrsqrt.f32 %v209_v18 }
 0x130   :  { %v210_v30 = vadd.f32 1e-05, %v194_v16  ;;  %v203_v31 = vadd.f32 1e-05, %v187_v26  ;;  %v231_v32 = vmul.f32 %v612_v27, %v767_v36  ;;  %v874_v36 = vld [vmem:[%s1017_s2] ss:$0 sm:$0xff] }
 0x131   :  { %v152_v34 = vpop.xlane.xlu1 %151  ;;  %v173_v20 = vpop.xlane.xlu0 %172 }
 0x132   :  { %625 = vrsqrt.f32 %v210_v30  ;;  %v188_v38 = vmul.f32 0.03125, %v152_v34  ;;  %v195_v39 = vmul.f32 0.03125, %v173_v20  ;;  %v254_v41 = vmul.f32 %v867_v33, %v231_v32 }
 0x133   :  { %v614_v40 = vpop.eup %613  ;;  %627 = vrsqrt.f32 %v203_v31 }
 0x134   :  { %v616_v42 = vpop.eup %615  ;;  %v204_v43 = vadd.f32 1e-05, %v188_v38  ;;  %v211_v46 = vadd.f32 1e-05, %v195_v39  ;;  %v232_v24 = vmul.f32 %v614_v40, %v775_v44  ;;  %v277_v53 = vadd.f32 %v874_v36, %v254_v41 }
 0x135   :  { %v176_v48 = vpop.xlane.xlu1 %175  ;;  %v155_v49 = vpop.xlane.xlu0 %154  ;;  %v239_v50 = vmul.f32 %v616_v42, %v769_v37 }
 0x136   :  { %629 = vrsqrt.f32 %v204_v43  ;;  %v196_v51 = vmul.f32 0.03125, %v176_v48  ;;  %v189_v52 = vmul.f32 0.03125, %v155_v49  ;;  %v255_v28 = vmul.f32 %v867_v33, %v232_v24 }
 0x137   :  { %v618_v29 = vpop.eup %617  ;;  %631 = vrsqrt.f32 %v211_v46  ;;  %v262_v37 = vmul.f32 %v867_v33, %v239_v50 }
 0x138   :  { %v620_v56 = vpop.eup %619  ;;  %v212_v44 = vadd.f32 1e-05, %v196_v51  ;;  %v205_v57 = vadd.f32 1e-05, %v189_v52  ;;  %v278_v58 = vadd.f32 %v874_v36, %v255_v28  ;;  %v240_v59 = vmul.f32 %v618_v29, %v777_v45 }
 0x139   :  { %v158_v60 = vpop.xlane.xlu1 %157  ;;  %v179_v61 = vpop.xlane.xlu0 %178  ;;  %v233_v62 = vmul.f32 %v620_v56, %v785_v54  ;;  %v285_v54 = vadd.f32 %v874_v36, %v262_v37 }
 0x13a   :  { %633 = vrsqrt.f32 %v212_v44  ;;  %v190_v63 = vmul.f32 0.03125, %v158_v60  ;;  %v197_v2 = vmul.f32 0.03125, %v179_v61  ;;  %v293_v3 = vpack.c.bf16 %v278_v58, %v277_v53 }
 0x13b   :  { %v622_v4 = vpop.eup %621  ;;  %635 = vrsqrt.f32 %v205_v57  ;;  %v263_v5 = vmul.f32 %v867_v33, %v240_v59  ;;  %v256_v6 = vmul.f32 %v867_v33, %v233_v62 }
 0x13c   :  { %v624_v7 = vpop.eup %623  ;;  %v206_v8 = vadd.f32 1e-05, %v190_v63  ;;  %v213_v9 = vadd.f32 1e-05, %v197_v2  ;;  %589 = vmatprep.mubr.msk.bf16.mxu0 %vm37_vm0, %v293_v3  ;;  %v234_v45 = vmul.f32 %v622_v4, %v787_v55  ;;  %v932_v4 = vld [vmem:[%s1018_s4] ss:$0 sm:$0xff] }
 0x13d   :  { %v182_v12 = vpop.xlane.xlu1 %181  ;;  %v286_v13 = vadd.f32 %v874_v36, %v263_v5  ;;  %v241_v14 = vmul.f32 %v624_v7, %v796_v0  ;;  %v279_v16 = vadd.f32 %v874_v36, %v256_v6 }
 0x13e   :  { %637 = vrsqrt.f32 %v206_v8  ;;  %v198_v15 = vmul.f32 0.03125, %v182_v12  ;;  %v257_v18 = vmul.f32 %v867_v33, %v234_v45 }
 0x13f   :  { %v626_v19 = vpop.eup %625  ;;  %639 = vrsqrt.f32 %v213_v9  ;;  %v297_v22 = vpack.c.bf16 %v286_v13, %v285_v54  ;;  %v264_v31 = vmul.f32 %v867_v33, %v241_v14 }
 0x140   :  { %v628_v26 = vpop.eup %627  ;;  %v214_v27 = vadd.f32 1e-05, %v198_v15  ;;  %v280_v55 = vadd.f32 %v874_v36, %v257_v18  ;;  %v242_v30 = vmul.f32 %v626_v19, %v799_v1 }
 0x141   :  { %597 = vmatprep.mubr.msk.bf16.mxu1 %vm37_vm0, %v297_v22  ;;  %v235_v0 = vmul.f32 %v628_v26, %v808_v10  ;;  %v287_v39 = vadd.f32 %v874_v36, %v264_v31 }
 0x142   :  { %641 = vrsqrt.f32 %v214_v27  ;;  %v294_v32 = vpack.c.bf16 %v280_v55, %v279_v16  ;;  %v265_v34 = vmul.f32 %v867_v33, %v242_v30 }
 0x143   :  { %v630_v20 = vpop.eup %629  ;;  %v258_v41 = vmul.f32 %v867_v33, %v235_v0 }
 0x144   :  { %v632_v38 = vpop.eup %631  ;;  %590 = vmatmul.mubr.msk.bf16.vlgmr.msra.gmra.mxu0 %vm37_vm0, %v294_v32  ;;  %v288_v40 = vadd.f32 %v874_v36, %v265_v34  ;;  %v236_v1 = vmul.f32 %v630_v20, %v811_v11 }
 0x145   :  { %v243_v42 = vmul.f32 %v632_v38, %v820_v23  ;;  %v281_v48 = vadd.f32 %v874_v36, %v258_v41 }
 0x146   :  { %v298_v43 = vpack.c.bf16 %v288_v40, %v287_v39  ;;  %v259_v10 = vmul.f32 %v867_v33, %v236_v1 }
 0x147   :  { %v634_v46 = vpop.eup %633  ;;  %v266_v51 = vmul.f32 %v867_v33, %v243_v42 }
 0x148   :  { %v636_v24 = vpop.eup %635  ;;  %598 = vmatmul.mubr.msk.bf16.vlgmr.msra.gmra.mxu1 %vm37_vm0, %v298_v43  ;;  %v282_v49 = vadd.f32 %v874_v36, %v259_v10  ;;  %v244_v50 = vmul.f32 %v634_v46, %v823_v17 }
 0x149   :  { %v237_v11 = vmul.f32 %v636_v24, %v832_v35  ;;  %v289_v53 = vadd.f32 %v874_v36, %v266_v51 }
 0x14a   :  { %v295_v52 = vpack.c.bf16 %v282_v49, %v281_v48  ;;  %v267_v23 = vmul.f32 %v867_v33, %v244_v50 }
 0x14b   :  { %v638_v28 = vpop.eup %637  ;;  %v260_v57 = vmul.f32 %v867_v33, %v237_v11 }
 0x14c   :  { %v640_v29 = vpop.eup %639  ;;  %593 = vmatprep.mubr.msk.bf16.mxu0 %vm37_vm0, %v295_v52  ;;  %v290_v56 = vadd.f32 %v874_v36, %v267_v23  ;;  %v238_v44 = vmul.f32 %v638_v28, %v835_v21 }
 0x14d   :  { %v245_v17 = vmul.f32 %v640_v29, %v844_v47  ;;  %v283_v60 = vadd.f32 %v874_v36, %v260_v57 }
 0x14e   :  { %v299_v58 = vpack.c.bf16 %v290_v56, %v289_v53  ;;  %v261_v35 = vmul.f32 %v867_v33, %v238_v44 }
 0x14f   :  { %v642_v59 = vpop.eup %641  ;;  %v268_v62 = vmul.f32 %v867_v33, %v245_v17 }
 0x150   :  { %601 = vmatprep.mubr.msk.bf16.mxu1 %vm37_vm0, %v299_v58  ;;  %v284_v61 = vadd.f32 %v874_v36, %v261_v35  ;;  %v246_v37 = vmul.f32 %v642_v59, %v847_v25 }
 0x151   :  { %v291_v47 = vadd.f32 %v874_v36, %v268_v62 }
 0x152   :  { %v296_v63 = vpack.c.bf16 %v284_v61, %v283_v60  ;;  %v269_v21 = vmul.f32 %v867_v33, %v246_v37 }
 0x154   :  { %594 = vmatmul.mubr.msk.bf16.gmra.mxu0 %vm37_vm0, %v296_v63  ;;  %v292_v2 = vadd.f32 %v874_v36, %v269_v21 }
 0x156   :  { %v300_v3 = vpack.c.bf16 %v292_v2, %v291_v47 }
 0x158   :  { %602 = vmatmul.mubr.msk.bf16.gmra.mxu1 %vm37_vm0, %v300_v3 }
 0x204   :  { %v591_v25 = vpop.f32.mrf.mxu0 }
 0x205   :  { %v391_v5 = vadd.f32 %v591_v25, %v932_v4 }
 0x206   :  { %v382_v6 = vpop.f32.mrf.mxu0 }
 0x207   :  { %v561_v33 = vpack.c.bf16 %v391_v5, %v391_v5  ;;  %v383_v7 = vadd.f32 %v932_v4, %v382_v6 }
 0x208   :  { %v592_v8 = vpop.f32.mrf.mxu0  ;;  %v599_v9 = vpop.f32.mrf.mxu1 }
 0x209   :  { %512 = vst.msk [vmem:[%s1019_s5 + $0x8] sm:$0xf] %vm509_vm1, %v561_v33  ;;  %v559_v36 = vpack.c.bf16 %v383_v7, %v383_v7  ;;  %v394_v45 = vadd.f32 %v592_v8, %v932_v4  ;;  %v423_v12 = vadd.f32 %v599_v9, %v932_v4 }
 0x20a   :  { %v385_v54 = vpop.f32.mrf.mxu0  ;;  %v414_v13 = vpop.f32.mrf.mxu1 }
 0x20b   :  { %510 = vst.msk [vmem:[%s1019_s5] sm:$0xf] %vm509_vm1, %v559_v36  ;;  %v562_v14 = vpack.c.bf16 %v394_v45, %v394_v45  ;;  %v569_v15 = vpack.c.bf16 %v423_v12, %v423_v12  ;;  %v386_v18 = vadd.f32 %v932_v4, %v385_v54  ;;  %v415_v19 = vadd.f32 %v932_v4, %v414_v13 }
 0x20c   :  { %v600_v22 = vpop.f32.mrf.mxu1 }
 0x20d   :  { %513 = vst.msk [vmem:[%s1019_s5 + $0xc] sm:$0xf] %vm509_vm1, %v562_v14  ;;  %520 = vst.msk [vmem:[%s1019_s5 + $0x28] sm:$0xf] %vm509_vm1, %v569_v15  ;;  %v560_v16 = vpack.c.bf16 %v386_v18, %v386_v18  ;;  %v567_v26 = vpack.c.bf16 %v415_v19, %v415_v19  ;;  %v426_v27 = vadd.f32 %v600_v22, %v932_v4 }
 0x20e   :  { %v417_v55 = vpop.f32.mrf.mxu1 }
 0x20f   :  { %511 = vst.msk [vmem:[%s1019_s5 + $0x4] sm:$0xf] %vm509_vm1, %v560_v16  ;;  %518 = vst.msk [vmem:[%s1019_s5 + $0x20] sm:$0xf] %vm509_vm1, %v567_v26  ;;  %v570_v30 = vpack.c.bf16 %v426_v27, %v426_v27  ;;  %v418_v31 = vadd.f32 %v932_v4, %v417_v55 }
 0x211   :  { %521 = vst.msk [vmem:[%s1019_s5 + $0x2c] sm:$0xf] %vm509_vm1, %v570_v30  ;;  %v568_v0 = vpack.c.bf16 %v418_v31, %v418_v31 }
 0x213   :  { %519 = vst.msk [vmem:[%s1019_s5 + $0x24] sm:$0xf] %vm509_vm1, %v568_v0 }
 0x214   :  { %v595_v32 = vpop.f32.mrf.mxu0 }
 0x215   :  { %v407_v34 = vadd.f32 %v595_v32, %v932_v4 }
 0x216   :  { %v398_v20 = vpop.f32.mrf.mxu0 }
 0x217   :  { %v565_v38 = vpack.c.bf16 %v407_v34, %v407_v34  ;;  %v399_v39 = vadd.f32 %v932_v4, %v398_v20 }
 0x218   :  { %v596_v40 = vpop.f32.mrf.mxu0  ;;  %v603_v1 = vpop.f32.mrf.mxu1 }
 0x219   :  { %516 = vst.msk [vmem:[%s1019_s5 + $0x18] sm:$0xf] %vm509_vm1, %v565_v38  ;;  %v563_v41 = vpack.c.bf16 %v399_v39, %v399_v39  ;;  %v410_v42 = vadd.f32 %v596_v40, %v932_v4  ;;  %v439_v43 = vadd.f32 %v603_v1, %v932_v4 }
 0x21a   :  { %v401_v10 = vpop.f32.mrf.mxu0  ;;  %v430_v46 = vpop.f32.mrf.mxu1 }
 0x21b   :  { %514 = vst.msk [vmem:[%s1019_s5 + $0x10] sm:$0xf] %vm509_vm1, %v563_v41  ;;  %v566_v24 = vpack.c.bf16 %v410_v42, %v410_v42  ;;  %v573_v48 = vpack.c.bf16 %v439_v43, %v439_v43  ;;  %v402_v49 = vadd.f32 %v932_v4, %v401_v10  ;;  %v431_v50 = vadd.f32 %v932_v4, %v430_v46 }
 0x21c   :  { %v604_v51 = vpop.f32.mrf.mxu1 }
 0x21d   :  { %517 = vst.msk [vmem:[%s1019_s5 + $0x1c] sm:$0xf] %vm509_vm1, %v566_v24  ;;  %524 = vst.msk [vmem:[%s1019_s5 + $0x38] sm:$0xf] %vm509_vm1, %v573_v48  ;;  %v564_v11 = vpack.c.bf16 %v402_v49, %v402_v49  ;;  %v571_v52 = vpack.c.bf16 %v431_v50, %v431_v50  ;;  %v442_v23 = vadd.f32 %v604_v51, %v932_v4 }
 0x21e   :  { %v433_v28 = vpop.f32.mrf.mxu1 }
 0x21f   :  { %515 = vst.msk [vmem:[%s1019_s5 + $0x14] sm:$0xf] %vm509_vm1, %v564_v11  ;;  %522 = vst.msk [vmem:[%s1019_s5 + $0x30] sm:$0xf] %vm509_vm1, %v571_v52  ;;  %v574_v29 = vpack.c.bf16 %v442_v23, %v442_v23  ;;  %v434_v53 = vadd.f32 %v932_v4, %v433_v28 }
 0x221   :  { %525 = vst.msk [vmem:[%s1019_s5 + $0x3c] sm:$0xf] %vm509_vm1, %v574_v29  ;;  %v572_v56 = vpack.c.bf16 %v434_v53, %v434_v53 }
 0x223   :  { %523 = vst.msk [vmem:[%s1019_s5 + $0x34] sm:$0xf] %vm509_vm1, %v572_v56 }

// kernel: model_forward.21
= control target key start
LH: loop header
LB: loop body
LE: loop exit
PB: predicated region body
PF: predicated region fallthrough
CT: control target
= control target key end

     0   :  { %v2838_v1 = vmov 0.0   ;;  %vm2839_vm0 = vmmov 0   ;;  %s2840_s19 = smov 96   ;;  %s2841_s6 = smov 64   ;;  %vm45_vm1 = vcmask 130048   ;;  %vm2296_vm2 = vcmask 261120   ;;  %s3695_s0 = inlined_call_operand.vmem [shape: bf16[8,16,96], index: 0, kind: input, shape index: {}]   ;;  %s3696_s1 = inlined_call_operand.vmem [shape: f32[2,16,16], index: 1, kind: input, shape index: {}]   ;;  %s3697_s2 = inlined_call_operand.vmem [shape: bf16[32,32], index: 2, kind: input, shape index: {}]   ;;  %s3698_s3 = inlined_call_operand.vmem [shape: f32[1,32], index: 3, kind: input, shape index: {}]   ;;  %s3699_s4 = inlined_call_operand.vmem [shape: f32[8,16,32], index: 4, kind: output, shape index: {}]  }
   0x1   :  { %v2873_v0 = vld [vmem:[%s3695_s0] sm:$0xff]   ;;  %2458 = vmatprep.subr.bf16.mxu0 %v2838_v1  ;;  %2464 = vmatprep.subr.bf16.mxu1 %v2838_v1  ;;  %v2880_v2 = vld [vmem:[%s3695_s0 + $0x8] sm:$0xff]   ;;  %v2890_v3 = vld [vmem:[%s3695_s0 + $0x10] sm:$0xff]   ;;  %s2842_s11 = smov 80   ;;  %s2843_s12 = smov 112  }
   0x2   :  { %2460 = vmatprep.mubr.msk.bf16.mxu0 %vm2839_vm0, %v2838_v1  ;;  %2466 = vmatprep.mubr.msk.bf16.mxu1 %vm2839_vm0, %v2838_v1  ;;  %v2896_v4 = vld [vmem:[%s3695_s0 + $0x18] sm:$0xff]   ;;  %v2902_v5 = vld [vmem:[%s3695_s0 + $0x20] sm:$0xff]   ;;  %v2908_v6 = vld [vmem:[%s3695_s0 + $0x28] sm:$0xff]   ;;  %s2844_s13 = smov 48  }
   0x3   :  { %43 = vrot.lane.b32.xlu0 %v2873_v0, %s2840_s19  ;;  %152 = vrot.lane.b32.xlu1 %v2890_v3, %s2840_s19  ;;  %v2914_v7 = vld [vmem:[%s3695_s0 + $0x30] sm:$0xff]   ;;  %v2920_v8 = vld [vmem:[%s3695_s0 + $0x38] sm:$0xff]  }
   0x4   :  { %v2978_v26 = vld [vmem:[%s3696_s1] sm:$0xff]  ;;  %v2986_v30 = vld [vmem:[%s3696_s1 + $0x8] sm:$0xff] }
   0x7   :  { %98 = vrot.lane.b32.xlu0 %v2880_v2, %s2840_s19  ;;  %206 = vrot.lane.b32.xlu1 %v2896_v4, %s2840_s19 }
   0xb   :  { %260 = vrot.lane.b32.xlu0 %v2902_v5, %s2840_s19  ;;  %314 = vrot.lane.b32.xlu1 %v2908_v6, %s2840_s19 }
   0xf   :  { %368 = vrot.lane.b32.xlu0 %v2914_v7, %s2840_s19  ;;  %422 = vrot.lane.b32.xlu1 %v2920_v8, %s2840_s19 }
  0x13   :  { %655 = vrot.lane.b32.xlu1 %v2873_v0, %s2841_s6 }
  0x75   :  { %v44_v9 = vpop.permute.xlu0 %43  ;;  %v153_v11 = vpop.permute.xlu1 %152 }
  0x76   :  { %v50_v10 = vsel %vm45_vm1, %v44_v9, 0  ;;  %v158_v14 = vsel %vm45_vm1, %v153_v11, 0 }
  0x77   :  { %2459 = vmatpush3.bf16.xpose.msra.mxu0 %v50_v10 }
  0x78   :  { %2470 = vmatprep.subr.bf16.mxu0 %v2838_v1 }
  0x79   :  { %v99_v12 = vpop.permute.xlu0 %98  ;;  %v207_v15 = vpop.permute.xlu1 %206 }
  0x7a   :  { %v104_v13 = vsel %vm45_vm1, %v99_v12, 0  ;;  %v212_v16 = vsel %vm45_vm1, %v207_v15, 0 }
  0x7b   :  { %2465 = vmatpush3.bf16.xpose.msra.mxu1 %v104_v13 }
  0x7c   :  { %2476 = vmatprep.subr.bf16.mxu1 %v2838_v1 }
  0x7d   :  { %v261_v17 = vpop.permute.xlu0 %260  ;;  %v315_v19 = vpop.permute.xlu1 %314 }
  0x7e   :  { %2461 = vmatmul.mubr.msk.bf16.vlgmr.msra.gmra.mxu0 %vm45_vm1, %v2873_v0  ;;  %v266_v18 = vsel %vm45_vm1, %v261_v17, 0  ;;  %v320_v20 = vsel %vm45_vm1, %v315_v19, 0 }
  0x7f   :  { %2471 = vmatpush3.bf16.xpose.msra.mxu0 %v158_v14  ;;  %2472 = vmatprep.mubr.msk.bf16.mxu0 %vm2839_vm0, %v2838_v1 }
  0x80   :  { %2482 = vmatprep.subr.bf16.mxu0 %v2838_v1 }
  0x81   :  { %v369_v21 = vpop.permute.xlu0 %368  ;;  %v423_v23 = vpop.permute.xlu1 %422 }
  0x82   :  { %2467 = vmatmul.mubr.msk.bf16.vlgmr.msra.gmra.mxu1 %vm45_vm1, %v2880_v2  ;;  %v374_v22 = vsel %vm45_vm1, %v369_v21, 0  ;;  %v428_v24 = vsel %vm45_vm1, %v423_v23, 0 }
  0x83   :  { %2477 = vmatpush3.bf16.xpose.msra.mxu1 %v212_v16  ;;  %2478 = vmatprep.mubr.msk.bf16.mxu1 %vm2839_vm0, %v2838_v1 }
  0x84   :  { %2488 = vmatprep.subr.bf16.mxu1 %v2838_v1 }
  0x85   :  { %v656_v25 = vpop.permute.xlu1 %655 }
  0x86   :  { %2473 = vmatmul.mubr.msk.bf16.vlgmr.msra.gmra.mxu0 %vm45_vm1, %v2890_v3 }
  0x87   :  { %2483 = vmatpush3.bf16.xpose.msra.mxu0 %v266_v18  ;;  %2484 = vmatprep.mubr.msk.bf16.mxu0 %vm2839_vm0, %v2838_v1 }
  0x88   :  { %2494 = vmatprep.subr.bf16.mxu0 %v2838_v1 }
  0x8a   :  { %2479 = vmatmul.mubr.msk.bf16.vlgmr.msra.gmra.mxu1 %vm45_vm1, %v2896_v4 }
  0x8b   :  { %2489 = vmatpush3.bf16.xpose.msra.mxu1 %v320_v20  ;;  %2490 = vmatprep.mubr.msk.bf16.mxu1 %vm2839_vm0, %v2838_v1 }
  0x8c   :  { %2500 = vmatprep.subr.bf16.mxu1 %v2838_v1 }
  0x8e   :  { %2485 = vmatmul.mubr.msk.bf16.vlgmr.msra.gmra.mxu0 %vm45_vm1, %v2902_v5 }
  0x8f   :  { %2495 = vmatpush3.bf16.xpose.msra.mxu0 %v374_v22  ;;  %2496 = vmatprep.mubr.msk.bf16.mxu0 %vm2839_vm0, %v2838_v1 }
  0x90   :  { %2506 = vmatprep.subr.bf16.mxu0 %v2838_v1 }
  0x92   :  { %2491 = vmatmul.mubr.msk.bf16.vlgmr.msra.gmra.mxu1 %vm45_vm1, %v2908_v6 }
  0x93   :  { %2501 = vmatpush3.bf16.xpose.msra.mxu1 %v428_v24  ;;  %2502 = vmatprep.mubr.msk.bf16.mxu1 %vm2839_vm0, %v2838_v1 }
  0x94   :  { %2512 = vmatprep.subr.bf16.mxu1 %v2838_v1 }
  0x96   :  { %2497 = vmatmul.mubr.msk.bf16.vlgmr.msra.gmra.mxu0 %vm45_vm1, %v2914_v7 }
  0x97   :  { %2508 = vmatprep.mubr.msk.bf16.mxu0 %vm2839_vm0, %v2838_v1  ;;  %2507 = vmatpush3.bf16.msra.mxu0 %v656_v25 }
  0x98   :  { %2518 = vmatprep.subr.bf16.mxu0 %v2838_v1 }
  0x9a   :  { %2503 = vmatmul.mubr.msk.bf16.vlgmr.msra.gmra.mxu1 %vm45_vm1, %v2920_v8 }
  0x9b   :  { %2514 = vmatprep.mubr.msk.bf16.mxu1 %vm2839_vm0, %v2838_v1 }
 0x13e   :  { %v86_v27 = vpop.f32.mrf.mxu0 }
 0x13f   :  { %v2981_v28 = vadd.f32 %v86_v27, %v2978_v26 }
 0x140   :  { %v2462_v29 = vpop.f32.mrf.mxu0 }
 0x141   :  { %v471_v31 = vsel %vm45_vm1, %v2981_v28, -inf }
 0x142   :  { %472 = vmax.xlane.f32.xlu0 %v471_v31  ;;  %v89_v32 = vpop.f32.mrf.mxu0  ;;  %v140_v33 = vpop.f32.mrf.mxu1 }
 0x143   :  { %v2991_v34 = vadd.f32 %v89_v32, %v2986_v30  ;;  %v2994_v35 = vadd.f32 %v140_v33, %v2978_v26 }
 0x144   :  { %v2463_v36 = vpop.f32.mrf.mxu0  ;;  %v2468_v37 = vpop.f32.mrf.mxu1 }
 0x145   :  { %v474_v38 = vsel %vm45_vm1, %v2991_v34, -inf  ;;  %v477_v39 = vsel %vm45_vm1, %v2994_v35, -inf }
 0x146   :  { %475 = vmax.xlane.f32.xlu1 %v474_v38  ;;  %v194_v40 = vpop.f32.mrf.mxu0  ;;  %478 = vmax.xlane.f32.xlu0 %v477_v39  ;;  %v143_v41 = vpop.f32.mrf.mxu1 }
 0x147   :  { %v3001_v42 = vadd.f32 %v194_v40, %v2978_v26  ;;  %v3004_v43 = vadd.f32 %v143_v41, %v2986_v30 }
 0x148   :  { %v2469_v44 = vpop.f32.mrf.mxu1  ;;  %v2474_v45 = vpop.f32.mrf.mxu0 }
 0x149   :  { %v483_v46 = vsel %vm45_vm1, %v3001_v42, -inf  ;;  %v480_v47 = vsel %vm45_vm1, %v3004_v43, -inf }
 0x14a   :  { %484 = vmax.xlane.f32.xlu1 %v483_v46  ;;  %v197_v48 = vpop.f32.mrf.mxu0  ;;  %481 = vmax.xlane.f32.xlu0 %v480_v47  ;;  %v248_v49 = vpop.f32.mrf.mxu1 }
 0x14b   :  { %v3011_v50 = vadd.f32 %v197_v48, %v2986_v30  ;;  %v3014_v51 = vadd.f32 %v248_v49, %v2978_v26 }
 0x14c   :  { %v2475_v52 = vpop.f32.mrf.mxu0  ;;  %v2480_v53 = vpop.f32.mrf.mxu1 }
 0x14d   :  { %v486_v54 = vsel %vm45_vm1, %v3011_v50, -inf  ;;  %v489_v55 = vsel %vm45_vm1, %v3014_v51, -inf }
 0x14e   :  { %487 = vmax.xlane.f32.xlu0 %v486_v54  ;;  %490 = vmax.xlane.f32.xlu1 %v489_v55  ;;  %v251_v56 = vpop.f32.mrf.mxu1  ;;  %v302_v57 = vpop.f32.mrf.mxu0 }
 0x14f   :  { %v3021_v58 = vadd.f32 %v251_v56, %v2986_v30  ;;  %v3024_v59 = vadd.f32 %v302_v57, %v2978_v26 }
 0x150   :  { %v2481_v60 = vpop.f32.mrf.mxu1  ;;  %v2486_v61 = vpop.f32.mrf.mxu0 }
 0x151   :  { %v492_v62 = vsel %vm45_vm1, %v3021_v58, -inf  ;;  %v495_v63 = vsel %vm45_vm1, %v3024_v59, -inf }
 0x152   :  { %493 = vmax.xlane.f32.xlu0 %v492_v62  ;;  %v356_v9 = vpop.f32.mrf.mxu1  ;;  %496 = vmax.xlane.f32.xlu1 %v495_v63  ;;  %v305_v10 = vpop.f32.mrf.mxu0 }
 0x153   :  { %v3031_v11 = vadd.f32 %v356_v9, %v2978_v26  ;;  %v3034_v12 = vadd.f32 %v305_v10, %v2986_v30 }
 0x154   :  { %v2487_v13 = vpop.f32.mrf.mxu0  ;;  %v2492_v14 = vpop.f32.mrf.mxu1 }
 0x155   :  { %v501_v15 = vsel %vm45_vm1, %v3031_v11, -inf  ;;  %v498_v16 = vsel %vm45_vm1, %v3034_v12, -inf }
 0x156   :  { %v359_v17 = vpop.f32.mrf.mxu1  ;;  %502 = vmax.xlane.f32.xlu1 %v501_v15  ;;  %499 = vmax.xlane.f32.xlu0 %v498_v16  ;;  %v410_v18 = vpop.f32.mrf.mxu0 }
 0x157   :  { %v3041_v19 = vadd.f32 %v359_v17, %v2986_v30  ;;  %v3044_v20 = vadd.f32 %v410_v18, %v2978_v26 }
 0x158   :  { %v2493_v21 = vpop.f32.mrf.mxu1  ;;  %v2498_v22 = vpop.f32.mrf.mxu0 }
 0x159   :  { %v504_v23 = vsel %vm45_vm1, %v3041_v19, -inf  ;;  %v507_v24 = vsel %vm45_vm1, %v3044_v20, -inf }
 0x15a   :  { %v464_v25 = vpop.f32.mrf.mxu1  ;;  %505 = vmax.xlane.f32.xlu0 %v504_v23  ;;  %508 = vmax.xlane.f32.xlu1 %v507_v24  ;;  %v413_v27 = vpop.f32.mrf.mxu0 }
 0x15b   :  { %v3051_v29 = vadd.f32 %v464_v25, %v2978_v26  ;;  %v3054_v31 = vadd.f32 %v413_v27, %v2986_v30 }
 0x15c   :  { %v2499_v32 = vpop.f32.mrf.mxu0  ;;  %v2504_v33 = vpop.f32.mrf.mxu1 }
 0x15d   :  { %v513_v36 = vsel %vm45_vm1, %v3051_v29, -inf  ;;  %v510_v37 = vsel %vm45_vm1, %v3054_v31, -inf }
 0x15e   :  { %v467_v38 = vpop.f32.mrf.mxu1  ;;  %514 = vmax.xlane.f32.xlu1 %v513_v36  ;;  %511 = vmax.xlane.f32.xlu0 %v510_v37 }
 0x15f   :  { %v3061_v39 = vadd.f32 %v467_v38, %v2986_v30 }
 0x160   :  { %v2505_v40 = vpop.f32.mrf.mxu1 }
 0x161   :  { %v516_v26 = vsel %vm45_vm1, %v3061_v39, -inf }
 0x162   :  { %517 = vmax.xlane.f32.xlu0 %v516_v26 }
 0x16f   :  { %749 = vrot.lane.b32.xlu1 %v2890_v3, %s2841_s6 }
 0x173   :  { %796 = vrot.lane.b32.xlu1 %v2896_v4, %s2841_s6 }
 0x177   :  { %890 = vrot.lane.b32.xlu1 %v2908_v6, %s2841_s6 }
 0x178   :  { %702 = vrot.lane.b32.xlu0 %v2880_v2, %s2841_s6 }
 0x17b   :  { %984 = vrot.lane.b32.xlu1 %v2920_v8, %s2841_s6 }
 0x17c   :  { %843 = vrot.lane.b32.xlu0 %v2902_v5, %s2841_s6 }
 0x180   :  { %937 = vrot.lane.b32.xlu0 %v2914_v7, %s2841_s6 }
 0x1cb   :  { %v473_v30 = vpop.xlane.xlu0 %472 }
 0x1cc   :  { %v519_v41 = vsub.f32 %v2981_v28, %v473_v30 }
 0x1ce   :  { %v535_v44 = vmul.f32 1.442695, %v519_v41 }
 0x1cf   :  { %v476_v45 = vpop.xlane.xlu1 %475  ;;  %v479_v46 = vpop.xlane.xlu0 %478 }
 0x1d0   :  { %2703 = vpow2.f32 %v535_v44  ;;  %v520_v47 = vsub.f32 %v2991_v34, %v476_v45  ;;  %v521_v48 = vsub.f32 %v2994_v35, %v479_v46 }
 0x1d2   :  { %v537_v49 = vmul.f32 1.442695, %v520_v47  ;;  %v539_v52 = vmul.f32 1.442695, %v521_v48 }
 0x1d3   :  { %v485_v53 = vpop.xlane.xlu1 %484  ;;  %v482_v54 = vpop.xlane.xlu0 %481 }
 0x1d4   :  { %2705 = vpow2.f32 %v537_v49  ;;  %v523_v55 = vsub.f32 %v3001_v42, %v485_v53  ;;  %v522_v56 = vsub.f32 %v3004_v43, %v482_v54 }
 0x1d5   :  { %2707 = vpow2.f32 %v539_v52 }
 0x1d6   :  { %v543_v57 = vmul.f32 1.442695, %v523_v55  ;;  %v541_v28 = vmul.f32 1.442695, %v522_v56 }
 0x1d7   :  { %v491_v60 = vpop.xlane.xlu1 %490  ;;  %v488_v61 = vpop.xlane.xlu0 %487 }
 0x1d8   :  { %2709 = vpow2.f32 %v543_v57  ;;  %v525_v62 = vsub.f32 %v3014_v51, %v491_v60  ;;  %v524_v34 = vsub.f32 %v3011_v50, %v488_v61 }
 0x1d9   :  { %2711 = vpow2.f32 %v541_v28 }
 0x1da   :  { %v547_v35 = vmul.f32 1.442695, %v525_v62  ;;  %v545_v63 = vmul.f32 1.442695, %v524_v34 }
 0x1db   :  { %v497_v9 = vpop.xlane.xlu1 %496  ;;  %v494_v10 = vpop.xlane.xlu0 %493 }
 0x1dc   :  { %2713 = vpow2.f32 %v547_v35  ;;  %v527_v42 = vsub.f32 %v3024_v59, %v497_v9  ;;  %v526_v43 = vsub.f32 %v3021_v58, %v494_v10 }
 0x1dd   :  { %v3088_v13 = vpop.eup %2703  ;;  %2715 = vpow2.f32 %v545_v63 }
 0x1de   :  { %v551_v14 = vmul.f32 1.442695, %v527_v42  ;;  %v549_v15 = vmul.f32 1.442695, %v526_v43  ;;  %v567_v51 = vsel %vm45_vm1, %v3088_v13, 0.0 }
 0x1df   :  { %v503_v16 = vpop.xlane.xlu1 %502  ;;  %568 = vadd.xlane.f32.xlu1 %v567_v51  ;;  %v500_v50 = vpop.xlane.xlu0 %499 }
 0x1e0   :  { %2717 = vpow2.f32 %v551_v14  ;;  %v529_v17 = vsub.f32 %v3031_v11, %v503_v16  ;;  %v528_v18 = vsub.f32 %v3034_v12, %v500_v50 }
 0x1e1   :  { %v3094_v21 = vpop.eup %2705  ;;  %2719 = vpow2.f32 %v549_v15 }
 0x1e2   :  { %v3096_v58 = vpop.eup %2707  ;;  %v555_v59 = vmul.f32 1.442695, %v529_v17  ;;  %v553_v22 = vmul.f32 1.442695, %v528_v18  ;;  %v570_v23 = vsel %vm45_vm1, %v3094_v21, 0.0 }
 0x1e3   :  { %v509_v24 = vpop.xlane.xlu1 %508  ;;  %571 = vadd.xlane.f32.xlu0 %v570_v23  ;;  %v573_v25 = vsel %vm45_vm1, %v3096_v58, 0.0  ;;  %v506_v27 = vpop.xlane.xlu0 %505 }
 0x1e4   :  { %2721 = vpow2.f32 %v555_v59  ;;  %v531_v11 = vsub.f32 %v3044_v20, %v509_v24  ;;  %574 = vadd.xlane.f32.xlu1 %v573_v25  ;;  %v530_v12 = vsub.f32 %v3041_v19, %v506_v27 }
 0x1e5   :  { %v3104_v32 = vpop.eup %2709  ;;  %2723 = vpow2.f32 %v553_v22 }
 0x1e6   :  { %v3106_v33 = vpop.eup %2711  ;;  %v559_v36 = vmul.f32 1.442695, %v531_v11  ;;  %v557_v37 = vmul.f32 1.442695, %v530_v12  ;;  %v579_v38 = vsel %vm45_vm1, %v3104_v32, 0.0 }
 0x1e7   :  { %v515_v40 = vpop.xlane.xlu1 %514  ;;  %v576_v26 = vsel %vm45_vm1, %v3106_v33, 0.0  ;;  %v512_v30 = vpop.xlane.xlu0 %511 }
 0x1e8   :  { %2725 = vpow2.f32 %v559_v36  ;;  %v533_v20 = vsub.f32 %v3051_v29, %v515_v40  ;;  %580 = vadd.xlane.f32.xlu1 %v579_v38  ;;  %577 = vadd.xlane.f32.xlu0 %v576_v26  ;;  %v532_v19 = vsub.f32 %v3054_v31, %v512_v30 }
 0x1e9   :  { %v3114_v41 = vpop.eup %2713  ;;  %2727 = vpow2.f32 %v557_v37 }
 0x1ea   :  { %v3116_v44 = vpop.eup %2715  ;;  %v563_v45 = vmul.f32 1.442695, %v533_v20  ;;  %v561_v46 = vmul.f32 1.442695, %v532_v19  ;;  %v585_v47 = vsel %vm45_vm1, %v3114_v41, 0.0 }
 0x1eb   :  { %v582_v48 = vsel %vm45_vm1, %v3116_v44, 0.0  ;;  %v518_v49 = vpop.xlane.xlu0 %517  ;;  %v750_v15 = vpop.permute.xlu1 %749 }
 0x1ec   :  { %2729 = vpow2.f32 %v563_v45  ;;  %586 = vadd.xlane.f32.xlu1 %v585_v47  ;;  %583 = vadd.xlane.f32.xlu0 %v582_v48  ;;  %v534_v29 = vsub.f32 %v3061_v39, %v518_v49 }
 0x1ed   :  { %v3123_v31 = vpop.eup %2717  ;;  %2731 = vpow2.f32 %v561_v46 }
 0x1ee   :  { %v3125_v52 = vpop.eup %2719  ;;  %v565_v53 = vmul.f32 1.442695, %v534_v29  ;;  %v591_v54 = vsel %vm45_vm1, %v3123_v31, 0.0 }
 0x1ef   :  { %v588_v55 = vsel %vm45_vm1, %v3125_v52, 0.0  ;;  %v703_v56 = vpop.permute.xlu0 %702  ;;  %v797_v51 = vpop.permute.xlu1 %796 }
 0x1f0   :  { %2733 = vpow2.f32 %v565_v53  ;;  %592 = vadd.xlane.f32.xlu1 %v591_v54  ;;  %589 = vadd.xlane.f32.xlu0 %v588_v55 }
 0x1f1   :  { %v3131_v57 = vpop.eup %2721  ;;  %2513 = vmatpush3.bf16.msra.mxu1 %v703_v56 }
 0x1f2   :  { %v3133_v39 = vpop.eup %2723  ;;  %v597_v28 = vsel %vm45_vm1, %v3131_v57, 0.0  ;;  %2524 = vmatprep.subr.bf16.mxu1 %v2838_v1 }
 0x1f3   :  { %v594_v60 = vsel %vm45_vm1, %v3133_v39, 0.0  ;;  %v3176_v16 = vpop.permute.xlu1 %890 }
 0x1f4   :  { %598 = vadd.xlane.f32.xlu1 %v597_v28  ;;  %595 = vadd.xlane.f32.xlu0 %v594_v60 }
 0x1f5   :  { %v3140_v61 = vpop.eup %2725 }
 0x1f6   :  { %v3142_v62 = vpop.eup %2727  ;;  %v603_v34 = vsel %vm45_vm1, %v3140_v61, 0.0 }
 0x1f7   :  { %v600_v35 = vsel %vm45_vm1, %v3142_v62, 0.0  ;;  %v3178_v50 = vpop.permute.xlu1 %984 }
 0x1f8   :  { %604 = vadd.xlane.f32.xlu1 %v603_v34  ;;  %601 = vadd.xlane.f32.xlu0 %v600_v35 }
 0x1f9   :  { %v3148_v63 = vpop.eup %2729 }
 0x1fa   :  { %v3150_v9 = vpop.eup %2731  ;;  %v609_v10 = vsel %vm45_vm1, %v3148_v63, 0.0 }
 0x1fb   :  { %v606_v42 = vsel %vm45_vm1, %v3150_v9, 0.0 }
 0x1fc   :  { %610 = vadd.xlane.f32.xlu1 %v609_v10  ;;  %607 = vadd.xlane.f32.xlu0 %v606_v42 }
 0x1fd   :  { %v3156_v43 = vpop.eup %2733 }
 0x1fe   :  { %v612_v14 = vsel %vm45_vm1, %v3156_v43, 0.0 }
 0x200   :  { %613 = vadd.xlane.f32.xlu0 %v612_v14 }
 0x20d   :  { %1094 = vrot.lane.b32.xlu1 %v2880_v2, %s2842_s11 }
 0x211   :  { %1145 = vrot.lane.b32.xlu1 %v2890_v3, %s2842_s11 }
 0x215   :  { %1196 = vrot.lane.b32.xlu1 %v2896_v4, %s2842_s11 }
 0x216   :  { %1043 = vrot.lane.b32.xlu0 %v2873_v0, %s2842_s11 }
 0x219   :  { %1247 = vrot.lane.b32.xlu1 %v2902_v5, %s2842_s11 }
 0x21a   :  { %1041 = vrot.lane.b32.xlu0 %v2873_v0, %s2843_s12 }
 0x21d   :  { %1298 = vrot.lane.b32.xlu1 %v2908_v6, %s2842_s11 }
 0x21e   :  { %1092 = vrot.lane.b32.xlu0 %v2880_v2, %s2843_s12  ;;  %v844_v2 = vpop.permute.xlu0 %843 }
 0x221   :  { %1349 = vrot.lane.b32.xlu1 %v2914_v7, %s2842_s11 }
 0x222   :  { %1143 = vrot.lane.b32.xlu0 %v2890_v3, %s2843_s12  ;;  %v3180_v3 = vpop.permute.xlu0 %937 }
 0x225   :  { %1400 = vrot.lane.b32.xlu1 %v2920_v8, %s2842_s11 }
 0x226   :  { %1194 = vrot.lane.b32.xlu0 %v2896_v4, %s2843_s12 }
 0x229   :  { %1398 = vrot.lane.b32.xlu1 %v2920_v8, %s2843_s12 }
 0x22a   :  { %1245 = vrot.lane.b32.xlu0 %v2902_v5, %s2843_s12 }
 0x22d   :  { %1633 = vrot.lane.b32.xlu1 %v2873_v0, %s2844_s13 }
 0x22e   :  { %1296 = vrot.lane.b32.xlu0 %v2908_v6, %s2843_s12 }
 0x232   :  { %1347 = vrot.lane.b32.xlu0 %v2914_v7, %s2843_s12 }
 0x268   :  { %v569_v17 = vpop.xlane.xlu1 %568 }
 0x269   :  { %2735 = vrcp.f32 %v569_v17 }
 0x26c   :  { %v572_v4 = vpop.xlane.xlu0 %571 }
 0x26d   :  { %v575_v18 = vpop.xlane.xlu1 %574  ;;  %2737 = vrcp.f32 %v572_v4 }
 0x26e   :  { %2739 = vrcp.f32 %v575_v18 }
 0x271   :  { %v581_v5 = vpop.xlane.xlu1 %580  ;;  %v578_v8 = vpop.xlane.xlu0 %577 }
 0x272   :  { %2741 = vrcp.f32 %v578_v8 }
 0x273   :  { %2743 = vrcp.f32 %v581_v5 }
 0x275   :  { %v587_v6 = vpop.xlane.xlu1 %586  ;;  %v584_v7 = vpop.xlane.xlu0 %583 }
 0x276   :  { %2745 = vrcp.f32 %v584_v7  ;;  %v2736_v59 = vpop.eup %2735 }
 0x277   :  { %2747 = vrcp.f32 %v587_v6  ;;  %v631_v25 = vmul.f32 %v2736_v59, %v3088_v13 }
 0x279   :  { %v593_v22 = vpop.xlane.xlu1 %592  ;;  %v590_v23 = vpop.xlane.xlu0 %589 }
 0x27a   :  { %v2738_v24 = vpop.eup %2737  ;;  %2749 = vrcp.f32 %v590_v23 }
 0x27b   :  { %v632_v27 = vmul.f32 %v2738_v24, %v3094_v21  ;;  %2751 = vrcp.f32 %v593_v22  ;;  %v2740_v37 = vpop.eup %2739 }
 0x27c   :  { %v633_v13 = vmul.f32 %v2740_v37, %v3096_v58 }
 0x27d   :  { %v599_v11 = vpop.xlane.xlu1 %598  ;;  %v596_v12 = vpop.xlane.xlu0 %595  ;;  %v647_v36 = vpack.c.bf16 %v632_v27, %v631_v25 }
 0x27e   :  { %2753 = vrcp.f32 %v596_v12 }
 0x27f   :  { %2509 = vmatmul.mubr.msk.bf16.vlgmr.msra.gmra.mxu0 %vm45_vm1, %v647_v36  ;;  %v2742_v38 = vpop.eup %2741  ;;  %2755 = vrcp.f32 %v599_v11 }
 0x280   :  { %2519 = vmatpush3.bf16.msra.mxu0 %v750_v15  ;;  %2520 = vmatprep.mubr.msk.bf16.mxu0 %vm2839_vm0, %v2838_v1  ;;  %v634_v21 = vmul.f32 %v2742_v38, %v3106_v33  ;;  %v2744_v30 = vpop.eup %2743 }
 0x281   :  { %v605_v40 = vpop.xlane.xlu1 %604  ;;  %v602_v26 = vpop.xlane.xlu0 %601  ;;  %2530 = vmatprep.subr.bf16.mxu0 %v2838_v1  ;;  %v635_v47 = vmul.f32 %v2744_v30, %v3104_v32 }
 0x282   :  { %2757 = vrcp.f32 %v602_v26  ;;  %v648_v20 = vpack.c.bf16 %v634_v21, %v633_v13 }
 0x283   :  { %v2746_v19 = vpop.eup %2745  ;;  %2759 = vrcp.f32 %v605_v40 }
 0x284   :  { %2515 = vmatmul.mubr.msk.bf16.vlgmr.msra.gmra.mxu1 %vm45_vm1, %v648_v20  ;;  %v636_v48 = vmul.f32 %v2746_v19, %v3116_v44  ;;  %v2748_v49 = vpop.eup %2747 }
 0x285   :  { %v611_v45 = vpop.xlane.xlu1 %610  ;;  %v608_v46 = vpop.xlane.xlu0 %607  ;;  %2525 = vmatpush3.bf16.msra.mxu1 %v797_v51  ;;  %2526 = vmatprep.mubr.msk.bf16.mxu1 %vm2839_vm0, %v2838_v1  ;;  %v637_v53 = vmul.f32 %v2748_v49, %v3114_v41 }
 0x286   :  { %2761 = vrcp.f32 %v608_v46  ;;  %v649_v58 = vpack.c.bf16 %v636_v48, %v635_v47  ;;  %2536 = vmatprep.subr.bf16.mxu1 %v2838_v1 }
 0x287   :  { %v2750_v33 = vpop.eup %2749  ;;  %2763 = vrcp.f32 %v611_v45 }
 0x288   :  { %2521 = vmatmul.mubr.msk.bf16.vlgmr.msra.gmra.mxu0 %vm45_vm1, %v649_v58  ;;  %v638_v32 = vmul.f32 %v2750_v33, %v3125_v52  ;;  %v2752_v54 = vpop.eup %2751 }
 0x289   :  { %v614_v29 = vpop.xlane.xlu0 %613  ;;  %2531 = vmatpush3.bf16.msra.mxu0 %v844_v2  ;;  %2532 = vmatprep.mubr.msk.bf16.mxu0 %vm2839_vm0, %v2838_v1  ;;  %v1095_v56 = vpop.permute.xlu1 %1094  ;;  %v639_v28 = vmul.f32 %v2752_v54, %v3123_v31 }
 0x28a   :  { %2765 = vrcp.f32 %v614_v29  ;;  %v650_v44 = vpack.c.bf16 %v638_v32, %v637_v53  ;;  %2542 = vmatprep.subr.bf16.mxu0 %v2838_v1 }
 0x28b   :  { %v2754_v55 = vpop.eup %2753 }
 0x28c   :  { %2527 = vmatmul.mubr.msk.bf16.vlgmr.msra.gmra.mxu1 %vm45_vm1, %v650_v44  ;;  %v640_v60 = vmul.f32 %v2754_v55, %v3133_v39  ;;  %v2756_v41 = vpop.eup %2755 }
 0x28d   :  { %2537 = vmatpush3.bf16.msra.mxu1 %v3176_v16  ;;  %2538 = vmatprep.mubr.msk.bf16.mxu1 %vm2839_vm0, %v2838_v1  ;;  %v1044_v52 = vpop.permute.xlu0 %1043  ;;  %v641_v10 = vmul.f32 %v2756_v41, %v3131_v57  ;;  %v1146_v39 = vpop.permute.xlu1 %1145 }
 0x28e   :  { %v651_v34 = vpack.c.bf16 %v640_v60, %v639_v28  ;;  %2548 = vmatprep.subr.bf16.mxu1 %v2838_v1 }
 0x28f   :  { %v2758_v35 = vpop.eup %2757 }
 0x290   :  { %2533 = vmatmul.mubr.msk.bf16.vlgmr.msra.gmra.mxu0 %vm45_vm1, %v651_v34  ;;  %v642_v42 = vmul.f32 %v2758_v35, %v3142_v62  ;;  %v2760_v31 = vpop.eup %2759 }
 0x291   :  { %2543 = vmatpush3.bf16.msra.mxu0 %v3180_v3  ;;  %2544 = vmatprep.mubr.msk.bf16.mxu0 %vm2839_vm0, %v2838_v1  ;;  %v1042_v14 = vpop.permute.xlu0 %1041  ;;  %v643_v2 = vmul.f32 %v2760_v31, %v3140_v61  ;;  %v1049_v3 = vsel %vm45_vm1, %v1044_v52, 0  ;;  %v1197_v5 = vpop.permute.xlu1 %1196 }
 0x292   :  { %v652_v15 = vpack.c.bf16 %v642_v42, %v641_v10  ;;  %2554 = vmatprep.subr.bf16.mxu0 %v2838_v1  ;;  %v1202_v6 = vsel %vm45_vm1, %v1197_v5, 0 }
 0x293   :  { %v2762_v51 = vpop.eup %2761 }
 0x294   :  { %v2764_v16 = vpop.eup %2763  ;;  %2539 = vmatmul.mubr.msk.bf16.vlgmr.msra.gmra.mxu1 %vm45_vm1, %v652_v15  ;;  %v644_v57 = vmul.f32 %v2762_v51, %v3150_v9  ;;  %v1100_v9 = vsel %vm45_vm1, %v1095_v56, 0 }
 0x295   :  { %2549 = vmatpush3.bf16.msra.mxu1 %v3178_v50  ;;  %2550 = vmatprep.mubr.msk.bf16.mxu1 %vm2839_vm0, %v2838_v1  ;;  %v645_v4 = vmul.f32 %v2764_v16, %v3148_v63  ;;  %v1093_v8 = vpop.permute.xlu0 %1092  ;;  %v1248_v63 = vpop.permute.xlu1 %1247  ;;  %v1151_v50 = vsel %vm45_vm1, %v1146_v39, 0 }
 0x296   :  { %v653_v17 = vpack.c.bf16 %v644_v57, %v643_v2  ;;  %2560 = vmatprep.subr.bf16.mxu1 %v2838_v1  ;;  %v1253_v22 = vsel %vm45_vm1, %v1248_v63, 0 }
 0x297   :  { %v2766_v62 = vpop.eup %2765 }
 0x298   :  { %v646_v18 = vmul.f32 %v2766_v62, %v3156_v43  ;;  %2545 = vmatmul.mubr.msk.bf16.vlgmr.msra.gmra.mxu0 %vm45_vm1, %v653_v17  ;;  %v3321_v62 = vld [vmem:[%s3696_s1 + $0x10] sm:$0xff] }
 0x299   :  { %2555 = vmatpush3.bf16.xpose.msra.mxu0 %v1049_v3  ;;  %2556 = vmatprep.mubr.msk.bf16.mxu0 %vm2839_vm0, %v2838_v1  ;;  %v1144_v43 = vpop.permute.xlu0 %1143  ;;  %v1299_v7 = vpop.permute.xlu1 %1298 }
 0x29a   :  { %v654_v61 = vpack.c.bf16 %v646_v18, %v645_v4  ;;  %2566 = vmatprep.subr.bf16.mxu0 %v2838_v1  ;;  %v1304_v25 = vsel %vm45_vm1, %v1299_v7, 0 }
 0x29c   :  { %2551 = vmatmul.mubr.msk.bf16.vlgmr.msra.gmra.mxu1 %vm45_vm1, %v654_v61  ;;  %v3333_v61 = vld [vmem:[%s3696_s1 + $0x18] sm:$0xff] }
 0x29d   :  { %2561 = vmatpush3.bf16.xpose.msra.mxu1 %v1100_v9  ;;  %2562 = vmatprep.mubr.msk.bf16.mxu1 %vm2839_vm0, %v2838_v1  ;;  %v1195_v59 = vpop.permute.xlu0 %1194  ;;  %v1350_v23 = vpop.permute.xlu1 %1349 }
 0x29e   :  { %2572 = vmatprep.subr.bf16.mxu1 %v2838_v1  ;;  %v1355_v27 = vsel %vm45_vm1, %v1350_v23, 0 }
 0x2a0   :  { %2557 = vmatmul.mubr.msk.bf16.vlgmr.msra.gmra.mxu0 %vm45_vm1, %v1042_v14 }
 0x2a1   :  { %2567 = vmatpush3.bf16.xpose.msra.mxu0 %v1151_v50  ;;  %2568 = vmatprep.mubr.msk.bf16.mxu0 %vm2839_vm0, %v2838_v1  ;;  %v1246_v24 = vpop.permute.xlu0 %1245  ;;  %v1401_v11 = vpop.permute.xlu1 %1400 }
 0x2a2   :  { %2578 = vmatprep.subr.bf16.mxu0 %v2838_v1  ;;  %v1406_v36 = vsel %vm45_vm1, %v1401_v11, 0 }
 0x2a4   :  { %2563 = vmatmul.mubr.msk.bf16.vlgmr.msra.gmra.mxu1 %vm45_vm1, %v1093_v8 }
 0x2a5   :  { %2573 = vmatpush3.bf16.xpose.msra.mxu1 %v1202_v6  ;;  %2574 = vmatprep.mubr.msk.bf16.mxu1 %vm2839_vm0, %v2838_v1  ;;  %v1297_v12 = vpop.permute.xlu0 %1296  ;;  %v1399_v38 = vpop.permute.xlu1 %1398 }
 0x2a6   :  { %2584 = vmatprep.subr.bf16.mxu1 %v2838_v1 }
 0x2a8   :  { %2569 = vmatmul.mubr.msk.bf16.vlgmr.msra.gmra.mxu0 %vm45_vm1, %v1144_v43 }
 0x2a9   :  { %2579 = vmatpush3.bf16.xpose.msra.mxu0 %v1253_v22  ;;  %2580 = vmatprep.mubr.msk.bf16.mxu0 %vm2839_vm0, %v2838_v1  ;;  %v1348_v37 = vpop.permute.xlu0 %1347  ;;  %v1634_v40 = vpop.permute.xlu1 %1633 }
 0x2aa   :  { %2590 = vmatprep.subr.bf16.mxu0 %v2838_v1 }
 0x2ac   :  { %2575 = vmatmul.mubr.msk.bf16.vlgmr.msra.gmra.mxu1 %vm45_vm1, %v1195_v59 }
 0x2ad   :  { %2585 = vmatpush3.bf16.xpose.msra.mxu1 %v1304_v25  ;;  %2586 = vmatprep.mubr.msk.bf16.mxu1 %vm2839_vm0, %v2838_v1 }
 0x2ae   :  { %2596 = vmatprep.subr.bf16.mxu1 %v2838_v1 }
 0x2b0   :  { %2581 = vmatmul.mubr.msk.bf16.vlgmr.msra.gmra.mxu0 %vm45_vm1, %v1246_v24 }
 0x2b1   :  { %2591 = vmatpush3.bf16.xpose.msra.mxu0 %v1355_v27  ;;  %2592 = vmatprep.mubr.msk.bf16.mxu0 %vm2839_vm0, %v2838_v1 }
 0x2b2   :  { %2602 = vmatprep.subr.bf16.mxu0 %v2838_v1 }
 0x2b4   :  { %2587 = vmatmul.mubr.msk.bf16.vlgmr.msra.gmra.mxu1 %vm45_vm1, %v1297_v12 }
 0x2b5   :  { %2597 = vmatpush3.bf16.xpose.msra.mxu1 %v1406_v36  ;;  %2598 = vmatprep.mubr.msk.bf16.mxu1 %vm2839_vm0, %v2838_v1 }
 0x2b6   :  { %2608 = vmatprep.subr.bf16.mxu1 %v2838_v1 }
 0x2b8   :  { %2593 = vmatmul.mubr.msk.bf16.vlgmr.msra.gmra.mxu0 %vm45_vm1, %v1348_v37 }
 0x2b9   :  { %2604 = vmatprep.mubr.msk.bf16.mxu0 %vm2839_vm0, %v2838_v1  ;;  %2603 = vmatpush3.bf16.msra.mxu0 %v1634_v40 }
 0x2ba   :  { %2614 = vmatprep.subr.bf16.mxu0 %v2838_v1 }
 0x2bc   :  { %2599 = vmatmul.mubr.msk.bf16.vlgmr.msra.gmra.mxu1 %vm45_vm1, %v1399_v38 }
 0x2bd   :  { %2610 = vmatprep.mubr.msk.bf16.mxu1 %vm2839_vm0, %v2838_v1 }
 0x33f   :  { %v3274_v26 = vpop.f32.mrf.mxu0 }
 0x341   :  { %v2510_v13 = vpop.f32.mrf.mxu0 }
 0x343   :  { %v3276_v21 = vpop.f32.mrf.mxu0 }
 0x344   :  { %v1031_v30 = vpack.c.bf16 %v3276_v21, %v3274_v26  ;;  %v3280_v20 = vpop.f32.mrf.mxu1 }
 0x345   :  { %v2511_v19 = vpop.f32.mrf.mxu0 }
 0x346   :  { %v2516_v45 = vpop.f32.mrf.mxu1 }
 0x348   :  { %v3282_v46 = vpop.f32.mrf.mxu1  ;;  %v3284_v47 = vpop.f32.mrf.mxu0 }
 0x349   :  { %v1032_v0 = vpack.c.bf16 %v3282_v46, %v3280_v20 }
 0x34a   :  { %v2517_v48 = vpop.f32.mrf.mxu1  ;;  %v2522_v49 = vpop.f32.mrf.mxu0 }
 0x34c   :  { %v3288_v58 = vpop.f32.mrf.mxu0  ;;  %v3290_v33 = vpop.f32.mrf.mxu1 }
 0x34d   :  { %v1033_v29 = vpack.c.bf16 %v3288_v58, %v3284_v47 }
 0x34e   :  { %v2523_v53 = vpop.f32.mrf.mxu0  ;;  %v2528_v32 = vpop.f32.mrf.mxu1 }
 0x350   :  { %v3294_v54 = vpop.f32.mrf.mxu1  ;;  %v3296_v44 = vpop.f32.mrf.mxu0 }
 0x351   :  { %v1034_v55 = vpack.c.bf16 %v3294_v54, %v3290_v33 }
 0x352   :  { %v2529_v56 = vpop.f32.mrf.mxu1  ;;  %v2534_v28 = vpop.f32.mrf.mxu0 }
 0x354   :  { %v3300_v60 = vpop.f32.mrf.mxu0  ;;  %v3302_v41 = vpop.f32.mrf.mxu1 }
 0x355   :  { %v1035_v52 = vpack.c.bf16 %v3300_v60, %v3296_v44 }
 0x356   :  { %v2535_v34 = vpop.f32.mrf.mxu0  ;;  %v2540_v35 = vpop.f32.mrf.mxu1 }
 0x358   :  { %v3306_v10 = vpop.f32.mrf.mxu1  ;;  %v3308_v42 = vpop.f32.mrf.mxu0 }
 0x359   :  { %v1036_v31 = vpack.c.bf16 %v3306_v10, %v3302_v41 }
 0x35a   :  { %v2541_v39 = vpop.f32.mrf.mxu1  ;;  %v2546_v14 = vpop.f32.mrf.mxu0 }
 0x35c   :  { %v3312_v15 = vpop.f32.mrf.mxu0  ;;  %v3314_v51 = vpop.f32.mrf.mxu1 }
 0x35d   :  { %v1037_v16 = vpack.c.bf16 %v3312_v15, %v3308_v42 }
 0x35e   :  { %v2547_v2 = vpop.f32.mrf.mxu0  ;;  %v2552_v57 = vpop.f32.mrf.mxu1 }
 0x360   :  { %v3323_v3 = vpop.f32.mrf.mxu1  ;;  %v1085_v17 = vpop.f32.mrf.mxu0 }
 0x361   :  { %v1038_v4 = vpack.c.bf16 %v3323_v3, %v3314_v51  ;;  %v3328_v18 = vadd.f32 %v1085_v17, %v3321_v62 }
 0x362   :  { %v2553_v5 = vpop.f32.mrf.mxu1  ;;  %v2558_v8 = vpop.f32.mrf.mxu0 }
 0x363   :  { %v1449_v9 = vsel %vm45_vm1, %v3328_v18, -inf }
 0x364   :  { %1450 = vmax.xlane.f32.xlu0 %v1449_v9  ;;  %v1088_v63 = vpop.f32.mrf.mxu0  ;;  %v1136_v43 = vpop.f32.mrf.mxu1 }
 0x365   :  { %v3338_v50 = vadd.f32 %v1088_v63, %v3333_v61  ;;  %v3341_v6 = vadd.f32 %v1136_v43, %v3321_v62 }
 0x366   :  { %v2559_v7 = vpop.f32.mrf.mxu0  ;;  %v2564_v59 = vpop.f32.mrf.mxu1 }
 0x367   :  { %v1452_v22 = vsel %vm45_vm1, %v3338_v50, -inf  ;;  %v1455_v23 = vsel %vm45_vm1, %v3341_v6, -inf }
 0x368   :  { %1453 = vmax.xlane.f32.xlu1 %v1452_v22  ;;  %1456 = vmax.xlane.f32.xlu0 %v1455_v23  ;;  %v1139_v24 = vpop.f32.mrf.mxu1  ;;  %v1187_v25 = vpop.f32.mrf.mxu0 }
 0x369   :  { %v3348_v27 = vadd.f32 %v1139_v24, %v3333_v61  ;;  %v3351_v11 = vadd.f32 %v1187_v25, %v3321_v62 }
 0x36a   :  { %v2565_v12 = vpop.f32.mrf.mxu1  ;;  %v2570_v36 = vpop.f32.mrf.mxu0 }
 0x36b   :  { %v1458_v37 = vsel %vm45_vm1, %v3348_v27, -inf  ;;  %v1461_v38 = vsel %vm45_vm1, %v3351_v11, -inf }
 0x36c   :  { %1459 = vmax.xlane.f32.xlu0 %v1458_v37  ;;  %1462 = vmax.xlane.f32.xlu1 %v1461_v38  ;;  %v1190_v40 = vpop.f32.mrf.mxu0  ;;  %v1238_v13 = vpop.f32.mrf.mxu1 }
 0x36d   :  { %v3358_v19 = vadd.f32 %v1190_v40, %v3333_v61  ;;  %v3361_v45 = vadd.f32 %v1238_v13, %v3321_v62 }
 0x36e   :  { %v2571_v48 = vpop.f32.mrf.mxu0  ;;  %v2576_v49 = vpop.f32.mrf.mxu1 }
 0x36f   :  { %v1464_v53 = vsel %vm45_vm1, %v3358_v19, -inf  ;;  %v1467_v32 = vsel %vm45_vm1, %v3361_v45, -inf }
 0x370   :  { %1465 = vmax.xlane.f32.xlu0 %v1464_v53  ;;  %1468 = vmax.xlane.f32.xlu1 %v1467_v32  ;;  %v1241_v56 = vpop.f32.mrf.mxu1  ;;  %v1289_v28 = vpop.f32.mrf.mxu0 }
 0x371   :  { %v3368_v34 = vadd.f32 %v1241_v56, %v3333_v61  ;;  %v3371_v35 = vadd.f32 %v1289_v28, %v3321_v62 }
 0x372   :  { %v2577_v39 = vpop.f32.mrf.mxu1  ;;  %v2582_v14 = vpop.f32.mrf.mxu0 }
 0x373   :  { %v1470_v2 = vsel %vm45_vm1, %v3368_v34, -inf  ;;  %v1473_v57 = vsel %vm45_vm1, %v3371_v35, -inf }
 0x374   :  { %1471 = vmax.xlane.f32.xlu0 %v1470_v2  ;;  %1474 = vmax.xlane.f32.xlu1 %v1473_v57  ;;  %v1292_v17 = vpop.f32.mrf.mxu0  ;;  %v1340_v5 = vpop.f32.mrf.mxu1  ;;  %v2831_v57 = vld [vmem:[%s3695_s0 + $0x10] sm:$0xff]  }
 0x375   :  { %v3378_v8 = vadd.f32 %v1292_v17, %v3333_v61  ;;  %v3381_v9 = vadd.f32 %v1340_v5, %v3321_v62  ;;  %v2832_v17 = vld [vmem:[%s3695_s0 + $0x18] sm:$0xff]   ;;  %v2834_v5 = vld [vmem:[%s3695_s0 + $0x8] sm:$0xff]  }
 0x376   :  { %v2583_v63 = vpop.f32.mrf.mxu0  ;;  %v2588_v43 = vpop.f32.mrf.mxu1 }
 0x377   :  { %v1476_v7 = vsel %vm45_vm1, %v3378_v8, -inf  ;;  %v1479_v59 = vsel %vm45_vm1, %v3381_v9, -inf  ;;  %v2835_v63 = vld [vmem:[%s3695_s0 + $0x20] sm:$0xff]  }
 0x378   :  { %1477 = vmax.xlane.f32.xlu0 %v1476_v7  ;;  %1480 = vmax.xlane.f32.xlu1 %v1479_v59  ;;  %v1343_v22 = vpop.f32.mrf.mxu1  ;;  %v1391_v23 = vpop.f32.mrf.mxu0 }
 0x379   :  { %v3388_v24 = vadd.f32 %v1343_v22, %v3333_v61  ;;  %v3391_v25 = vadd.f32 %v1391_v23, %v3321_v62 }
 0x37a   :  { %v2589_v12 = vpop.f32.mrf.mxu1  ;;  %v2594_v36 = vpop.f32.mrf.mxu0 }
 0x37b   :  { %v1482_v37 = vsel %vm45_vm1, %v3388_v24, -inf  ;;  %v1485_v38 = vsel %vm45_vm1, %v3391_v25, -inf }
 0x37c   :  { %1483 = vmax.xlane.f32.xlu0 %v1482_v37  ;;  %v1442_v40 = vpop.f32.mrf.mxu1  ;;  %1486 = vmax.xlane.f32.xlu1 %v1485_v38  ;;  %v1394_v13 = vpop.f32.mrf.mxu0 }
 0x37d   :  { %v3398_v48 = vadd.f32 %v1442_v40, %v3321_v62  ;;  %v3401_v49 = vadd.f32 %v1394_v13, %v3333_v61 }
 0x37e   :  { %v2595_v53 = vpop.f32.mrf.mxu0  ;;  %v2600_v32 = vpop.f32.mrf.mxu1 }
 0x37f   :  { %v1491_v56 = vsel %vm45_vm1, %v3398_v48, -inf  ;;  %v1488_v28 = vsel %vm45_vm1, %v3401_v49, -inf }
 0x380   :  { %v1445_v39 = vpop.f32.mrf.mxu1  ;;  %1492 = vmax.xlane.f32.xlu1 %v1491_v56  ;;  %1489 = vmax.xlane.f32.xlu0 %v1488_v28 }
 0x381   :  { %v3408_v14 = vadd.f32 %v1445_v39, %v3333_v61  ;;  %v2833_v61 = vld [vmem:[%s3695_s0 + $0x28] sm:$0xff]  }
 0x382   :  { %v2601_v2 = vpop.f32.mrf.mxu1 }
 0x383   :  { %v1494_v62 = vsel %vm45_vm1, %v3408_v14, -inf }
 0x384   :  { %1495 = vmax.xlane.f32.xlu0 %v1494_v62 }
 0x391   :  { %1727 = vrot.lane.b32.xlu1 %v2831_v57, %s2844_s13 }
 0x395   :  { %1774 = vrot.lane.b32.xlu1 %v2832_v17, %s2844_s13 }
 0x399   :  { %1868 = vrot.lane.b32.xlu1 %v2833_v61, %s2844_s13 }
 0x39a   :  { %1680 = vrot.lane.b32.xlu0 %v2834_v5, %s2844_s13 }
 0x39e   :  { %1821 = vrot.lane.b32.xlu0 %v2835_v63, %s2844_s13 }
 0x3ed   :  { %v1451_v43 = vpop.xlane.xlu0 %1450 }
 0x3ee   :  { %v1497_v7 = vsub.f32 %v3328_v18, %v1451_v43 }
 0x3f0   :  { %v1513_v59 = vmul.f32 1.442695, %v1497_v7 }
 0x3f1   :  { %v1454_v22 = vpop.xlane.xlu1 %1453  ;;  %v1457_v23 = vpop.xlane.xlu0 %1456 }
 0x3f2   :  { %2767 = vpow2.f32 %v1513_v59  ;;  %v1498_v12 = vsub.f32 %v3338_v50, %v1454_v22  ;;  %v1499_v36 = vsub.f32 %v3341_v6, %v1457_v23 }
 0x3f4   :  { %v1515_v37 = vmul.f32 1.442695, %v1498_v12  ;;  %v1517_v38 = vmul.f32 1.442695, %v1499_v36 }
 0x3f5   :  { %v1463_v40 = vpop.xlane.xlu1 %1462  ;;  %v1460_v13 = vpop.xlane.xlu0 %1459 }
 0x3f6   :  { %2769 = vpow2.f32 %v1515_v37  ;;  %v1501_v53 = vsub.f32 %v3351_v11, %v1463_v40  ;;  %v1500_v32 = vsub.f32 %v3348_v27, %v1460_v13 }
 0x3f7   :  { %2771 = vpow2.f32 %v1517_v38 }
 0x3f8   :  { %v1521_v56 = vmul.f32 1.442695, %v1501_v53  ;;  %v1519_v18 = vmul.f32 1.442695, %v1500_v32 }
 0x3f9   :  { %v1469_v28 = vpop.xlane.xlu1 %1468  ;;  %v1466_v39 = vpop.xlane.xlu0 %1465 }
 0x3fa   :  { %2773 = vpow2.f32 %v1521_v56  ;;  %v1503_v2 = vsub.f32 %v3361_v45, %v1469_v28  ;;  %v1502_v50 = vsub.f32 %v3358_v19, %v1466_v39 }
 0x3fb   :  { %2775 = vpow2.f32 %v1519_v18 }
 0x3fc   :  { %v1525_v6 = vmul.f32 1.442695, %v1503_v2  ;;  %v1523_v62 = vmul.f32 1.442695, %v1502_v50 }
 0x3fd   :  { %v1475_v57 = vpop.xlane.xlu1 %1474  ;;  %v1472_v17 = vpop.xlane.xlu0 %1471 }
 0x3fe   :  { %2777 = vpow2.f32 %v1525_v6  ;;  %v1505_v11 = vsub.f32 %v3371_v35, %v1475_v57  ;;  %v1504_v27 = vsub.f32 %v3368_v34, %v1472_v17 }
 0x3ff   :  { %v3441_v61 = vpop.eup %2767  ;;  %2779 = vpow2.f32 %v1523_v62 }
 0x400   :  { %v1529_v5 = vmul.f32 1.442695, %v1505_v11  ;;  %v1527_v63 = vmul.f32 1.442695, %v1504_v27  ;;  %v1545_v45 = vsel %vm45_vm1, %v3441_v61, 0.0 }
 0x401   :  { %v1481_v43 = vpop.xlane.xlu1 %1480  ;;  %1546 = vadd.xlane.f32.xlu1 %v1545_v45  ;;  %v1478_v19 = vpop.xlane.xlu0 %1477 }
 0x402   :  { %2781 = vpow2.f32 %v1529_v5  ;;  %v1507_v7 = vsub.f32 %v3381_v9, %v1481_v43  ;;  %v1506_v59 = vsub.f32 %v3378_v8, %v1478_v19 }
 0x403   :  { %v3447_v22 = vpop.eup %2769  ;;  %2783 = vpow2.f32 %v1527_v63 }
 0x404   :  { %v3449_v34 = vpop.eup %2771  ;;  %v1533_v35 = vmul.f32 1.442695, %v1507_v7  ;;  %v1531_v23 = vmul.f32 1.442695, %v1506_v59  ;;  %v1548_v12 = vsel %vm45_vm1, %v3447_v22, 0.0 }
 0x405   :  { %v1487_v36 = vpop.xlane.xlu1 %1486  ;;  %1549 = vadd.xlane.f32.xlu0 %v1548_v12  ;;  %v1551_v37 = vsel %vm45_vm1, %v3449_v34, 0.0  ;;  %v1484_v38 = vpop.xlane.xlu0 %1483 }
 0x406   :  { %2785 = vpow2.f32 %v1533_v35  ;;  %v1509_v9 = vsub.f32 %v3391_v25, %v1487_v36  ;;  %1552 = vadd.xlane.f32.xlu1 %v1551_v37  ;;  %v1508_v8 = vsub.f32 %v3388_v24, %v1484_v38 }
 0x407   :  { %v3457_v40 = vpop.eup %2773  ;;  %2787 = vpow2.f32 %v1531_v23 }
 0x408   :  { %v3459_v13 = vpop.eup %2775  ;;  %v1537_v53 = vmul.f32 1.442695, %v1509_v9  ;;  %v1535_v32 = vmul.f32 1.442695, %v1508_v8  ;;  %v1557_v56 = vsel %vm45_vm1, %v3457_v40, 0.0 }
 0x409   :  { %v1493_v18 = vpop.xlane.xlu1 %1492  ;;  %v1554_v28 = vsel %vm45_vm1, %v3459_v13, 0.0  ;;  %v1490_v39 = vpop.xlane.xlu0 %1489 }
 0x40a   :  { %2789 = vpow2.f32 %v1537_v53  ;;  %v1511_v25 = vsub.f32 %v3398_v48, %v1493_v18  ;;  %1558 = vadd.xlane.f32.xlu1 %v1557_v56  ;;  %1555 = vadd.xlane.f32.xlu0 %v1554_v28  ;;  %v1510_v24 = vsub.f32 %v3401_v49, %v1490_v39  ;;  %v2836_v56 = vld [vmem:[%s3695_s0 + $0x38] sm:$0xff]   ;;  %v2837_v18 = vld [vmem:[%s3695_s0 + $0x30] sm:$0xff]  }
 0x40b   :  { %v3467_v2 = vpop.eup %2777  ;;  %2791 = vpow2.f32 %v1535_v32 }
 0x40c   :  { %v3469_v50 = vpop.eup %2779  ;;  %v1541_v6 = vmul.f32 1.442695, %v1511_v25  ;;  %v1539_v62 = vmul.f32 1.442695, %v1510_v24  ;;  %v1563_v57 = vsel %vm45_vm1, %v3467_v2, 0.0 }
 0x40d   :  { %v1560_v17 = vsel %vm45_vm1, %v3469_v50, 0.0  ;;  %v1496_v11 = vpop.xlane.xlu0 %1495  ;;  %v1728_v28 = vpop.permute.xlu1 %1727 }
 0x40e   :  { %2793 = vpow2.f32 %v1541_v6  ;;  %1564 = vadd.xlane.f32.xlu1 %v1563_v57  ;;  %1561 = vadd.xlane.f32.xlu0 %v1560_v17  ;;  %v1512_v48 = vsub.f32 %v3408_v14, %v1496_v11 }
 0x40f   :  { %v3476_v49 = vpop.eup %2781  ;;  %2795 = vpow2.f32 %v1539_v62 }
 0x410   :  { %v3478_v27 = vpop.eup %2783  ;;  %v1543_v5 = vmul.f32 1.442695, %v1512_v48  ;;  %v1569_v63 = vsel %vm45_vm1, %v3476_v49, 0.0 }
 0x411   :  { %v1566_v45 = vsel %vm45_vm1, %v3478_v27, 0.0  ;;  %v1681_v43 = vpop.permute.xlu0 %1680  ;;  %v1775_v39 = vpop.permute.xlu1 %1774 }
 0x412   :  { %2797 = vpow2.f32 %v1543_v5  ;;  %1570 = vadd.xlane.f32.xlu1 %v1569_v63  ;;  %1567 = vadd.xlane.f32.xlu0 %v1566_v45 }
 0x413   :  { %v3484_v19 = vpop.eup %2785  ;;  %2609 = vmatpush3.bf16.msra.mxu1 %v1681_v43 }
 0x414   :  { %v3486_v14 = vpop.eup %2787  ;;  %v1575_v7 = vsel %vm45_vm1, %v3484_v19, 0.0  ;;  %2620 = vmatprep.subr.bf16.mxu1 %v2838_v1 }
 0x415   :  { %v1572_v59 = vsel %vm45_vm1, %v3486_v14, 0.0  ;;  %v3521_v25 = vpop.permute.xlu1 %1868  ;;  %v1822_v24 = vpop.permute.xlu0 %1821 }
 0x416   :  { %1576 = vadd.xlane.f32.xlu1 %v1575_v7  ;;  %1573 = vadd.xlane.f32.xlu0 %v1572_v59 }
 0x417   :  { %v3493_v35 = vpop.eup %2789 }
 0x418   :  { %v3495_v23 = vpop.eup %2791  ;;  %v1581_v12 = vsel %vm45_vm1, %v3493_v35, 0.0 }
 0x419   :  { %v1578_v36 = vsel %vm45_vm1, %v3495_v23, 0.0 }
 0x41a   :  { %1582 = vadd.xlane.f32.xlu1 %v1581_v12  ;;  %1579 = vadd.xlane.f32.xlu0 %v1578_v36 }
 0x41b   :  { %v3501_v37 = vpop.eup %2793 }
 0x41c   :  { %v3503_v38 = vpop.eup %2795  ;;  %v1587_v9 = vsel %vm45_vm1, %v3501_v37, 0.0 }
 0x41d   :  { %v1584_v8 = vsel %vm45_vm1, %v3503_v38, 0.0 }
 0x41e   :  { %1588 = vadd.xlane.f32.xlu1 %v1587_v9  ;;  %1585 = vadd.xlane.f32.xlu0 %v1584_v8 }
 0x41f   :  { %v3509_v53 = vpop.eup %2797 }
 0x420   :  { %v1590_v32 = vsel %vm45_vm1, %v3509_v53, 0.0 }
 0x422   :  { %1591 = vadd.xlane.f32.xlu0 %v1590_v32 }
 0x42f   :  { %1962 = vrot.lane.b32.xlu1 %v2836_v56, %s2844_s13 }
 0x438   :  { %1915 = vrot.lane.b32.xlu0 %v2837_v18, %s2844_s13 }
 0x48a   :  { %v1547_v6 = vpop.xlane.xlu1 %1546 }
 0x48b   :  { %2799 = vrcp.f32 %v1547_v6 }
 0x48e   :  { %v1550_v62 = vpop.xlane.xlu0 %1549 }
 0x48f   :  { %v1553_v57 = vpop.xlane.xlu1 %1552  ;;  %2801 = vrcp.f32 %v1550_v62 }
 0x490   :  { %2803 = vrcp.f32 %v1553_v57 }
 0x493   :  { %v1559_v17 = vpop.xlane.xlu1 %1558  ;;  %v1556_v11 = vpop.xlane.xlu0 %1555 }
 0x494   :  { %2805 = vrcp.f32 %v1556_v11 }
 0x495   :  { %2807 = vrcp.f32 %v1559_v17 }
 0x497   :  { %v1565_v48 = vpop.xlane.xlu1 %1564  ;;  %v1562_v5 = vpop.xlane.xlu0 %1561 }
 0x498   :  { %2809 = vrcp.f32 %v1562_v5  ;;  %v2800_v63 = vpop.eup %2799 }
 0x499   :  { %2811 = vrcp.f32 %v1565_v48  ;;  %v1609_v59 = vmul.f32 %v2800_v63, %v3441_v61 }
 0x49b   :  { %v1571_v45 = vpop.xlane.xlu1 %1570  ;;  %v1568_v43 = vpop.xlane.xlu0 %1567 }
 0x49c   :  { %v2802_v7 = vpop.eup %2801  ;;  %2813 = vrcp.f32 %v1568_v43 }
 0x49d   :  { %v1610_v12 = vmul.f32 %v2802_v7, %v3447_v22  ;;  %2815 = vrcp.f32 %v1571_v45  ;;  %v2804_v32 = vpop.eup %2803 }
 0x49e   :  { %v1611_v61 = vmul.f32 %v2804_v32, %v3449_v34  ;;  %v2701_v32 = vld [vmem:[%s3697_s2] sm:$0xff]  }
 0x49f   :  { %v1577_v36 = vpop.xlane.xlu1 %1576  ;;  %v1574_v9 = vpop.xlane.xlu0 %1573  ;;  %v1625_v8 = vpack.c.bf16 %v1610_v12, %v1609_v59 }
 0x4a0   :  { %2817 = vrcp.f32 %v1574_v9 }
 0x4a1   :  { %2605 = vmatmul.mubr.msk.bf16.vlgmr.msra.gmra.mxu0 %vm45_vm1, %v1625_v8  ;;  %v2806_v56 = vpop.eup %2805  ;;  %2819 = vrcp.f32 %v1577_v36 }
 0x4a2   :  { %2615 = vmatpush3.bf16.msra.mxu0 %v1728_v28  ;;  %2616 = vmatprep.mubr.msk.bf16.mxu0 %vm2839_vm0, %v2838_v1  ;;  %v1612_v22 = vmul.f32 %v2806_v56, %v3459_v13  ;;  %v2808_v62 = vpop.eup %2807 }
 0x4a3   :  { %v1583_v18 = vpop.xlane.xlu1 %1582  ;;  %v1580_v6 = vpop.xlane.xlu0 %1579  ;;  %2626 = vmatprep.subr.bf16.mxu0 %v2838_v1  ;;  %v1613_v48 = vmul.f32 %v2808_v62, %v3457_v40 }
 0x4a4   :  { %2821 = vrcp.f32 %v1580_v6  ;;  %v1626_v57 = vpack.c.bf16 %v1612_v22, %v1611_v61 }
 0x4a5   :  { %v2810_v17 = vpop.eup %2809  ;;  %2823 = vrcp.f32 %v1583_v18 }
 0x4a6   :  { %2611 = vmatmul.mubr.msk.bf16.vlgmr.msra.gmra.mxu1 %vm45_vm1, %v1626_v57  ;;  %v1614_v5 = vmul.f32 %v2810_v17, %v3469_v50  ;;  %v2812_v63 = vpop.eup %2811 }
 0x4a7   :  { %v1589_v28 = vpop.xlane.xlu1 %1588  ;;  %v1586_v11 = vpop.xlane.xlu0 %1585  ;;  %2621 = vmatpush3.bf16.msra.mxu1 %v1775_v39  ;;  %2622 = vmatprep.mubr.msk.bf16.mxu1 %vm2839_vm0, %v2838_v1  ;;  %v1615_v43 = vmul.f32 %v2812_v63, %v3467_v2 }
 0x4a8   :  { %2825 = vrcp.f32 %v1586_v11  ;;  %v1627_v34 = vpack.c.bf16 %v1614_v5, %v1613_v48  ;;  %2632 = vmatprep.subr.bf16.mxu1 %v2838_v1 }
 0x4a9   :  { %v2814_v13 = vpop.eup %2813  ;;  %2827 = vrcp.f32 %v1589_v28 }
 0x4aa   :  { %2617 = vmatmul.mubr.msk.bf16.vlgmr.msra.gmra.mxu0 %vm45_vm1, %v1627_v34  ;;  %v1616_v40 = vmul.f32 %v2814_v13, %v3478_v27  ;;  %v2816_v7 = vpop.eup %2815 }
 0x4ab   :  { %v1592_v45 = vpop.xlane.xlu0 %1591  ;;  %2627 = vmatpush3.bf16.msra.mxu0 %v1822_v24  ;;  %2628 = vmatprep.mubr.msk.bf16.mxu0 %vm2839_vm0, %v2838_v1  ;;  %v1617_v59 = vmul.f32 %v2816_v7, %v3476_v49 }
 0x4ac   :  { %2829 = vrcp.f32 %v1592_v45  ;;  %v1628_v50 = vpack.c.bf16 %v1616_v40, %v1615_v43  ;;  %2638 = vmatprep.subr.bf16.mxu0 %v2838_v1 }
 0x4ad   :  { %v2818_v39 = vpop.eup %2817 }
 0x4ae   :  { %2623 = vmatmul.mubr.msk.bf16.vlgmr.msra.gmra.mxu1 %vm45_vm1, %v1628_v50  ;;  %v1618_v12 = vmul.f32 %v2818_v39, %v3486_v14  ;;  %v2820_v36 = vpop.eup %2819  ;;  %v1963_v14 = vpop.permute.xlu1 %1962 }
 0x4af   :  { %2633 = vmatpush3.bf16.msra.mxu1 %v3521_v25  ;;  %2634 = vmatprep.mubr.msk.bf16.mxu1 %vm2839_vm0, %v2838_v1  ;;  %v1916_v27 = vpop.permute.xlu0 %1915  ;;  %v1619_v9 = vmul.f32 %v2820_v36, %v3484_v19 }
 0x4b0   :  { %v1629_v2 = vpack.c.bf16 %v1618_v12, %v1617_v59  ;;  %2644 = vmatprep.subr.bf16.mxu1 %v2838_v1 }
 0x4b1   :  { %v2822_v24 = vpop.eup %2821 }
 0x4b2   :  { %2629 = vmatmul.mubr.msk.bf16.vlgmr.msra.gmra.mxu0 %vm45_vm1, %v1629_v2  ;;  %v1620_v8 = vmul.f32 %v2822_v24, %v3495_v23  ;;  %v2824_v49 = vpop.eup %2823 }
 0x4b3   :  { %2639 = vmatpush3.bf16.msra.mxu0 %v1916_v27  ;;  %2640 = vmatprep.mubr.msk.bf16.mxu0 %vm2839_vm0, %v2838_v1  ;;  %v1621_v6 = vmul.f32 %v2824_v49, %v3493_v35 }
 0x4b4   :  { %v1630_v25 = vpack.c.bf16 %v1620_v8, %v1619_v9  ;;  %v3613_v8 = vld [vmem:[%s3698_s3] ss:$0 sm:$0xff] }
 0x4b5   :  { %v2826_v56 = vpop.eup %2825 }
 0x4b6   :  { %v2828_v18 = vpop.eup %2827  ;;  %2635 = vmatmul.mubr.msk.bf16.vlgmr.msra.gmra.mxu1 %vm45_vm1, %v1630_v25  ;;  %v1622_v19 = vmul.f32 %v2826_v56, %v3503_v38 }
 0x4b7   :  { %2645 = vmatpush3.bf16.msra.mxu1 %v1963_v14  ;;  %2646 = vmatprep.mubr.msk.bf16.mxu1 %vm2839_vm0, %v2838_v1  ;;  %v1623_v22 = vmul.f32 %v2828_v18, %v3501_v37  ;;  %v2702_v1 = vld [vmem:[%s3697_s2 + $0x8] sm:$0xff]  }
 0x4b8   :  { %v1631_v61 = vpack.c.bf16 %v1622_v19, %v1621_v6  ;;  %2668 = vmatprep.subr.bf16.mxu1 %v2701_v32  ;;  %2650 = vmatprep.subr.bf16.mxu0 %v2702_v1 }
 0x4b9   :  { %v2830_v23 = vpop.eup %2829 }
 0x4ba   :  { %v1624_v62 = vmul.f32 %v2830_v23, %v3509_v53  ;;  %2641 = vmatmul.mubr.msk.bf16.vlgmr.msra.gmra.mxu0 %vm45_vm1, %v1631_v61 }
 0x4bb   :  { %2651 = vmatpush3.bf16.msra.mxu0 %v2702_v1 }
 0x4bc   :  { %v1632_v57 = vpack.c.bf16 %v1624_v62, %v1623_v22 }
 0x4be   :  { %2647 = vmatmul.mubr.msk.bf16.vlgmr.msra.gmra.mxu1 %vm45_vm1, %v1632_v57 }
 0x4bf   :  { %2670 = vmatprep.mubr.msk.bf16.mxu1 %vm45_vm1, %v1031_v30  ;;  %2669 = vmatpush3.bf16.msra.mxu1 %v2701_v32 }
 0x4c6   :  { %2671 = vmatmul.mubr.msk.bf16.vlgmr.msra.gmra.mxu1 %vm45_vm1, %v1032_v0 }
 0x4c7   :  { %2674 = vmatprep.mubr.msk.bf16.mxu1 %vm45_vm1, %v1033_v29 }
 0x4ce   :  { %2675 = vmatmul.mubr.msk.bf16.gmra.mxu1 %vm45_vm1, %v1034_v55 }
 0x4cf   :  { %2678 = vmatprep.mubr.msk.bf16.mxu1 %vm45_vm1, %v1035_v52 }
 0x4d6   :  { %2679 = vmatmul.mubr.msk.bf16.gmra.mxu1 %vm45_vm1, %v1036_v31 }
 0x4d7   :  { %2682 = vmatprep.mubr.msk.bf16.mxu1 %vm45_vm1, %v1037_v16 }
 0x4de   :  { %2683 = vmatmul.mubr.msk.bf16.gmra.mxu1 %vm45_vm1, %v1038_v4 }
 0x561   :  { %v1673_v26 = vpop.f32.mrf.mxu0 }
 0x563   :  { %v2606_v21 = vpop.f32.mrf.mxu0 }
 0x565   :  { %v1676_v30 = vpop.f32.mrf.mxu0 }
 0x566   :  { %v2009_v20 = vpack.c.bf16 %v1676_v30, %v1673_v26  ;;  %v1720_v46 = vpop.f32.mrf.mxu1 }
 0x567   :  { %v2607_v47 = vpop.f32.mrf.mxu0 }
 0x568   :  { %2652 = vmatprep.mubr.msk.bf16.mxu0 %vm45_vm1, %v2009_v20  ;;  %v2612_v0 = vpop.f32.mrf.mxu1 }
 0x56a   :  { %v1723_v58 = vpop.f32.mrf.mxu1  ;;  %v1767_v33 = vpop.f32.mrf.mxu0 }
 0x56b   :  { %v2010_v29 = vpack.c.bf16 %v1723_v58, %v1720_v46 }
 0x56c   :  { %v2613_v54 = vpop.f32.mrf.mxu1  ;;  %v2618_v44 = vpop.f32.mrf.mxu0 }
 0x56d   :  { %2653 = vmatmul.mubr.msk.bf16.vlgmr.msra.gmra.mxu0 %vm45_vm1, %v2010_v29 }
 0x56e   :  { %v1770_v55 = vpop.f32.mrf.mxu0  ;;  %v1814_v60 = vpop.f32.mrf.mxu1 }
 0x56f   :  { %v2011_v41 = vpack.c.bf16 %v1770_v55, %v1767_v33 }
 0x570   :  { %v2619_v52 = vpop.f32.mrf.mxu0  ;;  %v2624_v10 = vpop.f32.mrf.mxu1 }
 0x571   :  { %2656 = vmatprep.mubr.msk.bf16.mxu0 %vm45_vm1, %v2011_v41 }
 0x572   :  { %v1817_v42 = vpop.f32.mrf.mxu1  ;;  %v1861_v31 = vpop.f32.mrf.mxu0 }
 0x573   :  { %v2012_v15 = vpack.c.bf16 %v1817_v42, %v1814_v60 }
 0x574   :  { %v2625_v51 = vpop.f32.mrf.mxu1  ;;  %v2630_v16 = vpop.f32.mrf.mxu0 }
 0x575   :  { %2657 = vmatmul.mubr.msk.bf16.gmra.mxu0 %vm45_vm1, %v2012_v15 }
 0x576   :  { %v1864_v3 = vpop.f32.mrf.mxu0  ;;  %v1908_v4 = vpop.f32.mrf.mxu1 }
 0x577   :  { %v2013_v35 = vpack.c.bf16 %v1864_v3, %v1861_v31 }
 0x578   :  { %v2631_v37 = vpop.f32.mrf.mxu0  ;;  %v2636_v38 = vpop.f32.mrf.mxu1 }
 0x579   :  { %2660 = vmatprep.mubr.msk.bf16.mxu0 %vm45_vm1, %v2013_v35 }
 0x57a   :  { %v1911_v53 = vpop.f32.mrf.mxu1  ;;  %v1955_v17 = vpop.f32.mrf.mxu0 }
 0x57b   :  { %v2014_v28 = vpack.c.bf16 %v1911_v53, %v1908_v4 }
 0x57c   :  { %v2637_v11 = vpop.f32.mrf.mxu1  ;;  %v2642_v48 = vpop.f32.mrf.mxu0 }
 0x57d   :  { %2661 = vmatmul.mubr.msk.bf16.gmra.mxu0 %vm45_vm1, %v2014_v28 }
 0x57e   :  { %v1958_v5 = vpop.f32.mrf.mxu0  ;;  %v2002_v63 = vpop.f32.mrf.mxu1 }
 0x57f   :  { %v2015_v34 = vpack.c.bf16 %v1958_v5, %v1955_v17 }
 0x580   :  { %v2643_v13 = vpop.f32.mrf.mxu0  ;;  %v2648_v45 = vpop.f32.mrf.mxu1 }
 0x581   :  { %2664 = vmatprep.mubr.msk.bf16.mxu0 %vm45_vm1, %v2015_v34 }
 0x582   :  { %v2005_v43 = vpop.f32.mrf.mxu1 }
 0x583   :  { %v2016_v40 = vpack.c.bf16 %v2005_v43, %v2002_v63 }
 0x584   :  { %v2649_v7 = vpop.f32.mrf.mxu1 }
 0x585   :  { %2665 = vmatmul.mubr.msk.bf16.gmra.mxu0 %vm45_vm1, %v2016_v40 }
 0x586   :  { %v2672_v50 = vpop.f32.mrf.mxu1 }
 0x588   :  { %v2210_v39 = vpop.f32.mrf.mxu1 }
 0x58a   :  { %v2673_v59 = vpop.f32.mrf.mxu1 }
 0x58c   :  { %v2213_v12 = vpop.f32.mrf.mxu1 }
 0x58e   :  { %v2676_v36 = vpop.f32.mrf.mxu1 }
 0x590   :  { %v2226_v2 = vpop.f32.mrf.mxu1 }
 0x592   :  { %v2677_v27 = vpop.f32.mrf.mxu1 }
 0x594   :  { %v2229_v24 = vpop.f32.mrf.mxu1 }
 0x596   :  { %v2680_v14 = vpop.f32.mrf.mxu1 }
 0x598   :  { %v2242_v23 = vpop.f32.mrf.mxu1 }
 0x59a   :  { %v2681_v21 = vpop.f32.mrf.mxu1 }
 0x59c   :  { %v2245_v33 = vpop.f32.mrf.mxu1 }
 0x59e   :  { %v2684_v52 = vpop.f32.mrf.mxu1 }
 0x5a0   :  { %v2258_v3 = vpop.f32.mrf.mxu1 }
 0x5a2   :  { %v2685_v28 = vpop.f32.mrf.mxu1 }
 0x5a4   :  { %v2261_v45 = vpop.f32.mrf.mxu1 }
 0x62d   :  { %v2654_v9 = vpop.f32.mrf.mxu0 }
 0x62e   :  { %v2219_v49 = vadd.f32 %v2672_v50, %v2654_v9 }
 0x62f   :  { %v2083_v25 = vpop.f32.mrf.mxu0 }
 0x630   :  { %v2282_v32 = vadd.f32 %v3613_v8, %v2219_v49  ;;  %v2211_v56 = vadd.f32 %v2210_v39, %v2083_v25 }
 0x631   :  { %v2655_v18 = vpop.f32.mrf.mxu0 }
 0x632   :  { %2299 = vst.msk [vmem:[%s3699_s4 + $0x10] sm:$0xff] %vm2296_vm2, %v2282_v32  ;;  %v2280_v6 = vadd.f32 %v3613_v8, %v2211_v56  ;;  %v2222_v19 = vadd.f32 %v2673_v59, %v2655_v18 }
 0x633   :  { %v2086_v61 = vpop.f32.mrf.mxu0 }
 0x634   :  { %2297 = vst.msk [vmem:[%s3699_s4] sm:$0xff] %vm2296_vm2, %v2280_v6  ;;  %v2283_v22 = vadd.f32 %v3613_v8, %v2222_v19  ;;  %v2214_v62 = vadd.f32 %v2213_v12, %v2086_v61 }
 0x635   :  { %v2658_v57 = vpop.f32.mrf.mxu0 }
 0x636   :  { %2300 = vst.msk [vmem:[%s3699_s4 + $0x18] sm:$0xff] %vm2296_vm2, %v2283_v22  ;;  %v2281_v1 = vadd.f32 %v3613_v8, %v2214_v62  ;;  %v2235_v26 = vadd.f32 %v2676_v36, %v2658_v57 }
 0x637   :  { %v2099_v30 = vpop.f32.mrf.mxu0 }
 0x638   :  { %2298 = vst.msk [vmem:[%s3699_s4 + $0x8] sm:$0xff] %vm2296_vm2, %v2281_v1  ;;  %v2286_v20 = vadd.f32 %v3613_v8, %v2235_v26  ;;  %v2227_v46 = vadd.f32 %v2226_v2, %v2099_v30 }
 0x639   :  { %v2659_v47 = vpop.f32.mrf.mxu0 }
 0x63a   :  { %2303 = vst.msk [vmem:[%s3699_s4 + $0x30] sm:$0xff] %vm2296_vm2, %v2286_v20  ;;  %v2284_v0 = vadd.f32 %v3613_v8, %v2227_v46  ;;  %v2238_v58 = vadd.f32 %v2677_v27, %v2659_v47 }
 0x63b   :  { %v2102_v29 = vpop.f32.mrf.mxu0 }
 0x63c   :  { %2301 = vst.msk [vmem:[%s3699_s4 + $0x20] sm:$0xff] %vm2296_vm2, %v2284_v0  ;;  %v2287_v54 = vadd.f32 %v3613_v8, %v2238_v58  ;;  %v2230_v44 = vadd.f32 %v2229_v24, %v2102_v29 }
 0x63d   :  { %v2662_v55 = vpop.f32.mrf.mxu0 }
 0x63e   :  { %2304 = vst.msk [vmem:[%s3699_s4 + $0x38] sm:$0xff] %vm2296_vm2, %v2287_v54  ;;  %v2285_v60 = vadd.f32 %v3613_v8, %v2230_v44  ;;  %v2251_v41 = vadd.f32 %v2680_v14, %v2662_v55 }
 0x63f   :  { %v2115_v10 = vpop.f32.mrf.mxu0 }
 0x640   :  { %2302 = vst.msk [vmem:[%s3699_s4 + $0x28] sm:$0xff] %vm2296_vm2, %v2285_v60  ;;  %v2290_v42 = vadd.f32 %v3613_v8, %v2251_v41  ;;  %v2243_v31 = vadd.f32 %v2242_v23, %v2115_v10 }
 0x641   :  { %v2663_v15 = vpop.f32.mrf.mxu0 }
 0x642   :  { %2307 = vst.msk [vmem:[%s3699_s4 + $0x50] sm:$0xff] %vm2296_vm2, %v2290_v42  ;;  %v2288_v51 = vadd.f32 %v3613_v8, %v2243_v31  ;;  %v2254_v16 = vadd.f32 %v2681_v21, %v2663_v15 }
 0x643   :  { %v2118_v4 = vpop.f32.mrf.mxu0 }
 0x644   :  { %2305 = vst.msk [vmem:[%s3699_s4 + $0x40] sm:$0xff] %vm2296_vm2, %v2288_v51  ;;  %v2291_v35 = vadd.f32 %v3613_v8, %v2254_v16  ;;  %v2246_v37 = vadd.f32 %v2245_v33, %v2118_v4 }
 0x645   :  { %v2666_v38 = vpop.f32.mrf.mxu0 }
 0x646   :  { %2308 = vst.msk [vmem:[%s3699_s4 + $0x58] sm:$0xff] %vm2296_vm2, %v2291_v35  ;;  %v2289_v53 = vadd.f32 %v3613_v8, %v2246_v37  ;;  %v2267_v17 = vadd.f32 %v2684_v52, %v2666_v38 }
 0x647   :  { %v2131_v11 = vpop.f32.mrf.mxu0 }
 0x648   :  { %2306 = vst.msk [vmem:[%s3699_s4 + $0x48] sm:$0xff] %vm2296_vm2, %v2289_v53  ;;  %v2294_v48 = vadd.f32 %v3613_v8, %v2267_v17  ;;  %v2259_v5 = vadd.f32 %v2258_v3, %v2131_v11 }
 0x649   :  { %v2667_v63 = vpop.f32.mrf.mxu0 }
 0x64a   :  { %2311 = vst.msk [vmem:[%s3699_s4 + $0x70] sm:$0xff] %vm2296_vm2, %v2294_v48  ;;  %v2292_v34 = vadd.f32 %v3613_v8, %v2259_v5  ;;  %v2270_v13 = vadd.f32 %v2685_v28, %v2667_v63 }
 0x64b   :  { %v2134_v43 = vpop.f32.mrf.mxu0 }
 0x64c   :  { %2309 = vst.msk [vmem:[%s3699_s4 + $0x60] sm:$0xff] %vm2296_vm2, %v2292_v34  ;;  %v2295_v40 = vadd.f32 %v3613_v8, %v2270_v13  ;;  %v2262_v7 = vadd.f32 %v2261_v45, %v2134_v43 }
 0x64e   :  { %2312 = vst.msk [vmem:[%s3699_s4 + $0x78] sm:$0xff] %vm2296_vm2, %v2295_v40  ;;  %v2293_v50 = vadd.f32 %v3613_v8, %v2262_v7 }
 0x650   :  { %2310 = vst.msk [vmem:[%s3699_s4 + $0x68] sm:$0xff] %vm2296_vm2, %v2293_v50 }

// kernel: model_forward.22
= control target key start
LH: loop header
LB: loop body
LE: loop exit
PB: predicated region body
PF: predicated region fallthrough
CT: control target
= control target key end

     0   :  { %vm43_vm0 = vcmask 261120   ;;  %s1599_s0 = inlined_call_operand.vmem [shape: f32[128,32], index: 0, kind: input, shape index: {}]   ;;  %s1600_s3 = inlined_call_operand.vmem [shape: bf16[32,128], index: 3, kind: input, shape index: {}]   ;;  %s1601_s1 = inlined_call_operand.vmem [shape: f32[1,32], index: 1, kind: input, shape index: {}]   ;;  %s1602_s2 = inlined_call_operand.vmem [shape: f32[1,32], index: 2, kind: input, shape index: {}]   ;;  %s1603_s5 = inlined_call_operand.vmem [shape: bf16[128,32], index: 5, kind: input, shape index: {}]   ;;  %s1604_s4 = inlined_call_operand.vmem [shape: f32[1,128], index: 4, kind: input, shape index: {}]   ;;  %s1605_s6 = inlined_call_operand.vmem [shape: f32[1,32], index: 6, kind: input, shape index: {}]   ;;  %s1606_s7 = inlined_call_operand.vmem [shape: f32[128,32], index: 7, kind: output, shape index: {}]  }
   0x1   :  { %v27_v0 = vld [vmem:[%s1599_s0] sm:$0xff]  ;;  %v29_v1 = vld [vmem:[%s1599_s0 + $0x10] sm:$0xff]  ;;  %v28_v2 = vld [vmem:[%s1599_s0 + $0x8] sm:$0xff] }
   0x2   :  { %v44_v3 = vsel %vm43_vm0, %v27_v0, 0.0  ;;  %v50_v4 = vsel %vm43_vm0, %v29_v1, 0.0  ;;  %v30_v5 = vld [vmem:[%s1599_s0 + $0x18] sm:$0xff]  ;;  %v47_v6 = vsel %vm43_vm0, %v28_v2, 0.0  ;;  %v31_v8 = vld [vmem:[%s1599_s0 + $0x20] sm:$0xff]  ;;  %v32_v9 = vld [vmem:[%s1599_s0 + $0x28] sm:$0xff] }
   0x3   :  { %45 = vadd.xlane.f32.xlu0 %v44_v3  ;;  %51 = vadd.xlane.f32.xlu1 %v50_v4  ;;  %v53_v7 = vsel %vm43_vm0, %v30_v5, 0.0  ;;  %v56_v10 = vsel %vm43_vm0, %v31_v8, 0.0  ;;  %v59_v11 = vsel %vm43_vm0, %v32_v9, 0.0  ;;  %v1080_v12 = vld [vmem:[%s1599_s0 + $0x30] sm:$0xff]  ;;  %v1085_v13 = vld [vmem:[%s1599_s0 + $0x38] sm:$0xff]  ;;  %v1094_v16 = vld [vmem:[%s1599_s0 + $0x40] sm:$0xff] }
   0x4   :  { %v62_v14 = vsel %vm43_vm0, %v1080_v12, 0.0  ;;  %v65_v15 = vsel %vm43_vm0, %v1085_v13, 0.0  ;;  %v1099_v17 = vld [vmem:[%s1599_s0 + $0x48] sm:$0xff]  ;;  %v68_v18 = vsel %vm43_vm0, %v1094_v16, 0.0  ;;  %v1108_v20 = vld [vmem:[%s1599_s0 + $0x50] sm:$0xff]  ;;  %v1113_v21 = vld [vmem:[%s1599_s0 + $0x58] sm:$0xff] }
   0x5   :  { %v71_v19 = vsel %vm43_vm0, %v1099_v17, 0.0  ;;  %v74_v22 = vsel %vm43_vm0, %v1108_v20, 0.0  ;;  %v77_v23 = vsel %vm43_vm0, %v1113_v21, 0.0  ;;  %v1122_v24 = vld [vmem:[%s1599_s0 + $0x60] sm:$0xff]  ;;  %v1127_v25 = vld [vmem:[%s1599_s0 + $0x68] sm:$0xff]  ;;  %v1136_v28 = vld [vmem:[%s1599_s0 + $0x70] sm:$0xff] }
   0x6   :  { %v80_v26 = vsel %vm43_vm0, %v1122_v24, 0.0  ;;  %v83_v27 = vsel %vm43_vm0, %v1127_v25, 0.0  ;;  %v1141_v29 = vld [vmem:[%s1599_s0 + $0x78] sm:$0xff]  ;;  %v86_v30 = vsel %vm43_vm0, %v1136_v28, 0.0 }
   0x7   :  { %48 = vadd.xlane.f32.xlu0 %v47_v6  ;;  %54 = vadd.xlane.f32.xlu1 %v53_v7  ;;  %v89_v31 = vsel %vm43_vm0, %v1141_v29, 0.0 }
   0xb   :  { %57 = vadd.xlane.f32.xlu0 %v56_v10  ;;  %60 = vadd.xlane.f32.xlu1 %v59_v11 }
   0xf   :  { %63 = vadd.xlane.f32.xlu0 %v62_v14  ;;  %66 = vadd.xlane.f32.xlu1 %v65_v15 }
  0x13   :  { %69 = vadd.xlane.f32.xlu0 %v68_v18  ;;  %72 = vadd.xlane.f32.xlu1 %v71_v19 }
  0x17   :  { %75 = vadd.xlane.f32.xlu0 %v74_v22  ;;  %78 = vadd.xlane.f32.xlu1 %v77_v23 }
  0x1b   :  { %81 = vadd.xlane.f32.xlu0 %v80_v26  ;;  %84 = vadd.xlane.f32.xlu1 %v83_v27 }
  0x1f   :  { %87 = vadd.xlane.f32.xlu0 %v86_v30  ;;  %90 = vadd.xlane.f32.xlu1 %v89_v31 }
  0x8c   :  { %v46_v32 = vpop.xlane.xlu0 %45  ;;  %v52_v33 = vpop.xlane.xlu1 %51 }
  0x8d   :  { %v93_v34 = vmul.f32 0.03125, %v46_v32  ;;  %v95_v35 = vmul.f32 0.03125, %v52_v33 }
  0x8f   :  { %v1147_v36 = vsub.f32 %v27_v0, %v93_v34  ;;  %v1149_v37 = vsub.f32 %v29_v1, %v95_v35 }
  0x90   :  { %v49_v38 = vpop.xlane.xlu0 %48  ;;  %v55_v39 = vpop.xlane.xlu1 %54 }
  0x91   :  { %v94_v40 = vmul.f32 0.03125, %v49_v38  ;;  %v96_v41 = vmul.f32 0.03125, %v55_v39  ;;  %v125_v42 = vmul.f32 %v1147_v36, %v1147_v36  ;;  %v127_v43 = vmul.f32 %v1149_v37, %v1149_v37 }
  0x93   :  { %v1155_v44 = vsub.f32 %v28_v2, %v94_v40  ;;  %v1157_v45 = vsub.f32 %v30_v5, %v96_v41  ;;  %v141_v46 = vsel %vm43_vm0, %v125_v42, 0.0  ;;  %v147_v49 = vsel %vm43_vm0, %v127_v43, 0.0 }
  0x94   :  { %142 = vadd.xlane.f32.xlu0 %v141_v46  ;;  %v58_v47 = vpop.xlane.xlu0 %57  ;;  %v61_v48 = vpop.xlane.xlu1 %60 }
  0x95   :  { %v97_v50 = vmul.f32 0.03125, %v58_v47  ;;  %v98_v51 = vmul.f32 0.03125, %v61_v48  ;;  %v126_v52 = vmul.f32 %v1155_v44, %v1155_v44  ;;  %v128_v53 = vmul.f32 %v1157_v45, %v1157_v45 }
  0x97   :  { %v1165_v54 = vsub.f32 %v31_v8, %v97_v50  ;;  %v1167_v55 = vsub.f32 %v32_v9, %v98_v51  ;;  %v144_v56 = vsel %vm43_vm0, %v126_v52, 0.0  ;;  %v150_v59 = vsel %vm43_vm0, %v128_v53, 0.0  ;;  %v924_v53 = vld [vmem:[%s1600_s3] sm:$0xff]  }
  0x98   :  { %148 = vadd.xlane.f32.xlu0 %v147_v49  ;;  %145 = vadd.xlane.f32.xlu1 %v144_v56  ;;  %v64_v57 = vpop.xlane.xlu0 %63  ;;  %v67_v58 = vpop.xlane.xlu1 %66 }
  0x99   :  { %v99_v60 = vmul.f32 0.03125, %v64_v57  ;;  %v100_v61 = vmul.f32 0.03125, %v67_v58  ;;  %v129_v62 = vmul.f32 %v1165_v54, %v1165_v54  ;;  %v130_v63 = vmul.f32 %v1167_v55, %v1167_v55 }
  0x9b   :  { %v1176_v0 = vsub.f32 %v1080_v12, %v99_v60  ;;  %v1179_v1 = vsub.f32 %v1085_v13, %v100_v61  ;;  %v153_v2 = vsel %vm43_vm0, %v129_v62, 0.0  ;;  %v156_v5 = vsel %vm43_vm0, %v130_v63, 0.0 }
  0x9c   :  { %151 = vadd.xlane.f32.xlu1 %v150_v59  ;;  %154 = vadd.xlane.f32.xlu0 %v153_v2  ;;  %v70_v3 = vpop.xlane.xlu0 %69  ;;  %v73_v4 = vpop.xlane.xlu1 %72 }
  0x9d   :  { %v101_v6 = vmul.f32 0.03125, %v70_v3  ;;  %v102_v7 = vmul.f32 0.03125, %v73_v4  ;;  %v131_v8 = vmul.f32 %v1176_v0, %v1176_v0  ;;  %v132_v9 = vmul.f32 %v1179_v1, %v1179_v1 }
  0x9f   :  { %v1188_v10 = vsub.f32 %v1094_v16, %v101_v6  ;;  %v1191_v11 = vsub.f32 %v1099_v17, %v102_v7  ;;  %v159_v12 = vsel %vm43_vm0, %v131_v8, 0.0  ;;  %v162_v15 = vsel %vm43_vm0, %v132_v9, 0.0 }
  0xa0   :  { %157 = vadd.xlane.f32.xlu1 %v156_v5  ;;  %160 = vadd.xlane.f32.xlu0 %v159_v12  ;;  %v76_v13 = vpop.xlane.xlu0 %75  ;;  %v79_v14 = vpop.xlane.xlu1 %78 }
  0xa1   :  { %v103_v18 = vmul.f32 0.03125, %v76_v13  ;;  %v104_v19 = vmul.f32 0.03125, %v79_v14  ;;  %v133_v22 = vmul.f32 %v1188_v10, %v1188_v10  ;;  %v134_v16 = vmul.f32 %v1191_v11, %v1191_v11 }
  0xa3   :  { %v1200_v23 = vsub.f32 %v1108_v20, %v103_v18  ;;  %v1203_v17 = vsub.f32 %v1113_v21, %v104_v19  ;;  %v165_v26 = vsel %vm43_vm0, %v133_v22, 0.0  ;;  %v168_v31 = vsel %vm43_vm0, %v134_v16, 0.0 }
  0xa4   :  { %163 = vadd.xlane.f32.xlu1 %v162_v15  ;;  %166 = vadd.xlane.f32.xlu0 %v165_v26  ;;  %v82_v27 = vpop.xlane.xlu0 %81  ;;  %v85_v30 = vpop.xlane.xlu1 %84 }
  0xa5   :  { %v105_v32 = vmul.f32 0.03125, %v82_v27  ;;  %v106_v33 = vmul.f32 0.03125, %v85_v30  ;;  %v135_v34 = vmul.f32 %v1200_v23, %v1200_v23  ;;  %v136_v20 = vmul.f32 %v1203_v17, %v1203_v17 }
  0xa7   :  { %v1212_v35 = vsub.f32 %v1122_v24, %v105_v32  ;;  %v1215_v21 = vsub.f32 %v1127_v25, %v106_v33  ;;  %v171_v38 = vsel %vm43_vm0, %v135_v34, 0.0  ;;  %v174_v41 = vsel %vm43_vm0, %v136_v20, 0.0  ;;  %v1247_v33 = vld [vmem:[%s1601_s1] ss:$0 sm:$0xff] }
  0xa8   :  { %169 = vadd.xlane.f32.xlu1 %v168_v31  ;;  %172 = vadd.xlane.f32.xlu0 %v171_v38  ;;  %v88_v39 = vpop.xlane.xlu0 %87  ;;  %v91_v40 = vpop.xlane.xlu1 %90 }
  0xa9   :  { %v107_v42 = vmul.f32 0.03125, %v88_v39  ;;  %v108_v43 = vmul.f32 0.03125, %v91_v40  ;;  %v137_v46 = vmul.f32 %v1212_v35, %v1212_v35  ;;  %v138_v24 = vmul.f32 %v1215_v21, %v1215_v21 }
  0xab   :  { %v1224_v47 = vsub.f32 %v1136_v28, %v107_v42  ;;  %v1227_v25 = vsub.f32 %v1141_v29, %v108_v43  ;;  %v177_v48 = vsel %vm43_vm0, %v137_v46, 0.0  ;;  %v180_v49 = vsel %vm43_vm0, %v138_v24, 0.0  ;;  %v923_v29 = vld [vmem:[%s1600_s3 + $0x8] sm:$0xff]  }
  0xac   :  { %175 = vadd.xlane.f32.xlu1 %v174_v41  ;;  %178 = vadd.xlane.f32.xlu0 %v177_v48 }
  0xad   :  { %v139_v50 = vmul.f32 %v1224_v47, %v1224_v47  ;;  %v140_v51 = vmul.f32 %v1227_v25, %v1227_v25  ;;  %855 = vmatprep.subr.bf16.mxu0 %v923_v29 }
  0xae   :  { %856 = vmatpush3.bf16.msra.mxu0 %v923_v29 }
  0xaf   :  { %v183_v52 = vsel %vm43_vm0, %v139_v50, 0.0  ;;  %v186_v28 = vsel %vm43_vm0, %v140_v51, 0.0  ;;  %857 = vmatprep.subr.bf16.mxu0 %v924_v53 }
  0xb0   :  { %181 = vadd.xlane.f32.xlu1 %v180_v49  ;;  %184 = vadd.xlane.f32.xlu0 %v183_v52 }
  0xb2   :  { %858 = vmatpush3.bf16.msra.mxu0 %v924_v53 }
  0xb4   :  { %187 = vadd.xlane.f32.xlu1 %v186_v28 }
 0x11d   :  { %v143_v56 = vpop.xlane.xlu0 %142 }
 0x11e   :  { %v189_v57 = vmul.f32 0.03125, %v143_v56 }
 0x120   :  { %v205_v58 = vadd.f32 1e-05, %v189_v57 }
 0x121   :  { %v146_v59 = vpop.xlane.xlu1 %145  ;;  %v149_v60 = vpop.xlane.xlu0 %148 }
 0x122   :  { %933 = vrsqrt.f32 %v205_v58  ;;  %v190_v61 = vmul.f32 0.03125, %v146_v59  ;;  %v191_v62 = vmul.f32 0.03125, %v149_v60 }
 0x124   :  { %v206_v63 = vadd.f32 1e-05, %v190_v61  ;;  %v207_v2 = vadd.f32 1e-05, %v191_v62 }
 0x125   :  { %v152_v3 = vpop.xlane.xlu1 %151  ;;  %v155_v4 = vpop.xlane.xlu0 %154 }
 0x126   :  { %935 = vrsqrt.f32 %v206_v63  ;;  %v192_v5 = vmul.f32 0.03125, %v152_v3  ;;  %v193_v6 = vmul.f32 0.03125, %v155_v4 }
 0x127   :  { %937 = vrsqrt.f32 %v207_v2 }
 0x128   :  { %v208_v7 = vadd.f32 1e-05, %v192_v5  ;;  %v209_v8 = vadd.f32 1e-05, %v193_v6 }
 0x129   :  { %v158_v9 = vpop.xlane.xlu1 %157  ;;  %v161_v12 = vpop.xlane.xlu0 %160 }
 0x12a   :  { %939 = vrsqrt.f32 %v208_v7  ;;  %v194_v13 = vmul.f32 0.03125, %v158_v9  ;;  %v195_v14 = vmul.f32 0.03125, %v161_v12 }
 0x12b   :  { %941 = vrsqrt.f32 %v209_v8 }
 0x12c   :  { %v210_v15 = vadd.f32 1e-05, %v194_v13  ;;  %v211_v18 = vadd.f32 1e-05, %v195_v14 }
 0x12d   :  { %v164_v19 = vpop.xlane.xlu1 %163  ;;  %v167_v22 = vpop.xlane.xlu0 %166 }
 0x12e   :  { %943 = vrsqrt.f32 %v210_v15  ;;  %v196_v16 = vmul.f32 0.03125, %v164_v19  ;;  %v197_v26 = vmul.f32 0.03125, %v167_v22 }
 0x12f   :  { %v934_v27 = vpop.eup %933  ;;  %945 = vrsqrt.f32 %v211_v18 }
 0x130   :  { %v212_v30 = vadd.f32 1e-05, %v196_v16  ;;  %v213_v31 = vadd.f32 1e-05, %v197_v26  ;;  %v237_v32 = vmul.f32 %v934_v27, %v1147_v36  ;;  %v1254_v36 = vld [vmem:[%s1602_s2] ss:$0 sm:$0xff] }
 0x131   :  { %v170_v34 = vpop.xlane.xlu1 %169  ;;  %v173_v20 = vpop.xlane.xlu0 %172 }
 0x132   :  { %947 = vrsqrt.f32 %v212_v30  ;;  %v198_v38 = vmul.f32 0.03125, %v170_v34  ;;  %v199_v39 = vmul.f32 0.03125, %v173_v20  ;;  %v260_v41 = vmul.f32 %v1247_v33, %v237_v32 }
 0x133   :  { %v936_v40 = vpop.eup %935  ;;  %949 = vrsqrt.f32 %v213_v31 }
 0x134   :  { %v938_v42 = vpop.eup %937  ;;  %v214_v43 = vadd.f32 1e-05, %v198_v38  ;;  %v215_v46 = vadd.f32 1e-05, %v199_v39  ;;  %v238_v24 = vmul.f32 %v936_v40, %v1155_v44  ;;  %v283_v53 = vadd.f32 %v1254_v36, %v260_v41 }
 0x135   :  { %v176_v48 = vpop.xlane.xlu1 %175  ;;  %v179_v49 = vpop.xlane.xlu0 %178  ;;  %v239_v50 = vmul.f32 %v938_v42, %v1149_v37 }
 0x136   :  { %951 = vrsqrt.f32 %v214_v43  ;;  %v200_v51 = vmul.f32 0.03125, %v176_v48  ;;  %v201_v52 = vmul.f32 0.03125, %v179_v49  ;;  %v261_v28 = vmul.f32 %v1247_v33, %v238_v24 }
 0x137   :  { %v940_v29 = vpop.eup %939  ;;  %953 = vrsqrt.f32 %v215_v46  ;;  %v262_v37 = vmul.f32 %v1247_v33, %v239_v50 }
 0x138   :  { %v942_v56 = vpop.eup %941  ;;  %v216_v44 = vadd.f32 1e-05, %v200_v51  ;;  %v217_v57 = vadd.f32 1e-05, %v201_v52  ;;  %v284_v58 = vadd.f32 %v1254_v36, %v261_v28  ;;  %v240_v59 = vmul.f32 %v940_v29, %v1157_v45 }
 0x139   :  { %v182_v60 = vpop.xlane.xlu1 %181  ;;  %v185_v61 = vpop.xlane.xlu0 %184  ;;  %v241_v62 = vmul.f32 %v942_v56, %v1165_v54  ;;  %v285_v54 = vadd.f32 %v1254_v36, %v262_v37 }
 0x13a   :  { %955 = vrsqrt.f32 %v216_v44  ;;  %v202_v63 = vmul.f32 0.03125, %v182_v60  ;;  %v203_v2 = vmul.f32 0.03125, %v185_v61  ;;  %v299_v3 = vpack.c.bf16 %v284_v58, %v283_v53 }
 0x13b   :  { %v944_v4 = vpop.eup %943  ;;  %957 = vrsqrt.f32 %v217_v57  ;;  %v263_v5 = vmul.f32 %v1247_v33, %v240_v59  ;;  %v264_v6 = vmul.f32 %v1247_v33, %v241_v62 }
 0x13c   :  { %v946_v7 = vpop.eup %945  ;;  %v218_v8 = vadd.f32 1e-05, %v202_v63  ;;  %v219_v9 = vadd.f32 1e-05, %v203_v2  ;;  %859 = vmatprep.mubr.msk.bf16.mxu0 %vm43_vm0, %v299_v3  ;;  %v242_v45 = vmul.f32 %v944_v4, %v1167_v55  ;;  %v928_v4 = vld [vmem:[%s1603_s5 + $0x20] sm:$0xff]  }
 0x13d   :  { %v188_v12 = vpop.xlane.xlu1 %187  ;;  %v286_v13 = vadd.f32 %v1254_v36, %v263_v5  ;;  %v243_v14 = vmul.f32 %v946_v7, %v1176_v0  ;;  %v287_v16 = vadd.f32 %v1254_v36, %v264_v6  ;;  %v929_v5 = vld [vmem:[%s1603_s5 + $0x18] sm:$0xff]   ;;  %v930_v6 = vld [vmem:[%s1603_s5 + $0x10] sm:$0xff]   ;;  %v931_v7 = vld [vmem:[%s1603_s5 + $0x8] sm:$0xff]  }
 0x13e   :  { %959 = vrsqrt.f32 %v218_v8  ;;  %v204_v15 = vmul.f32 0.03125, %v188_v12  ;;  %v265_v18 = vmul.f32 %v1247_v33, %v242_v45  ;;  %v932_v8 = vld [vmem:[%s1603_s5] sm:$0xff]  }
 0x13f   :  { %v948_v19 = vpop.eup %947  ;;  %961 = vrsqrt.f32 %v219_v9  ;;  %v300_v22 = vpack.c.bf16 %v286_v13, %v285_v54  ;;  %v266_v31 = vmul.f32 %v1247_v33, %v243_v14  ;;  %v1336_v9 = vld [vmem:[%s1604_s4] ss:$0 sm:$0xff] }
 0x140   :  { %v950_v26 = vpop.eup %949  ;;  %v220_v27 = vadd.f32 1e-05, %v204_v15  ;;  %v288_v55 = vadd.f32 %v1254_v36, %v265_v18  ;;  %v244_v30 = vmul.f32 %v948_v19, %v1179_v1 }
 0x141   :  { %860 = vmatmul.mubr.msk.bf16.vlgmr.msra.gmra.mxu0 %vm43_vm0, %v300_v22  ;;  %v245_v0 = vmul.f32 %v950_v26, %v1188_v10  ;;  %v289_v39 = vadd.f32 %v1254_v36, %v266_v31 }
 0x142   :  { %963 = vrsqrt.f32 %v220_v27  ;;  %v301_v32 = vpack.c.bf16 %v288_v55, %v287_v16  ;;  %v267_v34 = vmul.f32 %v1247_v33, %v244_v30 }
 0x143   :  { %v952_v20 = vpop.eup %951  ;;  %v268_v41 = vmul.f32 %v1247_v33, %v245_v0 }
 0x144   :  { %v954_v38 = vpop.eup %953  ;;  %863 = vmatprep.mubr.msk.bf16.mxu0 %vm43_vm0, %v301_v32  ;;  %v290_v40 = vadd.f32 %v1254_v36, %v267_v34  ;;  %v246_v1 = vmul.f32 %v952_v20, %v1191_v11 }
 0x145   :  { %v247_v42 = vmul.f32 %v954_v38, %v1200_v23  ;;  %v291_v48 = vadd.f32 %v1254_v36, %v268_v41 }
 0x146   :  { %v302_v43 = vpack.c.bf16 %v290_v40, %v289_v39  ;;  %v269_v10 = vmul.f32 %v1247_v33, %v246_v1 }
 0x147   :  { %v956_v46 = vpop.eup %955  ;;  %v270_v51 = vmul.f32 %v1247_v33, %v247_v42 }
 0x148   :  { %v958_v24 = vpop.eup %957  ;;  %v292_v49 = vadd.f32 %v1254_v36, %v269_v10  ;;  %v248_v50 = vmul.f32 %v956_v46, %v1203_v17 }
 0x149   :  { %864 = vmatmul.mubr.msk.bf16.gmra.mxu0 %vm43_vm0, %v302_v43  ;;  %v249_v11 = vmul.f32 %v958_v24, %v1212_v35  ;;  %v293_v53 = vadd.f32 %v1254_v36, %v270_v51 }
 0x14a   :  { %v303_v52 = vpack.c.bf16 %v292_v49, %v291_v48  ;;  %v271_v23 = vmul.f32 %v1247_v33, %v248_v50 }
 0x14b   :  { %v960_v28 = vpop.eup %959  ;;  %v272_v17 = vmul.f32 %v1247_v33, %v249_v11 }
 0x14c   :  { %v962_v29 = vpop.eup %961  ;;  %867 = vmatprep.mubr.msk.bf16.mxu0 %vm43_vm0, %v303_v52  ;;  %v294_v56 = vadd.f32 %v1254_v36, %v271_v23  ;;  %v250_v44 = vmul.f32 %v960_v28, %v1215_v21 }
 0x14d   :  { %v251_v57 = vmul.f32 %v962_v29, %v1224_v47  ;;  %v295_v60 = vadd.f32 %v1254_v36, %v272_v17 }
 0x14e   :  { %v304_v58 = vpack.c.bf16 %v294_v56, %v293_v53  ;;  %v273_v35 = vmul.f32 %v1247_v33, %v250_v44 }
 0x14f   :  { %v964_v59 = vpop.eup %963  ;;  %v274_v62 = vmul.f32 %v1247_v33, %v251_v57 }
 0x150   :  { %v296_v61 = vadd.f32 %v1254_v36, %v273_v35  ;;  %v252_v37 = vmul.f32 %v964_v59, %v1227_v25  ;;  %v925_v25 = vld [vmem:[%s1603_s5 + $0x38] sm:$0xff]  }
 0x151   :  { %868 = vmatmul.mubr.msk.bf16.gmra.mxu0 %vm43_vm0, %v304_v58  ;;  %v297_v47 = vadd.f32 %v1254_v36, %v274_v62  ;;  %875 = vmatprep.subr.bf16.mxu0 %v925_v25 }
 0x152   :  { %v305_v63 = vpack.c.bf16 %v296_v61, %v295_v60  ;;  %v275_v21 = vmul.f32 %v1247_v33, %v252_v37  ;;  %907 = vmatprep.subr.bf16.mxu1 %v925_v25  ;;  %876 = vmatpush3.bf16.msra.mxu0 %v925_v25  ;;  %v926_v33 = vld [vmem:[%s1603_s5 + $0x30] sm:$0xff]  }
 0x153   :  { %915 = vmatpush3.bf16.msra.mxu1 %v925_v25  ;;  %877 = vmatprep.subr.bf16.mxu0 %v926_v33 }
 0x154   :  { %871 = vmatprep.mubr.msk.bf16.mxu0 %vm43_vm0, %v305_v63  ;;  %v298_v2 = vadd.f32 %v1254_v36, %v275_v21  ;;  %908 = vmatprep.subr.bf16.mxu1 %v926_v33  ;;  %v927_v36 = vld [vmem:[%s1603_s5 + $0x28] sm:$0xff]  }
 0x156   :  { %v306_v3 = vpack.c.bf16 %v298_v2, %v297_v47  ;;  %878 = vmatpush3.bf16.msra.mxu0 %v926_v33 }
 0x157   :  { %916 = vmatpush3.bf16.msra.mxu1 %v926_v33  ;;  %879 = vmatprep.subr.bf16.mxu0 %v927_v36 }
 0x158   :  { %909 = vmatprep.subr.bf16.mxu1 %v927_v36 }
 0x159   :  { %872 = vmatmul.mubr.msk.bf16.gmra.mxu0 %vm43_vm0, %v306_v3 }
 0x15a   :  { %880 = vmatpush3.bf16.msra.mxu0 %v927_v36 }
 0x15b   :  { %917 = vmatpush3.bf16.msra.mxu1 %v927_v36  ;;  %881 = vmatprep.subr.bf16.mxu0 %v928_v4 }
 0x15c   :  { %910 = vmatprep.subr.bf16.mxu1 %v928_v4 }
 0x15e   :  { %882 = vmatpush3.bf16.msra.mxu0 %v928_v4 }
 0x15f   :  { %918 = vmatpush3.bf16.msra.mxu1 %v928_v4  ;;  %883 = vmatprep.subr.bf16.mxu0 %v929_v5 }
 0x160   :  { %911 = vmatprep.subr.bf16.mxu1 %v929_v5 }
 0x162   :  { %884 = vmatpush3.bf16.msra.mxu0 %v929_v5 }
 0x163   :  { %919 = vmatpush3.bf16.msra.mxu1 %v929_v5  ;;  %885 = vmatprep.subr.bf16.mxu0 %v930_v6 }
 0x164   :  { %912 = vmatprep.subr.bf16.mxu1 %v930_v6 }
 0x166   :  { %886 = vmatpush3.bf16.msra.mxu0 %v930_v6 }
 0x167   :  { %920 = vmatpush3.bf16.msra.mxu1 %v930_v6  ;;  %887 = vmatprep.subr.bf16.mxu0 %v931_v7 }
 0x168   :  { %913 = vmatprep.subr.bf16.mxu1 %v931_v7 }
 0x16a   :  { %888 = vmatpush3.bf16.msra.mxu0 %v931_v7 }
 0x16b   :  { %921 = vmatpush3.bf16.msra.mxu1 %v931_v7  ;;  %889 = vmatprep.subr.bf16.mxu0 %v932_v8 }
 0x16c   :  { %914 = vmatprep.subr.bf16.mxu1 %v932_v8 }
 0x16e   :  { %890 = vmatpush3.bf16.msra.mxu0 %v932_v8 }
 0x16f   :  { %922 = vmatpush3.bf16.msra.mxu1 %v932_v8 }
 0x201   :  { %v861_v45 = vpop.f32.mrf.mxu0 }
 0x202   :  { %v1339_v12 = vadd.f32 %v861_v45, %v1336_v9 }
 0x203   :  { %v388_v54 = vpop.f32.mrf.mxu0 }
 0x204   :  { %v453_v13 = vmul.f32 %v1339_v12, %v1339_v12  ;;  %v1344_v14 = vadd.f32 %v1336_v9, %v388_v54 }
 0x205   :  { %v862_v15 = vpop.f32.mrf.mxu0 }
 0x206   :  { %v469_v18 = vmul.f32 %v453_v13, %v1339_v12  ;;  %v451_v19 = vmul.f32 %v1344_v14, %v1344_v14  ;;  %v1350_v22 = vadd.f32 %v862_v15, %v1336_v9 }
 0x207   :  { %v391_v16 = vpop.f32.mrf.mxu0 }
 0x208   :  { %v485_v26 = vmul.f32 0.044715, %v469_v18  ;;  %v467_v27 = vmul.f32 %v451_v19, %v1344_v14  ;;  %v454_v55 = vmul.f32 %v1350_v22, %v1350_v22  ;;  %v1356_v30 = vadd.f32 %v1336_v9, %v391_v16 }
 0x209   :  { %v865_v31 = vpop.f32.mrf.mxu0 }
 0x20a   :  { %v501_v0 = vadd.f32 %v485_v26, %v1339_v12  ;;  %v483_v32 = vmul.f32 0.044715, %v467_v27  ;;  %v470_v34 = vmul.f32 %v454_v55, %v1350_v22  ;;  %v452_v20 = vmul.f32 %v1356_v30, %v1356_v30 }
 0x20b   :  { %v1363_v38 = vadd.f32 %v865_v31, %v1336_v9  ;;  %v404_v39 = vpop.f32.mrf.mxu0 }
 0x20c   :  { %v517_v40 = vmul.f32 0.7978846, %v501_v0  ;;  %v499_v1 = vadd.f32 %v483_v32, %v1344_v14  ;;  %v486_v41 = vmul.f32 0.044715, %v470_v34  ;;  %v468_v42 = vmul.f32 %v452_v20, %v1356_v30 }
 0x20d   :  { %v457_v43 = vmul.f32 %v1363_v38, %v1363_v38  ;;  %v1370_v10 = vadd.f32 %v1336_v9, %v404_v39  ;;  %v866_v46 = vpop.f32.mrf.mxu0 }
 0x20e   :  { %965 = vtanh.f32 %v517_v40  ;;  %v515_v24 = vmul.f32 0.7978846, %v499_v1  ;;  %v502_v48 = vadd.f32 %v486_v41, %v1350_v22  ;;  %v484_v49 = vmul.f32 0.044715, %v468_v42 }
 0x20f   :  { %v473_v50 = vmul.f32 %v457_v43, %v1363_v38  ;;  %v455_v51 = vmul.f32 %v1370_v10, %v1370_v10  ;;  %v1377_v11 = vadd.f32 %v866_v46, %v1336_v9  ;;  %v407_v52 = vpop.f32.mrf.mxu0 }
 0x210   :  { %v518_v23 = vmul.f32 0.7978846, %v502_v48  ;;  %v500_v28 = vadd.f32 %v484_v49, %v1356_v30  ;;  %v1381_v29 = vadd.f32 %v1336_v9, %v407_v52  ;;  %967 = vtanh.f32 %v515_v24 }
 0x211   :  { %v489_v53 = vmul.f32 0.044715, %v473_v50  ;;  %v471_v56 = vmul.f32 %v455_v51, %v1370_v10  ;;  %v458_v44 = vmul.f32 %v1377_v11, %v1377_v11  ;;  %v869_v17 = vpop.f32.mrf.mxu0 }
 0x212   :  { %969 = vtanh.f32 %v518_v23  ;;  %v516_v57 = vmul.f32 0.7978846, %v500_v28  ;;  %v456_v58 = vmul.f32 %v1381_v29, %v1381_v29  ;;  %v1389_v35 = vadd.f32 %v869_v17, %v1336_v9 }
 0x213   :  { %v505_v59 = vadd.f32 %v489_v53, %v1363_v38  ;;  %v487_v60 = vmul.f32 0.044715, %v471_v56  ;;  %v474_v61 = vmul.f32 %v458_v44, %v1377_v11  ;;  %v420_v37 = vpop.f32.mrf.mxu0 }
 0x214   :  { %971 = vtanh.f32 %v516_v57  ;;  %v472_v62 = vmul.f32 %v456_v58, %v1381_v29  ;;  %v461_v63 = vmul.f32 %v1389_v35, %v1389_v35  ;;  %v1397_v21 = vadd.f32 %v1336_v9, %v420_v37 }
 0x215   :  { %v521_v47 = vmul.f32 0.7978846, %v505_v59  ;;  %v503_v2 = vadd.f32 %v487_v60, %v1370_v10  ;;  %v490_v3 = vmul.f32 0.044715, %v474_v61  ;;  %v870_v25 = vpop.f32.mrf.mxu0 }
 0x216   :  { %v488_v33 = vmul.f32 0.044715, %v472_v62  ;;  %v477_v36 = vmul.f32 %v461_v63, %v1389_v35  ;;  %v459_v4 = vmul.f32 %v1397_v21, %v1397_v21  ;;  %v1404_v5 = vadd.f32 %v870_v25, %v1336_v9 }
 0x217   :  { %973 = vtanh.f32 %v521_v47  ;;  %v506_v6 = vadd.f32 %v490_v3, %v1377_v11  ;;  %v423_v7 = vpop.f32.mrf.mxu0  ;;  %v519_v8 = vmul.f32 0.7978846, %v503_v2 }
 0x218   :  { %v504_v45 = vadd.f32 %v488_v33, %v1381_v29  ;;  %v493_v54 = vmul.f32 0.044715, %v477_v36  ;;  %v475_v13 = vmul.f32 %v459_v4, %v1397_v21  ;;  %v462_v15 = vmul.f32 %v1404_v5, %v1404_v5 }
 0x219   :  { %v522_v18 = vmul.f32 0.7978846, %v506_v6  ;;  %v1412_v19 = vadd.f32 %v1336_v9, %v423_v7  ;;  %v873_v16 = vpop.f32.mrf.mxu0  ;;  %975 = vtanh.f32 %v519_v8 }
 0x21a   :  { %v509_v26 = vadd.f32 %v493_v54, %v1389_v35  ;;  %v491_v27 = vmul.f32 0.044715, %v475_v13  ;;  %v478_v55 = vmul.f32 %v462_v15, %v1404_v5  ;;  %v1417_v31 = vadd.f32 %v873_v16, %v1336_v9 }
 0x21b   :  { %v966_v0 = vpop.eup %965  ;;  %977 = vtanh.f32 %v522_v18  ;;  %v460_v32 = vmul.f32 %v1412_v19, %v1412_v19  ;;  %v436_v34 = vpop.f32.mrf.mxu0  ;;  %v520_v20 = vmul.f32 0.7978846, %v504_v45 }
 0x21c   :  { %v549_v39 = vadd.f32 1.0, %v966_v0  ;;  %v525_v40 = vmul.f32 0.7978846, %v509_v26  ;;  %v507_v1 = vadd.f32 %v491_v27, %v1397_v21  ;;  %v494_v41 = vmul.f32 0.044715, %v478_v55 }
 0x21d   :  { %v476_v42 = vmul.f32 %v460_v32, %v1412_v19  ;;  %v465_v43 = vmul.f32 %v1417_v31, %v1417_v31  ;;  %v1426_v46 = vadd.f32 %v1336_v9, %v436_v34  ;;  %v874_v24 = vpop.f32.mrf.mxu0  ;;  %979 = vtanh.f32 %v520_v20  ;;  %v968_v48 = vpop.eup %967 }
 0x21e   :  { %981 = vtanh.f32 %v525_v40  ;;  %v523_v49 = vmul.f32 0.7978846, %v507_v1  ;;  %v510_v50 = vadd.f32 %v494_v41, %v1404_v5  ;;  %v1433_v53 = vadd.f32 %v874_v24, %v1336_v9 }
 0x21f   :  { %v970_v51 = vpop.eup %969  ;;  %v492_v52 = vmul.f32 0.044715, %v476_v42  ;;  %v481_v23 = vmul.f32 %v465_v43, %v1417_v31  ;;  %v463_v28 = vmul.f32 %v1426_v46, %v1426_v46  ;;  %v439_v56 = vpop.f32.mrf.mxu0  ;;  %v565_v44 = vmul.f32 0.5, %v549_v39 }
 0x220   :  { %v550_v17 = vadd.f32 1.0, %v970_v51  ;;  %983 = vtanh.f32 %v523_v49  ;;  %v526_v57 = vmul.f32 0.7978846, %v510_v50  ;;  %v466_v37 = vmul.f32 %v1433_v53, %v1433_v53 }
 0x221   :  { %v972_v58 = vpop.eup %971  ;;  %v508_v59 = vadd.f32 %v492_v52, %v1412_v19  ;;  %v497_v60 = vmul.f32 0.044715, %v481_v23  ;;  %v479_v61 = vmul.f32 %v463_v28, %v1426_v46  ;;  %v1440_v63 = vadd.f32 %v1336_v9, %v439_v56 }
 0x222   :  { %v566_v62 = vmul.f32 0.5, %v550_v17  ;;  %985 = vtanh.f32 %v526_v57  ;;  %v547_v47 = vadd.f32 1.0, %v968_v48  ;;  %v482_v33 = vmul.f32 %v466_v37, %v1433_v53 }
 0x223   :  { %v524_v2 = vmul.f32 0.7978846, %v508_v59  ;;  %v513_v3 = vadd.f32 %v497_v60, %v1417_v31  ;;  %v495_v25 = vmul.f32 0.044715, %v479_v61  ;;  %v464_v4 = vmul.f32 %v1440_v63, %v1440_v63 }
 0x224   :  { %v974_v36 = vpop.eup %973  ;;  %v548_v6 = vadd.f32 1.0, %v972_v58  ;;  %v563_v7 = vmul.f32 0.5, %v547_v47  ;;  %v498_v54 = vmul.f32 0.044715, %v482_v33  ;;  %v581_v13 = vmul.f32 %v565_v44, %v1339_v12 }
 0x225   :  { %987 = vtanh.f32 %v524_v2  ;;  %v529_v8 = vmul.f32 0.7978846, %v513_v3  ;;  %v511_v45 = vadd.f32 %v495_v25, %v1426_v46  ;;  %v582_v15 = vmul.f32 %v566_v62, %v1350_v22 }
 0x226   :  { %v976_v9 = vpop.eup %975  ;;  %v480_v18 = vmul.f32 %v464_v4, %v1440_v63  ;;  %v564_v16 = vmul.f32 0.5, %v548_v6  ;;  %v514_v27 = vadd.f32 %v498_v54, %v1433_v53  ;;  %v579_v55 = vmul.f32 %v563_v7, %v1344_v14 }
 0x227   :  { %v527_v26 = vmul.f32 0.7978846, %v511_v45  ;;  %v551_v0 = vadd.f32 1.0, %v976_v9  ;;  %989 = vtanh.f32 %v529_v8  ;;  %v553_v39 = vadd.f32 1.0, %v974_v36 }
 0x228   :  { %v978_v32 = vpop.eup %977  ;;  %v496_v34 = vmul.f32 0.044715, %v480_v18  ;;  %v580_v20 = vmul.f32 %v564_v16, %v1356_v30  ;;  %v530_v40 = vmul.f32 0.7978846, %v514_v27  ;;  %v596_v22 = vpack.c.bf16 %v582_v15, %v581_v13 }
 0x229   :  { %991 = vtanh.f32 %v527_v26  ;;  %v554_v12 = vadd.f32 1.0, %v978_v32  ;;  %v567_v48 = vmul.f32 0.5, %v551_v0  ;;  %v569_v50 = vmul.f32 0.5, %v553_v39 }
 0x22a   :  { %v980_v1 = vpop.eup %979  ;;  %v512_v41 = vadd.f32 %v496_v34, %v1440_v63  ;;  %v595_v42 = vpack.c.bf16 %v580_v20, %v579_v55  ;;  %993 = vtanh.f32 %v530_v40  ;;  %v1469_v55 = vld [vmem:[%s1605_s6] ss:$0 sm:$0xff] }
 0x22b   :  { %v982_v43 = vpop.eup %981  ;;  %v552_v24 = vadd.f32 1.0, %v980_v1  ;;  %v570_v14 = vmul.f32 0.5, %v554_v12  ;;  %v583_v28 = vmul.f32 %v567_v48, %v1370_v10  ;;  %v585_v17 = vmul.f32 %v569_v50, %v1363_v38  ;;  %v998_v20 = vld [vmem:[%s1599_s0] sm:$0xff]  ;;  %v999_v1 = vld [vmem:[%s1599_s0 + $0x18] sm:$0xff] }
 0x22c   :  { %v528_v49 = vmul.f32 0.7978846, %v512_v41  ;;  %891 = vmatprep.mubr.bf16.mxu0 %v595_v42  ;;  %v557_v57 = vadd.f32 1.0, %v982_v43 }
 0x22d   :  { %v984_v51 = vpop.eup %983  ;;  %892 = vmatmul.mubr.bf16.vlgmr.msra.gmra.mxu0 %v596_v22  ;;  %v568_v30 = vmul.f32 0.5, %v552_v24  ;;  %v586_v52 = vmul.f32 %v570_v14, %v1377_v11  ;;  %v1000_v24 = vld [vmem:[%s1599_s0 + $0x8] sm:$0xff] }
 0x22e   :  { %995 = vtanh.f32 %v528_v49  ;;  %v555_v44 = vadd.f32 1.0, %v984_v51  ;;  %v573_v2 = vmul.f32 0.5, %v557_v57  ;;  %v1001_v49 = vld [vmem:[%s1599_s0 + $0x30] sm:$0xff] }
 0x22f   :  { %v986_v23 = vpop.eup %985  ;;  %v584_v56 = vmul.f32 %v568_v30, %v1381_v29  ;;  %v598_v61 = vpack.c.bf16 %v586_v52, %v585_v17  ;;  %v1002_v52 = vld [vmem:[%s1599_s0 + $0x20] sm:$0xff] }
 0x230   :  { %v558_v58 = vadd.f32 1.0, %v986_v23  ;;  %v571_v47 = vmul.f32 0.5, %v555_v44  ;;  %v589_v36 = vmul.f32 %v573_v2, %v1389_v35  ;;  %v1003_v44 = vld [vmem:[%s1599_s0 + $0x38] sm:$0xff] }
 0x231   :  { %v597_v59 = vpack.c.bf16 %v584_v56, %v583_v28 }
 0x232   :  { %v988_v60 = vpop.eup %987  ;;  %v574_v37 = vmul.f32 0.5, %v558_v58  ;;  %v587_v29 = vmul.f32 %v571_v47, %v1397_v21 }
 0x233   :  { %895 = vmatprep.mubr.bf16.mxu1 %v597_v59  ;;  %v556_v62 = vadd.f32 1.0, %v988_v60  ;;  %v1004_v59 = vld [vmem:[%s1599_s0 + $0x28] sm:$0xff] }
 0x234   :  { %896 = vmatmul.mubr.bf16.vlgmr.msra.gmra.mxu1 %v598_v61  ;;  %v990_v11 = vpop.eup %989  ;;  %v590_v10 = vmul.f32 %v574_v37, %v1404_v5 }
 0x235   :  { %v572_v3 = vmul.f32 0.5, %v556_v62  ;;  %v561_v7 = vadd.f32 1.0, %v990_v11  ;;  %v1005_v62 = vld [vmem:[%s1599_s0 + $0x50] sm:$0xff] }
 0x236   :  { %v992_v25 = vpop.eup %991  ;;  %v600_v45 = vpack.c.bf16 %v590_v10, %v589_v36 }
 0x237   :  { %v588_v38 = vmul.f32 %v572_v3, %v1412_v19  ;;  %v994_v33 = vpop.eup %993  ;;  %v559_v4 = vadd.f32 1.0, %v992_v25  ;;  %v577_v18 = vmul.f32 0.5, %v561_v7  ;;  %v1006_v3 = vld [vmem:[%s1599_s0 + $0x40] sm:$0xff] }
 0x238   :  { %v562_v8 = vadd.f32 1.0, %v994_v33 }
 0x239   :  { %v599_v6 = vpack.c.bf16 %v588_v38, %v587_v29  ;;  %v575_v15 = vmul.f32 0.5, %v559_v4  ;;  %v593_v35 = vmul.f32 %v577_v18, %v1417_v31  ;;  %v1007_v38 = vld [vmem:[%s1599_s0 + $0x58] sm:$0xff]  ;;  %v1008_v4 = vld [vmem:[%s1599_s0 + $0x48] sm:$0xff]  ;;  %v1010_v18 = vld [vmem:[%s1599_s0 + $0x60] sm:$0xff] }
 0x23a   :  { %v578_v9 = vmul.f32 0.5, %v562_v8 }
 0x23b   :  { %v996_v54 = vpop.eup %995  ;;  %899 = vmatprep.mubr.bf16.mxu1 %v599_v6  ;;  %v591_v19 = vmul.f32 %v575_v15, %v1426_v46  ;;  %v997_v46 = vld [vmem:[%s1599_s0 + $0x10] sm:$0xff] }
 0x23c   :  { %900 = vmatmul.mubr.bf16.gmra.mxu1 %v600_v45  ;;  %v560_v13 = vadd.f32 1.0, %v996_v54  ;;  %v594_v21 = vmul.f32 %v578_v9, %v1433_v53  ;;  %v1009_v54 = vld [vmem:[%s1599_s0 + $0x70] sm:$0xff] }
 0x23e   :  { %v576_v5 = vmul.f32 0.5, %v560_v13  ;;  %v602_v27 = vpack.c.bf16 %v594_v21, %v593_v35 }
 0x240   :  { %v592_v16 = vmul.f32 %v576_v5, %v1440_v63 }
 0x242   :  { %v601_v26 = vpack.c.bf16 %v592_v16, %v591_v19  ;;  %v1011_v16 = vld [vmem:[%s1599_s0 + $0x78] sm:$0xff] }
 0x244   :  { %903 = vmatprep.mubr.bf16.mxu1 %v601_v26 }
 0x245   :  { %904 = vmatmul.mubr.bf16.gmra.mxu1 %v602_v27  ;;  %v1012_v27 = vld [vmem:[%s1599_s0 + $0x68] sm:$0xff] }
 0x2ed   :  { %v893_v0 = vpop.f32.mrf.mxu0 }
 0x2ee   :  { %v717_v32 = vadd.f32 %v893_v0, %v1469_v55 }
 0x2ef   :  { %v708_v34 = vpop.f32.mrf.mxu0 }
 0x2f0   :  { %v773_v53 = vadd.f32 %v997_v46, %v717_v32  ;;  %v709_v31 = vadd.f32 %v1469_v55, %v708_v34 }
 0x2f1   :  { %v894_v63 = vpop.f32.mrf.mxu0 }
 0x2f2   :  { %789 = vst.msk [vmem:[%s1606_s7 + $0x10] sm:$0xff] %vm43_vm0, %v773_v53  ;;  %v771_v39 = vadd.f32 %v998_v20, %v709_v31  ;;  %v720_v40 = vadd.f32 %v894_v63, %v1469_v55 }
 0x2f3   :  { %v711_v12 = vpop.f32.mrf.mxu0 }
 0x2f4   :  { %787 = vst.msk [vmem:[%s1606_s7] sm:$0xff] %vm43_vm0, %v771_v39  ;;  %v774_v22 = vadd.f32 %v999_v1, %v720_v40  ;;  %v712_v41 = vadd.f32 %v1469_v55, %v711_v12  ;;  %v897_v42 = vpop.f32.mrf.mxu1 }
 0x2f5   :  { %v733_v43 = vadd.f32 %v897_v42, %v1469_v55 }
 0x2f6   :  { %790 = vst.msk [vmem:[%s1606_s7 + $0x18] sm:$0xff] %vm43_vm0, %v774_v22  ;;  %v772_v48 = vadd.f32 %v1000_v24, %v712_v41  ;;  %v724_v14 = vpop.f32.mrf.mxu1 }
 0x2f7   :  { %v777_v50 = vadd.f32 %v1001_v49, %v733_v43  ;;  %v725_v51 = vadd.f32 %v1469_v55, %v724_v14 }
 0x2f8   :  { %788 = vst.msk [vmem:[%s1606_s7 + $0x8] sm:$0xff] %vm43_vm0, %v772_v48  ;;  %v898_v30 = vpop.f32.mrf.mxu1 }
 0x2f9   :  { %793 = vst.msk [vmem:[%s1606_s7 + $0x30] sm:$0xff] %vm43_vm0, %v777_v50  ;;  %v775_v23 = vadd.f32 %v1002_v52, %v725_v51  ;;  %v736_v28 = vadd.f32 %v898_v30, %v1469_v55 }
 0x2fa   :  { %v727_v56 = vpop.f32.mrf.mxu1 }
 0x2fb   :  { %791 = vst.msk [vmem:[%s1606_s7 + $0x20] sm:$0xff] %vm43_vm0, %v775_v23  ;;  %v778_v17 = vadd.f32 %v1003_v44, %v736_v28  ;;  %v728_v57 = vadd.f32 %v1469_v55, %v727_v56 }
 0x2fc   :  { %v901_v58 = vpop.f32.mrf.mxu1 }
 0x2fd   :  { %794 = vst.msk [vmem:[%s1606_s7 + $0x38] sm:$0xff] %vm43_vm0, %v778_v17  ;;  %v776_v60 = vadd.f32 %v1004_v59, %v728_v57  ;;  %v749_v61 = vadd.f32 %v901_v58, %v1469_v55 }
 0x2fe   :  { %v740_v37 = vpop.f32.mrf.mxu1 }
 0x2ff   :  { %792 = vst.msk [vmem:[%s1606_s7 + $0x28] sm:$0xff] %vm43_vm0, %v776_v60  ;;  %v781_v47 = vadd.f32 %v1005_v62, %v749_v61  ;;  %v741_v2 = vadd.f32 %v1469_v55, %v740_v37 }
 0x300   :  { %v902_v11 = vpop.f32.mrf.mxu1 }
 0x301   :  { %797 = vst.msk [vmem:[%s1606_s7 + $0x50] sm:$0xff] %vm43_vm0, %v781_v47  ;;  %v779_v25 = vadd.f32 %v1006_v3, %v741_v2  ;;  %v752_v10 = vadd.f32 %v902_v11, %v1469_v55 }
 0x302   :  { %v743_v29 = vpop.f32.mrf.mxu1 }
 0x303   :  { %795 = vst.msk [vmem:[%s1606_s7 + $0x40] sm:$0xff] %vm43_vm0, %v779_v25  ;;  %v782_v33 = vadd.f32 %v1007_v38, %v752_v10  ;;  %v744_v36 = vadd.f32 %v1469_v55, %v743_v29 }
 0x305   :  { %798 = vst.msk [vmem:[%s1606_s7 + $0x58] sm:$0xff] %vm43_vm0, %v782_v33  ;;  %v780_v6 = vadd.f32 %v1008_v4, %v744_v36  ;;  %v905_v7 = vpop.f32.mrf.mxu1 }
 0x306   :  { %v765_v8 = vadd.f32 %v905_v7, %v1469_v55 }
 0x307   :  { %796 = vst.msk [vmem:[%s1606_s7 + $0x48] sm:$0xff] %vm43_vm0, %v780_v6  ;;  %v756_v45 = vpop.f32.mrf.mxu1 }
 0x308   :  { %v785_v9 = vadd.f32 %v1009_v54, %v765_v8  ;;  %v757_v13 = vadd.f32 %v1469_v55, %v756_v45 }
 0x309   :  { %v906_v15 = vpop.f32.mrf.mxu1 }
 0x30a   :  { %801 = vst.msk [vmem:[%s1606_s7 + $0x70] sm:$0xff] %vm43_vm0, %v785_v9  ;;  %v783_v5 = vadd.f32 %v1010_v18, %v757_v13  ;;  %v768_v21 = vadd.f32 %v906_v15, %v1469_v55 }
 0x30b   :  { %v759_v19 = vpop.f32.mrf.mxu1 }
 0x30c   :  { %799 = vst.msk [vmem:[%s1606_s7 + $0x60] sm:$0xff] %vm43_vm0, %v783_v5  ;;  %v786_v35 = vadd.f32 %v1011_v16, %v768_v21  ;;  %v760_v26 = vadd.f32 %v1469_v55, %v759_v19 }
 0x30e   :  { %802 = vst.msk [vmem:[%s1606_s7 + $0x78] sm:$0xff] %vm43_vm0, %v786_v35  ;;  %v784_v0 = vadd.f32 %v1012_v27, %v760_v26 }
 0x310   :  { %800 = vst.msk [vmem:[%s1606_s7 + $0x68] sm:$0xff] %vm43_vm0, %v784_v0 }

// kernel: model_forward.24
= control target key start
LH: loop header
LB: loop body
LE: loop exit
PB: predicated region body
PF: predicated region fallthrough
CT: control target
= control target key end

     0   :  { %s1853_s18 = smov 0   ;;  %s2161_s0 = inlined_call_operand.vmem [shape: bf16[8,16,96], index: 0, kind: input, shape index: {}]   ;;  %s2162_s1 = inlined_call_operand.vmem [shape: f32[2,16,16], index: 1, kind: input, shape index: {}]   ;;  %s2163_s2 = inlined_call_operand.vmem [shape: f32[4,16,16], index: 2, kind: input, shape index: {}]   ;;  %s2164_s3 = inlined_call_operand.vmem [shape: bf16[32,32], index: 3, kind: input, shape index: {}]   ;;  %s2165_s4 = inlined_call_operand.vmem [shape: f32[1,32], index: 4, kind: input, shape index: {}]   ;;  %s2166_s5 = inlined_call_operand.vmem [shape: f32[8,16,32], index: 5, kind: output, shape index: {}]  }
   0x1 LB: > { %s1519_s19 = sadd.s32 4294967295, %s1814_s18   ;;  %p1523_p0 = scmp.ge.s32.totalorder %s1814_s18, 1  ;;  %s1814_s18 = sphi %s1853_s18, %s15_s18  }
   0x2   : > { %p189_p1 = scmp.lt.s32.totalorder %s1814_s18, 3 }
   0x4   : > { %p190_p2 = pnand %p1523_p0, %p189_p1 }
   0x5   : > { %s1524_s20 = sshll.u32 (!%p190_p2), %s1519_s19, 2  ;;  %s1818_s25 = smov (!%p190_p2), 96  }
   0x6   : > { %193 = sbr.rel (%p190_p2) target bundleno = 1601 (0x641), region = 40  ;;  %p220_p3 = scmp.lt.s32.totalorder (!%p190_p2), %s1524_s20, 7 }
   0x7   : > { %s1819_s23 = smov (!%p190_p2), 64   ;;  %s1822_s30 = smov (!%p190_p2), 48  }
   0xb   : > { %v1816_v0 = vmov 0.0   ;;  %vm1817_vm0 = vmmov 0   ;;  %s2168_s20 = smov (!%p220_p3, %s1524_s20), 7  ;;  %vm253_vm1 = vcmask 130048   ;;  %v242_v13 = vld [vmem:[%s2162_s1] sm:$0xff]  ;;  %v243_v18 = vld [vmem:[%s2162_s1 + $0x8] sm:$0xff] }
   0xc   : > { %1607 = vmatprep.subr.bf16.mxu0 %v1816_v0  ;;  %1613 = vmatprep.subr.bf16.mxu1 %v1816_v0  ;;  %s1563_s21 = sshll.u32 %s2168_s20, 3  ;;  %v1915_v15 = vld [vmem:[%s2163_s2] sm:$0xff]  ;;  %v1924_v22 = vld [vmem:[%s2163_s2 + $0x8] sm:$0xff]  ;;  %v1929_v23 = vld [vmem:[%s2163_s2 + $0x10] sm:$0xff]  ;;  %s1564_s10 = sshll.u32 %s2168_s20, 4  ;;  %vm1452_vm2 = vcmask 261120  }
   0xd   : > { %1609 = vmatprep.mubr.msk.bf16.mxu0 %vm1817_vm0, %v1816_v0  ;;  %1615 = vmatprep.mubr.msk.bf16.mxu1 %vm1817_vm0, %v1816_v0  ;;  %s224_s24 = scalar_lea.vmem %s2161_s0, %s1563_s21  ;;  %v1937_v33 = vld [vmem:[%s2163_s2 + $0x20] sm:$0xff]  ;;  %v1942_v34 = vld [vmem:[%s2163_s2 + $0x18] sm:$0xff]  ;;  %v1951_v45 = vld [vmem:[%s2163_s2 + $0x28] sm:$0xff]  ;;  %s2140_s15 = scalar_lea.vmem %s2166_s5, %s1564_s10 }
   0xe   : > { %v1873_v1 = vld [vmem:[%s224_s24] sm:$0xff]   ;;  %v1875_v2 = vld [vmem:[%s224_s24 + $0x8] sm:$0xff]   ;;  %v1878_v3 = vld [vmem:[%s224_s24 + $0x10] sm:$0xff]  }
   0xf   : > { %251 = vrot.lane.b32.xlu0 %v1873_v1, %s1818_s25  ;;  %360 = vrot.lane.b32.xlu1 %v1878_v3, %s1818_s25  ;;  %v1881_v4 = vld [vmem:[%s224_s24 + $0x18] sm:$0xff]   ;;  %v1956_v46 = vld [vmem:[%s2163_s2 + $0x30] sm:$0xff]  ;;  %s1820_s24 = smov 80  }
  0x10   : > { %v1965_v56 = vld [vmem:[%s2163_s2 + $0x38] sm:$0xff] }
  0x13   : > { %306 = vrot.lane.b32.xlu0 %v1875_v2, %s1818_s25  ;;  %414 = vrot.lane.b32.xlu1 %v1881_v4, %s1818_s25  ;;  %s1821_s25 = smov 112  }
  0x81   : > { %v252_v5 = vpop.permute.xlu0 %251  ;;  %v361_v7 = vpop.permute.xlu1 %360 }
  0x82   : > { %v258_v6 = vsel %vm253_vm1, %v252_v5, 0  ;;  %v366_v10 = vsel %vm253_vm1, %v361_v7, 0 }
  0x83   : > { %1608 = vmatpush3.bf16.xpose.msra.mxu0 %v258_v6 }
  0x84   : > { %1619 = vmatprep.subr.bf16.mxu0 %v1816_v0 }
  0x85   : > { %v307_v8 = vpop.permute.xlu0 %306  ;;  %v415_v11 = vpop.permute.xlu1 %414 }
  0x86   : > { %v312_v9 = vsel %vm253_vm1, %v307_v8, 0  ;;  %v420_v12 = vsel %vm253_vm1, %v415_v11, 0 }
  0x87   : > { %1614 = vmatpush3.bf16.xpose.msra.mxu1 %v312_v9 }
  0x88   : > { %1625 = vmatprep.subr.bf16.mxu1 %v1816_v0 }
  0x8a   : > { %1610 = vmatmul.mubr.msk.bf16.vlgmr.msra.gmra.mxu0 %vm253_vm1, %v1873_v1 }
  0x8b   : > { %1620 = vmatpush3.bf16.xpose.msra.mxu0 %v366_v10  ;;  %1621 = vmatprep.mubr.msk.bf16.mxu0 %vm1817_vm0, %v1816_v0 }
  0x8c   : > { %1631 = vmatprep.subr.bf16.mxu0 %v1816_v0 }
  0x8e   : > { %1616 = vmatmul.mubr.msk.bf16.vlgmr.msra.gmra.mxu1 %vm253_vm1, %v1875_v2 }
  0x8f   : > { %1626 = vmatpush3.bf16.xpose.msra.mxu1 %v420_v12  ;;  %1627 = vmatprep.mubr.msk.bf16.mxu1 %vm1817_vm0, %v1816_v0 }
  0x90   : > { %1637 = vmatprep.subr.bf16.mxu1 %v1816_v0 }
  0x92   : > { %1622 = vmatmul.mubr.msk.bf16.vlgmr.msra.gmra.mxu0 %vm253_vm1, %v1878_v3 }
  0x93   : > { %1633 = vmatprep.mubr.msk.bf16.mxu0 %vm1817_vm0, %v1816_v0 }
  0x96   : > { %1628 = vmatmul.mubr.msk.bf16.vlgmr.msra.gmra.mxu1 %vm253_vm1, %v1881_v4 }
  0x97   : > { %1639 = vmatprep.mubr.msk.bf16.mxu1 %vm1817_vm0, %v1816_v0 }
 0x14a   : > { %v294_v14 = vpop.f32.mrf.mxu0 }
 0x14b   : > { %v295_v16 = vadd.f32 %v294_v14, %v242_v13 }
 0x14c   : > { %v1611_v17 = vpop.f32.mrf.mxu0 }
 0x14d   : > { %v471_v19 = vadd.f32 %v1915_v15, %v295_v16 }
 0x14e   : > { %v297_v20 = vpop.f32.mrf.mxu0  ;;  %v348_v21 = vpop.f32.mrf.mxu1 }
 0x14f   : > { %v298_v24 = vadd.f32 %v297_v20, %v243_v18  ;;  %v349_v25 = vadd.f32 %v348_v21, %v242_v13  ;;  %v479_v26 = vsel %vm253_vm1, %v471_v19, -inf }
 0x150   : > { %480 = vmax.xlane.f32.xlu0 %v479_v26  ;;  %v1612_v27 = vpop.f32.mrf.mxu0  ;;  %v1617_v28 = vpop.f32.mrf.mxu1 }
 0x151   : > { %v472_v29 = vadd.f32 %v1924_v22, %v298_v24  ;;  %v473_v30 = vadd.f32 %v1929_v23, %v349_v25 }
 0x152   : > { %v351_v31 = vpop.f32.mrf.mxu1  ;;  %v402_v32 = vpop.f32.mrf.mxu0 }
 0x153   : > { %v352_v35 = vadd.f32 %v351_v31, %v243_v18  ;;  %v403_v36 = vadd.f32 %v402_v32, %v242_v13  ;;  %v482_v37 = vsel %vm253_vm1, %v472_v29, -inf  ;;  %v485_v38 = vsel %vm253_vm1, %v473_v30, -inf }
 0x154   : > { %483 = vmax.xlane.f32.xlu1 %v482_v37  ;;  %v1623_v39 = vpop.f32.mrf.mxu0  ;;  %486 = vmax.xlane.f32.xlu0 %v485_v38  ;;  %v1618_v40 = vpop.f32.mrf.mxu1 }
 0x155   : > { %v475_v41 = vadd.f32 %v1937_v33, %v403_v36  ;;  %v474_v42 = vadd.f32 %v1942_v34, %v352_v35 }
 0x156   : > { %v405_v43 = vpop.f32.mrf.mxu0  ;;  %v456_v44 = vpop.f32.mrf.mxu1 }
 0x157   : > { %v406_v47 = vadd.f32 %v405_v43, %v243_v18  ;;  %v457_v48 = vadd.f32 %v456_v44, %v242_v13  ;;  %v491_v49 = vsel %vm253_vm1, %v475_v41, -inf  ;;  %v488_v50 = vsel %vm253_vm1, %v474_v42, -inf }
 0x158   : > { %492 = vmax.xlane.f32.xlu1 %v491_v49  ;;  %v1624_v51 = vpop.f32.mrf.mxu0  ;;  %489 = vmax.xlane.f32.xlu0 %v488_v50  ;;  %v1629_v52 = vpop.f32.mrf.mxu1 }
 0x159   : > { %v476_v53 = vadd.f32 %v1951_v45, %v406_v47  ;;  %v477_v54 = vadd.f32 %v1956_v46, %v457_v48 }
 0x15a   : > { %v459_v55 = vpop.f32.mrf.mxu1 }
 0x15b   : > { %v460_v57 = vadd.f32 %v459_v55, %v243_v18  ;;  %v494_v58 = vsel %vm253_vm1, %v476_v53, -inf  ;;  %v497_v59 = vsel %vm253_vm1, %v477_v54, -inf }
 0x15c   : > { %495 = vmax.xlane.f32.xlu0 %v494_v58  ;;  %498 = vmax.xlane.f32.xlu1 %v497_v59  ;;  %v1630_v60 = vpop.f32.mrf.mxu1 }
 0x15d   : > { %v478_v61 = vadd.f32 %v1965_v56, %v460_v57 }
 0x15f   : > { %v500_v62 = vsel %vm253_vm1, %v478_v61, -inf }
 0x160   : > { %501 = vmax.xlane.f32.xlu0 %v500_v62 }
 0x16d   : > { %571 = vrot.lane.b32.xlu1 %v1873_v1, %s1819_s23 }
 0x171   : > { %665 = vrot.lane.b32.xlu1 %v1878_v3, %s1819_s23 }
 0x175   : > { %712 = vrot.lane.b32.xlu1 %v1881_v4, %s1819_s23 }
 0x176   : > { %618 = vrot.lane.b32.xlu0 %v1875_v2, %s1819_s23 }
 0x1d9   : > { %v481_v63 = vpop.xlane.xlu0 %480 }
 0x1da   : > { %v503_v5 = vsub.f32 %v471_v19, %v481_v63 }
 0x1dc   : > { %v511_v6 = vmul.f32 1.442695, %v503_v5 }
 0x1dd   : > { %v484_v7 = vpop.xlane.xlu1 %483  ;;  %v487_v8 = vpop.xlane.xlu0 %486 }
 0x1de   : > { %1744 = vpow2.f32 %v511_v6  ;;  %v504_v9 = vsub.f32 %v472_v29, %v484_v7  ;;  %v505_v10 = vsub.f32 %v473_v30, %v487_v8 }
 0x1e0   : > { %v513_v11 = vmul.f32 1.442695, %v504_v9  ;;  %v515_v12 = vmul.f32 1.442695, %v505_v10 }
 0x1e1   : > { %v493_v13 = vpop.xlane.xlu1 %492  ;;  %v490_v14 = vpop.xlane.xlu0 %489 }
 0x1e2   : > { %1746 = vpow2.f32 %v513_v11  ;;  %v507_v16 = vsub.f32 %v475_v41, %v493_v13  ;;  %v506_v17 = vsub.f32 %v474_v42, %v490_v14 }
 0x1e3   : > { %1748 = vpow2.f32 %v515_v12 }
 0x1e4   : > { %v519_v18 = vmul.f32 1.442695, %v507_v16  ;;  %v517_v20 = vmul.f32 1.442695, %v506_v17 }
 0x1e5   : > { %v499_v21 = vpop.xlane.xlu1 %498  ;;  %v496_v24 = vpop.xlane.xlu0 %495 }
 0x1e6   : > { %1750 = vpow2.f32 %v519_v18  ;;  %v509_v19 = vsub.f32 %v477_v54, %v499_v21  ;;  %v508_v25 = vsub.f32 %v476_v53, %v496_v24 }
 0x1e7   : > { %1752 = vpow2.f32 %v517_v20 }
 0x1e8   : > { %v523_v26 = vmul.f32 1.442695, %v509_v19  ;;  %v521_v27 = vmul.f32 1.442695, %v508_v25 }
 0x1e9   : > { %v502_v28 = vpop.xlane.xlu0 %501  ;;  %v572_v29 = vpop.permute.xlu1 %571 }
 0x1ea   : > { %1754 = vpow2.f32 %v523_v26  ;;  %v510_v30 = vsub.f32 %v478_v61, %v502_v28  ;;  %1632 = vmatpush3.bf16.msra.mxu0 %v572_v29 }
 0x1eb   : > { %v1745_v31 = vpop.eup %1744  ;;  %1756 = vpow2.f32 %v521_v27  ;;  %1643 = vmatprep.subr.bf16.mxu0 %v1816_v0 }
 0x1ec   : > { %v525_v32 = vmul.f32 1.442695, %v510_v30  ;;  %v527_v35 = vsel %vm253_vm1, %v1745_v31, 0.0 }
 0x1ed   : > { %528 = vadd.xlane.f32.xlu1 %v527_v35  ;;  %v619_v36 = vpop.permute.xlu0 %618  ;;  %v666_v53 = vpop.permute.xlu1 %665 }
 0x1ee   : > { %1758 = vpow2.f32 %v525_v32  ;;  %1638 = vmatpush3.bf16.msra.mxu1 %v619_v36 }
 0x1ef   : > { %v1747_v37 = vpop.eup %1746  ;;  %1649 = vmatprep.subr.bf16.mxu1 %v1816_v0 }
 0x1f0   : > { %v1749_v38 = vpop.eup %1748  ;;  %v530_v39 = vsel %vm253_vm1, %v1747_v37, 0.0 }
 0x1f1   : > { %531 = vadd.xlane.f32.xlu0 %v530_v39  ;;  %v533_v40 = vsel %vm253_vm1, %v1749_v38, 0.0  ;;  %v713_v54 = vpop.permute.xlu1 %712 }
 0x1f2   : > { %534 = vadd.xlane.f32.xlu1 %v533_v40 }
 0x1f3   : > { %v1980_v41 = vpop.eup %1750 }
 0x1f4   : > { %v1753_v42 = vpop.eup %1752  ;;  %v539_v43 = vsel %vm253_vm1, %v1980_v41, 0.0 }
 0x1f5   : > { %v536_v44 = vsel %vm253_vm1, %v1753_v42, 0.0 }
 0x1f6   : > { %540 = vadd.xlane.f32.xlu1 %v539_v43  ;;  %537 = vadd.xlane.f32.xlu0 %v536_v44 }
 0x1f7   : > { %v1985_v47 = vpop.eup %1754 }
 0x1f8   : > { %v1757_v48 = vpop.eup %1756  ;;  %v545_v49 = vsel %vm253_vm1, %v1985_v47, 0.0 }
 0x1f9   : > { %v542_v50 = vsel %vm253_vm1, %v1757_v48, 0.0 }
 0x1fa   : > { %546 = vadd.xlane.f32.xlu1 %v545_v49  ;;  %543 = vadd.xlane.f32.xlu0 %v542_v50 }
 0x1fb   : > { %v1759_v51 = vpop.eup %1758 }
 0x1fc   : > { %v548_v52 = vsel %vm253_vm1, %v1759_v51, 0.0 }
 0x1fe   : > { %549 = vadd.xlane.f32.xlu0 %v548_v52 }
 0x20b   : > { %818 = vrot.lane.b32.xlu1 %v1875_v2, %s1820_s24 }
 0x20f   : > { %869 = vrot.lane.b32.xlu1 %v1878_v3, %s1820_s24 }
 0x213   : > { %920 = vrot.lane.b32.xlu1 %v1881_v4, %s1820_s24 }
 0x214   : > { %767 = vrot.lane.b32.xlu0 %v1873_v1, %s1820_s24 }
 0x217   : > { %918 = vrot.lane.b32.xlu1 %v1881_v4, %s1821_s25 }
 0x218   : > { %765 = vrot.lane.b32.xlu0 %v1873_v1, %s1821_s25 }
 0x21c   : > { %816 = vrot.lane.b32.xlu0 %v1875_v2, %s1821_s25 }
 0x220   : > { %867 = vrot.lane.b32.xlu0 %v1878_v3, %s1821_s25 }
 0x276   : > { %v529_v55 = vpop.xlane.xlu1 %528 }
 0x277   : > { %1760 = vrcp.f32 %v529_v55 }
 0x27a   : > { %v532_v57 = vpop.xlane.xlu0 %531 }
 0x27b   : > { %v535_v58 = vpop.xlane.xlu1 %534  ;;  %1762 = vrcp.f32 %v532_v57 }
 0x27c   : > { %1764 = vrcp.f32 %v535_v58 }
 0x27f   : > { %v541_v59 = vpop.xlane.xlu1 %540  ;;  %v538_v60 = vpop.xlane.xlu0 %537 }
 0x280   : > { %1766 = vrcp.f32 %v538_v60 }
 0x281   : > { %1768 = vrcp.f32 %v541_v59 }
 0x283   : > { %v547_v61 = vpop.xlane.xlu1 %546  ;;  %v544_v62 = vpop.xlane.xlu0 %543 }
 0x284   : > { %1770 = vrcp.f32 %v544_v62  ;;  %v1761_v63 = vpop.eup %1760  ;;  %v244_v62 = vld [vmem:[%s2162_s1 + $0x10] sm:$0xff] }
 0x285   : > { %1772 = vrcp.f32 %v547_v61  ;;  %v559_v7 = vmul.f32 %v1761_v63, %v1745_v31 }
 0x287   : > { %v550_v5 = vpop.xlane.xlu0 %549  ;;  %v819_v20 = vpop.permute.xlu1 %818 }
 0x288   : > { %v1763_v6 = vpop.eup %1762  ;;  %1774 = vrcp.f32 %v550_v5  ;;  %v824_v35 = vsel %vm253_vm1, %v819_v20, 0 }
 0x289   : > { %v560_v8 = vmul.f32 %v1763_v6, %v1747_v37  ;;  %v1765_v10 = vpop.eup %1764 }
 0x28a   : > { %v561_v12 = vmul.f32 %v1765_v10, %v1749_v38  ;;  %v245_v10 = vld [vmem:[%s2162_s1 + $0x18] sm:$0xff] }
 0x28b   : > { %v567_v9 = vpack.c.bf16 %v560_v8, %v559_v7  ;;  %v768_v18 = vpop.permute.xlu0 %767  ;;  %v870_v31 = vpop.permute.xlu1 %869 }
 0x28c   : > { %v773_v26 = vsel %vm253_vm1, %v768_v18, 0  ;;  %v875_v36 = vsel %vm253_vm1, %v870_v31, 0 }
 0x28d   : > { %1634 = vmatmul.mubr.msk.bf16.vlgmr.msra.gmra.mxu0 %vm253_vm1, %v567_v9  ;;  %v1767_v11 = vpop.eup %1766 }
 0x28e   : > { %1644 = vmatpush3.bf16.msra.mxu0 %v666_v53  ;;  %1645 = vmatprep.mubr.msk.bf16.mxu0 %vm1817_vm0, %v1816_v0  ;;  %v562_v13 = vmul.f32 %v1767_v11, %v1753_v42  ;;  %v1769_v14 = vpop.eup %1768 }
 0x28f   : > { %1655 = vmatprep.subr.bf16.mxu0 %v1816_v0  ;;  %v563_v24 = vmul.f32 %v1769_v14, %v1980_v41  ;;  %v766_v32 = vpop.permute.xlu0 %765  ;;  %v921_v37 = vpop.permute.xlu1 %920 }
 0x290   : > { %v568_v16 = vpack.c.bf16 %v562_v13, %v561_v12  ;;  %v926_v39 = vsel %vm253_vm1, %v921_v37, 0 }
 0x291   : > { %v1771_v17 = vpop.eup %1770 }
 0x292   : > { %v1773_v21 = vpop.eup %1772  ;;  %1640 = vmatmul.mubr.msk.bf16.vlgmr.msra.gmra.mxu1 %vm253_vm1, %v568_v16  ;;  %v564_v19 = vmul.f32 %v1771_v17, %v1757_v48 }
 0x293   : > { %1650 = vmatpush3.bf16.msra.mxu1 %v713_v54  ;;  %1651 = vmatprep.mubr.msk.bf16.mxu1 %vm1817_vm0, %v1816_v0  ;;  %v565_v28 = vmul.f32 %v1773_v21, %v1985_v47  ;;  %v817_v38 = vpop.permute.xlu0 %816  ;;  %v919_v41 = vpop.permute.xlu1 %918 }
 0x294   : > { %v569_v27 = vpack.c.bf16 %v564_v19, %v563_v24  ;;  %1661 = vmatprep.subr.bf16.mxu1 %v1816_v0 }
 0x295   : > { %v1775_v25 = vpop.eup %1774 }
 0x296   : > { %v566_v29 = vmul.f32 %v1775_v25, %v1759_v51  ;;  %1646 = vmatmul.mubr.msk.bf16.vlgmr.msra.gmra.mxu0 %vm253_vm1, %v569_v27 }
 0x297   : > { %1656 = vmatpush3.bf16.xpose.msra.mxu0 %v773_v26  ;;  %1657 = vmatprep.mubr.msk.bf16.mxu0 %vm1817_vm0, %v1816_v0  ;;  %v868_v40 = vpop.permute.xlu0 %867 }
 0x298   : > { %v570_v30 = vpack.c.bf16 %v566_v29, %v565_v28  ;;  %1667 = vmatprep.subr.bf16.mxu0 %v1816_v0 }
 0x29a   : > { %1652 = vmatmul.mubr.msk.bf16.vlgmr.msra.gmra.mxu1 %vm253_vm1, %v570_v30 }
 0x29b   : > { %1662 = vmatpush3.bf16.xpose.msra.mxu1 %v824_v35  ;;  %1663 = vmatprep.mubr.msk.bf16.mxu1 %vm1817_vm0, %v1816_v0 }
 0x29c   : > { %1673 = vmatprep.subr.bf16.mxu1 %v1816_v0 }
 0x29e   : > { %1658 = vmatmul.mubr.msk.bf16.vlgmr.msra.gmra.mxu0 %vm253_vm1, %v766_v32 }
 0x29f   : > { %1668 = vmatpush3.bf16.xpose.msra.mxu0 %v875_v36  ;;  %1669 = vmatprep.mubr.msk.bf16.mxu0 %vm1817_vm0, %v1816_v0 }
 0x2a0   : > { %1679 = vmatprep.subr.bf16.mxu0 %v1816_v0 }
 0x2a2   : > { %1664 = vmatmul.mubr.msk.bf16.vlgmr.msra.gmra.mxu1 %vm253_vm1, %v817_v38 }
 0x2a3   : > { %1674 = vmatpush3.bf16.xpose.msra.mxu1 %v926_v39  ;;  %1675 = vmatprep.mubr.msk.bf16.mxu1 %vm1817_vm0, %v1816_v0 }
 0x2a4   : > { %1685 = vmatprep.subr.bf16.mxu1 %v1816_v0 }
 0x2a6   : > { %1670 = vmatmul.mubr.msk.bf16.vlgmr.msra.gmra.mxu0 %vm253_vm1, %v868_v40 }
 0x2a7   : > { %1681 = vmatprep.mubr.msk.bf16.mxu0 %vm1817_vm0, %v1816_v0 }
 0x2aa   : > { %1676 = vmatmul.mubr.msk.bf16.vlgmr.msra.gmra.mxu1 %vm253_vm1, %v919_v41 }
 0x2ab   : > { %1687 = vmatprep.mubr.msk.bf16.mxu1 %vm1817_vm0, %v1816_v0 }
 0x34d   : > { %v2035_v42 = vpop.f32.mrf.mxu0 }
 0x34f   : > { %v1635_v43 = vpop.f32.mrf.mxu0 }
 0x351   : > { %v2037_v44 = vpop.f32.mrf.mxu0 }
 0x352   : > { %v759_v47 = vpack.c.bf16 %v2037_v44, %v2035_v42  ;;  %v2041_v48 = vpop.f32.mrf.mxu1 }
 0x353   : > { %v1636_v49 = vpop.f32.mrf.mxu0 }
 0x354   : > { %v1641_v50 = vpop.f32.mrf.mxu1 }
 0x356   : > { %v2043_v51 = vpop.f32.mrf.mxu1  ;;  %v2045_v52 = vpop.f32.mrf.mxu0 }
 0x357   : > { %v760_v53 = vpack.c.bf16 %v2043_v51, %v2041_v48 }
 0x358   : > { %v1642_v54 = vpop.f32.mrf.mxu1  ;;  %v1647_v55 = vpop.f32.mrf.mxu0 }
 0x35a   : > { %v2049_v57 = vpop.f32.mrf.mxu0  ;;  %v2051_v58 = vpop.f32.mrf.mxu1 }
 0x35b   : > { %v761_v59 = vpack.c.bf16 %v2049_v57, %v2045_v52 }
 0x35c   : > { %v1648_v60 = vpop.f32.mrf.mxu0  ;;  %v1653_v61 = vpop.f32.mrf.mxu1 }
 0x35e   : > { %v2058_v63 = vpop.f32.mrf.mxu1  ;;  %v809_v5 = vpop.f32.mrf.mxu0 }
 0x35f   : > { %v762_v6 = vpack.c.bf16 %v2058_v63, %v2051_v58  ;;  %v810_v7 = vadd.f32 %v809_v5, %v244_v62 }
 0x360   : > { %v1654_v8 = vpop.f32.mrf.mxu1  ;;  %v1659_v9 = vpop.f32.mrf.mxu0 }
 0x361   : > { %v977_v11 = vadd.f32 %v810_v7, %v1915_v15 }
 0x362   : > { %v812_v12 = vpop.f32.mrf.mxu0  ;;  %v860_v13 = vpop.f32.mrf.mxu1 }
 0x363   : > { %v813_v14 = vadd.f32 %v812_v12, %v245_v10  ;;  %v861_v16 = vadd.f32 %v860_v13, %v244_v62  ;;  %v985_v17 = vsel %vm253_vm1, %v977_v11, -inf }
 0x364   : > { %986 = vmax.xlane.f32.xlu0 %v985_v17  ;;  %v1660_v18 = vpop.f32.mrf.mxu0  ;;  %v1665_v20 = vpop.f32.mrf.mxu1 }
 0x365   : > { %v978_v21 = vadd.f32 %v813_v14, %v1924_v22  ;;  %v979_v24 = vadd.f32 %v861_v16, %v1929_v23 }
 0x366   : > { %v863_v19 = vpop.f32.mrf.mxu1  ;;  %v911_v25 = vpop.f32.mrf.mxu0 }
 0x367   : > { %v864_v26 = vadd.f32 %v863_v19, %v245_v10  ;;  %v912_v27 = vadd.f32 %v911_v25, %v244_v62  ;;  %v988_v28 = vsel %vm253_vm1, %v978_v21, -inf  ;;  %v991_v15 = vsel %vm253_vm1, %v979_v24, -inf }
 0x368   : > { %989 = vmax.xlane.f32.xlu1 %v988_v28  ;;  %992 = vmax.xlane.f32.xlu0 %v991_v15  ;;  %v1666_v29 = vpop.f32.mrf.mxu1  ;;  %v1671_v30 = vpop.f32.mrf.mxu0 }
 0x369   : > { %v980_v31 = vadd.f32 %v864_v26, %v1942_v34  ;;  %v981_v32 = vadd.f32 %v912_v27, %v1937_v33 }
 0x36a   : > { %v914_v35 = vpop.f32.mrf.mxu0  ;;  %v962_v22 = vpop.f32.mrf.mxu1 }
 0x36b   : > { %v915_v36 = vadd.f32 %v914_v35, %v245_v10  ;;  %v963_v23 = vadd.f32 %v962_v22, %v244_v62  ;;  %v994_v37 = vsel %vm253_vm1, %v980_v31, -inf  ;;  %v997_v38 = vsel %vm253_vm1, %v981_v32, -inf }
 0x36c   : > { %995 = vmax.xlane.f32.xlu0 %v994_v37  ;;  %v1677_v39 = vpop.f32.mrf.mxu1  ;;  %998 = vmax.xlane.f32.xlu1 %v997_v38  ;;  %v1672_v40 = vpop.f32.mrf.mxu0 }
 0x36d   : > { %v983_v41 = vadd.f32 %v963_v23, %v1956_v46  ;;  %v982_v43 = vadd.f32 %v915_v36, %v1951_v45 }
 0x36e   : > { %v965_v49 = vpop.f32.mrf.mxu1 }
 0x36f   : > { %v966_v34 = vadd.f32 %v965_v49, %v245_v10  ;;  %v1003_v33 = vsel %vm253_vm1, %v983_v41, -inf  ;;  %v1000_v50 = vsel %vm253_vm1, %v982_v43, -inf }
 0x370   : > { %v1678_v54 = vpop.f32.mrf.mxu1  ;;  %1004 = vmax.xlane.f32.xlu1 %v1003_v33  ;;  %1001 = vmax.xlane.f32.xlu0 %v1000_v50 }
 0x371   : > { %v984_v55 = vadd.f32 %v966_v34, %v1965_v56 }
 0x373   : > { %v1006_v60 = vsel %vm253_vm1, %v984_v55, -inf }
 0x374   : > { %1007 = vmax.xlane.f32.xlu0 %v1006_v60 }
 0x381   : > { %1077 = vrot.lane.b32.xlu1 %v1873_v1, %s1822_s30 }
 0x3ed   : > { %v987_v46 = vpop.xlane.xlu0 %986 }
 0x3ee   : > { %v1009_v45 = vsub.f32 %v977_v11, %v987_v46 }
 0x3f0   : > { %v1017_v61 = vmul.f32 1.442695, %v1009_v45 }
 0x3f1   : > { %v990_v62 = vpop.xlane.xlu1 %989  ;;  %v993_v5 = vpop.xlane.xlu0 %992 }
 0x3f2   : > { %1776 = vpow2.f32 %v1017_v61  ;;  %v1010_v7 = vsub.f32 %v978_v21, %v990_v62  ;;  %v1011_v8 = vsub.f32 %v979_v24, %v993_v5 }
 0x3f4   : > { %v1019_v9 = vmul.f32 1.442695, %v1010_v7  ;;  %v1021_v10 = vmul.f32 1.442695, %v1011_v8 }
 0x3f5   : > { %v999_v12 = vpop.xlane.xlu1 %998  ;;  %v996_v13 = vpop.xlane.xlu0 %995 }
 0x3f6   : > { %1778 = vpow2.f32 %v1019_v9  ;;  %v1013_v56 = vsub.f32 %v981_v32, %v999_v12  ;;  %v1012_v14 = vsub.f32 %v980_v31, %v996_v13 }
 0x3f7   : > { %1780 = vpow2.f32 %v1021_v10 }
 0x3f8   : > { %v1025_v16 = vmul.f32 1.442695, %v1013_v56  ;;  %v1023_v17 = vmul.f32 1.442695, %v1012_v14  ;;  %v1742_v14 = vld [vmem:[%s2164_s3] sm:$0xff]  }
 0x3f9   : > { %v1005_v18 = vpop.xlane.xlu1 %1004  ;;  %v1002_v1 = vpop.xlane.xlu0 %1001 }
 0x3fa   : > { %1782 = vpow2.f32 %v1025_v16  ;;  %v1015_v11 = vsub.f32 %v983_v41, %v1005_v18  ;;  %v1014_v20 = vsub.f32 %v982_v43, %v1002_v1 }
 0x3fb   : > { %1784 = vpow2.f32 %v1023_v17 }
 0x3fc   : > { %v1029_v19 = vmul.f32 1.442695, %v1015_v11  ;;  %v1027_v25 = vmul.f32 1.442695, %v1014_v20 }
 0x3fd   : > { %v1008_v21 = vpop.xlane.xlu0 %1007  ;;  %v1078_v24 = vpop.permute.xlu1 %1077 }
 0x3fe   : > { %1786 = vpow2.f32 %v1029_v19  ;;  %v1016_v26 = vsub.f32 %v984_v55, %v1008_v21  ;;  %1680 = vmatpush3.bf16.msra.mxu0 %v1078_v24 }
 0x3ff   : > { %v1777_v27 = vpop.eup %1776  ;;  %1788 = vpow2.f32 %v1027_v25  ;;  %1691 = vmatprep.subr.bf16.mxu0 %v1816_v0 }
 0x400   : > { %v1031_v28 = vmul.f32 1.442695, %v1016_v26  ;;  %v1033_v15 = vsel %vm253_vm1, %v1777_v27, 0.0 }
 0x401   : > { %1034 = vadd.xlane.f32.xlu1 %v1033_v15 }
 0x402   : > { %1790 = vpow2.f32 %v1031_v28 }
 0x403   : > { %v1779_v29 = vpop.eup %1778 }
 0x404   : > { %v1781_v30 = vpop.eup %1780  ;;  %v1036_v31 = vsel %vm253_vm1, %v1779_v29, 0.0 }
 0x405   : > { %1037 = vadd.xlane.f32.xlu0 %v1036_v31  ;;  %v1039_v32 = vsel %vm253_vm1, %v1781_v30, 0.0 }
 0x406   : > { %1040 = vadd.xlane.f32.xlu1 %v1039_v32 }
 0x407   : > { %v1783_v35 = vpop.eup %1782 }
 0x408   : > { %v1785_v22 = vpop.eup %1784  ;;  %v1045_v36 = vsel %vm253_vm1, %v1783_v35, 0.0 }
 0x409   : > { %v1042_v23 = vsel %vm253_vm1, %v1785_v22, 0.0 }
 0x40a   : > { %1046 = vadd.xlane.f32.xlu1 %v1045_v36  ;;  %1043 = vadd.xlane.f32.xlu0 %v1042_v23 }
 0x40b   : > { %v1787_v37 = vpop.eup %1786 }
 0x40c   : > { %v1789_v38 = vpop.eup %1788  ;;  %v1051_v39 = vsel %vm253_vm1, %v1787_v37, 0.0 }
 0x40d   : > { %v1048_v40 = vsel %vm253_vm1, %v1789_v38, 0.0 }
 0x40e   : > { %1052 = vadd.xlane.f32.xlu1 %v1051_v39  ;;  %1049 = vadd.xlane.f32.xlu0 %v1048_v40  ;;  %v1560_v40 = vld [vmem:[%s2165_s4] ss:$0 sm:$0xff] }
 0x40f   : > { %v1791_v41 = vpop.eup %1790 }
 0x410   : > { %v1054_v43 = vsel %vm253_vm1, %v1791_v41, 0.0 }
 0x412   : > { %1055 = vadd.xlane.f32.xlu0 %v1054_v43 }
 0x41f   : > { %1171 = vrot.lane.b32.xlu1 %v1878_v3, %s1822_s30 }
 0x423   : > { %1218 = vrot.lane.b32.xlu1 %v1881_v4, %s1822_s30 }
 0x428   : > { %1124 = vrot.lane.b32.xlu0 %v1875_v2, %s1822_s30 }
 0x48a   : > { %v1035_v49 = vpop.xlane.xlu1 %1034 }
 0x48b   : > { %1792 = vrcp.f32 %v1035_v49 }
 0x48e   : > { %v1038_v34 = vpop.xlane.xlu0 %1037 }
 0x48f   : > { %v1041_v33 = vpop.xlane.xlu1 %1040  ;;  %1794 = vrcp.f32 %v1038_v34 }
 0x490   : > { %1796 = vrcp.f32 %v1041_v33 }
 0x493   : > { %v1047_v50 = vpop.xlane.xlu1 %1046  ;;  %v1044_v54 = vpop.xlane.xlu0 %1043 }
 0x494   : > { %1798 = vrcp.f32 %v1044_v54 }
 0x495   : > { %1800 = vrcp.f32 %v1047_v50 }
 0x497   : > { %v1053_v55 = vpop.xlane.xlu1 %1052  ;;  %v1050_v60 = vpop.xlane.xlu0 %1049 }
 0x498   : > { %1802 = vrcp.f32 %v1050_v60  ;;  %v1793_v3 = vpop.eup %1792 }
 0x499   : > { %1804 = vrcp.f32 %v1053_v55  ;;  %v1065_v45 = vmul.f32 %v1793_v3, %v1777_v27 }
 0x49b   : > { %v1056_v46 = vpop.xlane.xlu0 %1055  ;;  %v1172_v5 = vpop.permute.xlu1 %1171 }
 0x49c   : > { %v1795_v4 = vpop.eup %1794  ;;  %1806 = vrcp.f32 %v1056_v46 }
 0x49d   : > { %v1066_v2 = vmul.f32 %v1795_v4, %v1779_v29  ;;  %v1797_v7 = vpop.eup %1796 }
 0x49e   : > { %v1067_v9 = vmul.f32 %v1797_v7, %v1781_v30 }
 0x49f   : > { %v1125_v61 = vpop.permute.xlu0 %1124  ;;  %v1073_v62 = vpack.c.bf16 %v1066_v2, %v1065_v45  ;;  %v1219_v56 = vpop.permute.xlu1 %1218 }
 0x4a0   : > { %1686 = vmatpush3.bf16.msra.mxu1 %v1125_v61 }
 0x4a1   : > { %1682 = vmatmul.mubr.msk.bf16.vlgmr.msra.gmra.mxu0 %vm253_vm1, %v1073_v62  ;;  %1697 = vmatprep.subr.bf16.mxu1 %v1816_v0  ;;  %v1799_v8 = vpop.eup %1798 }
 0x4a2   : > { %1692 = vmatpush3.bf16.msra.mxu0 %v1172_v5  ;;  %1693 = vmatprep.mubr.msk.bf16.mxu0 %vm1817_vm0, %v1816_v0  ;;  %v1068_v10 = vmul.f32 %v1799_v8, %v1785_v22  ;;  %v1801_v12 = vpop.eup %1800 }
 0x4a3   : > { %v1069_v18 = vmul.f32 %v1801_v12, %v1783_v35 }
 0x4a4   : > { %v1074_v13 = vpack.c.bf16 %v1068_v10, %v1067_v9 }
 0x4a5   : > { %v1803_v16 = vpop.eup %1802 }
 0x4a6   : > { %v1805_v17 = vpop.eup %1804  ;;  %1688 = vmatmul.mubr.msk.bf16.vlgmr.msra.gmra.mxu1 %vm253_vm1, %v1074_v13  ;;  %v1070_v1 = vmul.f32 %v1803_v16, %v1789_v38 }
 0x4a7   : > { %1698 = vmatpush3.bf16.msra.mxu1 %v1219_v56  ;;  %1699 = vmatprep.mubr.msk.bf16.mxu1 %vm1817_vm0, %v1816_v0  ;;  %v1071_v19 = vmul.f32 %v1805_v17, %v1787_v37  ;;  %v1743_v0 = vld [vmem:[%s2164_s3 + $0x8] sm:$0xff]  }
 0x4a8   : > { %v1075_v20 = vpack.c.bf16 %v1070_v1, %v1069_v18  ;;  %1713 = vmatprep.subr.bf16.mxu1 %v1742_v14  ;;  %1703 = vmatprep.subr.bf16.mxu0 %v1743_v0 }
 0x4a9   : > { %v1807_v11 = vpop.eup %1806 }
 0x4aa   : > { %v1072_v25 = vmul.f32 %v1807_v11, %v1791_v41  ;;  %1694 = vmatmul.mubr.msk.bf16.vlgmr.msra.gmra.mxu0 %vm253_vm1, %v1075_v20 }
 0x4ab   : > { %1704 = vmatpush3.bf16.msra.mxu0 %v1743_v0 }
 0x4ac   : > { %v1076_v21 = vpack.c.bf16 %v1072_v25, %v1071_v19 }
 0x4ae   : > { %1700 = vmatmul.mubr.msk.bf16.vlgmr.msra.gmra.mxu1 %vm253_vm1, %v1076_v21 }
 0x4af   : > { %1715 = vmatprep.mubr.msk.bf16.mxu1 %vm253_vm1, %v759_v47  ;;  %1714 = vmatpush3.bf16.msra.mxu1 %v1742_v14 }
 0x4b6   : > { %1716 = vmatmul.mubr.msk.bf16.vlgmr.msra.gmra.mxu1 %vm253_vm1, %v760_v53 }
 0x4b7   : > { %1719 = vmatprep.mubr.msk.bf16.mxu1 %vm253_vm1, %v761_v59 }
 0x4be   : > { %1720 = vmatmul.mubr.msk.bf16.gmra.mxu1 %vm253_vm1, %v762_v6 }
 0x561   : > { %v1117_v42 = vpop.f32.mrf.mxu0 }
 0x563   : > { %v1683_v44 = vpop.f32.mrf.mxu0 }
 0x565   : > { %v1120_v47 = vpop.f32.mrf.mxu0 }
 0x566   : > { %v1265_v48 = vpack.c.bf16 %v1120_v47, %v1117_v42  ;;  %v1164_v51 = vpop.f32.mrf.mxu1 }
 0x567   : > { %v1684_v53 = vpop.f32.mrf.mxu0 }
 0x568   : > { %1705 = vmatprep.mubr.msk.bf16.mxu0 %vm253_vm1, %v1265_v48  ;;  %v1689_v52 = vpop.f32.mrf.mxu1 }
 0x56a   : > { %v1167_v57 = vpop.f32.mrf.mxu1  ;;  %v1211_v59 = vpop.f32.mrf.mxu0 }
 0x56b   : > { %v1266_v58 = vpack.c.bf16 %v1167_v57, %v1164_v51 }
 0x56c   : > { %v1690_v63 = vpop.f32.mrf.mxu1  ;;  %v1695_v6 = vpop.f32.mrf.mxu0 }
 0x56d   : > { %1706 = vmatmul.mubr.msk.bf16.vlgmr.msra.gmra.mxu0 %vm253_vm1, %v1266_v58 }
 0x56e   : > { %v1214_v24 = vpop.f32.mrf.mxu0  ;;  %v1258_v26 = vpop.f32.mrf.mxu1 }
 0x56f   : > { %v1267_v27 = vpack.c.bf16 %v1214_v24, %v1211_v59 }
 0x570   : > { %v1696_v28 = vpop.f32.mrf.mxu0  ;;  %v1701_v15 = vpop.f32.mrf.mxu1 }
 0x571   : > { %1709 = vmatprep.mubr.msk.bf16.mxu0 %vm253_vm1, %v1267_v27 }
 0x572   : > { %v1261_v29 = vpop.f32.mrf.mxu1 }
 0x573   : > { %v1268_v30 = vpack.c.bf16 %v1261_v29, %v1258_v26 }
 0x574   : > { %v1702_v31 = vpop.f32.mrf.mxu1 }
 0x575   : > { %1710 = vmatmul.mubr.msk.bf16.gmra.mxu0 %vm253_vm1, %v1268_v30 }
 0x576   : > { %v1717_v32 = vpop.f32.mrf.mxu1 }
 0x578   : > { %v1406_v35 = vpop.f32.mrf.mxu1 }
 0x57a   : > { %v1718_v22 = vpop.f32.mrf.mxu1 }
 0x57c   : > { %v1409_v36 = vpop.f32.mrf.mxu1 }
 0x57e   : > { %v1721_v37 = vpop.f32.mrf.mxu1 }
 0x580   : > { %v1422_v34 = vpop.f32.mrf.mxu1 }
 0x582   : > { %v1722_v46 = vpop.f32.mrf.mxu1 }
 0x584   : > { %v1425_v7 = vpop.f32.mrf.mxu1 }
 0x62d   : > { %v1707_v23 = vpop.f32.mrf.mxu0 }
 0x62e   : > { %v1415_v38 = vadd.f32 %v1717_v32, %v1707_v23 }
 0x62f   : > { %v1323_v39 = vpop.f32.mrf.mxu0 }
 0x630   : > { %v1407_v41 = vadd.f32 %v1406_v35, %v1323_v39  ;;  %v1446_v33 = vadd.f32 %v1560_v40, %v1415_v38 }
 0x631   : > { %v1708_v43 = vpop.f32.mrf.mxu0 }
 0x632   : > { %v1444_v49 = vadd.f32 %v1560_v40, %v1407_v41  ;;  %v1418_v50 = vadd.f32 %v1718_v22, %v1708_v43  ;;  %1455 = vst.msk [vmem:[%s2140_s15 + $0x10] sm:$0xff] %vm1452_vm2, %v1446_v33 }
 0x633   : > { %v1326_v54 = vpop.f32.mrf.mxu0 }
 0x634   : > { %1453 = vst.msk [vmem:[%s2140_s15] sm:$0xff] %vm1452_vm2, %v1444_v49  ;;  %v1410_v55 = vadd.f32 %v1409_v36, %v1326_v54  ;;  %v1447_v4 = vadd.f32 %v1560_v40, %v1418_v50 }
 0x635   : > { %v1711_v60 = vpop.f32.mrf.mxu0 }
 0x636   : > { %v1445_v3 = vadd.f32 %v1560_v40, %v1410_v55  ;;  %v1431_v45 = vadd.f32 %v1721_v37, %v1711_v60  ;;  %1456 = vst.msk [vmem:[%s2140_s15 + $0x18] sm:$0xff] %vm1452_vm2, %v1447_v4 }
 0x637   : > { %v1339_v2 = vpop.f32.mrf.mxu0 }
 0x638   : > { %1454 = vst.msk [vmem:[%s2140_s15 + $0x8] sm:$0xff] %vm1452_vm2, %v1445_v3  ;;  %v1423_v61 = vadd.f32 %v1422_v34, %v1339_v2  ;;  %v1450_v8 = vadd.f32 %v1560_v40, %v1431_v45 }
 0x639   : > { %v1712_v62 = vpop.f32.mrf.mxu0 }
 0x63a   : > { %v1448_v5 = vadd.f32 %v1560_v40, %v1423_v61  ;;  %v1434_v9 = vadd.f32 %v1722_v46, %v1712_v62  ;;  %1459 = vst.msk [vmem:[%s2140_s15 + $0x30] sm:$0xff] %vm1452_vm2, %v1450_v8 }
 0x63b   : > { %v1342_v10 = vpop.f32.mrf.mxu0 }
 0x63c   : > { %1457 = vst.msk [vmem:[%s2140_s15 + $0x20] sm:$0xff] %vm1452_vm2, %v1448_v5  ;;  %v1426_v12 = vadd.f32 %v1425_v7, %v1342_v10  ;;  %v1451_v56 = vadd.f32 %v1560_v40, %v1434_v9 }
 0x63e   : > { %v1449_v13 = vadd.f32 %v1560_v40, %v1426_v12  ;;  %1460 = vst.msk [vmem:[%s2140_s15 + $0x38] sm:$0xff] %vm1452_vm2, %v1451_v56 }
 0x640   : > { %1458 = vst.msk [vmem:[%s2140_s15 + $0x28] sm:$0xff] %vm1452_vm2, %v1449_v13 }
 0x641 PF: > { %s15_s18 = sadd.s32 1, %s1814_s18  }
 0x642   : > { %p12_p4 = scmp.ge.s32.totalorder %s15_s18, 4  }
 0x644   :  { %14 = sbr.rel (!%p12_p4) target bundleno = 1 (0x1), region = 70 }

// kernel: model_forward.26
= control target key start
LH: loop header
LB: loop body
LE: loop exit
PB: predicated region body
PF: predicated region fallthrough
CT: control target
= control target key end

     0   :  { %vm214_vm0 = vcmask 523264   ;;  %s377_s0 = inlined_call_operand.vmem [shape: f32[32,128], index: 0, kind: input, shape index: {}]   ;;  %s378_s3 = inlined_call_operand.vmem [shape: bf16[128,64], index: 3, kind: input, shape index: {}]   ;;  %s379_s1 = inlined_call_operand.vmem [shape: f32[1,128], index: 1, kind: input, shape index: {}]   ;;  %s380_s2 = inlined_call_operand.vmem [shape: f32[1,128], index: 2, kind: input, shape index: {}]   ;;  %s381_s4 = inlined_call_operand.vmem [shape: f32[1,64], index: 4, kind: input, shape index: {}]   ;;  %s382_s5 = inlined_call_operand.vmem [shape: f32[32,64], index: 5, kind: output, shape index: {}]  }
   0x1   :  { %v21_v0 = vld [vmem:[%s377_s0] sm:$0xff]  ;;  %v23_v1 = vld [vmem:[%s377_s0 + $0x10] sm:$0xff]  ;;  %v22_v2 = vld [vmem:[%s377_s0 + $0x8] sm:$0xff] }
   0x2   :  { %25 = vadd.xlane.f32.xlu0 %v21_v0  ;;  %29 = vadd.xlane.f32.xlu1 %v23_v1  ;;  %v24_v3 = vld [vmem:[%s377_s0 + $0x18] sm:$0xff]  ;;  %v265_v21 = vld [vmem:[%s378_s3 + $0x30] sm:$0xff]   ;;  %v266_v22 = vld [vmem:[%s378_s3 + $0x28] sm:$0xff]  }
   0x3   :  { %v264_v20 = vld [vmem:[%s378_s3 + $0x38] sm:$0xff]   ;;  %v267_v23 = vld [vmem:[%s378_s3 + $0x20] sm:$0xff]   ;;  %v269_v25 = vld [vmem:[%s378_s3 + $0x10] sm:$0xff]  }
   0x4   :  { %244 = vmatprep.subr.bf16.mxu0 %v264_v20  ;;  %v268_v24 = vld [vmem:[%s378_s3 + $0x18] sm:$0xff]   ;;  %v270_v26 = vld [vmem:[%s378_s3 + $0x8] sm:$0xff]   ;;  %v271_v27 = vld [vmem:[%s378_s3] sm:$0xff]  }
   0x5   :  { %245 = vmatpush3.bf16.msra.mxu0 %v264_v20  ;;  %v223_v42 = vld [vmem:[%s379_s1] ss:$0 sm:$0xff] }
   0x6   :  { %27 = vadd.xlane.f32.xlu0 %v22_v2  ;;  %31 = vadd.xlane.f32.xlu1 %v24_v3  ;;  %v224_v47 = vld [vmem:[%s380_s2] ss:$0 sm:$0xff] }
   0x7   :  { %246 = vmatprep.subr.bf16.mxu0 %v265_v21  ;;  %v225_v60 = vld [vmem:[%s381_s4] ss:$0 sm:$0xff] }
   0x9   :  { %247 = vmatpush3.bf16.msra.mxu0 %v265_v21 }
   0xa   :  { %248 = vmatprep.subr.bf16.mxu0 %v266_v22 }
   0xd   :  { %249 = vmatpush3.bf16.msra.mxu0 %v266_v22 }
   0xe   :  { %250 = vmatprep.subr.bf16.mxu0 %v267_v23 }
  0x11   :  { %251 = vmatpush3.bf16.msra.mxu0 %v267_v23 }
  0x12   :  { %252 = vmatprep.subr.bf16.mxu0 %v268_v24 }
  0x15   :  { %253 = vmatpush3.bf16.msra.mxu0 %v268_v24 }
  0x16   :  { %254 = vmatprep.subr.bf16.mxu0 %v269_v25 }
  0x19   :  { %255 = vmatpush3.bf16.msra.mxu0 %v269_v25 }
  0x1a   :  { %256 = vmatprep.subr.bf16.mxu0 %v270_v26 }
  0x1d   :  { %257 = vmatpush3.bf16.msra.mxu0 %v270_v26 }
  0x1e   :  { %258 = vmatprep.subr.bf16.mxu0 %v271_v27 }
  0x21   :  { %259 = vmatpush3.bf16.msra.mxu0 %v271_v27 }
  0x8b   :  { %v26_v4 = vpop.xlane.xlu0 %25  ;;  %v30_v5 = vpop.xlane.xlu1 %29 }
  0x8c   :  { %v34_v6 = vmul.f32 0.0078125, %v26_v4  ;;  %v36_v7 = vmul.f32 0.0078125, %v30_v5 }
  0x8e   :  { %v38_v8 = vsub.f32 %v21_v0, %v34_v6  ;;  %v322_v9 = vsub.f32 %v23_v1, %v36_v7 }
  0x8f   :  { %v28_v10 = vpop.xlane.xlu0 %27  ;;  %v32_v11 = vpop.xlane.xlu1 %31 }
  0x90   :  { %v35_v12 = vmul.f32 0.0078125, %v28_v10  ;;  %v42_v13 = vmul.f32 %v38_v8, %v38_v8  ;;  %v37_v14 = vmul.f32 0.0078125, %v32_v11  ;;  %v44_v17 = vmul.f32 %v322_v9, %v322_v9 }
  0x92   :  { %v39_v15 = vsub.f32 %v22_v2, %v35_v12  ;;  %46 = vadd.xlane.f32.xlu0 %v42_v13  ;;  %v324_v16 = vsub.f32 %v24_v3, %v37_v14 }
  0x94   :  { %v43_v18 = vmul.f32 %v39_v15, %v39_v15  ;;  %v45_v19 = vmul.f32 %v324_v16, %v324_v16 }
  0x96   :  { %50 = vadd.xlane.f32.xlu0 %v44_v17  ;;  %48 = vadd.xlane.f32.xlu1 %v43_v18 }
  0x9a   :  { %52 = vadd.xlane.f32.xlu1 %v45_v19 }
 0x11b   :  { %v47_v28 = vpop.xlane.xlu0 %46 }
 0x11c   :  { %v54_v29 = vmul.f32 0.0078125, %v47_v28 }
 0x11e   :  { %v58_v30 = vadd.f32 1e-05, %v54_v29 }
 0x11f   :  { %v49_v31 = vpop.xlane.xlu1 %48  ;;  %v51_v32 = vpop.xlane.xlu0 %50 }
 0x120   :  { %272 = vrsqrt.f32 %v58_v30  ;;  %v55_v33 = vmul.f32 0.0078125, %v49_v31  ;;  %v56_v34 = vmul.f32 0.0078125, %v51_v32 }
 0x122   :  { %v59_v35 = vadd.f32 1e-05, %v55_v33  ;;  %v60_v36 = vadd.f32 1e-05, %v56_v34 }
 0x123   :  { %v53_v37 = vpop.xlane.xlu1 %52 }
 0x124   :  { %274 = vrsqrt.f32 %v59_v35  ;;  %v57_v38 = vmul.f32 0.0078125, %v53_v37 }
 0x125   :  { %276 = vrsqrt.f32 %v60_v36 }
 0x126   :  { %v61_v39 = vadd.f32 1e-05, %v57_v38 }
 0x128   :  { %278 = vrsqrt.f32 %v61_v39 }
 0x12d   :  { %v273_v40 = vpop.eup %272 }
 0x12e   :  { %v66_v41 = vmul.f32 %v273_v40, %v38_v8 }
 0x130   :  { %v77_v46 = vmul.f32 %v223_v42, %v66_v41 }
 0x131   :  { %v275_v43 = vpop.eup %274 }
 0x132   :  { %v277_v44 = vpop.eup %276  ;;  %v67_v45 = vmul.f32 %v275_v43, %v39_v15  ;;  %v88_v51 = vadd.f32 %v224_v47, %v77_v46 }
 0x133   :  { %v68_v48 = vmul.f32 %v277_v44, %v322_v9 }
 0x134   :  { %v78_v49 = vmul.f32 %v223_v42, %v67_v45 }
 0x135   :  { %v279_v50 = vpop.eup %278  ;;  %v79_v54 = vmul.f32 %v223_v42, %v68_v48 }
 0x136   :  { %v89_v52 = vadd.f32 %v224_v47, %v78_v49  ;;  %v69_v53 = vmul.f32 %v279_v50, %v324_v16 }
 0x137   :  { %v90_v57 = vadd.f32 %v224_v47, %v79_v54 }
 0x138   :  { %v92_v55 = vpack.c.bf16 %v89_v52, %v88_v51  ;;  %v80_v56 = vmul.f32 %v223_v42, %v69_v53 }
 0x13a   :  { %260 = vmatprep.mubr.bf16.mxu0 %v92_v55  ;;  %v91_v58 = vadd.f32 %v224_v47, %v80_v56 }
 0x13c   :  { %v93_v59 = vpack.c.bf16 %v91_v58, %v90_v57 }
 0x13e   :  { %261 = vmatmul.mubr.bf16.vlgmr.msra.gmra.mxu0 %v93_v59 }
 0x1fe   :  { %v262_v61 = vpop.f32.mrf.mxu0 }
 0x1ff   :  { %v208_v62 = vadd.f32 %v262_v61, %v225_v60 }
 0x200   :  { %v199_v63 = vpop.f32.mrf.mxu0 }
 0x201   :  { %217 = vst.msk [vmem:[%s382_s5 + $0x10] sm:$0xff] %vm214_vm0, %v208_v62  ;;  %v200_v0 = vadd.f32 %v225_v60, %v199_v63 }
 0x202   :  { %v263_v1 = vpop.f32.mrf.mxu0 }
 0x203   :  { %215 = vst.msk [vmem:[%s382_s5] sm:$0xff] %vm214_vm0, %v200_v0  ;;  %v211_v2 = vadd.f32 %v263_v1, %v225_v60 }
 0x204   :  { %v202_v3 = vpop.f32.mrf.mxu0 }
 0x205   :  { %218 = vst.msk [vmem:[%s382_s5 + $0x18] sm:$0xff] %vm214_vm0, %v211_v2  ;;  %v203_v4 = vadd.f32 %v225_v60, %v202_v3 }
 0x207   :  { %216 = vst.msk [vmem:[%s382_s5 + $0x8] sm:$0xff] %vm214_vm0, %v203_v4 }

// kernel: model_forward.27
= control target key start
LH: loop header
LB: loop body
LE: loop exit
PB: predicated region body
PF: predicated region fallthrough
CT: control target
= control target key end

     0   :  { %vm25_vm0 = vcmask 523264   ;;  %v306_v29 = vmov 0   ;;  %vm246_vm1 = vcmask 1043456   ;;  %vm247_vm2 = vcmask 523268   ;;  %s436_s0 = inlined_call_operand.vmem [shape: f32[32,64], index: 0, kind: input, shape index: {}]   ;;  %s437_s3 = inlined_call_operand.vmem [shape: bf16[64,192], index: 3, kind: input, shape index: {}]   ;;  %s438_s1 = inlined_call_operand.vmem [shape: f32[1,64], index: 1, kind: input, shape index: {}]   ;;  %s439_s2 = inlined_call_operand.vmem [shape: f32[1,64], index: 2, kind: input, shape index: {}]   ;;  %s440_s4 = inlined_call_operand.vmem [shape: f32[1,192], index: 4, kind: input, shape index: {}]   ;;  %s441_s5 = inlined_call_operand.vmem [shape: bf16[32,192], index: 5, kind: output, shape index: {}]  }
   0x1   :  { %v21_v0 = vld [vmem:[%s436_s0] sm:$0xff]  ;;  %v23_v1 = vld [vmem:[%s436_s0 + $0x10] sm:$0xff]  ;;  %v22_v2 = vld [vmem:[%s436_s0 + $0x8] sm:$0xff]  ;;  %201 = vmatprep.mubr.bf16.mxu0 %v306_v29  ;;  %211 = vmatprep.mubr.bf16.mxu1 %v306_v29 }
   0x2   :  { %v26_v3 = vsel %vm25_vm0, %v21_v0, 0.0  ;;  %v32_v4 = vsel %vm25_vm0, %v23_v1, 0.0  ;;  %v24_v5 = vld [vmem:[%s436_s0 + $0x18] sm:$0xff]  ;;  %v29_v6 = vsel %vm25_vm0, %v22_v2, 0.0  ;;  %v289_v31 = vld [vmem:[%s437_s3 + $0x24] ss:$8 sps:$4 sm:$0xff]   ;;  %vm412_vm3 = vmor %vm247_vm2, %vm246_vm1 }
   0x3   :  { %27 = vadd.xlane.f32.xlu0 %v26_v3  ;;  %33 = vadd.xlane.f32.xlu1 %v32_v4  ;;  %v35_v7 = vsel %vm25_vm0, %v24_v5, 0.0  ;;  %v286_v28 = vld [vmem:[%s437_s3 + $0x34] ss:$8 sps:$4 sm:$0xff]   ;;  %v288_v30 = vld [vmem:[%s437_s3 + $0x30] ss:$8 sps:$4 sm:$0xff]  }
   0x4   :  { %177 = vmatprep.subr.bf16.mxu0 %v286_v28  ;;  %277 = vmatprep.subr.bf16.mxu1 %v286_v28  ;;  %v291_v32 = vld [vmem:[%s437_s3 + $0x20] ss:$8 sps:$4 sm:$0xff]   ;;  %v292_v33 = vld [vmem:[%s437_s3 + $0x14] ss:$8 sps:$4 sm:$0xff]   ;;  %v294_v34 = vld [vmem:[%s437_s3 + $0x10] ss:$8 sps:$4 sm:$0xff]  }
   0x5   :  { %178 = vmatpush1.bf16.msra.mxu0 %v288_v30  ;;  %281 = vmatpush1.bf16.msra.mxu1 %v288_v30  ;;  %v295_v35 = vld [vmem:[%s437_s3 + $0x4] ss:$8 sps:$4 sm:$0xff]   ;;  %v297_v36 = vld [vmem:[%s437_s3] ss:$8 sps:$4 sm:$0xff]  }
   0x6   :  { %179 = vmatprep.subr.bf16.mxu0 %v289_v31  ;;  %278 = vmatprep.subr.bf16.mxu1 %v289_v31  ;;  %v257_v51 = vld [vmem:[%s438_s1] ss:$0 sm:$0xff] }
   0x7   :  { %30 = vadd.xlane.f32.xlu0 %v29_v6  ;;  %36 = vadd.xlane.f32.xlu1 %v35_v7  ;;  %v258_v56 = vld [vmem:[%s439_s2] ss:$0 sm:$0xff] }
   0x9   :  { %180 = vmatpush1.bf16.msra.mxu0 %v291_v32  ;;  %282 = vmatpush1.bf16.msra.mxu1 %v291_v32 }
   0xa   :  { %181 = vmatprep.subr.bf16.mxu0 %v292_v33  ;;  %279 = vmatprep.subr.bf16.mxu1 %v292_v33 }
   0xd   :  { %182 = vmatpush1.bf16.msra.mxu0 %v294_v34  ;;  %283 = vmatpush1.bf16.msra.mxu1 %v294_v34 }
   0xe   :  { %183 = vmatprep.subr.bf16.mxu0 %v295_v35  ;;  %280 = vmatprep.subr.bf16.mxu1 %v295_v35 }
  0x11   :  { %184 = vmatpush1.bf16.msra.mxu0 %v297_v36  ;;  %284 = vmatpush1.bf16.msra.mxu1 %v297_v36 }
  0x8c   :  { %v28_v8 = vpop.xlane.xlu0 %27  ;;  %v34_v9 = vpop.xlane.xlu1 %33 }
  0x8d   :  { %v39_v10 = vmul.f32 0.015625, %v28_v8  ;;  %v41_v11 = vmul.f32 0.015625, %v34_v9  ;;  %v111_v9 = vld [vmem:[%s440_s4] sm:$0x3] }
  0x8f   :  { %v353_v12 = vsub.f32 %v21_v0, %v39_v10  ;;  %v355_v13 = vsub.f32 %v23_v1, %v41_v11 }
  0x90   :  { %v31_v14 = vpop.xlane.xlu0 %30  ;;  %v37_v15 = vpop.xlane.xlu1 %36 }
  0x91   :  { %v40_v16 = vmul.f32 0.015625, %v31_v14  ;;  %v42_v17 = vmul.f32 0.015625, %v37_v15  ;;  %v47_v18 = vmul.f32 %v353_v12, %v353_v12  ;;  %v49_v19 = vmul.f32 %v355_v13, %v355_v13 }
  0x93   :  { %v361_v20 = vsub.f32 %v22_v2, %v40_v16  ;;  %v363_v21 = vsub.f32 %v24_v5, %v42_v17  ;;  %v51_v22 = vsel %vm25_vm0, %v47_v18, 0.0  ;;  %v57_v23 = vsel %vm25_vm0, %v49_v19, 0.0 }
  0x94   :  { %52 = vadd.xlane.f32.xlu0 %v51_v22  ;;  %v113_v5 = vlaneseq }
  0x95   :  { %v48_v24 = vmul.f32 %v361_v20, %v361_v20  ;;  %v50_v25 = vmul.f32 %v363_v21, %v363_v21 }
  0x96   :  { %v114_v6 = vshrl.u32 %v113_v5, 7 }
  0x97   :  { %v54_v26 = vsel %vm25_vm0, %v48_v24, 0.0  ;;  %v60_v27 = vsel %vm25_vm0, %v50_v25, 0.0 }
  0x98   :  { %58 = vadd.xlane.f32.xlu0 %v57_v23  ;;  %55 = vadd.xlane.f32.xlu1 %v54_v26  ;;  %v115_v7 = vsub.s32 0, %v114_v6  ;;  %v119_v8 = vsub.s32 1, %v114_v6 }
  0x9a   :  { %v116_v10 = vrot.slane %v111_v9, %v115_v7  ;;  %v120_v11 = vrot.slane %v111_v9, %v119_v8 }
  0x9c   :  { %61 = vadd.xlane.f32.xlu1 %v60_v27 }
 0x11d   :  { %v53_v37 = vpop.xlane.xlu0 %52 }
 0x11e   :  { %v63_v38 = vmul.f32 0.015625, %v53_v37 }
 0x120   :  { %v67_v39 = vadd.f32 1e-05, %v63_v38 }
 0x121   :  { %v56_v40 = vpop.xlane.xlu1 %55  ;;  %v59_v41 = vpop.xlane.xlu0 %58 }
 0x122   :  { %298 = vrsqrt.f32 %v67_v39  ;;  %v64_v42 = vmul.f32 0.015625, %v56_v40  ;;  %v65_v43 = vmul.f32 0.015625, %v59_v41 }
 0x124   :  { %v68_v44 = vadd.f32 1e-05, %v64_v42  ;;  %v69_v45 = vadd.f32 1e-05, %v65_v43 }
 0x125   :  { %v62_v46 = vpop.xlane.xlu1 %61 }
 0x126   :  { %300 = vrsqrt.f32 %v68_v44  ;;  %v66_v47 = vmul.f32 0.015625, %v62_v46 }
 0x127   :  { %302 = vrsqrt.f32 %v69_v45 }
 0x128   :  { %v70_v48 = vadd.f32 1e-05, %v66_v47 }
 0x12a   :  { %304 = vrsqrt.f32 %v70_v48 }
 0x12f   :  { %v299_v49 = vpop.eup %298 }
 0x130   :  { %v75_v50 = vmul.f32 %v299_v49, %v353_v12 }
 0x132   :  { %v86_v55 = vmul.f32 %v257_v51, %v75_v50 }
 0x133   :  { %v301_v52 = vpop.eup %300 }
 0x134   :  { %v303_v53 = vpop.eup %302  ;;  %v76_v54 = vmul.f32 %v301_v52, %v361_v20  ;;  %v97_v60 = vadd.f32 %v258_v56, %v86_v55 }
 0x135   :  { %v77_v57 = vmul.f32 %v303_v53, %v355_v13 }
 0x136   :  { %v87_v58 = vmul.f32 %v257_v51, %v76_v54 }
 0x137   :  { %v305_v59 = vpop.eup %304  ;;  %v88_v63 = vmul.f32 %v257_v51, %v77_v57 }
 0x138   :  { %v98_v61 = vadd.f32 %v258_v56, %v87_v58  ;;  %v78_v62 = vmul.f32 %v305_v59, %v363_v21 }
 0x139   :  { %v99_v2 = vadd.f32 %v258_v56, %v88_v63 }
 0x13a   :  { %v101_v0 = vpack.c.bf16 %v98_v61, %v97_v60  ;;  %v89_v1 = vmul.f32 %v257_v51, %v78_v62 }
 0x13c   :  { %267 = vmatmul.mubr.msk.bf16.vlgmr.msra.gmra.mxu0 %vm25_vm0, %v101_v0  ;;  %v100_v3 = vadd.f32 %v258_v56, %v89_v1 }
 0x13e   :  { %v102_v4 = vpack.c.bf16 %v100_v3, %v99_v2 }
 0x140   :  { %268 = vmatmul.mubr.msk.bf16.vlgmr.msra.gmra.mxu1 %vm25_vm0, %v102_v4 }
 0x1fc   :  { %v203_v12 = vpop.f32.mrf.mxu0 }
 0x1fd   :  { %v204_v14 = vadd.f32 %v203_v12, %v116_v10 }
 0x1fe   :  { %v205_v13 = vpop.f32.mrf.mxu0 }
 0x1ff   :  { %v206_v15 = vadd.f32 %v205_v13, %v120_v11 }
 0x200   :  { %v207_v17 = vpop.f32.mrf.mxu0  ;;  %v213_v18 = vpop.f32.mrf.mxu1 }
 0x201   :  { %v273_v19 = vpack.c.bf16 %v206_v15, %v204_v14  ;;  %v208_v22 = vadd.f32 %v207_v17, %v116_v10  ;;  %v214_v23 = vadd.f32 %v213_v18, %v116_v10 }
 0x202   :  { %v209_v20 = vpop.f32.mrf.mxu0  ;;  %v215_v21 = vpop.f32.mrf.mxu1 }
 0x203   :  { %249 = vst.msk [vmem:[%s441_s5] sm:$0xff] %vm412_vm3, %v273_v19  ;;  %v210_v24 = vadd.f32 %v209_v20, %v120_v11  ;;  %v216_v25 = vadd.f32 %v215_v21, %v120_v11 }
 0x204   :  { %v217_v26 = vpop.f32.mrf.mxu1 }
 0x205   :  { %v274_v27 = vpack.c.bf16 %v210_v24, %v208_v22  ;;  %v275_v28 = vpack.c.bf16 %v216_v25, %v214_v23  ;;  %v218_v30 = vadd.f32 %v217_v26, %v116_v10 }
 0x206   :  { %v219_v29 = vpop.f32.mrf.mxu1 }
 0x207   :  { %250 = vst.msk [vmem:[%s441_s5 + $0x8] sm:$0xff] %vm412_vm3, %v274_v27  ;;  %251 = vst.msk [vmem:[%s441_s5 + $0x10] sm:$0xff] %vm412_vm3, %v275_v28  ;;  %v220_v31 = vadd.f32 %v219_v29, %v120_v11 }
 0x209   :  { %v276_v32 = vpack.c.bf16 %v220_v31, %v218_v30 }
 0x20b   :  { %252 = vst.msk [vmem:[%s441_s5 + $0x18] sm:$0xff] %vm412_vm3, %v276_v32 }

// kernel: model_forward.28
= control target key start
LH: loop header
LB: loop body
LE: loop exit
PB: predicated region body
PF: predicated region fallthrough
CT: control target
= control target key end

     0   :  { %v1623_v3 = vmov 0.0   ;;  %vm1624_vm0 = vmmov 0   ;;  %s1625_s23 = smov 64   ;;  %vm37_vm1 = vcmask 130048   ;;  %s1626_s27 = smov 48   ;;  %vm1332_vm2 = vcmask 523264   ;;  %s1956_s0 = inlined_call_operand.vmem [shape: bf16[2,16,192], index: 0, kind: input, shape index: {}]   ;;  %s1957_s1 = inlined_call_operand.vmem [shape: f32[4,16,16], index: 1, kind: input, shape index: {}]   ;;  %s1958_s2 = inlined_call_operand.vmem [shape: bf16[64,64], index: 2, kind: input, shape index: {}]   ;;  %s1959_s3 = inlined_call_operand.vmem [shape: f32[1,64], index: 3, kind: input, shape index: {}]   ;;  %s1960_s4 = inlined_call_operand.vmem [shape: f32[2,16,64], index: 4, kind: output, shape index: {}]  }
   0x1   :  { %v1660_v0 = vld [vmem:[%s1956_s0] sm:$0xff]  ;;  %v1665_v1 = vld [vmem:[%s1956_s0 + $0x8] sm:$0xff]  ;;  %v1670_v2 = vld [vmem:[%s1956_s0 + $0x10] sm:$0xff]  ;;  %1424 = vmatprep.subr.bf16.mxu0 %v1623_v3  ;;  %1430 = vmatprep.subr.bf16.mxu1 %v1623_v3  ;;  %s1627_s28 = smov 112   ;;  %s1628_s7 = smov 32  }
   0x2   :  { %v1676_v4 = vcombine.low %v1660_v0, %v1665_v1  ;;  %v1681_v5 = vld [vmem:[%s1956_s0 + $0x18] sm:$0xff]  ;;  %1426 = vmatprep.mubr.msk.bf16.mxu0 %vm1624_vm0, %v1623_v3  ;;  %1432 = vmatprep.mubr.msk.bf16.mxu1 %vm1624_vm0, %v1623_v3  ;;  %v22_v11 = vld [vmem:[%s1957_s1] sm:$0xff]  ;;  %v23_v15 = vld [vmem:[%s1957_s1 + $0x8] sm:$0xff]  ;;  %v185_v49 = vrot.slane %v1660_v0, 4  ;;  %v186_v50 = vrot.slane %v1665_v1, 4  ;;  %v235_v51 = vrot.slane %v1670_v2, 4 }
   0x3   :  { %v1690_v6 = vcombine.low %v1670_v2, %v1681_v5  ;;  %v236_v52 = vrot.slane %v1681_v5, 4  ;;  %s1629_s8 = smov 96   ;;  %s1630_s17 = smov 16  }
   0x4   :  { %35 = vrot.lane.b32.xlu0 %v1676_v4, %s1625_s23  ;;  %v1345_v53 = vcombine.low %v185_v49, %v186_v50  ;;  %s1631_s18 = smov 80  }
   0x5   :  { %v1347_v54 = vcombine.low %v235_v51, %v236_v52 }
   0x8   :  { %90 = vrot.lane.b32.xlu0 %v1690_v6, %s1625_s23 }
  0x76   :  { %v36_v7 = vpop.permute.xlu0 %35 }
  0x77   :  { %v42_v8 = vsel %vm37_vm1, %v36_v7, 0 }
  0x78   :  { %1425 = vmatpush3.bf16.xpose.msra.mxu0 %v42_v8 }
  0x79   :  { %1436 = vmatprep.subr.bf16.mxu0 %v1623_v3 }
  0x7a   :  { %v91_v9 = vpop.permute.xlu0 %90 }
  0x7b   :  { %v96_v10 = vsel %vm37_vm1, %v91_v9, 0 }
  0x7c   :  { %1431 = vmatpush3.bf16.xpose.msra.mxu1 %v96_v10 }
  0x7d   :  { %1442 = vmatprep.subr.bf16.mxu1 %v1623_v3 }
  0x7f   :  { %1427 = vmatmul.mubr.msk.bf16.vlgmr.msra.gmra.mxu0 %vm37_vm1, %v1676_v4 }
  0x80   :  { %1438 = vmatprep.mubr.msk.bf16.mxu0 %vm1624_vm0, %v1623_v3  ;;  %1437 = vmatpush3.bf16.msra.mxu0 %v1345_v53 }
  0x81   :  { %1448 = vmatprep.subr.bf16.mxu0 %v1623_v3 }
  0x83   :  { %1433 = vmatmul.mubr.msk.bf16.vlgmr.msra.gmra.mxu1 %vm37_vm1, %v1690_v6 }
  0x84   :  { %1444 = vmatprep.mubr.msk.bf16.mxu1 %vm1624_vm0, %v1623_v3  ;;  %1443 = vmatpush3.bf16.msra.mxu1 %v1347_v54 }
  0x85   :  { %1454 = vmatprep.subr.bf16.mxu1 %v1623_v3 }
 0x13f   :  { %v78_v12 = vpop.f32.mrf.mxu0 }
 0x140   :  { %v79_v13 = vadd.f32 %v78_v12, %v22_v11 }
 0x141   :  { %v1428_v14 = vpop.f32.mrf.mxu0 }
 0x142   :  { %v139_v16 = vsel %vm37_vm1, %v79_v13, -inf }
 0x143   :  { %140 = vmax.xlane.f32.xlu1 %v139_v16  ;;  %v81_v17 = vpop.f32.mrf.mxu0  ;;  %v132_v18 = vpop.f32.mrf.mxu1 }
 0x144   :  { %v82_v19 = vadd.f32 %v81_v17, %v23_v15  ;;  %v133_v20 = vadd.f32 %v132_v18, %v22_v11 }
 0x145   :  { %v1429_v21 = vpop.f32.mrf.mxu0  ;;  %v1434_v22 = vpop.f32.mrf.mxu1 }
 0x146   :  { %v142_v23 = vsel %vm37_vm1, %v82_v19, -inf  ;;  %v145_v24 = vsel %vm37_vm1, %v133_v20, -inf }
 0x147   :  { %143 = vmax.xlane.f32.xlu1 %v142_v23  ;;  %146 = vmax.xlane.f32.xlu0 %v145_v24  ;;  %v135_v25 = vpop.f32.mrf.mxu1 }
 0x148   :  { %v136_v26 = vadd.f32 %v135_v25, %v23_v15  ;;  %v24_v25 = vld [vmem:[%s1957_s1 + $0x10] sm:$0xff] }
 0x149   :  { %v1435_v27 = vpop.f32.mrf.mxu1 }
 0x14a   :  { %v148_v28 = vsel %vm37_vm1, %v136_v26, -inf }
 0x14b   :  { %149 = vmax.xlane.f32.xlu1 %v148_v28 }
 0x15c   :  { %291 = vrot.lane.b32.xlu1 %v1676_v4, %s1626_s27 }
 0x15d   :  { %342 = vrot.lane.b32.xlu0 %v1690_v6, %s1626_s27 }
 0x1cc   :  { %v141_v29 = vpop.xlane.xlu1 %140 }
 0x1cd   :  { %v151_v30 = vsub.f32 %v79_v13, %v141_v29 }
 0x1cf   :  { %v155_v31 = vmul.f32 1.442695, %v151_v30 }
 0x1d0   :  { %v144_v32 = vpop.xlane.xlu1 %143  ;;  %v147_v33 = vpop.xlane.xlu0 %146 }
 0x1d1   :  { %1559 = vpow2.f32 %v155_v31  ;;  %v152_v34 = vsub.f32 %v82_v19, %v144_v32  ;;  %v153_v35 = vsub.f32 %v133_v20, %v147_v33  ;;  %v25_v32 = vld [vmem:[%s1957_s1 + $0x18] sm:$0xff] }
 0x1d3   :  { %v159_v36 = vmul.f32 1.442695, %v153_v35  ;;  %v157_v37 = vmul.f32 1.442695, %v152_v34 }
 0x1d4   :  { %v150_v38 = vpop.xlane.xlu1 %149  ;;  %v343_v10 = vpop.permute.xlu0 %342 }
 0x1d5   :  { %v154_v39 = vsub.f32 %v136_v26, %v150_v38  ;;  %1561 = vpow2.f32 %v159_v36  ;;  %v348_v14 = vsel %vm37_vm1, %v343_v10, 0 }
 0x1d6   :  { %1563 = vpow2.f32 %v157_v37 }
 0x1d7   :  { %v161_v40 = vmul.f32 1.442695, %v154_v39 }
 0x1d8   :  { %v292_v55 = vpop.permute.xlu1 %291 }
 0x1d9   :  { %1565 = vpow2.f32 %v161_v40  ;;  %v297_v11 = vsel %vm37_vm1, %v292_v55, 0 }
 0x1de   :  { %v1560_v41 = vpop.eup %1559 }
 0x1df   :  { %v163_v42 = vsel %vm37_vm1, %v1560_v41, 0.0 }
 0x1e0   :  { %164 = vadd.xlane.f32.xlu1 %v163_v42 }
 0x1e2   :  { %v1562_v43 = vpop.eup %1561 }
 0x1e3   :  { %v169_v44 = vsel %vm37_vm1, %v1562_v43, 0.0  ;;  %v1564_v45 = vpop.eup %1563 }
 0x1e4   :  { %170 = vadd.xlane.f32.xlu1 %v169_v44  ;;  %v166_v46 = vsel %vm37_vm1, %v1564_v45, 0.0 }
 0x1e6   :  { %v1566_v47 = vpop.eup %1565 }
 0x1e7   :  { %v172_v48 = vsel %vm37_vm1, %v1566_v47, 0.0 }
 0x1e8   :  { %167 = vadd.xlane.f32.xlu1 %v166_v46 }
 0x1ec   :  { %173 = vadd.xlane.f32.xlu1 %v172_v48 }
 0x1fd   :  { %289 = vrot.lane.b32.xlu1 %v1676_v4, %s1627_s28 }
 0x201   :  { %340 = vrot.lane.b32.xlu1 %v1690_v6, %s1627_s28 }
 0x269   :  { %v165_v56 = vpop.xlane.xlu1 %164 }
 0x26a   :  { %1567 = vrcp.f32 %v165_v56 }
 0x26d   :  { %v171_v57 = vpop.xlane.xlu1 %170 }
 0x271   :  { %v168_v58 = vpop.xlane.xlu1 %167 }
 0x272   :  { %1569 = vrcp.f32 %v168_v58 }
 0x273   :  { %1571 = vrcp.f32 %v171_v57 }
 0x275   :  { %v174_v59 = vpop.xlane.xlu1 %173 }
 0x276   :  { %1573 = vrcp.f32 %v174_v59 }
 0x277   :  { %v1568_v60 = vpop.eup %1567 }
 0x278   :  { %v179_v62 = vmul.f32 %v1568_v60, %v1560_v41 }
 0x279   :  { %v290_v16 = vpop.permute.xlu1 %289 }
 0x27d   :  { %v341_v17 = vpop.permute.xlu1 %340 }
 0x27f   :  { %v1570_v61 = vpop.eup %1569 }
 0x280   :  { %v180_v63 = vmul.f32 %v1570_v61, %v1564_v45  ;;  %v1572_v7 = vpop.eup %1571 }
 0x281   :  { %v181_v12 = vmul.f32 %v1572_v7, %v1562_v43 }
 0x282   :  { %v183_v8 = vpack.c.bf16 %v180_v63, %v179_v62 }
 0x283   :  { %v1574_v9 = vpop.eup %1573 }
 0x284   :  { %1439 = vmatmul.mubr.msk.bf16.vlgmr.msra.gmra.mxu0 %vm37_vm1, %v183_v8  ;;  %v182_v13 = vmul.f32 %v1574_v9, %v1566_v47 }
 0x285   :  { %1449 = vmatpush3.bf16.xpose.msra.mxu0 %v297_v11  ;;  %1450 = vmatprep.mubr.msk.bf16.mxu0 %vm1624_vm0, %v1623_v3 }
 0x286   :  { %v184_v15 = vpack.c.bf16 %v182_v13, %v181_v12  ;;  %1460 = vmatprep.subr.bf16.mxu0 %v1623_v3 }
 0x288   :  { %1445 = vmatmul.mubr.msk.bf16.vlgmr.msra.gmra.mxu1 %vm37_vm1, %v184_v15 }
 0x289   :  { %1455 = vmatpush3.bf16.xpose.msra.mxu1 %v348_v14  ;;  %1456 = vmatprep.mubr.msk.bf16.mxu1 %vm1624_vm0, %v1623_v3 }
 0x28a   :  { %1466 = vmatprep.subr.bf16.mxu1 %v1623_v3 }
 0x28c   :  { %1451 = vmatmul.mubr.msk.bf16.vlgmr.msra.gmra.mxu0 %vm37_vm1, %v290_v16 }
 0x28d   :  { %1462 = vmatprep.mubr.msk.bf16.mxu0 %vm1624_vm0, %v1623_v3 }
 0x290   :  { %1457 = vmatmul.mubr.msk.bf16.vlgmr.msra.gmra.mxu1 %vm37_vm1, %v341_v17 }
 0x291   :  { %1468 = vmatprep.mubr.msk.bf16.mxu1 %vm1624_vm0, %v1623_v3 }
 0x344   :  { %v1747_v18 = vpop.f32.mrf.mxu0 }
 0x346   :  { %v1440_v19 = vpop.f32.mrf.mxu0 }
 0x348   :  { %v1749_v20 = vpop.f32.mrf.mxu0  ;;  %v1751_v21 = vpop.f32.mrf.mxu1 }
 0x349   :  { %v285_v22 = vpack.c.bf16 %v1749_v20, %v1747_v18 }
 0x34a   :  { %v1441_v23 = vpop.f32.mrf.mxu0  ;;  %v1446_v24 = vpop.f32.mrf.mxu1 }
 0x34c   :  { %v1758_v26 = vpop.f32.mrf.mxu1  ;;  %v333_v27 = vpop.f32.mrf.mxu0 }
 0x34d   :  { %v286_v28 = vpack.c.bf16 %v1758_v26, %v1751_v21  ;;  %v334_v29 = vadd.f32 %v333_v27, %v24_v25  ;;  %v1555_v27 = vld [vmem:[%s1958_s2] sm:$0xff]  }
 0x34e   :  { %v1447_v30 = vpop.f32.mrf.mxu1  ;;  %v1452_v31 = vpop.f32.mrf.mxu0 }
 0x34f   :  { %v391_v33 = vsel %vm37_vm1, %v334_v29, -inf }
 0x350   :  { %392 = vmax.xlane.f32.xlu1 %v391_v33  ;;  %v336_v34 = vpop.f32.mrf.mxu0  ;;  %v384_v35 = vpop.f32.mrf.mxu1 }
 0x351   :  { %v337_v36 = vadd.f32 %v336_v34, %v25_v32  ;;  %v385_v37 = vadd.f32 %v384_v35, %v24_v25 }
 0x352   :  { %v1453_v38 = vpop.f32.mrf.mxu0  ;;  %v1458_v39 = vpop.f32.mrf.mxu1 }
 0x353   :  { %v394_v40 = vsel %vm37_vm1, %v337_v36, -inf  ;;  %v397_v41 = vsel %vm37_vm1, %v385_v37, -inf }
 0x354   :  { %395 = vmax.xlane.f32.xlu0 %v394_v40  ;;  %398 = vmax.xlane.f32.xlu1 %v397_v41  ;;  %v387_v42 = vpop.f32.mrf.mxu1  ;;  %v1556_v40 = vld [vmem:[%s1958_s2 + $0x8] sm:$0xff]  }
 0x355   :  { %v388_v43 = vadd.f32 %v387_v42, %v25_v32 }
 0x356   :  { %v1459_v44 = vpop.f32.mrf.mxu1 }
 0x357   :  { %v400_v45 = vsel %vm37_vm1, %v388_v43, -inf }
 0x358   :  { %401 = vmax.xlane.f32.xlu0 %v400_v45 }
 0x365   :  { %437 = vrot.lane.b32.xlu1 %v1660_v0, %s1627_s28 }
 0x3d9   :  { %v393_v46 = vpop.xlane.xlu1 %392 }
 0x3da   :  { %v403_v47 = vsub.f32 %v334_v29, %v393_v46 }
 0x3dc   :  { %v407_v48 = vmul.f32 1.442695, %v403_v47 }
 0x3dd   :  { %v396_v49 = vpop.xlane.xlu0 %395  ;;  %v399_v50 = vpop.xlane.xlu1 %398 }
 0x3de   :  { %1575 = vpow2.f32 %v407_v48  ;;  %v404_v51 = vsub.f32 %v337_v36, %v396_v49  ;;  %v405_v52 = vsub.f32 %v385_v37, %v399_v50 }
 0x3e0   :  { %v409_v53 = vmul.f32 1.442695, %v404_v51  ;;  %v411_v54 = vmul.f32 1.442695, %v405_v52 }
 0x3e1   :  { %v402_v55 = vpop.xlane.xlu0 %401  ;;  %v438_v9 = vpop.permute.xlu1 %437 }
 0x3e2   :  { %1577 = vpow2.f32 %v409_v53  ;;  %v406_v56 = vsub.f32 %v388_v43, %v402_v55  ;;  %v441_v17 = vrot.slane %v438_v9, 4 }
 0x3e3   :  { %1579 = vpow2.f32 %v411_v54 }
 0x3e4   :  { %v413_v57 = vmul.f32 1.442695, %v406_v56 }
 0x3e6   :  { %1581 = vpow2.f32 %v413_v57 }
 0x3eb   :  { %v1576_v58 = vpop.eup %1575 }
 0x3ec   :  { %v415_v59 = vsel %vm37_vm1, %v1576_v58, 0.0 }
 0x3ed   :  { %416 = vadd.xlane.f32.xlu1 %v415_v59 }
 0x3ef   :  { %v1578_v60 = vpop.eup %1577 }
 0x3f0   :  { %v1580_v61 = vpop.eup %1579  ;;  %v418_v62 = vsel %vm37_vm1, %v1578_v60, 0.0 }
 0x3f1   :  { %v421_v63 = vsel %vm37_vm1, %v1580_v61, 0.0  ;;  %419 = vadd.xlane.f32.xlu0 %v418_v62 }
 0x3f2   :  { %422 = vadd.xlane.f32.xlu1 %v421_v63  ;;  %v26_v63 = vld [vmem:[%s1957_s1 + $0x20] sm:$0xff] }
 0x3f3   :  { %v1582_v7 = vpop.eup %1581 }
 0x3f4   :  { %v424_v8 = vsel %vm37_vm1, %v1582_v7, 0.0 }
 0x3f5   :  { %425 = vadd.xlane.f32.xlu0 %v424_v8 }
 0x403   :  { %491 = vrot.lane.b32.xlu1 %v1670_v2, %s1627_s28 }
 0x407   :  { %493 = vrot.lane.b32.xlu1 %v1681_v5, %s1627_s28 }
 0x40b   :  { %439 = vrot.lane.b32.xlu0 %v1665_v1, %s1627_s28  ;;  %724 = vrot.lane.b32.xlu1 %v1690_v6, %s1628_s7 }
 0x40f   :  { %673 = vrot.lane.b32.xlu0 %v1676_v4, %s1628_s7  ;;  %722 = vrot.lane.b32.xlu1 %v1690_v6, %s1629_s8 }
 0x413   :  { %671 = vrot.lane.b32.xlu0 %v1676_v4, %s1629_s8 }
 0x476   :  { %v417_v10 = vpop.xlane.xlu1 %416 }
 0x477   :  { %1583 = vrcp.f32 %v417_v10 }
 0x47a   :  { %v420_v11 = vpop.xlane.xlu0 %419 }
 0x47b   :  { %v423_v12 = vpop.xlane.xlu1 %422  ;;  %1585 = vrcp.f32 %v420_v11  ;;  %v27_v11 = vld [vmem:[%s1957_s1 + $0x28] sm:$0xff] }
 0x47c   :  { %1587 = vrcp.f32 %v423_v12 }
 0x47e   :  { %v426_v13 = vpop.xlane.xlu0 %425 }
 0x47f   :  { %v492_v14 = vpop.permute.xlu1 %491  ;;  %1589 = vrcp.f32 %v426_v13 }
 0x480   :  { %v495_v15 = vrot.slane %v492_v14, 4 }
 0x482   :  { %v440_v16 = vpop.permute.xlu0 %439 }
 0x483   :  { %v494_v19 = vpop.permute.xlu1 %493  ;;  %v442_v23 = vrot.slane %v440_v16, 4 }
 0x484   :  { %v496_v24 = vrot.slane %v494_v19, 4  ;;  %v1584_v29 = vpop.eup %1583 }
 0x485   :  { %v1351_v25 = vcombine.low %v441_v17, %v442_v23  ;;  %v431_v32 = vmul.f32 %v1584_v29, %v1576_v58 }
 0x486   :  { %v1353_v30 = vcombine.low %v495_v15, %v496_v24  ;;  %v674_v43 = vpop.permute.xlu0 %673 }
 0x487   :  { %1461 = vmatpush3.bf16.msra.mxu0 %v1351_v25  ;;  %v725_v18 = vpop.permute.xlu1 %724  ;;  %v679_v48 = vsel %vm37_vm1, %v674_v43, 0 }
 0x488   :  { %v1586_v31 = vpop.eup %1585  ;;  %1467 = vmatpush3.bf16.msra.mxu1 %v1353_v30  ;;  %1472 = vmatprep.subr.bf16.mxu0 %v1556_v40  ;;  %v730_v20 = vsel %vm37_vm1, %v725_v18, 0 }
 0x489   :  { %v432_v33 = vmul.f32 %v1586_v31, %v1578_v60  ;;  %1478 = vmatprep.subr.bf16.mxu1 %v1555_v27  ;;  %v1588_v34 = vpop.eup %1587 }
 0x48a   :  { %v433_v37 = vmul.f32 %v1588_v34, %v1580_v61  ;;  %v672_v50 = vpop.permute.xlu0 %671 }
 0x48b   :  { %v435_v35 = vpack.c.bf16 %v432_v33, %v431_v32  ;;  %v723_v21 = vpop.permute.xlu1 %722 }
 0x48c   :  { %v1590_v36 = vpop.eup %1589 }
 0x48d   :  { %1463 = vmatmul.mubr.msk.bf16.vlgmr.msra.gmra.mxu0 %vm37_vm1, %v435_v35  ;;  %v434_v38 = vmul.f32 %v1590_v36, %v1582_v7 }
 0x48e   :  { %1473 = vmatpush3.bf16.msra.mxu0 %v1556_v40 }
 0x48f   :  { %v436_v39 = vpack.c.bf16 %v434_v38, %v433_v37  ;;  %1484 = vmatprep.subr.bf16.mxu0 %v1623_v3 }
 0x491   :  { %1469 = vmatmul.mubr.msk.bf16.vlgmr.msra.gmra.mxu1 %vm37_vm1, %v436_v39 }
 0x492   :  { %1480 = vmatprep.mubr.msk.bf16.mxu1 %vm37_vm1, %v285_v22  ;;  %1479 = vmatpush3.bf16.msra.mxu1 %v1555_v27 }
 0x493   :  { %1490 = vmatprep.subr.bf16.mxu1 %v1623_v3 }
 0x499   :  { %1481 = vmatmul.mubr.msk.bf16.vlgmr.msra.gmra.mxu1 %vm37_vm1, %v286_v28 }
 0x49a   :  { %1492 = vmatprep.mubr.msk.bf16.mxu1 %vm1624_vm0, %v1623_v3  ;;  %1491 = vmatpush3.bf16.xpose.msra.mxu1 %v730_v20 }
 0x49b   :  { %1502 = vmatprep.subr.bf16.mxu1 %v1623_v3 }
 0x4a1   :  { %1493 = vmatmul.mubr.msk.bf16.vlgmr.msra.gmra.mxu1 %vm37_vm1, %v723_v21 }
 0x4a2   :  { %1504 = vmatprep.mubr.msk.bf16.mxu1 %vm1624_vm0, %v1623_v3 }
 0x54d   :  { %v484_v22 = vpop.f32.mrf.mxu0 }
 0x54f   :  { %v1464_v26 = vpop.f32.mrf.mxu0 }
 0x551   :  { %v487_v28 = vpop.f32.mrf.mxu0  ;;  %v538_v41 = vpop.f32.mrf.mxu1 }
 0x552   :  { %v545_v42 = vpack.c.bf16 %v487_v28, %v484_v22 }
 0x553   :  { %v1465_v44 = vpop.f32.mrf.mxu0  ;;  %v1470_v45 = vpop.f32.mrf.mxu1 }
 0x554   :  { %1474 = vmatprep.mubr.msk.bf16.mxu0 %vm37_vm1, %v545_v42 }
 0x555   :  { %v541_v46 = vpop.f32.mrf.mxu1 }
 0x556   :  { %v546_v47 = vpack.c.bf16 %v541_v46, %v538_v41 }
 0x557   :  { %v1471_v49 = vpop.f32.mrf.mxu1 }
 0x558   :  { %1475 = vmatmul.mubr.msk.bf16.vlgmr.msra.gmra.mxu0 %vm37_vm1, %v546_v47 }
 0x559   :  { %1485 = vmatpush3.bf16.xpose.msra.mxu0 %v679_v48  ;;  %1486 = vmatprep.mubr.msk.bf16.mxu0 %vm1624_vm0, %v1623_v3  ;;  %v1821_v51 = vpop.f32.mrf.mxu1 }
 0x55a   :  { %1496 = vmatprep.subr.bf16.mxu0 %v1623_v3 }
 0x55b   :  { %v1823_v52 = vpop.f32.mrf.mxu1 }
 0x55d   :  { %v1825_v53 = vpop.f32.mrf.mxu1 }
 0x55f   :  { %v1827_v54 = vpop.f32.mrf.mxu1 }
 0x560   :  { %1487 = vmatmul.mubr.msk.bf16.vlgmr.msra.gmra.mxu0 %vm37_vm1, %v672_v50 }
 0x561   :  { %1498 = vmatprep.mubr.msk.bf16.mxu0 %vm1624_vm0, %v1623_v3  ;;  %v766_v55 = vpop.f32.mrf.mxu1 }
 0x562   :  { %v767_v8 = vadd.f32 %v766_v55, %v26_v63 }
 0x563   :  { %v1494_v56 = vpop.f32.mrf.mxu1 }
 0x564   :  { %v779_v15 = vsel %vm37_vm1, %v767_v8, -inf }
 0x565   :  { %v769_v57 = vpop.f32.mrf.mxu1 }
 0x566   :  { %v770_v17 = vadd.f32 %v769_v57, %v27_v11 }
 0x567   :  { %v1495_v58 = vpop.f32.mrf.mxu1 }
 0x568   :  { %v782_v23 = vsel %vm37_vm1, %v770_v17, -inf }
 0x618   :  { %v1829_v59 = vpop.f32.mrf.mxu0 }
 0x61a   :  { %v1831_v60 = vpop.f32.mrf.mxu0 }
 0x61c   :  { %v1833_v61 = vpop.f32.mrf.mxu0 }
 0x61e   :  { %v1835_v62 = vpop.f32.mrf.mxu0 }
 0x620   :  { %v715_v7 = vpop.f32.mrf.mxu0 }
 0x621   :  { %v716_v9 = vadd.f32 %v715_v7, %v26_v63 }
 0x622   :  { %v1488_v10 = vpop.f32.mrf.mxu0 }
 0x623   :  { %v773_v12 = vsel %vm37_vm1, %v716_v9, -inf }
 0x624   :  { %774 = vmax.xlane.f32.xlu0 %v773_v12  ;;  %v718_v13 = vpop.f32.mrf.mxu0 }
 0x625   :  { %v719_v14 = vadd.f32 %v718_v13, %v27_v11 }
 0x626   :  { %v1489_v16 = vpop.f32.mrf.mxu0 }
 0x627   :  { %v776_v19 = vsel %vm37_vm1, %v719_v14, -inf  ;;  %v1557_v16 = vld [vmem:[%s1958_s2 + $0x10] sm:$0xff]  }
 0x628   :  { %777 = vmax.xlane.f32.xlu1 %v776_v19  ;;  %780 = vmax.xlane.f32.xlu0 %v779_v15 }
 0x62c   :  { %783 = vmax.xlane.f32.xlu0 %v782_v23 }
 0x6ad   :  { %v775_v24 = vpop.xlane.xlu0 %774 }
 0x6ae   :  { %v785_v20 = vsub.f32 %v716_v9, %v775_v24 }
 0x6b0   :  { %v789_v21 = vmul.f32 1.442695, %v785_v20 }
 0x6b1   :  { %v778_v25 = vpop.xlane.xlu1 %777  ;;  %v781_v27 = vpop.xlane.xlu0 %780 }
 0x6b2   :  { %v787_v29 = vsub.f32 %v767_v8, %v781_v27  ;;  %v786_v30 = vsub.f32 %v719_v14, %v778_v25 }
 0x6b4   :  { %v793_v31 = vmul.f32 1.442695, %v787_v29  ;;  %v791_v34 = vmul.f32 1.442695, %v786_v30  ;;  %v28_v29 = vld [vmem:[%s1957_s1 + $0x30] sm:$0xff] }
 0x6b5   :  { %v784_v32 = vpop.xlane.xlu0 %783 }
 0x6b6   :  { %v788_v33 = vsub.f32 %v770_v17, %v784_v32  ;;  %1591 = vpow2.f32 %v793_v31 }
 0x6b8   :  { %v795_v35 = vmul.f32 1.442695, %v788_v33 }
 0x6ba   :  { %1593 = vpow2.f32 %v795_v35 }
 0x6bb   :  { %1595 = vpow2.f32 %v791_v34 }
 0x6bc   :  { %1597 = vpow2.f32 %v789_v21 }
 0x6c3   :  { %v1592_v36 = vpop.eup %1591 }
 0x6c4   :  { %v803_v37 = vsel %vm37_vm1, %v1592_v36, 0.0 }
 0x6c5   :  { %804 = vadd.xlane.f32.xlu1 %v803_v37 }
 0x6c7   :  { %v1594_v38 = vpop.eup %1593 }
 0x6c8   :  { %v806_v39 = vsel %vm37_vm1, %v1594_v38, 0.0  ;;  %v1596_v40 = vpop.eup %1595 }
 0x6c9   :  { %807 = vadd.xlane.f32.xlu0 %v806_v39  ;;  %v800_v18 = vsel %vm37_vm1, %v1596_v40, 0.0  ;;  %v1598_v22 = vpop.eup %1597  ;;  %v29_v39 = vld [vmem:[%s1957_s1 + $0x38] sm:$0xff] }
 0x6ca   :  { %v797_v26 = vsel %vm37_vm1, %v1598_v22, 0.0 }
 0x6cd   :  { %801 = vadd.xlane.f32.xlu0 %v800_v18 }
 0x6d6   :  { %819 = vrot.lane.b32.xlu1 %v1660_v0, %s1629_s8 }
 0x6e3   :  { %821 = vrot.lane.b32.xlu0 %v1665_v1, %s1629_s8 }
 0x6e7   :  { %998 = vrot.lane.b32.xlu0 %v1676_v4, %s1630_s17 }
 0x6eb   :  { %996 = vrot.lane.b32.xlu0 %v1676_v4, %s1631_s18 }
 0x6fa   :  { %798 = vadd.xlane.f32.xlu1 %v797_v26 }
 0x70b   :  { %873 = vrot.lane.b32.xlu1 %v1670_v2, %s1629_s8 }
 0x70f   :  { %875 = vrot.lane.b32.xlu1 %v1681_v5, %s1629_s8 }
 0x713   :  { %1049 = vrot.lane.b32.xlu1 %v1690_v6, %s1630_s17 }
 0x717   :  { %1047 = vrot.lane.b32.xlu1 %v1690_v6, %s1631_s18 }
 0x74e   :  { %v805_v28 = vpop.xlane.xlu1 %804 }
 0x752   :  { %v808_v41 = vpop.xlane.xlu0 %807  ;;  %v820_v43 = vpop.permute.xlu1 %819 }
 0x753   :  { %v823_v44 = vrot.slane %v820_v43, 4  ;;  %1599 = vrcp.f32 %v808_v41 }
 0x754   :  { %1601 = vrcp.f32 %v805_v28 }
 0x756   :  { %v802_v42 = vpop.xlane.xlu0 %801 }
 0x757   :  { %1603 = vrcp.f32 %v802_v42 }
 0x75a   :  { %v822_v4 = vpop.permute.xlu0 %821 }
 0x75b   :  { %v824_v45 = vrot.slane %v822_v4, 4 }
 0x75d   :  { %v1363_v46 = vcombine.low %v823_v44, %v824_v45 }
 0x75e   :  { %v999_v63 = vpop.permute.xlu0 %998 }
 0x75f   :  { %1497 = vmatpush3.bf16.msra.mxu0 %v1363_v46  ;;  %v1004_v10 = vsel %vm37_vm1, %v999_v63, 0  ;;  %v665_v46 = vadd.f32 %v1821_v51, %v1829_v59 }
 0x760   :  { %v1600_v49 = vpop.eup %1599  ;;  %1508 = vmatprep.subr.bf16.mxu0 %v1557_v16 }
 0x761   :  { %v1602_v56 = vpop.eup %1601  ;;  %v816_v57 = vmul.f32 %v1600_v49, %v1594_v38 }
 0x762   :  { %v815_v8 = vmul.f32 %v1602_v56, %v1592_v36  ;;  %v997_v15 = vpop.permute.xlu0 %996 }
 0x764   :  { %v1604_v7 = vpop.eup %1603  ;;  %v818_v11 = vpack.c.bf16 %v816_v57, %v815_v8 }
 0x765   :  { %v814_v13 = vmul.f32 %v1604_v7, %v1596_v40 }
 0x783   :  { %v799_v47 = vpop.xlane.xlu1 %798 }
 0x784   :  { %1605 = vrcp.f32 %v799_v47 }
 0x787   :  { %v874_v48 = vpop.permute.xlu1 %873 }
 0x788   :  { %v877_v50 = vrot.slane %v874_v48, 4  ;;  %v657_v48 = vadd.f32 %v1823_v52, %v1831_v60 }
 0x78b   :  { %v876_v55 = vpop.permute.xlu1 %875 }
 0x78c   :  { %v878_v6 = vrot.slane %v876_v55, 4  ;;  %v668_v55 = vadd.f32 %v1825_v53, %v1833_v61 }
 0x78e   :  { %v1365_v58 = vcombine.low %v877_v50, %v878_v6  ;;  %v660_v6 = vadd.f32 %v1827_v54, %v1835_v62 }
 0x78f   :  { %v1050_v30 = vpop.permute.xlu1 %1049 }
 0x790   :  { %1503 = vmatpush3.bf16.msra.mxu1 %v1365_v58  ;;  %v1055_v37 = vsel %vm37_vm1, %v1050_v30, 0 }
 0x791   :  { %v1606_v9 = vpop.eup %1605  ;;  %1514 = vmatprep.subr.bf16.mxu1 %v1623_v3 }
 0x792   :  { %v813_v12 = vmul.f32 %v1606_v9, %v1598_v22 }
 0x793   :  { %1505 = vmatmul.mubr.msk.bf16.vlgmr.msra.gmra.mxu1 %vm37_vm1, %v818_v11  ;;  %v1048_v26 = vpop.permute.xlu1 %1047 }
 0x794   :  { %1515 = vmatpush3.bf16.xpose.msra.mxu1 %v1004_v10  ;;  %v817_v14 = vpack.c.bf16 %v814_v13, %v813_v12  ;;  %1516 = vmatprep.mubr.msk.bf16.mxu1 %vm1624_vm0, %v1623_v3 }
 0x795   :  { %1526 = vmatprep.subr.bf16.mxu1 %v1623_v3 }
 0x796   :  { %1499 = vmatmul.mubr.msk.bf16.vlgmr.msra.gmra.mxu0 %vm37_vm1, %v817_v14 }
 0x797   :  { %1509 = vmatpush3.bf16.msra.mxu0 %v1557_v16 }
 0x798   :  { %1520 = vmatprep.subr.bf16.mxu0 %v1623_v3 }
 0x79b   :  { %1517 = vmatmul.mubr.msk.bf16.vlgmr.msra.gmra.mxu1 %vm37_vm1, %v997_v15 }
 0x79c   :  { %1528 = vmatprep.mubr.msk.bf16.mxu1 %vm1624_vm0, %v1623_v3 }
 0x853   :  { %v920_v17 = vpop.f32.mrf.mxu1 }
 0x855   :  { %v1506_v19 = vpop.f32.mrf.mxu1 }
 0x856   :  { %v866_v23 = vpop.f32.mrf.mxu0 }
 0x857   :  { %v923_v24 = vpop.f32.mrf.mxu1 }
 0x858   :  { %v1500_v25 = vpop.f32.mrf.mxu0  ;;  %v928_v34 = vpack.c.bf16 %v923_v24, %v920_v17 }
 0x859   :  { %v1507_v27 = vpop.f32.mrf.mxu1 }
 0x85a   :  { %v869_v31 = vpop.f32.mrf.mxu0 }
 0x85b   :  { %v927_v32 = vpack.c.bf16 %v869_v31, %v866_v23  ;;  %v1040_v33 = vpop.f32.mrf.mxu1 }
 0x85c   :  { %v1041_v35 = vadd.f32 %v1040_v33, %v28_v29  ;;  %v1501_v36 = vpop.f32.mrf.mxu0 }
 0x85d   :  { %1510 = vmatprep.mubr.msk.bf16.mxu0 %vm37_vm1, %v927_v32  ;;  %v1518_v38 = vpop.f32.mrf.mxu1 }
 0x85e   :  { %1511 = vmatmul.mubr.msk.bf16.vlgmr.msra.gmra.mxu0 %vm37_vm1, %v928_v34  ;;  %v1098_v40 = vsel %vm37_vm1, %v1041_v35, -inf }
 0x85f   :  { %1521 = vmatpush3.bf16.xpose.msra.mxu0 %v1055_v37  ;;  %1099 = vmax.xlane.f32.xlu0 %v1098_v40  ;;  %v1043_v18 = vpop.f32.mrf.mxu1 }
 0x860   :  { %1522 = vmatprep.mubr.msk.bf16.mxu0 %vm1624_vm0, %v1623_v3  ;;  %v1044_v20 = vadd.f32 %v1043_v18, %v29_v39  ;;  %1532 = vmatprep.subr.bf16.mxu0 %v1623_v3 }
 0x861   :  { %v1519_v21 = vpop.f32.mrf.mxu1 }
 0x862   :  { %v1101_v22 = vsel %vm37_vm1, %v1044_v20, -inf }
 0x863   :  { %1102 = vmax.xlane.f32.xlu1 %v1101_v22 }
 0x866   :  { %1523 = vmatmul.mubr.msk.bf16.vlgmr.msra.gmra.mxu0 %vm37_vm1, %v1048_v26 }
 0x867   :  { %1534 = vmatprep.mubr.msk.bf16.mxu0 %vm1624_vm0, %v1623_v3 }
 0x8e8   :  { %v1100_v28 = vpop.xlane.xlu0 %1099 }
 0x8e9   :  { %v1110_v41 = vsub.f32 %v1041_v35, %v1100_v28  ;;  %v1558_v28 = vld [vmem:[%s1958_s2 + $0x18] sm:$0xff]  }
 0x8eb   :  { %v1114_v42 = vmul.f32 1.442695, %v1110_v41 }
 0x8ec   :  { %v1103_v44 = vpop.xlane.xlu1 %1102 }
 0x8ed   :  { %1607 = vpow2.f32 %v1114_v42  ;;  %v1111_v45 = vsub.f32 %v1044_v20, %v1103_v44 }
 0x8ef   :  { %v1116_v47 = vmul.f32 1.442695, %v1111_v45 }
 0x8f1   :  { %1609 = vpow2.f32 %v1116_v47 }
 0x8fa   :  { %v1896_v43 = vpop.eup %1607 }
 0x8fb   :  { %v1122_v4 = vsel %vm37_vm1, %v1896_v43, 0.0 }
 0x8fc   :  { %1123 = vadd.xlane.f32.xlu1 %v1122_v4 }
 0x8fe   :  { %v1610_v9 = vpop.eup %1609 }
 0x8ff   :  { %v1125_v54 = vsel %vm37_vm1, %v1610_v9, 0.0 }
 0x90d   :  { %1144 = vrot.lane.b32.xlu1 %v1660_v0, %s1631_s18 }
 0x91e   :  { %v1512_v3 = vpop.f32.mrf.mxu0 }
 0x91f   :  { %v1906_v49 = vadd.f32 %v1512_v3, %v665_v46 }
 0x920   :  { %v977_v50 = vpop.f32.mrf.mxu0 }
 0x921   :  { %v1910_v56 = vadd.f32 %v977_v50, %v657_v48 }
 0x922   :  { %v1513_v0 = vpop.f32.mrf.mxu0 }
 0x923   :  { %v1914_v57 = vadd.f32 %v1513_v0, %v668_v55  ;;  %v1379_v55 = vld [vmem:[%s1959_s3] ss:$0 sm:$0xff] }
 0x924   :  { %v980_v51 = vpop.f32.mrf.mxu0 }
 0x925   :  { %v1916_v59 = vadd.f32 %v980_v51, %v660_v6 }
 0x926   :  { %v1091_v58 = vpop.f32.mrf.mxu0 }
 0x927   :  { %v1092_v52 = vadd.f32 %v1091_v58, %v28_v29 }
 0x928   :  { %v1524_v60 = vpop.f32.mrf.mxu0 }
 0x929   :  { %v1104_v63 = vsel %vm37_vm1, %v1092_v52, -inf }
 0x92a   :  { %v1094_v7 = vpop.f32.mrf.mxu0  ;;  %1105 = vmax.xlane.f32.xlu0 %v1104_v63 }
 0x92b   :  { %v1095_v53 = vadd.f32 %v1094_v7, %v29_v39 }
 0x92c   :  { %v1525_v61 = vpop.f32.mrf.mxu0 }
 0x92d   :  { %v1107_v8 = vsel %vm37_vm1, %v1095_v53, -inf }
 0x92e   :  { %1108 = vmax.xlane.f32.xlu0 %v1107_v8 }
 0x932   :  { %1126 = vadd.xlane.f32.xlu0 %v1125_v54 }
 0x985   :  { %v1124_v24 = vpop.xlane.xlu1 %1123 }
 0x989   :  { %v1145_v25 = vpop.permute.xlu1 %1144 }
 0x98a   :  { %v1148_v35 = vrot.slane %v1145_v25, 4 }
 0x9b3   :  { %v1106_v62 = vpop.xlane.xlu0 %1105 }
 0x9b4   :  { %v1112_v10 = vsub.f32 %v1092_v52, %v1106_v62 }
 0x9b6   :  { %v1118_v11 = vmul.f32 1.442695, %v1112_v10 }
 0x9b7   :  { %v1109_v12 = vpop.xlane.xlu0 %1108 }
 0x9b8   :  { %1611 = vpow2.f32 %v1118_v11  ;;  %v1113_v13 = vsub.f32 %v1095_v53, %v1109_v12 }
 0x9ba   :  { %v1120_v14 = vmul.f32 1.442695, %v1113_v13 }
 0x9bb   :  { %v1127_v23 = vpop.xlane.xlu0 %1126 }
 0x9bc   :  { %1613 = vpow2.f32 %v1120_v14 }
 0x9bd   :  { %1615 = vrcp.f32 %v1127_v23 }
 0x9be   :  { %1617 = vrcp.f32 %v1124_v24 }
 0x9c5   :  { %v1612_v15 = vpop.eup %1611 }
 0x9c6   :  { %v1128_v16 = vsel %vm37_vm1, %v1612_v15, 0.0 }
 0x9c7   :  { %1129 = vadd.xlane.f32.xlu1 %v1128_v16 }
 0x9c9   :  { %v1614_v17 = vpop.eup %1613 }
 0x9ca   :  { %v1131_v19 = vsel %vm37_vm1, %v1614_v17, 0.0  ;;  %v1616_v31 = vpop.eup %1615 }
 0x9cb   :  { %1132 = vadd.xlane.f32.xlu0 %v1131_v19  ;;  %v1618_v34 = vpop.eup %1617  ;;  %v1139_v37 = vmul.f32 %v1616_v31, %v1610_v9 }
 0x9cc   :  { %v1138_v39 = vmul.f32 %v1618_v34, %v1896_v43 }
 0x9ce   :  { %v1142_v40 = vpack.c.bf16 %v1139_v37, %v1138_v39 }
 0x9d8   :  { %1198 = vrot.lane.b32.xlu1 %v1670_v2, %s1631_s18 }
 0x9dc   :  { %1200 = vrot.lane.b32.xlu1 %v1681_v5, %s1631_s18 }
 0x9e1   :  { %1146 = vrot.lane.b32.xlu0 %v1665_v1, %s1631_s18 }
 0xa50   :  { %v1130_v27 = vpop.xlane.xlu1 %1129 }
 0xa51   :  { %1619 = vrcp.f32 %v1130_v27 }
 0xa54   :  { %v1133_v29 = vpop.xlane.xlu0 %1132  ;;  %v1199_v30 = vpop.permute.xlu1 %1198 }
 0xa55   :  { %1621 = vrcp.f32 %v1133_v29  ;;  %v1202_v32 = vrot.slane %v1199_v30, 4 }
 0xa58   :  { %v1147_v33 = vpop.permute.xlu0 %1146  ;;  %v1201_v2 = vpop.permute.xlu1 %1200 }
 0xa59   :  { %v1149_v5 = vrot.slane %v1147_v33, 4  ;;  %v1203_v36 = vrot.slane %v1201_v2, 4 }
 0xa5b   :  { %v1372_v1 = vcombine.low %v1148_v35, %v1149_v5  ;;  %v1374_v38 = vcombine.low %v1202_v32, %v1203_v36 }
 0xa5d   :  { %1527 = vmatpush3.bf16.msra.mxu1 %v1372_v1  ;;  %1533 = vmatpush3.bf16.msra.mxu0 %v1374_v38 }
 0xa5e   :  { %v1620_v18 = vpop.eup %1619  ;;  %1538 = vmatprep.subr.bf16.mxu1 %v1558_v28 }
 0xa5f   :  { %v1140_v21 = vmul.f32 %v1620_v18, %v1612_v15 }
 0xa60   :  { %1529 = vmatmul.mubr.msk.bf16.vlgmr.msra.gmra.mxu1 %vm37_vm1, %v1142_v40 }
 0xa61   :  { %1539 = vmatpush3.bf16.msra.mxu1 %v1558_v28 }
 0xa62   :  { %v1622_v20 = vpop.eup %1621 }
 0xa63   :  { %v1141_v22 = vmul.f32 %v1622_v20, %v1614_v17 }
 0xa65   :  { %v1143_v26 = vpack.c.bf16 %v1141_v22, %v1140_v21 }
 0xa67   :  { %1535 = vmatmul.mubr.msk.bf16.vlgmr.msra.gmra.mxu0 %vm37_vm1, %v1143_v26 }
 0xb20   :  { %v1191_v41 = vpop.f32.mrf.mxu1 }
 0xb22   :  { %v1530_v42 = vpop.f32.mrf.mxu1 }
 0xb24   :  { %v1194_v43 = vpop.f32.mrf.mxu1 }
 0xb25   :  { %v1252_v4 = vpack.c.bf16 %v1194_v43, %v1191_v41 }
 0xb26   :  { %v1531_v44 = vpop.f32.mrf.mxu1 }
 0xb27   :  { %v1245_v45 = vpop.f32.mrf.mxu0  ;;  %1540 = vmatprep.mubr.msk.bf16.mxu1 %vm37_vm1, %v1252_v4 }
 0xb29   :  { %v1536_v46 = vpop.f32.mrf.mxu0 }
 0xb2b   :  { %v1248_v47 = vpop.f32.mrf.mxu0 }
 0xb2c   :  { %v1253_v3 = vpack.c.bf16 %v1248_v47, %v1245_v45 }
 0xb2d   :  { %v1537_v48 = vpop.f32.mrf.mxu0 }
 0xb2e   :  { %1541 = vmatmul.mubr.msk.bf16.vlgmr.msra.gmra.mxu1 %vm37_vm1, %v1253_v3 }
 0xbee   :  { %v1542_v50 = vpop.f32.mrf.mxu1 }
 0xbef   :  { %v1319_v0 = vadd.f32 %v1542_v50, %v1906_v49 }
 0xbf0   :  { %v1302_v6 = vpop.f32.mrf.mxu1 }
 0xbf1   :  { %v1330_v51 = vadd.f32 %v1379_v55, %v1319_v0  ;;  %v1317_v58 = vadd.f32 %v1302_v6, %v1910_v56 }
 0xbf2   :  { %v1543_v52 = vpop.f32.mrf.mxu1 }
 0xbf3   :  { %1335 = vst.msk [vmem:[%s1960_s4 + $0x10] sm:$0xff] %vm1332_vm2, %v1330_v51  ;;  %v1328_v60 = vadd.f32 %v1379_v55, %v1317_v58  ;;  %v1320_v63 = vadd.f32 %v1543_v52, %v1914_v57 }
 0xbf4   :  { %v1305_v7 = vpop.f32.mrf.mxu1 }
 0xbf5   :  { %1333 = vst.msk [vmem:[%s1960_s4] sm:$0xff] %vm1332_vm2, %v1328_v60  ;;  %v1331_v53 = vadd.f32 %v1379_v55, %v1320_v63  ;;  %v1318_v49 = vadd.f32 %v1305_v7, %v1916_v59 }
 0xbf7   :  { %1336 = vst.msk [vmem:[%s1960_s4 + $0x18] sm:$0xff] %vm1332_vm2, %v1331_v53  ;;  %v1329_v56 = vadd.f32 %v1379_v55, %v1318_v49 }
 0xbf9   :  { %1334 = vst.msk [vmem:[%s1960_s4 + $0x8] sm:$0xff] %vm1332_vm2, %v1329_v56 }

// kernel: model_forward.29
= control target key start
LH: loop header
LB: loop body
LE: loop exit
PB: predicated region body
PF: predicated region fallthrough
CT: control target
= control target key end

     0   :  { %vm31_vm0 = vcmask 523264   ;;  %v610_v29 = vmov 0   ;;  %s847_s0 = inlined_call_operand.vmem [shape: f32[32,64], index: 0, kind: input, shape index: {}]   ;;  %s848_s3 = inlined_call_operand.vmem [shape: bf16[64,256], index: 3, kind: input, shape index: {}]   ;;  %s849_s1 = inlined_call_operand.vmem [shape: f32[1,64], index: 1, kind: input, shape index: {}]   ;;  %s850_s2 = inlined_call_operand.vmem [shape: f32[1,64], index: 2, kind: input, shape index: {}]   ;;  %s851_s5 = inlined_call_operand.vmem [shape: bf16[256,64], index: 5, kind: input, shape index: {}]   ;;  %s852_s4 = inlined_call_operand.vmem [shape: f32[1,256], index: 4, kind: input, shape index: {}]   ;;  %s853_s6 = inlined_call_operand.vmem [shape: f32[1,64], index: 6, kind: input, shape index: {}]   ;;  %s854_s7 = inlined_call_operand.vmem [shape: f32[32,64], index: 7, kind: output, shape index: {}]  }
   0x1   :  { %v654_v0 = vld [vmem:[%s847_s0] sm:$0xff]  ;;  %v659_v1 = vld [vmem:[%s847_s0 + $0x10] sm:$0xff]  ;;  %v664_v2 = vld [vmem:[%s847_s0 + $0x8] sm:$0xff]  ;;  %207 = vmatprep.mubr.bf16.mxu0 %v610_v29 }
   0x2   :  { %v32_v3 = vsel %vm31_vm0, %v654_v0, 0.0  ;;  %v38_v4 = vsel %vm31_vm0, %v659_v1, 0.0  ;;  %v673_v5 = vld [vmem:[%s847_s0 + $0x18] sm:$0xff]  ;;  %v35_v6 = vsel %vm31_vm0, %v664_v2, 0.0  ;;  %v561_v31 = vld [vmem:[%s848_s3 + $0x24] ss:$8 sps:$4 sm:$0xff]  }
   0x3   :  { %33 = vadd.xlane.f32.xlu0 %v32_v3  ;;  %39 = vadd.xlane.f32.xlu1 %v38_v4  ;;  %v41_v7 = vsel %vm31_vm0, %v673_v5, 0.0  ;;  %v558_v28 = vld [vmem:[%s848_s3 + $0x34] ss:$8 sps:$4 sm:$0xff]   ;;  %v560_v30 = vld [vmem:[%s848_s3 + $0x30] ss:$8 sps:$4 sm:$0xff]  }
   0x4   :  { %183 = vmatprep.subr.bf16.mxu0 %v558_v28  ;;  %v563_v32 = vld [vmem:[%s848_s3 + $0x20] ss:$8 sps:$4 sm:$0xff]   ;;  %v564_v33 = vld [vmem:[%s848_s3 + $0x14] ss:$8 sps:$4 sm:$0xff]   ;;  %v566_v34 = vld [vmem:[%s848_s3 + $0x10] ss:$8 sps:$4 sm:$0xff]  }
   0x5   :  { %184 = vmatpush1.bf16.msra.mxu0 %v560_v30  ;;  %v567_v35 = vld [vmem:[%s848_s3 + $0x4] ss:$8 sps:$4 sm:$0xff]   ;;  %v569_v36 = vld [vmem:[%s848_s3] ss:$8 sps:$4 sm:$0xff]  }
   0x6   :  { %185 = vmatprep.subr.bf16.mxu0 %v561_v31  ;;  %v500_v51 = vld [vmem:[%s849_s1] ss:$0 sm:$0xff] }
   0x7   :  { %36 = vadd.xlane.f32.xlu0 %v35_v6  ;;  %42 = vadd.xlane.f32.xlu1 %v41_v7  ;;  %v501_v56 = vld [vmem:[%s850_s2] ss:$0 sm:$0xff] }
   0x8   :  { %v117_v28 = vld [vmem:[%s852_s4] sm:$0x3] }
   0x9   :  { %186 = vmatpush1.bf16.msra.mxu0 %v563_v32 }
   0xa   :  { %187 = vmatprep.subr.bf16.mxu0 %v564_v33 }
   0xd   :  { %188 = vmatpush1.bf16.msra.mxu0 %v566_v34 }
   0xe   :  { %189 = vmatprep.subr.bf16.mxu0 %v567_v35 }
  0x11   :  { %190 = vmatpush1.bf16.msra.mxu0 %v569_v36 }
  0x8c   :  { %v34_v8 = vpop.xlane.xlu0 %33  ;;  %v40_v9 = vpop.xlane.xlu1 %39 }
  0x8d   :  { %v45_v10 = vmul.f32 0.015625, %v34_v8  ;;  %v47_v11 = vmul.f32 0.015625, %v40_v9  ;;  %v570_v9 = vld [vmem:[%s851_s5 + $0x78] sm:$0xff]  }
  0x8e   :  { %529 = vmatprep.subr.bf16.mxu1 %v570_v9 }
  0x8f   :  { %v49_v12 = vsub.f32 %v654_v0, %v45_v10  ;;  %v681_v13 = vsub.f32 %v659_v1, %v47_v11  ;;  %v571_v10 = vld [vmem:[%s851_s5 + $0x38] sm:$0xff]   ;;  %v572_v11 = vld [vmem:[%s851_s5 + $0x70] sm:$0xff]  }
  0x90   :  { %v37_v14 = vpop.xlane.xlu0 %36  ;;  %v43_v15 = vpop.xlane.xlu1 %42  ;;  %530 = vmatpush3.bf16.msra.mxu1 %v571_v10 }
  0x91   :  { %v46_v16 = vmul.f32 0.015625, %v37_v14  ;;  %v48_v17 = vmul.f32 0.015625, %v43_v15  ;;  %v53_v18 = vmul.f32 %v49_v12, %v49_v12  ;;  %v55_v19 = vmul.f32 %v681_v13, %v681_v13  ;;  %531 = vmatprep.subr.bf16.mxu1 %v572_v11  ;;  %v575_v14 = vld [vmem:[%s851_s5 + $0x28] sm:$0xff]   ;;  %v576_v15 = vld [vmem:[%s851_s5 + $0x60] sm:$0xff]  }
  0x93   :  { %v50_v20 = vsub.f32 %v664_v2, %v46_v16  ;;  %v52_v21 = vsub.f32 %v673_v5, %v48_v17  ;;  %v57_v22 = vsel %vm31_vm0, %v53_v18, 0.0  ;;  %v63_v23 = vsel %vm31_vm0, %v55_v19, 0.0  ;;  %v577_v16 = vld [vmem:[%s851_s5 + $0x20] sm:$0xff]   ;;  %v578_v17 = vld [vmem:[%s851_s5 + $0x58] sm:$0xff]   ;;  %v580_v19 = vld [vmem:[%s851_s5 + $0x50] sm:$0xff]  }
  0x94   :  { %58 = vadd.xlane.f32.xlu0 %v57_v22  ;;  %v579_v18 = vld [vmem:[%s851_s5 + $0x18] sm:$0xff]   ;;  %v583_v22 = vld [vmem:[%s851_s5 + $0x8] sm:$0xff]  }
  0x95   :  { %v54_v24 = vmul.f32 %v50_v20, %v50_v20  ;;  %v56_v25 = vmul.f32 %v52_v21, %v52_v21 }
  0x97   :  { %v60_v26 = vsel %vm31_vm0, %v54_v24, 0.0  ;;  %v66_v27 = vsel %vm31_vm0, %v56_v25, 0.0  ;;  %v585_v24 = vld [vmem:[%s851_s5] sm:$0xff]   ;;  %v119_v25 = vlaneseq }
  0x98   :  { %64 = vadd.xlane.f32.xlu0 %v63_v23  ;;  %61 = vadd.xlane.f32.xlu1 %v60_v26  ;;  %v584_v23 = vld [vmem:[%s851_s5 + $0x40] sm:$0xff]  }
  0x99   :  { %v120_v26 = vshrl.u32 %v119_v25, 7 }
  0x9c   :  { %67 = vadd.xlane.f32.xlu1 %v66_v27  ;;  %v121_v27 = vsub.s32 0, %v120_v26 }
  0x9e   :  { %v122_v30 = vrot.slane %v117_v28, %v121_v27 }
 0x11d   :  { %v59_v37 = vpop.xlane.xlu0 %58 }
 0x11e   :  { %v69_v38 = vmul.f32 0.015625, %v59_v37 }
 0x120   :  { %v73_v39 = vadd.f32 1e-05, %v69_v38 }
 0x121   :  { %v62_v40 = vpop.xlane.xlu1 %61  ;;  %v65_v41 = vpop.xlane.xlu0 %64 }
 0x122   :  { %586 = vrsqrt.f32 %v73_v39  ;;  %v70_v42 = vmul.f32 0.015625, %v62_v40  ;;  %v71_v43 = vmul.f32 0.015625, %v65_v41 }
 0x124   :  { %v74_v44 = vadd.f32 1e-05, %v70_v42  ;;  %v75_v45 = vadd.f32 1e-05, %v71_v43 }
 0x125   :  { %v68_v46 = vpop.xlane.xlu1 %67 }
 0x126   :  { %588 = vrsqrt.f32 %v74_v44  ;;  %v72_v47 = vmul.f32 0.015625, %v68_v46 }
 0x127   :  { %590 = vrsqrt.f32 %v75_v45 }
 0x128   :  { %v76_v48 = vadd.f32 1e-05, %v72_v47 }
 0x12a   :  { %592 = vrsqrt.f32 %v76_v48 }
 0x12f   :  { %v587_v49 = vpop.eup %586 }
 0x130   :  { %v81_v50 = vmul.f32 %v587_v49, %v49_v12  ;;  %v573_v12 = vld [vmem:[%s851_s5 + $0x30] sm:$0xff]  }
 0x131   :  { %532 = vmatpush3.bf16.msra.mxu1 %v573_v12 }
 0x132   :  { %v92_v54 = vmul.f32 %v500_v51, %v81_v50 }
 0x133   :  { %v589_v52 = vpop.eup %588 }
 0x134   :  { %v82_v53 = vmul.f32 %v589_v52, %v50_v20  ;;  %v591_v55 = vpop.eup %590  ;;  %v103_v59 = vadd.f32 %v501_v56, %v92_v54  ;;  %v581_v20 = vld [vmem:[%s851_s5 + $0x10] sm:$0xff]  }
 0x135   :  { %v83_v61 = vmul.f32 %v591_v55, %v681_v13  ;;  %v574_v13 = vld [vmem:[%s851_s5 + $0x68] sm:$0xff]  }
 0x136   :  { %v93_v57 = vmul.f32 %v500_v51, %v82_v53  ;;  %533 = vmatprep.subr.bf16.mxu1 %v574_v13 }
 0x137   :  { %v593_v58 = vpop.eup %592  ;;  %v94_v4 = vmul.f32 %v500_v51, %v83_v61  ;;  %534 = vmatpush3.bf16.msra.mxu1 %v575_v14 }
 0x138   :  { %v104_v60 = vadd.f32 %v501_v56, %v93_v57  ;;  %v84_v62 = vmul.f32 %v593_v58, %v52_v21  ;;  %535 = vmatprep.subr.bf16.mxu1 %v576_v15  ;;  %v582_v21 = vld [vmem:[%s851_s5 + $0x48] sm:$0xff]  }
 0x139   :  { %v105_v7 = vadd.f32 %v501_v56, %v94_v4 }
 0x13a   :  { %v107_v63 = vpack.c.bf16 %v104_v60, %v103_v59  ;;  %v95_v3 = vmul.f32 %v500_v51, %v84_v62 }
 0x13b   :  { %536 = vmatpush3.bf16.msra.mxu1 %v577_v16 }
 0x13c   :  { %510 = vmatmul.mubr.msk.bf16.vlgmr.msra.gmra.mxu0 %vm31_vm0, %v107_v63  ;;  %v106_v6 = vadd.f32 %v501_v56, %v95_v3  ;;  %537 = vmatprep.subr.bf16.mxu1 %v578_v17 }
 0x13d   :  { %217 = vmatprep.mubr.bf16.mxu0 %v610_v29  ;;  %v125_v29 = vsub.s32 1, %v120_v26 }
 0x13e   :  { %v108_v8 = vpack.c.bf16 %v106_v6, %v105_v7 }
 0x13f   :  { %538 = vmatpush3.bf16.msra.mxu1 %v579_v18  ;;  %v126_v31 = vrot.slane %v117_v28, %v125_v29 }
 0x140   :  { %539 = vmatprep.subr.bf16.mxu1 %v580_v19 }
 0x143   :  { %540 = vmatpush3.bf16.msra.mxu1 %v581_v20 }
 0x144   :  { %511 = vmatmul.mubr.msk.bf16.gmra.mxu0 %vm31_vm0, %v108_v8  ;;  %541 = vmatprep.subr.bf16.mxu1 %v582_v21 }
 0x147   :  { %542 = vmatpush3.bf16.msra.mxu1 %v583_v22 }
 0x148   :  { %543 = vmatprep.subr.bf16.mxu1 %v584_v23 }
 0x14b   :  { %544 = vmatpush3.bf16.msra.mxu1 %v585_v24 }
 0x1fc   :  { %v209_v32 = vpop.f32.mrf.mxu0 }
 0x1fd   :  { %v775_v33 = vadd.f32 %v209_v32, %v122_v30 }
 0x1fe   :  { %v211_v34 = vpop.f32.mrf.mxu0 }
 0x1ff   :  { %v228_v35 = vmul.f32 %v775_v33, %v775_v33  ;;  %v779_v36 = vadd.f32 %v211_v34, %v126_v31 }
 0x200   :  { %v213_v37 = vpop.f32.mrf.mxu0 }
 0x201   :  { %v236_v38 = vmul.f32 %v228_v35, %v775_v33  ;;  %v229_v39 = vmul.f32 %v779_v36, %v779_v36  ;;  %v784_v40 = vadd.f32 %v213_v37, %v122_v30 }
 0x202   :  { %v215_v41 = vpop.f32.mrf.mxu0 }
 0x203   :  { %v244_v42 = vmul.f32 0.044715, %v236_v38  ;;  %v237_v43 = vmul.f32 %v229_v39, %v779_v36  ;;  %v230_v44 = vmul.f32 %v784_v40, %v784_v40  ;;  %v789_v45 = vadd.f32 %v215_v41, %v126_v31 }
 0x204   :  { %v219_v46 = vpop.f32.mrf.mxu0 }
 0x205   :  { %v252_v47 = vadd.f32 %v244_v42, %v775_v33  ;;  %v245_v48 = vmul.f32 0.044715, %v237_v43  ;;  %v238_v49 = vmul.f32 %v230_v44, %v784_v40  ;;  %v231_v50 = vmul.f32 %v789_v45, %v789_v45 }
 0x206   :  { %v795_v51 = vadd.f32 %v219_v46, %v122_v30  ;;  %v221_v52 = vpop.f32.mrf.mxu0 }
 0x207   :  { %v260_v53 = vmul.f32 0.7978846, %v252_v47  ;;  %v253_v54 = vadd.f32 %v245_v48, %v779_v36  ;;  %v246_v55 = vmul.f32 0.044715, %v238_v49  ;;  %v239_v56 = vmul.f32 %v231_v50, %v789_v45 }
 0x208   :  { %v232_v57 = vmul.f32 %v795_v51, %v795_v51  ;;  %v801_v58 = vadd.f32 %v221_v52, %v126_v31  ;;  %v223_v59 = vpop.f32.mrf.mxu0 }
 0x209   :  { %v254_v60 = vadd.f32 %v246_v55, %v784_v40  ;;  %v247_v61 = vmul.f32 0.044715, %v239_v56  ;;  %v804_v62 = vadd.f32 %v223_v59, %v122_v30  ;;  %594 = vtanh.f32 %v260_v53 }
 0x20a   :  { %v240_v63 = vmul.f32 %v232_v57, %v795_v51  ;;  %v233_v3 = vmul.f32 %v801_v58, %v801_v58  ;;  %v225_v4 = vpop.f32.mrf.mxu0  ;;  %v261_v6 = vmul.f32 0.7978846, %v253_v54 }
 0x20b   :  { %v262_v7 = vmul.f32 0.7978846, %v254_v60  ;;  %v255_v8 = vadd.f32 %v247_v61, %v789_v45  ;;  %v234_v9 = vmul.f32 %v804_v62, %v804_v62  ;;  %v226_v10 = vadd.f32 %v225_v4, %v126_v31 }
 0x20c   :  { %v248_v11 = vmul.f32 0.044715, %v240_v63  ;;  %v241_v12 = vmul.f32 %v233_v3, %v801_v58  ;;  %596 = vtanh.f32 %v261_v6 }
 0x20d   :  { %598 = vtanh.f32 %v262_v7  ;;  %v242_v13 = vmul.f32 %v234_v9, %v804_v62  ;;  %v235_v14 = vmul.f32 %v226_v10, %v226_v10  ;;  %v263_v15 = vmul.f32 0.7978846, %v255_v8  ;;  %v512_v8 = vld [vmem:[%s853_s6] ss:$0 sm:$0xff] }
 0x20e   :  { %v256_v16 = vadd.f32 %v248_v11, %v795_v51  ;;  %v249_v17 = vmul.f32 0.044715, %v241_v12 }
 0x20f   :  { %v250_v18 = vmul.f32 0.044715, %v242_v13  ;;  %v243_v19 = vmul.f32 %v235_v14, %v226_v10  ;;  %600 = vtanh.f32 %v263_v15 }
 0x210   :  { %v264_v20 = vmul.f32 0.7978846, %v256_v16  ;;  %v257_v21 = vadd.f32 %v249_v17, %v801_v58 }
 0x211   :  { %v258_v22 = vadd.f32 %v250_v18, %v804_v62  ;;  %v251_v23 = vmul.f32 0.044715, %v243_v19 }
 0x212   :  { %602 = vtanh.f32 %v264_v20  ;;  %v265_v24 = vmul.f32 0.7978846, %v257_v21 }
 0x213   :  { %v266_v25 = vmul.f32 0.7978846, %v258_v22  ;;  %v259_v26 = vadd.f32 %v251_v23, %v226_v10 }
 0x214   :  { %604 = vtanh.f32 %v265_v24 }
 0x215   :  { %606 = vtanh.f32 %v266_v25  ;;  %v267_v27 = vmul.f32 0.7978846, %v259_v26 }
 0x216   :  { %v595_v28 = vpop.eup %594 }
 0x217   :  { %608 = vtanh.f32 %v267_v27  ;;  %v276_v32 = vadd.f32 1.0, %v595_v28 }
 0x219   :  { %v597_v29 = vpop.eup %596  ;;  %v284_v41 = vmul.f32 0.5, %v276_v32 }
 0x21a   :  { %v599_v30 = vpop.eup %598  ;;  %v277_v31 = vadd.f32 1.0, %v597_v29 }
 0x21b   :  { %v278_v34 = vadd.f32 1.0, %v599_v30  ;;  %v292_v50 = vmul.f32 %v284_v41, %v775_v33 }
 0x21c   :  { %v601_v35 = vpop.eup %600  ;;  %v285_v38 = vmul.f32 0.5, %v277_v31 }
 0x21d   :  { %v279_v37 = vadd.f32 1.0, %v601_v35  ;;  %v286_v39 = vmul.f32 0.5, %v278_v34 }
 0x21e   :  { %v293_v47 = vmul.f32 %v285_v38, %v779_v36 }
 0x21f   :  { %v603_v42 = vpop.eup %602  ;;  %v287_v43 = vmul.f32 0.5, %v279_v37  ;;  %v294_v44 = vmul.f32 %v286_v39, %v784_v40 }
 0x220   :  { %v280_v53 = vadd.f32 1.0, %v603_v42 }
 0x221   :  { %v605_v46 = vpop.eup %604  ;;  %v295_v48 = vmul.f32 %v287_v43, %v789_v45  ;;  %v300_v57 = vpack.c.bf16 %v294_v44, %v292_v50 }
 0x222   :  { %v607_v49 = vpop.eup %606  ;;  %v281_v52 = vadd.f32 1.0, %v605_v46  ;;  %v288_v40 = vmul.f32 0.5, %v280_v53 }
 0x223   :  { %v301_v54 = vpack.c.bf16 %v295_v48, %v293_v47  ;;  %v282_v55 = vadd.f32 1.0, %v607_v49 }
 0x224   :  { %v609_v56 = vpop.eup %608  ;;  %v289_v60 = vmul.f32 0.5, %v281_v52  ;;  %v296_v33 = vmul.f32 %v288_v40, %v795_v51 }
 0x225   :  { %471 = vmatprep.mubr.bf16.mxu1 %v301_v54  ;;  %v283_v59 = vadd.f32 1.0, %v609_v56  ;;  %v290_v61 = vmul.f32 0.5, %v282_v55 }
 0x226   :  { %472 = vmatmul.mubr.bf16.vlgmr.msra.gmra.mxu1 %v300_v57  ;;  %v297_v45 = vmul.f32 %v289_v60, %v801_v58 }
 0x227   :  { %v291_v63 = vmul.f32 0.5, %v283_v59  ;;  %v298_v36 = vmul.f32 %v290_v61, %v804_v62 }
 0x229   :  { %v299_v3 = vmul.f32 %v291_v63, %v226_v10  ;;  %v302_v6 = vpack.c.bf16 %v298_v36, %v296_v33 }
 0x22b   :  { %v303_v4 = vpack.c.bf16 %v299_v3, %v297_v45 }
 0x22d   :  { %479 = vmatprep.mubr.bf16.mxu1 %v303_v4 }
 0x22e   :  { %480 = vmatmul.mubr.bf16.gmra.mxu1 %v302_v6 }
 0x2e6   :  { %v545_v7 = vpop.f32.mrf.mxu1 }
 0x2e8   :  { %v546_v9 = vpop.f32.mrf.mxu1 }
 0x2e9   :  { %v547_v11 = vadd.f32 %v546_v9, %v545_v7 }
 0x2ea   :  { %v548_v12 = vpop.f32.mrf.mxu1 }
 0x2eb   :  { %v474_v13 = vadd.f32 %v547_v11, %v512_v8 }
 0x2ec   :  { %v549_v14 = vpop.f32.mrf.mxu1 }
 0x2ed   :  { %v488_v62 = vadd.f32 %v474_v13, %v654_v0  ;;  %v550_v58 = vadd.f32 %v549_v14, %v548_v12 }
 0x2ee   :  { %v551_v10 = vpop.f32.mrf.mxu1 }
 0x2ef   :  { %492 = vst.msk [vmem:[%s854_s7] sm:$0xff] %vm31_vm0, %v488_v62  ;;  %v477_v51 = vadd.f32 %v550_v58, %v512_v8 }
 0x2f0   :  { %v552_v15 = vpop.f32.mrf.mxu1 }
 0x2f1   :  { %v489_v16 = vadd.f32 %v477_v51, %v664_v2  ;;  %v553_v17 = vadd.f32 %v552_v15, %v551_v10 }
 0x2f2   :  { %v554_v18 = vpop.f32.mrf.mxu1 }
 0x2f3   :  { %493 = vst.msk [vmem:[%s854_s7 + $0x8] sm:$0xff] %vm31_vm0, %v489_v16  ;;  %v482_v19 = vadd.f32 %v553_v17, %v512_v8 }
 0x2f4   :  { %v555_v0 = vpop.f32.mrf.mxu1 }
 0x2f5   :  { %v490_v20 = vadd.f32 %v482_v19, %v659_v1  ;;  %v556_v21 = vadd.f32 %v555_v0, %v554_v18 }
 0x2f7   :  { %494 = vst.msk [vmem:[%s854_s7 + $0x10] sm:$0xff] %vm31_vm0, %v490_v20  ;;  %v485_v22 = vadd.f32 %v556_v21, %v512_v8 }
 0x2f9   :  { %v491_v2 = vadd.f32 %v485_v22, %v673_v5 }
 0x2fb   :  { %495 = vst.msk [vmem:[%s854_s7 + $0x18] sm:$0xff] %vm31_vm0, %v491_v2 }

// kernel: model_forward.34
= control target key start
LH: loop header
LB: loop body
LE: loop exit
PB: predicated region body
PF: predicated region fallthrough
CT: control target
= control target key end

     0   :  { %vm25_vm0 = vcmask 523264   ;;  %vm197_vm1 = vcmask 261120   ;;  %s330_s0 = inlined_call_operand.vmem [shape: f32[32,64], index: 0, kind: input, shape index: {}]   ;;  %s331_s3 = inlined_call_operand.vmem [shape: bf16[64,32], index: 3, kind: input, shape index: {}]   ;;  %s332_s1 = inlined_call_operand.vmem [shape: f32[1,64], index: 1, kind: input, shape index: {}]   ;;  %s333_s2 = inlined_call_operand.vmem [shape: f32[1,64], index: 2, kind: input, shape index: {}]   ;;  %s334_s4 = inlined_call_operand.vmem [shape: f32[1,32], index: 4, kind: input, shape index: {}]   ;;  %s335_s5 = inlined_call_operand.vmem [shape: f32[32,32], index: 5, kind: output, shape index: {}]  }
   0x1   :  { %v21_v0 = vld [vmem:[%s330_s0] sm:$0xff]  ;;  %v23_v1 = vld [vmem:[%s330_s0 + $0x10] sm:$0xff]  ;;  %v22_v2 = vld [vmem:[%s330_s0 + $0x8] sm:$0xff] }
   0x2   :  { %v26_v3 = vsel %vm25_vm0, %v21_v0, 0.0  ;;  %v32_v4 = vsel %vm25_vm0, %v23_v1, 0.0  ;;  %v24_v5 = vld [vmem:[%s330_s0 + $0x18] sm:$0xff]  ;;  %v29_v6 = vsel %vm25_vm0, %v22_v2, 0.0  ;;  %v234_v29 = vld [vmem:[%s331_s3 + $0x10] sm:$0xff]   ;;  %v235_v30 = vld [vmem:[%s331_s3 + $0x8] sm:$0xff]  }
   0x3   :  { %27 = vadd.xlane.f32.xlu0 %v26_v3  ;;  %33 = vadd.xlane.f32.xlu1 %v32_v4  ;;  %v35_v7 = vsel %vm25_vm0, %v24_v5, 0.0  ;;  %v233_v28 = vld [vmem:[%s331_s3 + $0x18] sm:$0xff]   ;;  %v236_v31 = vld [vmem:[%s331_s3] sm:$0xff]  }
   0x4   :  { %221 = vmatprep.subr.bf16.mxu0 %v233_v28  ;;  %v206_v46 = vld [vmem:[%s332_s1] ss:$0 sm:$0xff] }
   0x5   :  { %222 = vmatpush3.bf16.msra.mxu0 %v233_v28  ;;  %v207_v51 = vld [vmem:[%s333_s2] ss:$0 sm:$0xff] }
   0x6   :  { %223 = vmatprep.subr.bf16.mxu0 %v234_v29 }
   0x7   :  { %30 = vadd.xlane.f32.xlu0 %v29_v6  ;;  %36 = vadd.xlane.f32.xlu1 %v35_v7 }
   0x9   :  { %224 = vmatpush3.bf16.msra.mxu0 %v234_v29 }
   0xa   :  { %225 = vmatprep.subr.bf16.mxu0 %v235_v30 }
   0xd   :  { %226 = vmatpush3.bf16.msra.mxu0 %v235_v30 }
   0xe   :  { %227 = vmatprep.subr.bf16.mxu0 %v236_v31 }
  0x11   :  { %228 = vmatpush3.bf16.msra.mxu0 %v236_v31 }
  0x8c   :  { %v28_v8 = vpop.xlane.xlu0 %27  ;;  %v34_v9 = vpop.xlane.xlu1 %33 }
  0x8d   :  { %v39_v10 = vmul.f32 0.015625, %v28_v8  ;;  %v41_v11 = vmul.f32 0.015625, %v34_v9 }
  0x8f   :  { %v43_v12 = vsub.f32 %v21_v0, %v39_v10  ;;  %v45_v13 = vsub.f32 %v23_v1, %v41_v11  ;;  %v208_v0 = vld [vmem:[%s334_s4] ss:$0 sm:$0xff] }
  0x90   :  { %v31_v14 = vpop.xlane.xlu0 %30  ;;  %v37_v15 = vpop.xlane.xlu1 %36 }
  0x91   :  { %v40_v16 = vmul.f32 0.015625, %v31_v14  ;;  %v42_v17 = vmul.f32 0.015625, %v37_v15  ;;  %v47_v18 = vmul.f32 %v43_v12, %v43_v12  ;;  %v49_v19 = vmul.f32 %v45_v13, %v45_v13 }
  0x93   :  { %v44_v20 = vsub.f32 %v22_v2, %v40_v16  ;;  %v46_v21 = vsub.f32 %v24_v5, %v42_v17  ;;  %v51_v22 = vsel %vm25_vm0, %v47_v18, 0.0  ;;  %v57_v23 = vsel %vm25_vm0, %v49_v19, 0.0 }
  0x94   :  { %52 = vadd.xlane.f32.xlu0 %v51_v22 }
  0x95   :  { %v48_v24 = vmul.f32 %v44_v20, %v44_v20  ;;  %v50_v25 = vmul.f32 %v46_v21, %v46_v21 }
  0x97   :  { %v54_v26 = vsel %vm25_vm0, %v48_v24, 0.0  ;;  %v60_v27 = vsel %vm25_vm0, %v50_v25, 0.0 }
  0x98   :  { %58 = vadd.xlane.f32.xlu0 %v57_v23  ;;  %55 = vadd.xlane.f32.xlu1 %v54_v26 }
  0x9c   :  { %61 = vadd.xlane.f32.xlu1 %v60_v27 }
 0x11d   :  { %v53_v32 = vpop.xlane.xlu0 %52 }
 0x11e   :  { %v63_v33 = vmul.f32 0.015625, %v53_v32 }
 0x120   :  { %v67_v34 = vadd.f32 1e-05, %v63_v33 }
 0x121   :  { %v56_v35 = vpop.xlane.xlu1 %55  ;;  %v59_v36 = vpop.xlane.xlu0 %58 }
 0x122   :  { %237 = vrsqrt.f32 %v67_v34  ;;  %v64_v37 = vmul.f32 0.015625, %v56_v35  ;;  %v65_v38 = vmul.f32 0.015625, %v59_v36 }
 0x124   :  { %v68_v39 = vadd.f32 1e-05, %v64_v37  ;;  %v69_v40 = vadd.f32 1e-05, %v65_v38 }
 0x125   :  { %v62_v41 = vpop.xlane.xlu1 %61 }
 0x126   :  { %239 = vrsqrt.f32 %v68_v39  ;;  %v66_v42 = vmul.f32 0.015625, %v62_v41 }
 0x127   :  { %241 = vrsqrt.f32 %v69_v40 }
 0x128   :  { %v70_v43 = vadd.f32 1e-05, %v66_v42 }
 0x12a   :  { %243 = vrsqrt.f32 %v70_v43 }
 0x12f   :  { %v238_v44 = vpop.eup %237 }
 0x130   :  { %v75_v45 = vmul.f32 %v238_v44, %v43_v12 }
 0x132   :  { %v86_v50 = vmul.f32 %v206_v46, %v75_v45 }
 0x133   :  { %v240_v47 = vpop.eup %239 }
 0x134   :  { %v242_v48 = vpop.eup %241  ;;  %v76_v49 = vmul.f32 %v240_v47, %v44_v20  ;;  %v97_v55 = vadd.f32 %v207_v51, %v86_v50 }
 0x135   :  { %v77_v52 = vmul.f32 %v242_v48, %v45_v13 }
 0x136   :  { %v87_v53 = vmul.f32 %v206_v46, %v76_v49 }
 0x137   :  { %v244_v54 = vpop.eup %243  ;;  %v88_v58 = vmul.f32 %v206_v46, %v77_v52 }
 0x138   :  { %v98_v56 = vadd.f32 %v207_v51, %v87_v53  ;;  %v78_v57 = vmul.f32 %v244_v54, %v46_v21 }
 0x139   :  { %v99_v61 = vadd.f32 %v207_v51, %v88_v58 }
 0x13a   :  { %v101_v59 = vpack.c.bf16 %v98_v56, %v97_v55  ;;  %v89_v60 = vmul.f32 %v206_v46, %v78_v57 }
 0x13c   :  { %229 = vmatprep.mubr.msk.bf16.mxu0 %vm25_vm0, %v101_v59  ;;  %v100_v62 = vadd.f32 %v207_v51, %v89_v60 }
 0x13e   :  { %v102_v63 = vpack.c.bf16 %v100_v62, %v99_v61 }
 0x140   :  { %230 = vmatmul.mubr.msk.bf16.vlgmr.msra.gmra.mxu0 %vm25_vm0, %v102_v63 }
 0x200   :  { %v231_v1 = vpop.f32.mrf.mxu0 }
 0x201   :  { %v191_v2 = vadd.f32 %v231_v1, %v208_v0 }
 0x202   :  { %v182_v3 = vpop.f32.mrf.mxu0 }
 0x203   :  { %200 = vst.msk [vmem:[%s335_s5 + $0x10] sm:$0xff] %vm197_vm1, %v191_v2  ;;  %v183_v4 = vadd.f32 %v208_v0, %v182_v3 }
 0x204   :  { %v232_v5 = vpop.f32.mrf.mxu0 }
 0x205   :  { %198 = vst.msk [vmem:[%s335_s5] sm:$0xff] %vm197_vm1, %v183_v4  ;;  %v194_v6 = vadd.f32 %v232_v5, %v208_v0 }
 0x206   :  { %v185_v7 = vpop.f32.mrf.mxu0 }
 0x207   :  { %201 = vst.msk [vmem:[%s335_s5 + $0x18] sm:$0xff] %vm197_vm1, %v194_v6  ;;  %v186_v8 = vadd.f32 %v208_v0, %v185_v7 }
 0x209   :  { %199 = vst.msk [vmem:[%s335_s5 + $0x8] sm:$0xff] %vm197_vm1, %v186_v8 }

// kernel: model_forward.31
= control target key start
LH: loop header
LB: loop body
LE: loop exit
PB: predicated region body
PF: predicated region fallthrough
CT: control target
= control target key end

     0   :  { %s1279_s18 = smov 0   ;;  %s1476_s0 = inlined_call_operand.vmem [shape: bf16[2,16,192], index: 0, kind: input, shape index: {}]   ;;  %s1477_s1 = inlined_call_operand.vmem [shape: f32[4,16,16], index: 1, kind: input, shape index: {}]   ;;  %s1478_s2 = inlined_call_operand.vmem [shape: f32[1,16,16], index: 2, kind: input, shape index: {}]   ;;  %s1479_s3 = inlined_call_operand.vmem [shape: bf16[64,64], index: 3, kind: input, shape index: {}]   ;;  %s1480_s4 = inlined_call_operand.vmem [shape: f32[1,64], index: 4, kind: input, shape index: {}]   ;;  %s1481_s5 = inlined_call_operand.vmem [shape: f32[2,16,64], index: 5, kind: output, shape index: {}]  }
   0x1 LB: > { %s1047_s19 = sadd.s32 4294967295, %s1238_s18   ;;  %p1051_p0 = scmp.ge.s32.totalorder %s1238_s18, 1  ;;  %s1238_s18 = sphi %s1279_s18, %s15_s18  }
   0x2   : > { %p187_p1 = scmp.lt.s32.totalorder %s1238_s18, 3 }
   0x4   : > { %p188_p2 = pnand %p1051_p0, %p187_p1 }
   0x5   : > { %p215_p3 = scmp.lt.s32.totalorder (!%p188_p2), %s1047_s19, 1  ;;  %s1242_s24 = smov (!%p188_p2), 64  }
   0x6   : > { %191 = sbr.rel (%p188_p2) target bundleno = 2824 (0xb08), region = 40  ;;  %s1243_s8 = smov (!%p188_p2), 48  }
   0x7   : > { %s1244_s9 = smov (!%p188_p2), 112   ;;  %s1245_s16 = smov (!%p188_p2), 32  }
   0x8   : > { %s1246_s17 = smov (!%p188_p2), 96   ;;  %s1247_s27 = smov (!%p188_p2), 80  }
   0x9   : > { %s1248_s28 = smov (!%p188_p2), 16  }
   0xb   : > { %v1240_v0 = vmov 0.0   ;;  %vm1241_vm0 = vmmov 0   ;;  %s1483_s19 = smov (!%p215_p3, %s1047_s19), 1  ;;  %vm243_vm1 = vcmask 130048   ;;  %v228_v6 = vld [vmem:[%s1477_s1] sm:$0xff]  ;;  %v229_v11 = vld [vmem:[%s1477_s1 + $0x8] sm:$0xff] }
   0xc   : > { %1106 = vmatprep.subr.bf16.mxu0 %v1240_v0  ;;  %1108 = vmatprep.mubr.msk.bf16.mxu0 %vm1241_vm0, %v1240_v0  ;;  %s1080_s20 = sshll.u32 %s1483_s19, 4  ;;  %v1322_v8 = vld [vmem:[%s1478_s2] sm:$0xff]  ;;  %v1331_v14 = vld [vmem:[%s1478_s2 + $0x8] sm:$0xff]  ;;  %v230_v48 = vld [vmem:[%s1477_s1 + $0x10] sm:$0xff]  ;;  %vm989_vm2 = vcmask 523264  }
   0xd   : > { %1112 = vmatprep.subr.bf16.mxu1 %v1240_v0  ;;  %1114 = vmatprep.mubr.msk.bf16.mxu1 %vm1241_vm0, %v1240_v0  ;;  %s219_s23 = scalar_lea.vmem %s1476_s0, %s1080_s20  ;;  %v231_v52 = vld [vmem:[%s1477_s1 + $0x18] sm:$0xff] }
   0xe   : > { %v1301_v1 = vld [vmem:[%s219_s23] sm:$0xff]  ;;  %v1303_v2 = vld [vmem:[%s219_s23 + $0x8] sm:$0xff] }
   0xf   : > { %v1307_v3 = vcombine.low %v1301_v1, %v1303_v2  ;;  %v318_v30 = vrot.slane %v1301_v1, 4  ;;  %v319_v31 = vrot.slane %v1303_v2, 4 }
  0x11   : > { %241 = vrot.lane.b32.xlu0 %v1307_v3, %s1242_s24  ;;  %v1058_v32 = vcombine.low %v318_v30, %v319_v31 }
  0x13   : > { %1113 = vmatpush3.bf16.msra.mxu1 %v1058_v32 }
  0x14   : > { %1118 = vmatprep.subr.bf16.mxu1 %v1240_v0 }
  0x83   : > { %v242_v4 = vpop.permute.xlu0 %241 }
  0x84   : > { %v248_v5 = vsel %vm243_vm1, %v242_v4, 0 }
  0x85   : > { %1107 = vmatpush3.bf16.xpose.msra.mxu0 %v248_v5 }
  0x86   : > { %1124 = vmatprep.subr.bf16.mxu0 %v1240_v0 }
  0x8c   : > { %1109 = vmatmul.mubr.msk.bf16.vlgmr.msra.gmra.mxu0 %vm243_vm1, %v1307_v3 }
  0x8d   : > { %1126 = vmatprep.mubr.msk.bf16.mxu0 %vm1241_vm0, %v1240_v0 }
 0x14c   : > { %v284_v7 = vpop.f32.mrf.mxu0 }
 0x14d   : > { %v285_v9 = vadd.f32 %v284_v7, %v228_v6 }
 0x14e   : > { %v1110_v10 = vpop.f32.mrf.mxu0 }
 0x14f   : > { %v293_v12 = vadd.f32 %v1322_v8, %v285_v9 }
 0x150   : > { %v287_v13 = vpop.f32.mrf.mxu0 }
 0x151   : > { %v288_v15 = vadd.f32 %v287_v13, %v229_v11  ;;  %v295_v16 = vsel %vm243_vm1, %v293_v12, -inf  ;;  %v1197_v11 = vld [vmem:[%s1479_s3 + $0x8] sm:$0xff]  }
 0x152   : > { %296 = vmax.xlane.f32.xlu0 %v295_v16  ;;  %v1111_v17 = vpop.f32.mrf.mxu0 }
 0x153   : > { %v294_v18 = vadd.f32 %v1331_v14, %v288_v15 }
 0x155   : > { %v298_v19 = vsel %vm243_vm1, %v294_v18, -inf }
 0x156   : > { %299 = vmax.xlane.f32.xlu1 %v298_v19 }
 0x1db   : > { %v297_v20 = vpop.xlane.xlu0 %296 }
 0x1dc   : > { %v301_v21 = vsub.f32 %v293_v12, %v297_v20 }
 0x1de   : > { %v303_v22 = vmul.f32 1.442695, %v301_v21 }
 0x1df   : > { %v300_v23 = vpop.xlane.xlu1 %299 }
 0x1e0   : > { %1200 = vpow2.f32 %v303_v22  ;;  %v302_v24 = vsub.f32 %v294_v18, %v300_v23 }
 0x1e2   : > { %v305_v25 = vmul.f32 1.442695, %v302_v24  ;;  %v1196_v24 = vld [vmem:[%s1479_s3] sm:$0xff]  }
 0x1e4   : > { %1202 = vpow2.f32 %v305_v25 }
 0x1ed   : > { %v1201_v26 = vpop.eup %1200 }
 0x1ee   : > { %v307_v27 = vsel %vm243_vm1, %v1201_v26, 0.0 }
 0x1ef   : > { %308 = vadd.xlane.f32.xlu1 %v307_v27 }
 0x1f1   : > { %v1203_v28 = vpop.eup %1202 }
 0x1f2   : > { %v310_v29 = vsel %vm243_vm1, %v1203_v28, 0.0 }
 0x1f3   : > { %311 = vadd.xlane.f32.xlu1 %v310_v29 }
 0x204   : > { %373 = vrot.lane.b32.xlu1 %v1307_v3, %s1243_s8 }
 0x208   : > { %371 = vrot.lane.b32.xlu1 %v1307_v3, %s1244_s9 }
 0x278   : > { %v309_v33 = vpop.xlane.xlu1 %308 }
 0x279   : > { %1204 = vrcp.f32 %v309_v33 }
 0x27c   : > { %v312_v34 = vpop.xlane.xlu1 %311 }
 0x27d   : > { %1206 = vrcp.f32 %v312_v34 }
 0x280   : > { %v374_v37 = vpop.permute.xlu1 %373 }
 0x281   : > { %v379_v40 = vsel %vm243_vm1, %v374_v37, 0 }
 0x284   : > { %v372_v42 = vpop.permute.xlu1 %371 }
 0x286   : > { %v1205_v35 = vpop.eup %1204 }
 0x287   : > { %v315_v38 = vmul.f32 %v1205_v35, %v1201_v26 }
 0x28a   : > { %v1207_v36 = vpop.eup %1206 }
 0x28b   : > { %v316_v39 = vmul.f32 %v1207_v36, %v1203_v28 }
 0x28d   : > { %v317_v41 = vpack.c.bf16 %v316_v39, %v315_v38 }
 0x28f   : > { %1115 = vmatmul.mubr.msk.bf16.vlgmr.msra.gmra.mxu1 %vm243_vm1, %v317_v41 }
 0x290   : > { %1119 = vmatpush3.bf16.xpose.msra.mxu1 %v379_v40  ;;  %1120 = vmatprep.mubr.msk.bf16.mxu1 %vm1241_vm0, %v1240_v0 }
 0x291   : > { %1130 = vmatprep.subr.bf16.mxu1 %v1240_v0 }
 0x297   : > { %1121 = vmatmul.mubr.msk.bf16.vlgmr.msra.gmra.mxu1 %vm243_vm1, %v372_v42  ;;  %v232_v42 = vld [vmem:[%s1477_s1 + $0x20] sm:$0xff] }
 0x298   : > { %1132 = vmatprep.mubr.msk.bf16.mxu1 %vm1241_vm0, %v1240_v0  ;;  %1131 = vmatpush3.bf16.msra.mxu1 %v1197_v11 }
 0x299   : > { %1142 = vmatprep.subr.bf16.mxu1 %v1240_v0 }
 0x34f   : > { %v1352_v43 = vpop.f32.mrf.mxu1 }
 0x351   : > { %v1116_v44 = vpop.f32.mrf.mxu1 }
 0x353   : > { %v364_v45 = vpop.f32.mrf.mxu1 }
 0x354   : > { %v368_v46 = vpack.c.bf16 %v364_v45, %v1352_v43 }
 0x355   : > { %v1117_v47 = vpop.f32.mrf.mxu1 }
 0x357   : > { %v415_v49 = vpop.f32.mrf.mxu1 }
 0x358   : > { %v416_v50 = vadd.f32 %v415_v49, %v230_v48 }
 0x359   : > { %v1122_v51 = vpop.f32.mrf.mxu1 }
 0x35a   : > { %v424_v53 = vadd.f32 %v416_v50, %v1322_v8 }
 0x35b   : > { %v418_v54 = vpop.f32.mrf.mxu1 }
 0x35c   : > { %v419_v55 = vadd.f32 %v418_v54, %v231_v52  ;;  %v426_v56 = vsel %vm243_vm1, %v424_v53, -inf }
 0x35d   : > { %427 = vmax.xlane.f32.xlu1 %v426_v56  ;;  %v1123_v57 = vpop.f32.mrf.mxu1 }
 0x35e   : > { %v425_v58 = vadd.f32 %v419_v55, %v1331_v14 }
 0x360   : > { %v429_v59 = vsel %vm243_vm1, %v425_v58, -inf }
 0x361   : > { %430 = vmax.xlane.f32.xlu0 %v429_v59 }
 0x36e   : > { %608 = vrot.lane.b32.xlu1 %v1307_v3, %s1245_s16  ;;  %s224_s16 = scalar_lea.vmem %s1481_s5, %s1080_s20 }
 0x377   : > { %449 = vrot.lane.b32.xlu0 %v1301_v1, %s1244_s9 }
 0x3e6   : > { %v428_v60 = vpop.xlane.xlu1 %427 }
 0x3e7   : > { %v432_v61 = vsub.f32 %v424_v53, %v428_v60 }
 0x3e9   : > { %v434_v62 = vmul.f32 1.442695, %v432_v61 }
 0x3ea   : > { %v431_v63 = vpop.xlane.xlu0 %430  ;;  %v609_v28 = vpop.permute.xlu1 %608 }
 0x3eb   : > { %1208 = vpow2.f32 %v434_v62  ;;  %v433_v4 = vsub.f32 %v425_v58, %v431_v63  ;;  %v614_v31 = vsel %vm243_vm1, %v609_v28, 0 }
 0x3ed   : > { %v436_v5 = vmul.f32 1.442695, %v433_v4 }
 0x3ee   : > { %v450_v12 = vpop.permute.xlu0 %449 }
 0x3ef   : > { %1210 = vpow2.f32 %v436_v5  ;;  %v453_v17 = vrot.slane %v450_v12, 4 }
 0x3f8   : > { %v1209_v6 = vpop.eup %1208 }
 0x3f9   : > { %v438_v7 = vsel %vm243_vm1, %v1209_v6, 0.0 }
 0x3fa   : > { %439 = vadd.xlane.f32.xlu0 %v438_v7 }
 0x3fc   : > { %v1211_v9 = vpop.eup %1210 }
 0x3fd   : > { %v441_v10 = vsel %vm243_vm1, %v1211_v9, 0.0 }
 0x3fe   : > { %442 = vadd.xlane.f32.xlu0 %v441_v10 }
 0x414   : > { %451 = vrot.lane.b32.xlu0 %v1303_v2, %s1244_s9 }
 0x418   : > { %606 = vrot.lane.b32.xlu0 %v1307_v3, %s1246_s17 }
 0x483   : > { %v440_v13 = vpop.xlane.xlu0 %439 }
 0x484   : > { %1212 = vrcp.f32 %v440_v13 }
 0x487   : > { %v443_v15 = vpop.xlane.xlu0 %442 }
 0x488   : > { %1214 = vrcp.f32 %v443_v15 }
 0x48b   : > { %v452_v16 = vpop.permute.xlu0 %451 }
 0x48c   : > { %v454_v18 = vrot.slane %v452_v16, 4 }
 0x48e   : > { %v1061_v19 = vcombine.low %v453_v17, %v454_v18 }
 0x48f   : > { %v607_v36 = vpop.permute.xlu0 %606 }
 0x490   : > { %1125 = vmatpush3.bf16.msra.mxu0 %v1061_v19 }
 0x491   : > { %1136 = vmatprep.subr.bf16.mxu0 %v1240_v0  ;;  %v1213_v20 = vpop.eup %1212 }
 0x492   : > { %v446_v22 = vmul.f32 %v1213_v20, %v1209_v6  ;;  %v1198_v20 = vld [vmem:[%s1479_s3 + $0x10] sm:$0xff]  }
 0x495   : > { %v1215_v21 = vpop.eup %1214 }
 0x496   : > { %v447_v23 = vmul.f32 %v1215_v21, %v1211_v9 }
 0x498   : > { %v448_v25 = vpack.c.bf16 %v447_v23, %v446_v22 }
 0x49a   : > { %1127 = vmatmul.mubr.msk.bf16.vlgmr.msra.gmra.mxu0 %vm243_vm1, %v448_v25 }
 0x49b   : > { %1137 = vmatpush3.bf16.msra.mxu0 %v1196_v24  ;;  %1138 = vmatprep.mubr.msk.bf16.mxu0 %vm1241_vm0, %v1240_v0 }
 0x49c   : > { %1148 = vmatprep.subr.bf16.mxu0 %v1240_v0 }
 0x4a2   : > { %1139 = vmatmul.mubr.msk.bf16.vlgmr.msra.gmra.mxu0 %vm243_vm1, %v368_v46  ;;  %v233_v46 = vld [vmem:[%s1477_s1 + $0x28] sm:$0xff] }
 0x4a3   : > { %1150 = vmatprep.mubr.msk.bf16.mxu0 %vm1241_vm0, %v1240_v0 }
 0x55a   : > { %v496_v26 = vpop.f32.mrf.mxu0 }
 0x55c   : > { %v1128_v27 = vpop.f32.mrf.mxu0 }
 0x55e   : > { %v499_v29 = vpop.f32.mrf.mxu0 }
 0x55f   : > { %v503_v30 = vpack.c.bf16 %v499_v29, %v496_v26  ;;  %v234_v26 = vld [vmem:[%s1477_s1 + $0x30] sm:$0xff] }
 0x560   : > { %v1129_v32 = vpop.f32.mrf.mxu0 }
 0x561   : > { %1133 = vmatmul.mubr.msk.bf16.vlgmr.msra.gmra.mxu1 %vm243_vm1, %v503_v30  ;;  %v235_v30 = vld [vmem:[%s1477_s1 + $0x38] sm:$0xff] }
 0x562   : > { %1143 = vmatpush3.bf16.xpose.msra.mxu1 %v614_v31  ;;  %v1391_v33 = vpop.f32.mrf.mxu0  ;;  %1144 = vmatprep.mubr.msk.bf16.mxu1 %vm1241_vm0, %v1240_v0 }
 0x563   : > { %1154 = vmatprep.subr.bf16.mxu1 %v1240_v0 }
 0x564   : > { %v1140_v34 = vpop.f32.mrf.mxu0 }
 0x566   : > { %v1396_v35 = vpop.f32.mrf.mxu0 }
 0x568   : > { %v1141_v37 = vpop.f32.mrf.mxu0 }
 0x569   : > { %1145 = vmatmul.mubr.msk.bf16.vlgmr.msra.gmra.mxu1 %vm243_vm1, %v607_v36 }
 0x56a   : > { %1156 = vmatprep.mubr.msk.bf16.mxu1 %vm1241_vm0, %v1240_v0  ;;  %1155 = vmatpush3.bf16.msra.mxu1 %v1198_v20 }
 0x56b   : > { %1166 = vmatprep.subr.bf16.mxu1 %v1240_v0 }
 0x621   : > { %v1401_v38 = vpop.f32.mrf.mxu1 }
 0x623   : > { %v1134_v39 = vpop.f32.mrf.mxu1 }
 0x625   : > { %v1403_v40 = vpop.f32.mrf.mxu1 }
 0x627   : > { %v1135_v41 = vpop.f32.mrf.mxu1 }
 0x629   : > { %v650_v43 = vpop.f32.mrf.mxu1 }
 0x62a   : > { %v651_v44 = vadd.f32 %v650_v43, %v232_v42 }
 0x62b   : > { %v1146_v45 = vpop.f32.mrf.mxu1 }
 0x62c   : > { %v659_v47 = vadd.f32 %v651_v44, %v1322_v8 }
 0x62d   : > { %v653_v48 = vpop.f32.mrf.mxu1 }
 0x62e   : > { %v654_v49 = vadd.f32 %v653_v48, %v233_v46  ;;  %v661_v50 = vsel %vm243_vm1, %v659_v47, -inf }
 0x62f   : > { %662 = vmax.xlane.f32.xlu0 %v661_v50  ;;  %v1147_v51 = vpop.f32.mrf.mxu1 }
 0x630   : > { %v660_v52 = vadd.f32 %v654_v49, %v1331_v14 }
 0x632   : > { %v664_v53 = vsel %vm243_vm1, %v660_v52, -inf }
 0x633   : > { %665 = vmax.xlane.f32.xlu1 %v664_v53 }
 0x644   : > { %686 = vrot.lane.b32.xlu1 %v1303_v2, %s1246_s17 }
 0x645   : > { %684 = vrot.lane.b32.xlu0 %v1301_v1, %s1246_s17 }
 0x648   : > { %793 = vrot.lane.b32.xlu1 %v1307_v3, %s1247_s27 }
 0x6b8   : > { %v663_v54 = vpop.xlane.xlu0 %662 }
 0x6b9   : > { %v667_v55 = vsub.f32 %v659_v47, %v663_v54  ;;  %v1199_v54 = vld [vmem:[%s1479_s3 + $0x18] sm:$0xff]  }
 0x6bb   : > { %v669_v56 = vmul.f32 1.442695, %v667_v55 }
 0x6bc   : > { %v666_v57 = vpop.xlane.xlu1 %665  ;;  %v685_v58 = vpop.permute.xlu0 %684 }
 0x6bd   : > { %1216 = vpow2.f32 %v669_v56  ;;  %v668_v59 = vsub.f32 %v660_v52, %v666_v57  ;;  %v688_v61 = vrot.slane %v685_v58, 4  ;;  %v603_v52 = vadd.f32 %v1396_v35, %v1403_v40 }
 0x6bf   : > { %v671_v60 = vmul.f32 1.442695, %v668_v59 }
 0x6c0   : > { %v687_v62 = vpop.permute.xlu1 %686 }
 0x6c1   : > { %1218 = vpow2.f32 %v671_v60  ;;  %v689_v63 = vrot.slane %v687_v62, 4 }
 0x6c3   : > { %v1068_v4 = vcombine.low %v688_v61, %v689_v63 }
 0x6c5   : > { %1149 = vmatpush3.bf16.msra.mxu0 %v1068_v4 }
 0x6c6   : > { %1160 = vmatprep.subr.bf16.mxu0 %v1240_v0 }
 0x6ca   : > { %v1217_v5 = vpop.eup %1216 }
 0x6cb   : > { %v673_v6 = vsel %vm243_vm1, %v1217_v5, 0.0 }
 0x6cc   : > { %674 = vadd.xlane.f32.xlu0 %v673_v6 }
 0x6ce   : > { %v1219_v7 = vpop.eup %1218 }
 0x6cf   : > { %v676_v9 = vsel %vm243_vm1, %v1219_v7, 0.0 }
 0x6d0   : > { %677 = vadd.xlane.f32.xlu0 %v676_v9 }
 0x6e6   : > { %795 = vrot.lane.b32.xlu0 %v1307_v3, %s1248_s28  ;;  %v794_v3 = vpop.permute.xlu1 %793 }
 0x755   : > { %v675_v10 = vpop.xlane.xlu0 %674 }
 0x756   : > { %1220 = vrcp.f32 %v675_v10 }
 0x759   : > { %v678_v11 = vpop.xlane.xlu0 %677 }
 0x75a   : > { %1222 = vrcp.f32 %v678_v11  ;;  %v1077_v11 = vld [vmem:[%s1480_s4] ss:$0 sm:$0xff] }
 0x75d   : > { %v796_v15 = vpop.permute.xlu0 %795 }
 0x75e   : > { %v801_v18 = vsel %vm243_vm1, %v796_v15, 0 }
 0x763   : > { %v1221_v12 = vpop.eup %1220 }
 0x764   : > { %v681_v16 = vmul.f32 %v1221_v12, %v1217_v5 }
 0x767   : > { %v1223_v13 = vpop.eup %1222 }
 0x768   : > { %v682_v17 = vmul.f32 %v1223_v13, %v1219_v7 }
 0x76a   : > { %v683_v19 = vpack.c.bf16 %v682_v17, %v681_v16 }
 0x76c   : > { %1151 = vmatmul.mubr.msk.bf16.vlgmr.msra.gmra.mxu0 %vm243_vm1, %v683_v19 }
 0x76d   : > { %1161 = vmatpush3.bf16.xpose.msra.mxu0 %v801_v18  ;;  %1162 = vmatprep.mubr.msk.bf16.mxu0 %vm1241_vm0, %v1240_v0 }
 0x76e   : > { %1172 = vmatprep.subr.bf16.mxu0 %v1240_v0 }
 0x774   : > { %1163 = vmatmul.mubr.msk.bf16.vlgmr.msra.gmra.mxu0 %vm243_vm1, %v794_v3 }
 0x775   : > { %1174 = vmatprep.mubr.msk.bf16.mxu0 %vm1241_vm0, %v1240_v0  ;;  %1173 = vmatpush3.bf16.msra.mxu0 %v1199_v54 }
 0x82c   : > { %v731_v21 = vpop.f32.mrf.mxu0 }
 0x82e   : > { %v1152_v22 = vpop.f32.mrf.mxu0 }
 0x830   : > { %v734_v23 = vpop.f32.mrf.mxu0 }
 0x831   : > { %v738_v24 = vpack.c.bf16 %v734_v23, %v731_v21 }
 0x832   : > { %v1153_v25 = vpop.f32.mrf.mxu0 }
 0x833   : > { %1157 = vmatmul.mubr.msk.bf16.vlgmr.msra.gmra.mxu1 %vm243_vm1, %v738_v24 }
 0x834   : > { %v837_v27 = vpop.f32.mrf.mxu0  ;;  %1168 = vmatprep.mubr.msk.bf16.mxu1 %vm1241_vm0, %v1240_v0 }
 0x835   : > { %v838_v28 = vadd.f32 %v837_v27, %v234_v26 }
 0x836   : > { %v1164_v29 = vpop.f32.mrf.mxu0 }
 0x837   : > { %v846_v31 = vadd.f32 %v838_v28, %v1322_v8 }
 0x838   : > { %v840_v32 = vpop.f32.mrf.mxu0 }
 0x839   : > { %v841_v34 = vadd.f32 %v840_v32, %v235_v30  ;;  %v848_v36 = vsel %vm243_vm1, %v846_v31, -inf }
 0x83a   : > { %849 = vmax.xlane.f32.xlu0 %v848_v36  ;;  %v1165_v37 = vpop.f32.mrf.mxu0 }
 0x83b   : > { %v847_v39 = vadd.f32 %v841_v34, %v1331_v14 }
 0x83d   : > { %v851_v41 = vsel %vm243_vm1, %v847_v39, -inf }
 0x83e   : > { %852 = vmax.xlane.f32.xlu1 %v851_v41 }
 0x84f   : > { %871 = vrot.lane.b32.xlu1 %v1301_v1, %s1247_s27  ;;  %v600_v1 = vadd.f32 %v1391_v33, %v1401_v38 }
 0x8c3   : > { %v850_v0 = vpop.xlane.xlu0 %849 }
 0x8c4   : > { %v854_v42 = vsub.f32 %v846_v31, %v850_v0 }
 0x8c6   : > { %v856_v43 = vmul.f32 1.442695, %v854_v42 }
 0x8c7   : > { %v853_v44 = vpop.xlane.xlu1 %852 }
 0x8c8   : > { %1224 = vpow2.f32 %v856_v43  ;;  %v855_v8 = vsub.f32 %v847_v39, %v853_v44 }
 0x8ca   : > { %v858_v45 = vmul.f32 1.442695, %v855_v8 }
 0x8cb   : > { %v872_v58 = vpop.permute.xlu1 %871 }
 0x8cc   : > { %1226 = vpow2.f32 %v858_v45  ;;  %v875_v33 = vrot.slane %v872_v58, 4 }
 0x8d5   : > { %v1225_v46 = vpop.eup %1224 }
 0x8d6   : > { %v860_v47 = vsel %vm243_vm1, %v1225_v46, 0.0 }
 0x8d7   : > { %861 = vadd.xlane.f32.xlu0 %v860_v47 }
 0x8d9   : > { %v1227_v48 = vpop.eup %1226 }
 0x8da   : > { %v863_v14 = vsel %vm243_vm1, %v1227_v48, 0.0 }
 0x8db   : > { %864 = vadd.xlane.f32.xlu0 %v863_v14 }
 0x8f1   : > { %873 = vrot.lane.b32.xlu0 %v1303_v2, %s1247_s27 }
 0x8f3   : > { %v784_v49 = vpop.f32.mrf.mxu1 }
 0x8f4   : > { %v791_v50 = vadd.f32 %v784_v49, %v600_v1 }
 0x8f5   : > { %v1158_v51 = vpop.f32.mrf.mxu1 }
 0x8f7   : > { %v787_v53 = vpop.f32.mrf.mxu1 }
 0x8f8   : > { %v792_v55 = vadd.f32 %v787_v53, %v603_v52 }
 0x8f9   : > { %v1159_v56 = vpop.f32.mrf.mxu1 }
 0x960   : > { %v862_v57 = vpop.xlane.xlu0 %861 }
 0x961   : > { %1228 = vrcp.f32 %v862_v57 }
 0x964   : > { %v865_v2 = vpop.xlane.xlu0 %864 }
 0x965   : > { %1230 = vrcp.f32 %v865_v2 }
 0x968   : > { %v874_v38 = vpop.permute.xlu0 %873 }
 0x969   : > { %v876_v59 = vrot.slane %v874_v38, 4 }
 0x96b   : > { %v1073_v60 = vcombine.low %v875_v33, %v876_v59 }
 0x96d   : > { %1167 = vmatpush3.bf16.msra.mxu1 %v1073_v60 }
 0x96e   : > { %v1229_v35 = vpop.eup %1228 }
 0x96f   : > { %v868_v61 = vmul.f32 %v1229_v35, %v1225_v46 }
 0x972   : > { %v1231_v40 = vpop.eup %1230 }
 0x973   : > { %v869_v62 = vmul.f32 %v1231_v40, %v1227_v48 }
 0x975   : > { %v870_v63 = vpack.c.bf16 %v869_v62, %v868_v61 }
 0x977   : > { %1169 = vmatmul.mubr.msk.bf16.vlgmr.msra.gmra.mxu1 %vm243_vm1, %v870_v63 }
 0xa37   : > { %v918_v4 = vpop.f32.mrf.mxu1 }
 0xa39   : > { %v1170_v5 = vpop.f32.mrf.mxu1 }
 0xa3b   : > { %v921_v6 = vpop.f32.mrf.mxu1 }
 0xa3c   : > { %v925_v7 = vpack.c.bf16 %v921_v6, %v918_v4 }
 0xa3d   : > { %v1171_v9 = vpop.f32.mrf.mxu1 }
 0xa3e   : > { %1175 = vmatmul.mubr.msk.bf16.vlgmr.msra.gmra.mxu0 %vm243_vm1, %v925_v7 }
 0xafe   : > { %v971_v10 = vpop.f32.mrf.mxu0 }
 0xaff   : > { %v978_v12 = vadd.f32 %v971_v10, %v791_v50 }
 0xb00   : > { %v1176_v13 = vpop.f32.mrf.mxu0 }
 0xb01   : > { %v987_v15 = vadd.f32 %v1077_v11, %v978_v12 }
 0xb02   : > { %v974_v16 = vpop.f32.mrf.mxu0 }
 0xb03   : > { %990 = vst.msk [vmem:[%s224_s16] sm:$0xff] %vm989_vm2, %v987_v15  ;;  %v979_v17 = vadd.f32 %v974_v16, %v792_v55 }
 0xb04   : > { %v1177_v18 = vpop.f32.mrf.mxu0 }
 0xb05   : > { %v988_v19 = vadd.f32 %v1077_v11, %v979_v17 }
 0xb07   : > { %991 = vst.msk [vmem:[%s224_s16 + $0x8] sm:$0xff] %vm989_vm2, %v988_v19 }
 0xb08 PF: > { %s15_s18 = sadd.s32 1, %s1238_s18  }
 0xb09   : > { %p12_p4 = scmp.ge.s32.totalorder %s15_s18, 4  }
 0xb0b   :  { %14 = sbr.rel (!%p12_p4) target bundleno = 1 (0x1), region = 70 }

// kernel: model_forward.33
= control target key start
LH: loop header
LB: loop body
LE: loop exit
PB: predicated region body
PF: predicated region fallthrough
CT: control target
= control target key end

     0   :  { %vm37_vm0 = vcmask 261120   ;;  %s899_s0 = inlined_call_operand.vmem [shape: f32[128,32], index: 0, kind: input, shape index: {}]   ;;  %s900_s3 = inlined_call_operand.vmem [shape: bf16[32,32], index: 3, kind: input, shape index: {}]   ;;  %s901_s1 = inlined_call_operand.vmem [shape: f32[1,32], index: 1, kind: input, shape index: {}]   ;;  %s902_s2 = inlined_call_operand.vmem [shape: f32[1,32], index: 2, kind: input, shape index: {}]   ;;  %s903_s4 = inlined_call_operand.vmem [shape: f32[1,32], index: 4, kind: input, shape index: {}]   ;;  %s904_s5 = inlined_call_operand.vmem [shape: f32[128,32], index: 5, kind: output, shape index: {}]  }
   0x1   :  { %v21_v0 = vld [vmem:[%s899_s0] sm:$0xff]  ;;  %v22_v2 = vld [vmem:[%s899_s0 + $0x8] sm:$0xff]  ;;  %v23_v8 = vld [vmem:[%s899_s0 + $0x10] sm:$0xff] }
   0x2   :  { %v29_v1 = vld [vmem:[%s899_s0 + $0x40] sm:$0xff]  ;;  %v38_v3 = vsel %vm37_vm0, %v21_v0, 0.0  ;;  %v30_v5 = vld [vmem:[%s899_s0 + $0x48] sm:$0xff]  ;;  %v41_v6 = vsel %vm37_vm0, %v22_v2, 0.0  ;;  %v24_v9 = vld [vmem:[%s899_s0 + $0x18] sm:$0xff]  ;;  %v44_v10 = vsel %vm37_vm0, %v23_v8, 0.0 }
   0x3   :  { %v62_v4 = vsel %vm37_vm0, %v29_v1, 0.0  ;;  %39 = vadd.xlane.f32.xlu0 %v38_v3  ;;  %v65_v7 = vsel %vm37_vm0, %v30_v5, 0.0  ;;  %v47_v11 = vsel %vm37_vm0, %v24_v9, 0.0  ;;  %v603_v12 = vld [vmem:[%s899_s0 + $0x50] sm:$0xff]  ;;  %v608_v13 = vld [vmem:[%s899_s0 + $0x58] sm:$0xff]  ;;  %v617_v16 = vld [vmem:[%s899_s0 + $0x20] sm:$0xff] }
   0x4   :  { %63 = vadd.xlane.f32.xlu1 %v62_v4  ;;  %v68_v14 = vsel %vm37_vm0, %v603_v12, 0.0  ;;  %v71_v15 = vsel %vm37_vm0, %v608_v13, 0.0  ;;  %v622_v17 = vld [vmem:[%s899_s0 + $0x28] sm:$0xff]  ;;  %v50_v18 = vsel %vm37_vm0, %v617_v16, 0.0  ;;  %v631_v20 = vld [vmem:[%s899_s0 + $0x60] sm:$0xff]  ;;  %v645_v24 = vld [vmem:[%s899_s0 + $0x30] sm:$0xff] }
   0x5   :  { %v53_v19 = vsel %vm37_vm0, %v622_v17, 0.0  ;;  %v636_v21 = vld [vmem:[%s899_s0 + $0x68] sm:$0xff]  ;;  %v74_v22 = vsel %vm37_vm0, %v631_v20, 0.0  ;;  %v650_v25 = vld [vmem:[%s899_s0 + $0x38] sm:$0xff]  ;;  %v56_v26 = vsel %vm37_vm0, %v645_v24, 0.0  ;;  %v659_v28 = vld [vmem:[%s899_s0 + $0x70] sm:$0xff] }
   0x6   :  { %v77_v23 = vsel %vm37_vm0, %v636_v21, 0.0  ;;  %v59_v27 = vsel %vm37_vm0, %v650_v25, 0.0  ;;  %v664_v29 = vld [vmem:[%s899_s0 + $0x78] sm:$0xff]  ;;  %v80_v30 = vsel %vm37_vm0, %v659_v28, 0.0 }
   0x7   :  { %42 = vadd.xlane.f32.xlu0 %v41_v6  ;;  %v83_v31 = vsel %vm37_vm0, %v664_v29, 0.0 }
   0x8   :  { %66 = vadd.xlane.f32.xlu1 %v65_v7 }
   0xb   :  { %45 = vadd.xlane.f32.xlu0 %v44_v10 }
   0xc   :  { %48 = vadd.xlane.f32.xlu1 %v47_v11 }
   0xf   :  { %69 = vadd.xlane.f32.xlu0 %v68_v14 }
  0x10   :  { %72 = vadd.xlane.f32.xlu1 %v71_v15 }
  0x13   :  { %51 = vadd.xlane.f32.xlu0 %v50_v18 }
  0x14   :  { %54 = vadd.xlane.f32.xlu1 %v53_v19 }
  0x17   :  { %75 = vadd.xlane.f32.xlu0 %v74_v22 }
  0x18   :  { %78 = vadd.xlane.f32.xlu1 %v77_v23 }
  0x1b   :  { %57 = vadd.xlane.f32.xlu0 %v56_v26 }
  0x1c   :  { %60 = vadd.xlane.f32.xlu1 %v59_v27 }
  0x1f   :  { %81 = vadd.xlane.f32.xlu0 %v80_v30 }
  0x20   :  { %84 = vadd.xlane.f32.xlu1 %v83_v31 }
  0x8c   :  { %v40_v32 = vpop.xlane.xlu0 %39 }
  0x8d   :  { %v64_v33 = vpop.xlane.xlu1 %63  ;;  %v87_v34 = vmul.f32 0.03125, %v40_v32 }
  0x8e   :  { %v95_v35 = vmul.f32 0.03125, %v64_v33 }
  0x8f   :  { %v670_v36 = vsub.f32 %v21_v0, %v87_v34 }
  0x90   :  { %v672_v37 = vsub.f32 %v29_v1, %v95_v35  ;;  %v43_v38 = vpop.xlane.xlu0 %42 }
  0x91   :  { %v67_v39 = vpop.xlane.xlu1 %66  ;;  %v88_v40 = vmul.f32 0.03125, %v43_v38  ;;  %v119_v42 = vmul.f32 %v670_v36, %v670_v36 }
  0x92   :  { %v96_v41 = vmul.f32 0.03125, %v67_v39  ;;  %v127_v43 = vmul.f32 %v672_v37, %v672_v37 }
  0x93   :  { %v678_v44 = vsub.f32 %v22_v2, %v88_v40  ;;  %v135_v46 = vsel %vm37_vm0, %v119_v42, 0.0 }
  0x94   :  { %v680_v45 = vsub.f32 %v30_v5, %v96_v41  ;;  %136 = vadd.xlane.f32.xlu0 %v135_v46  ;;  %v46_v47 = vpop.xlane.xlu0 %45  ;;  %v159_v49 = vsel %vm37_vm0, %v127_v43, 0.0 }
  0x95   :  { %v49_v48 = vpop.xlane.xlu1 %48  ;;  %v89_v50 = vmul.f32 0.03125, %v46_v47  ;;  %v120_v52 = vmul.f32 %v678_v44, %v678_v44 }
  0x96   :  { %v90_v51 = vmul.f32 0.03125, %v49_v48  ;;  %v128_v53 = vmul.f32 %v680_v45, %v680_v45 }
  0x97   :  { %v688_v54 = vsub.f32 %v23_v8, %v89_v50  ;;  %v138_v56 = vsel %vm37_vm0, %v120_v52, 0.0 }
  0x98   :  { %v690_v55 = vsub.f32 %v24_v9, %v90_v51  ;;  %160 = vadd.xlane.f32.xlu0 %v159_v49  ;;  %139 = vadd.xlane.f32.xlu1 %v138_v56  ;;  %v70_v57 = vpop.xlane.xlu0 %69  ;;  %v162_v59 = vsel %vm37_vm0, %v128_v53, 0.0  ;;  %v513_v53 = vld [vmem:[%s900_s3] sm:$0xff]  }
  0x99   :  { %v73_v58 = vpop.xlane.xlu1 %72  ;;  %v97_v60 = vmul.f32 0.03125, %v70_v57  ;;  %v121_v62 = vmul.f32 %v688_v54, %v688_v54 }
  0x9a   :  { %v98_v61 = vmul.f32 0.03125, %v73_v58  ;;  %v122_v63 = vmul.f32 %v690_v55, %v690_v55 }
  0x9b   :  { %v699_v0 = vsub.f32 %v603_v12, %v97_v60  ;;  %v141_v2 = vsel %vm37_vm0, %v121_v62, 0.0 }
  0x9c   :  { %v702_v1 = vsub.f32 %v608_v13, %v98_v61  ;;  %163 = vadd.xlane.f32.xlu1 %v162_v59  ;;  %142 = vadd.xlane.f32.xlu0 %v141_v2  ;;  %v52_v3 = vpop.xlane.xlu0 %51  ;;  %v144_v5 = vsel %vm37_vm0, %v122_v63, 0.0 }
  0x9d   :  { %v55_v4 = vpop.xlane.xlu1 %54  ;;  %v91_v6 = vmul.f32 0.03125, %v52_v3  ;;  %v129_v8 = vmul.f32 %v699_v0, %v699_v0 }
  0x9e   :  { %v92_v7 = vmul.f32 0.03125, %v55_v4  ;;  %v130_v9 = vmul.f32 %v702_v1, %v702_v1 }
  0x9f   :  { %v711_v10 = vsub.f32 %v617_v16, %v91_v6  ;;  %v165_v12 = vsel %vm37_vm0, %v129_v8, 0.0 }
  0xa0   :  { %v714_v11 = vsub.f32 %v622_v17, %v92_v7  ;;  %145 = vadd.xlane.f32.xlu1 %v144_v5  ;;  %166 = vadd.xlane.f32.xlu0 %v165_v12  ;;  %v76_v13 = vpop.xlane.xlu0 %75  ;;  %v168_v15 = vsel %vm37_vm0, %v130_v9, 0.0 }
  0xa1   :  { %v79_v14 = vpop.xlane.xlu1 %78  ;;  %v99_v18 = vmul.f32 0.03125, %v76_v13  ;;  %v123_v22 = vmul.f32 %v711_v10, %v711_v10 }
  0xa2   :  { %v100_v19 = vmul.f32 0.03125, %v79_v14  ;;  %v124_v16 = vmul.f32 %v714_v11, %v714_v11 }
  0xa3   :  { %v723_v23 = vsub.f32 %v631_v20, %v99_v18  ;;  %v147_v26 = vsel %vm37_vm0, %v123_v22, 0.0 }
  0xa4   :  { %v726_v17 = vsub.f32 %v636_v21, %v100_v19  ;;  %169 = vadd.xlane.f32.xlu1 %v168_v15  ;;  %148 = vadd.xlane.f32.xlu0 %v147_v26  ;;  %v58_v27 = vpop.xlane.xlu0 %57  ;;  %v150_v31 = vsel %vm37_vm0, %v124_v16, 0.0 }
  0xa5   :  { %v61_v30 = vpop.xlane.xlu1 %60  ;;  %v93_v32 = vmul.f32 0.03125, %v58_v27  ;;  %v131_v34 = vmul.f32 %v723_v23, %v723_v23 }
  0xa6   :  { %v94_v33 = vmul.f32 0.03125, %v61_v30  ;;  %v132_v20 = vmul.f32 %v726_v17, %v726_v17 }
  0xa7   :  { %v735_v35 = vsub.f32 %v645_v24, %v93_v32  ;;  %v171_v38 = vsel %vm37_vm0, %v131_v34, 0.0 }
  0xa8   :  { %v738_v21 = vsub.f32 %v650_v25, %v94_v33  ;;  %151 = vadd.xlane.f32.xlu1 %v150_v31  ;;  %172 = vadd.xlane.f32.xlu0 %v171_v38  ;;  %v82_v39 = vpop.xlane.xlu0 %81  ;;  %v174_v41 = vsel %vm37_vm0, %v132_v20, 0.0  ;;  %v770_v33 = vld [vmem:[%s901_s1] ss:$0 sm:$0xff] }
  0xa9   :  { %v85_v40 = vpop.xlane.xlu1 %84  ;;  %v101_v42 = vmul.f32 0.03125, %v82_v39  ;;  %v125_v46 = vmul.f32 %v735_v35, %v735_v35 }
  0xaa   :  { %v102_v43 = vmul.f32 0.03125, %v85_v40  ;;  %v126_v24 = vmul.f32 %v738_v21, %v738_v21 }
  0xab   :  { %v747_v47 = vsub.f32 %v659_v28, %v101_v42  ;;  %v153_v48 = vsel %vm37_vm0, %v125_v46, 0.0 }
  0xac   :  { %v750_v25 = vsub.f32 %v664_v29, %v102_v43  ;;  %175 = vadd.xlane.f32.xlu1 %v174_v41  ;;  %154 = vadd.xlane.f32.xlu0 %v153_v48  ;;  %v156_v49 = vsel %vm37_vm0, %v126_v24, 0.0  ;;  %v512_v29 = vld [vmem:[%s900_s3 + $0x8] sm:$0xff]  }
  0xad   :  { %v133_v50 = vmul.f32 %v747_v47, %v747_v47  ;;  %488 = vmatprep.subr.bf16.mxu0 %v512_v29  ;;  %508 = vmatprep.subr.bf16.mxu1 %v512_v29 }
  0xae   :  { %v134_v51 = vmul.f32 %v750_v25, %v750_v25  ;;  %489 = vmatpush3.bf16.msra.mxu0 %v512_v29  ;;  %510 = vmatpush3.bf16.msra.mxu1 %v512_v29 }
  0xaf   :  { %v177_v52 = vsel %vm37_vm0, %v133_v50, 0.0  ;;  %490 = vmatprep.subr.bf16.mxu0 %v513_v53  ;;  %509 = vmatprep.subr.bf16.mxu1 %v513_v53 }
  0xb0   :  { %157 = vadd.xlane.f32.xlu1 %v156_v49  ;;  %178 = vadd.xlane.f32.xlu0 %v177_v52  ;;  %v180_v28 = vsel %vm37_vm0, %v134_v51, 0.0 }
  0xb2   :  { %491 = vmatpush3.bf16.msra.mxu0 %v513_v53  ;;  %511 = vmatpush3.bf16.msra.mxu1 %v513_v53 }
  0xb4   :  { %181 = vadd.xlane.f32.xlu1 %v180_v28 }
 0x11d   :  { %v137_v56 = vpop.xlane.xlu0 %136 }
 0x11e   :  { %v183_v57 = vmul.f32 0.03125, %v137_v56 }
 0x120   :  { %v199_v58 = vadd.f32 1e-05, %v183_v57 }
 0x121   :  { %v140_v59 = vpop.xlane.xlu1 %139  ;;  %v161_v60 = vpop.xlane.xlu0 %160 }
 0x122   :  { %514 = vrsqrt.f32 %v199_v58  ;;  %v184_v61 = vmul.f32 0.03125, %v140_v59  ;;  %v191_v62 = vmul.f32 0.03125, %v161_v60 }
 0x124   :  { %v200_v63 = vadd.f32 1e-05, %v184_v61  ;;  %v207_v2 = vadd.f32 1e-05, %v191_v62 }
 0x125   :  { %v164_v3 = vpop.xlane.xlu1 %163  ;;  %v143_v4 = vpop.xlane.xlu0 %142 }
 0x126   :  { %516 = vrsqrt.f32 %v200_v63  ;;  %v192_v5 = vmul.f32 0.03125, %v164_v3  ;;  %v185_v6 = vmul.f32 0.03125, %v143_v4 }
 0x127   :  { %518 = vrsqrt.f32 %v207_v2 }
 0x128   :  { %v208_v7 = vadd.f32 1e-05, %v192_v5  ;;  %v201_v8 = vadd.f32 1e-05, %v185_v6 }
 0x129   :  { %v146_v9 = vpop.xlane.xlu1 %145  ;;  %v167_v12 = vpop.xlane.xlu0 %166 }
 0x12a   :  { %520 = vrsqrt.f32 %v208_v7  ;;  %v186_v13 = vmul.f32 0.03125, %v146_v9  ;;  %v193_v14 = vmul.f32 0.03125, %v167_v12 }
 0x12b   :  { %522 = vrsqrt.f32 %v201_v8 }
 0x12c   :  { %v202_v15 = vadd.f32 1e-05, %v186_v13  ;;  %v209_v18 = vadd.f32 1e-05, %v193_v14 }
 0x12d   :  { %v170_v19 = vpop.xlane.xlu1 %169  ;;  %v149_v22 = vpop.xlane.xlu0 %148 }
 0x12e   :  { %524 = vrsqrt.f32 %v202_v15  ;;  %v194_v16 = vmul.f32 0.03125, %v170_v19  ;;  %v187_v26 = vmul.f32 0.03125, %v149_v22 }
 0x12f   :  { %v515_v27 = vpop.eup %514  ;;  %526 = vrsqrt.f32 %v209_v18 }
 0x130   :  { %v210_v30 = vadd.f32 1e-05, %v194_v16  ;;  %v203_v31 = vadd.f32 1e-05, %v187_v26  ;;  %v231_v32 = vmul.f32 %v515_v27, %v670_v36  ;;  %v777_v36 = vld [vmem:[%s902_s2] ss:$0 sm:$0xff] }
 0x131   :  { %v152_v34 = vpop.xlane.xlu1 %151  ;;  %v173_v20 = vpop.xlane.xlu0 %172 }
 0x132   :  { %528 = vrsqrt.f32 %v210_v30  ;;  %v188_v38 = vmul.f32 0.03125, %v152_v34  ;;  %v195_v39 = vmul.f32 0.03125, %v173_v20  ;;  %v254_v41 = vmul.f32 %v770_v33, %v231_v32 }
 0x133   :  { %v517_v40 = vpop.eup %516  ;;  %530 = vrsqrt.f32 %v203_v31 }
 0x134   :  { %v519_v42 = vpop.eup %518  ;;  %v204_v43 = vadd.f32 1e-05, %v188_v38  ;;  %v211_v46 = vadd.f32 1e-05, %v195_v39  ;;  %v232_v24 = vmul.f32 %v517_v40, %v678_v44  ;;  %v277_v53 = vadd.f32 %v777_v36, %v254_v41 }
 0x135   :  { %v176_v48 = vpop.xlane.xlu1 %175  ;;  %v155_v49 = vpop.xlane.xlu0 %154  ;;  %v239_v50 = vmul.f32 %v519_v42, %v672_v37 }
 0x136   :  { %532 = vrsqrt.f32 %v204_v43  ;;  %v196_v51 = vmul.f32 0.03125, %v176_v48  ;;  %v189_v52 = vmul.f32 0.03125, %v155_v49  ;;  %v255_v28 = vmul.f32 %v770_v33, %v232_v24 }
 0x137   :  { %v521_v29 = vpop.eup %520  ;;  %534 = vrsqrt.f32 %v211_v46  ;;  %v262_v37 = vmul.f32 %v770_v33, %v239_v50 }
 0x138   :  { %v523_v56 = vpop.eup %522  ;;  %v212_v44 = vadd.f32 1e-05, %v196_v51  ;;  %v205_v57 = vadd.f32 1e-05, %v189_v52  ;;  %v278_v58 = vadd.f32 %v777_v36, %v255_v28  ;;  %v240_v59 = vmul.f32 %v521_v29, %v680_v45 }
 0x139   :  { %v158_v60 = vpop.xlane.xlu1 %157  ;;  %v179_v61 = vpop.xlane.xlu0 %178  ;;  %v233_v62 = vmul.f32 %v523_v56, %v688_v54  ;;  %v285_v54 = vadd.f32 %v777_v36, %v262_v37 }
 0x13a   :  { %536 = vrsqrt.f32 %v212_v44  ;;  %v190_v63 = vmul.f32 0.03125, %v158_v60  ;;  %v197_v2 = vmul.f32 0.03125, %v179_v61  ;;  %v293_v3 = vpack.c.bf16 %v278_v58, %v277_v53 }
 0x13b   :  { %v525_v4 = vpop.eup %524  ;;  %538 = vrsqrt.f32 %v205_v57  ;;  %v263_v5 = vmul.f32 %v770_v33, %v240_v59  ;;  %v256_v6 = vmul.f32 %v770_v33, %v233_v62 }
 0x13c   :  { %v527_v7 = vpop.eup %526  ;;  %v206_v8 = vadd.f32 1e-05, %v190_v63  ;;  %v213_v9 = vadd.f32 1e-05, %v197_v2  ;;  %492 = vmatprep.mubr.msk.bf16.mxu0 %vm37_vm0, %v293_v3  ;;  %v234_v45 = vmul.f32 %v525_v4, %v690_v55  ;;  %v467_v4 = vld [vmem:[%s903_s4] ss:$0 sm:$0xff] }
 0x13d   :  { %v182_v12 = vpop.xlane.xlu1 %181  ;;  %v286_v13 = vadd.f32 %v777_v36, %v263_v5  ;;  %v241_v14 = vmul.f32 %v527_v7, %v699_v0  ;;  %v279_v16 = vadd.f32 %v777_v36, %v256_v6 }
 0x13e   :  { %540 = vrsqrt.f32 %v206_v8  ;;  %v198_v15 = vmul.f32 0.03125, %v182_v12  ;;  %v257_v18 = vmul.f32 %v770_v33, %v234_v45 }
 0x13f   :  { %v529_v19 = vpop.eup %528  ;;  %542 = vrsqrt.f32 %v213_v9  ;;  %v297_v22 = vpack.c.bf16 %v286_v13, %v285_v54  ;;  %v264_v31 = vmul.f32 %v770_v33, %v241_v14 }
 0x140   :  { %v531_v26 = vpop.eup %530  ;;  %v214_v27 = vadd.f32 1e-05, %v198_v15  ;;  %v280_v55 = vadd.f32 %v777_v36, %v257_v18  ;;  %v242_v30 = vmul.f32 %v529_v19, %v702_v1 }
 0x141   :  { %500 = vmatprep.mubr.msk.bf16.mxu1 %vm37_vm0, %v297_v22  ;;  %v235_v0 = vmul.f32 %v531_v26, %v711_v10  ;;  %v287_v39 = vadd.f32 %v777_v36, %v264_v31 }
 0x142   :  { %544 = vrsqrt.f32 %v214_v27  ;;  %v294_v32 = vpack.c.bf16 %v280_v55, %v279_v16  ;;  %v265_v34 = vmul.f32 %v770_v33, %v242_v30 }
 0x143   :  { %v533_v20 = vpop.eup %532  ;;  %v258_v41 = vmul.f32 %v770_v33, %v235_v0 }
 0x144   :  { %v535_v38 = vpop.eup %534  ;;  %493 = vmatmul.mubr.msk.bf16.vlgmr.msra.gmra.mxu0 %vm37_vm0, %v294_v32  ;;  %v288_v40 = vadd.f32 %v777_v36, %v265_v34  ;;  %v236_v1 = vmul.f32 %v533_v20, %v714_v11 }
 0x145   :  { %v243_v42 = vmul.f32 %v535_v38, %v723_v23  ;;  %v281_v48 = vadd.f32 %v777_v36, %v258_v41 }
 0x146   :  { %v298_v43 = vpack.c.bf16 %v288_v40, %v287_v39  ;;  %v259_v10 = vmul.f32 %v770_v33, %v236_v1 }
 0x147   :  { %v537_v46 = vpop.eup %536  ;;  %v266_v51 = vmul.f32 %v770_v33, %v243_v42 }
 0x148   :  { %v539_v24 = vpop.eup %538  ;;  %501 = vmatmul.mubr.msk.bf16.vlgmr.msra.gmra.mxu1 %vm37_vm0, %v298_v43  ;;  %v282_v49 = vadd.f32 %v777_v36, %v259_v10  ;;  %v244_v50 = vmul.f32 %v537_v46, %v726_v17 }
 0x149   :  { %v237_v11 = vmul.f32 %v539_v24, %v735_v35  ;;  %v289_v53 = vadd.f32 %v777_v36, %v266_v51 }
 0x14a   :  { %v295_v52 = vpack.c.bf16 %v282_v49, %v281_v48  ;;  %v267_v23 = vmul.f32 %v770_v33, %v244_v50 }
 0x14b   :  { %v541_v28 = vpop.eup %540  ;;  %v260_v57 = vmul.f32 %v770_v33, %v237_v11 }
 0x14c   :  { %v543_v29 = vpop.eup %542  ;;  %496 = vmatprep.mubr.msk.bf16.mxu0 %vm37_vm0, %v295_v52  ;;  %v290_v56 = vadd.f32 %v777_v36, %v267_v23  ;;  %v238_v44 = vmul.f32 %v541_v28, %v738_v21 }
 0x14d   :  { %v245_v17 = vmul.f32 %v543_v29, %v747_v47  ;;  %v283_v60 = vadd.f32 %v777_v36, %v260_v57 }
 0x14e   :  { %v299_v58 = vpack.c.bf16 %v290_v56, %v289_v53  ;;  %v261_v35 = vmul.f32 %v770_v33, %v238_v44 }
 0x14f   :  { %v545_v59 = vpop.eup %544  ;;  %v268_v62 = vmul.f32 %v770_v33, %v245_v17 }
 0x150   :  { %504 = vmatprep.mubr.msk.bf16.mxu1 %vm37_vm0, %v299_v58  ;;  %v284_v61 = vadd.f32 %v777_v36, %v261_v35  ;;  %v246_v37 = vmul.f32 %v545_v59, %v750_v25 }
 0x151   :  { %v291_v47 = vadd.f32 %v777_v36, %v268_v62 }
 0x152   :  { %v296_v63 = vpack.c.bf16 %v284_v61, %v283_v60  ;;  %v269_v21 = vmul.f32 %v770_v33, %v246_v37 }
 0x154   :  { %497 = vmatmul.mubr.msk.bf16.gmra.mxu0 %vm37_vm0, %v296_v63  ;;  %v292_v2 = vadd.f32 %v777_v36, %v269_v21 }
 0x156   :  { %v300_v3 = vpack.c.bf16 %v292_v2, %v291_v47 }
 0x158   :  { %505 = vmatmul.mubr.msk.bf16.gmra.mxu1 %vm37_vm0, %v300_v3 }
 0x204   :  { %v494_v5 = vpop.f32.mrf.mxu0 }
 0x205   :  { %v391_v25 = vadd.f32 %v494_v5, %v467_v4 }
 0x206   :  { %v382_v6 = vpop.f32.mrf.mxu0 }
 0x207   :  { %447 = vst.msk [vmem:[%s904_s5 + $0x10] sm:$0xff] %vm37_vm0, %v391_v25  ;;  %v383_v33 = vadd.f32 %v467_v4, %v382_v6 }
 0x208   :  { %v495_v7 = vpop.f32.mrf.mxu0  ;;  %v502_v8 = vpop.f32.mrf.mxu1 }
 0x209   :  { %445 = vst.msk [vmem:[%s904_s5] sm:$0xff] %vm37_vm0, %v383_v33  ;;  %v394_v36 = vadd.f32 %v495_v7, %v467_v4  ;;  %v423_v9 = vadd.f32 %v502_v8, %v467_v4 }
 0x20a   :  { %v385_v45 = vpop.f32.mrf.mxu0  ;;  %v414_v12 = vpop.f32.mrf.mxu1 }
 0x20b   :  { %448 = vst.msk [vmem:[%s904_s5 + $0x18] sm:$0xff] %vm37_vm0, %v394_v36  ;;  %455 = vst.msk [vmem:[%s904_s5 + $0x50] sm:$0xff] %vm37_vm0, %v423_v9  ;;  %v386_v54 = vadd.f32 %v467_v4, %v385_v45  ;;  %v415_v13 = vadd.f32 %v467_v4, %v414_v12 }
 0x20c   :  { %v503_v14 = vpop.f32.mrf.mxu1 }
 0x20d   :  { %446 = vst.msk [vmem:[%s904_s5 + $0x8] sm:$0xff] %vm37_vm0, %v386_v54  ;;  %453 = vst.msk [vmem:[%s904_s5 + $0x40] sm:$0xff] %vm37_vm0, %v415_v13  ;;  %v426_v15 = vadd.f32 %v503_v14, %v467_v4 }
 0x20e   :  { %v417_v18 = vpop.f32.mrf.mxu1 }
 0x20f   :  { %456 = vst.msk [vmem:[%s904_s5 + $0x58] sm:$0xff] %vm37_vm0, %v426_v15  ;;  %v418_v19 = vadd.f32 %v467_v4, %v417_v18 }
 0x211   :  { %454 = vst.msk [vmem:[%s904_s5 + $0x48] sm:$0xff] %vm37_vm0, %v418_v19 }
 0x214   :  { %v498_v22 = vpop.f32.mrf.mxu0 }
 0x215   :  { %v407_v16 = vadd.f32 %v498_v22, %v467_v4 }
 0x216   :  { %v398_v26 = vpop.f32.mrf.mxu0 }
 0x217   :  { %451 = vst.msk [vmem:[%s904_s5 + $0x30] sm:$0xff] %vm37_vm0, %v407_v16  ;;  %v399_v27 = vadd.f32 %v467_v4, %v398_v26 }
 0x218   :  { %v499_v55 = vpop.f32.mrf.mxu0  ;;  %v506_v30 = vpop.f32.mrf.mxu1 }
 0x219   :  { %449 = vst.msk [vmem:[%s904_s5 + $0x20] sm:$0xff] %vm37_vm0, %v399_v27  ;;  %v410_v31 = vadd.f32 %v499_v55, %v467_v4  ;;  %v439_v0 = vadd.f32 %v506_v30, %v467_v4 }
 0x21a   :  { %v401_v32 = vpop.f32.mrf.mxu0  ;;  %v430_v34 = vpop.f32.mrf.mxu1 }
 0x21b   :  { %452 = vst.msk [vmem:[%s904_s5 + $0x38] sm:$0xff] %vm37_vm0, %v410_v31  ;;  %459 = vst.msk [vmem:[%s904_s5 + $0x70] sm:$0xff] %vm37_vm0, %v439_v0  ;;  %v402_v20 = vadd.f32 %v467_v4, %v401_v32  ;;  %v431_v38 = vadd.f32 %v467_v4, %v430_v34 }
 0x21c   :  { %v507_v39 = vpop.f32.mrf.mxu1 }
 0x21d   :  { %450 = vst.msk [vmem:[%s904_s5 + $0x28] sm:$0xff] %vm37_vm0, %v402_v20  ;;  %457 = vst.msk [vmem:[%s904_s5 + $0x60] sm:$0xff] %vm37_vm0, %v431_v38  ;;  %v442_v40 = vadd.f32 %v507_v39, %v467_v4 }
 0x21e   :  { %v433_v1 = vpop.f32.mrf.mxu1 }
 0x21f   :  { %460 = vst.msk [vmem:[%s904_s5 + $0x78] sm:$0xff] %vm37_vm0, %v442_v40  ;;  %v434_v41 = vadd.f32 %v467_v4, %v433_v1 }
 0x221   :  { %458 = vst.msk [vmem:[%s904_s5 + $0x68] sm:$0xff] %vm37_vm0, %v434_v41 }

// kernel: model_forward.35
= control target key start
LH: loop header
LB: loop body
LE: loop exit
PB: predicated region body
PF: predicated region fallthrough
CT: control target
= control target key end

     0   :  { %vm238_vm0 = vcmask 261120   ;;  %s958_s1 = inlined_call_operand.vmem [shape: bf16[288,32], index: 1, kind: input, shape index: {}]   ;;  %s959_s0 = inlined_call_operand.vmem [shape: f32[128,288], index: 0, kind: input, shape index: {}]   ;;  %s960_s2 = inlined_call_operand.vmem [shape: f32[1,32], index: 2, kind: input, shape index: {}]   ;;  %s961_s3 = inlined_call_operand.vmem [shape: f32[128,32], index: 3, kind: output, shape index: {}]  }
   0x1   :  { %v614_v0 = vld [vmem:[%s958_s1 + $0x78] sm:$0xff]   ;;  %v616_v2 = vld [vmem:[%s958_s1 + $0x70] sm:$0xff]   ;;  %v618_v4 = vld [vmem:[%s958_s1 + $0x68] sm:$0xff]  }
   0x2   :  { %v615_v1 = vld [vmem:[%s958_s1 + $0x38] sm:$0xff]   ;;  %504 = vmatprep.subr.bf16.mxu0 %v614_v0  ;;  %598 = vmatprep.subr.bf16.mxu1 %v614_v0  ;;  %v617_v3 = vld [vmem:[%s958_s1 + $0x30] sm:$0xff]   ;;  %v619_v5 = vld [vmem:[%s958_s1 + $0x28] sm:$0xff]  }
   0x3   :  { %505 = vmatpush3.bf16.msra.mxu0 %v615_v1  ;;  %606 = vmatpush3.bf16.msra.mxu1 %v615_v1  ;;  %v620_v6 = vld [vmem:[%s958_s1 + $0x60] sm:$0xff]   ;;  %v622_v8 = vld [vmem:[%s958_s1 + $0x58] sm:$0xff]   ;;  %v624_v10 = vld [vmem:[%s958_s1 + $0x50] sm:$0xff]  }
   0x4   :  { %506 = vmatprep.subr.bf16.mxu0 %v616_v2  ;;  %599 = vmatprep.subr.bf16.mxu1 %v616_v2  ;;  %v621_v7 = vld [vmem:[%s958_s1 + $0x20] sm:$0xff]   ;;  %v623_v9 = vld [vmem:[%s958_s1 + $0x18] sm:$0xff]   ;;  %v16_v11 = vld [vmem:[%s959_s0 + $0x8] sm:$0xff] }
   0x5   :  { %v19_v12 = vld [vmem:[%s959_s0 + $0x20] sm:$0xff]  ;;  %v52_v13 = vld [vmem:[%s959_s0 + $0x128] sm:$0xff]  ;;  %v625_v17 = vld [vmem:[%s958_s1 + $0x10] sm:$0xff]  }
   0x6   :  { %v64_v14 = vpack.c.bf16 %v19_v12, %v16_v11  ;;  %v55_v15 = vld [vmem:[%s959_s0 + $0x140] sm:$0xff]  ;;  %v626_v18 = vld [vmem:[%s958_s1 + $0x48] sm:$0xff]   ;;  %v18_v23 = vld [vmem:[%s959_s0 + $0x18] sm:$0xff] }
   0x7   :  { %507 = vmatpush3.bf16.msra.mxu0 %v617_v3  ;;  %607 = vmatpush3.bf16.msra.mxu1 %v617_v3  ;;  %v82_v16 = vpack.c.bf16 %v55_v15, %v52_v13  ;;  %v627_v19 = vld [vmem:[%s958_s1 + $0x8] sm:$0xff]   ;;  %v628_v20 = vld [vmem:[%s958_s1 + $0x40] sm:$0xff]   ;;  %v54_v25 = vld [vmem:[%s959_s0 + $0x138] sm:$0xff] }
   0x8   :  { %508 = vmatprep.subr.bf16.mxu0 %v618_v4  ;;  %600 = vmatprep.subr.bf16.mxu1 %v618_v4  ;;  %v629_v21 = vld [vmem:[%s958_s1] sm:$0xff]   ;;  %v630_v26 = vld [vmem:[%s958_s1 + $0x88] sm:$0xff]   ;;  %v22_v27 = vld [vmem:[%s959_s0 + $0x38] sm:$0xff] }
   0x9   :  { %295 = vmatprep.mubr.bf16.mxu0 %v64_v14  ;;  %343 = vmatprep.mubr.bf16.mxu1 %v82_v16  ;;  %v15_v22 = vld [vmem:[%s959_s0] sm:$0xff]  ;;  %v25_v28 = vld [vmem:[%s959_s0 + $0x50] sm:$0xff]  ;;  %v58_v29 = vld [vmem:[%s959_s0 + $0x158] sm:$0xff] }
   0xa   :  { %v51_v24 = vld [vmem:[%s959_s0 + $0x120] sm:$0xff]  ;;  %v61_v30 = vld [vmem:[%s959_s0 + $0x170] sm:$0xff]  ;;  %v63_v31 = vpack.c.bf16 %v18_v23, %v15_v22  ;;  %v67_v33 = vpack.c.bf16 %v25_v28, %v22_v27  ;;  %v24_v37 = vld [vmem:[%s959_s0 + $0x48] sm:$0xff] }
   0xb   :  { %509 = vmatpush3.bf16.msra.mxu0 %v619_v5  ;;  %608 = vmatpush3.bf16.msra.mxu1 %v619_v5  ;;  %v81_v32 = vpack.c.bf16 %v54_v25, %v51_v24  ;;  %v85_v34 = vpack.c.bf16 %v61_v30, %v58_v29  ;;  %v631_v35 = vld [vmem:[%s958_s1 + $0x80] sm:$0xff]   ;;  %v21_v36 = vld [vmem:[%s959_s0 + $0x30] sm:$0xff]  ;;  %v60_v39 = vld [vmem:[%s959_s0 + $0x168] sm:$0xff] }
   0xc   :  { %510 = vmatprep.subr.bf16.mxu0 %v620_v6  ;;  %601 = vmatprep.subr.bf16.mxu1 %v620_v6  ;;  %v57_v38 = vld [vmem:[%s959_s0 + $0x150] sm:$0xff]  ;;  %v28_v40 = vld [vmem:[%s959_s0 + $0x68] sm:$0xff]  ;;  %v31_v41 = vld [vmem:[%s959_s0 + $0x80] sm:$0xff]  ;;  %v66_v44 = vpack.c.bf16 %v24_v37, %v21_v36 }
   0xd   :  { %v17_v42 = vld [vmem:[%s959_s0 + $0x10] sm:$0xff]  ;;  %v20_v43 = vld [vmem:[%s959_s0 + $0x28] sm:$0xff]  ;;  %v84_v45 = vpack.c.bf16 %v60_v39, %v57_v38  ;;  %v70_v46 = vpack.c.bf16 %v31_v41, %v28_v40  ;;  %v27_v48 = vld [vmem:[%s959_s0 + $0x60] sm:$0xff] }
   0xe   :  { %v65_v47 = vpack.c.bf16 %v20_v43, %v17_v42  ;;  %v30_v49 = vld [vmem:[%s959_s0 + $0x78] sm:$0xff]  ;;  %v23_v50 = vld [vmem:[%s959_s0 + $0x40] sm:$0xff]  ;;  %v37_v53 = vld [vmem:[%s959_s0 + $0xb0] sm:$0xff] }
   0xf   :  { %511 = vmatpush3.bf16.msra.mxu0 %v621_v7  ;;  %609 = vmatpush3.bf16.msra.mxu1 %v621_v7  ;;  %v26_v51 = vld [vmem:[%s959_s0 + $0x58] sm:$0xff]  ;;  %v29_v54 = vld [vmem:[%s959_s0 + $0x70] sm:$0xff]  ;;  %v32_v55 = vld [vmem:[%s959_s0 + $0x88] sm:$0xff]  ;;  %v69_v56 = vpack.c.bf16 %v30_v49, %v27_v48 }
  0x10   :  { %512 = vmatprep.subr.bf16.mxu0 %v622_v8  ;;  %602 = vmatprep.subr.bf16.mxu1 %v622_v8  ;;  %v34_v52 = vld [vmem:[%s959_s0 + $0x98] sm:$0xff]  ;;  %v68_v57 = vpack.c.bf16 %v26_v51, %v23_v50  ;;  %v71_v59 = vpack.c.bf16 %v32_v55, %v29_v54  ;;  %v33_v60 = vld [vmem:[%s959_s0 + $0x90] sm:$0xff]  ;;  %v36_v61 = vld [vmem:[%s959_s0 + $0xa8] sm:$0xff] }
  0x11   :  { %v73_v58 = vpack.c.bf16 %v37_v53, %v34_v52  ;;  %v35_v62 = vld [vmem:[%s959_s0 + $0xa0] sm:$0xff]  ;;  %v38_v63 = vld [vmem:[%s959_s0 + $0xb8] sm:$0xff]  ;;  %v40_v0 = vld [vmem:[%s959_s0 + $0xc8] sm:$0xff]  ;;  %v72_v4 = vpack.c.bf16 %v36_v61, %v33_v60 }
  0x12   :  { %v43_v1 = vld [vmem:[%s959_s0 + $0xe0] sm:$0xff]  ;;  %v41_v2 = vld [vmem:[%s959_s0 + $0xd0] sm:$0xff]  ;;  %v44_v3 = vld [vmem:[%s959_s0 + $0xe8] sm:$0xff]  ;;  %v74_v5 = vpack.c.bf16 %v38_v63, %v35_v62 }
  0x13   :  { %513 = vmatpush3.bf16.msra.mxu0 %v623_v9  ;;  %610 = vmatpush3.bf16.msra.mxu1 %v623_v9  ;;  %v76_v6 = vpack.c.bf16 %v43_v1, %v40_v0  ;;  %v77_v7 = vpack.c.bf16 %v44_v3, %v41_v2  ;;  %v39_v8 = vld [vmem:[%s959_s0 + $0xc0] sm:$0xff]  ;;  %v42_v9 = vld [vmem:[%s959_s0 + $0xd8] sm:$0xff]  ;;  %v49_v13 = vld [vmem:[%s959_s0 + $0x110] sm:$0xff] }
  0x14   :  { %514 = vmatprep.subr.bf16.mxu0 %v624_v10  ;;  %603 = vmatprep.subr.bf16.mxu1 %v624_v10  ;;  %v47_v10 = vld [vmem:[%s959_s0 + $0x100] sm:$0xff]  ;;  %v50_v11 = vld [vmem:[%s959_s0 + $0x118] sm:$0xff]  ;;  %v53_v14 = vld [vmem:[%s959_s0 + $0x130] sm:$0xff]  ;;  %v75_v16 = vpack.c.bf16 %v42_v9, %v39_v8 }
  0x15   :  { %v46_v12 = vld [vmem:[%s959_s0 + $0xf8] sm:$0xff]  ;;  %v56_v15 = vld [vmem:[%s959_s0 + $0x148] sm:$0xff]  ;;  %v59_v22 = vld [vmem:[%s959_s0 + $0x160] sm:$0xff] }
  0x16   :  { %v62_v23 = vld [vmem:[%s959_s0 + $0x178] sm:$0xff] }
  0x17   :  { %515 = vmatpush3.bf16.msra.mxu0 %v625_v17  ;;  %611 = vmatpush3.bf16.msra.mxu1 %v625_v17  ;;  %v80_v17 = vpack.c.bf16 %v50_v11, %v47_v10  ;;  %v86_v25 = vpack.c.bf16 %v62_v23, %v59_v22 }
  0x18   :  { %516 = vmatprep.subr.bf16.mxu0 %v626_v18  ;;  %604 = vmatprep.subr.bf16.mxu1 %v626_v18  ;;  %v79_v18 = vpack.c.bf16 %v49_v13, %v46_v12 }
  0x1b   :  { %517 = vmatpush3.bf16.msra.mxu0 %v627_v19  ;;  %612 = vmatpush3.bf16.msra.mxu1 %v627_v19  ;;  %v83_v19 = vpack.c.bf16 %v56_v15, %v53_v14 }
  0x1c   :  { %518 = vmatprep.subr.bf16.mxu0 %v628_v20  ;;  %605 = vmatprep.subr.bf16.mxu1 %v628_v20  ;;  %v45_v20 = vld [vmem:[%s959_s0 + $0xf0] sm:$0xff] }
  0x1f   :  { %519 = vmatpush3.bf16.msra.mxu0 %v629_v21  ;;  %613 = vmatpush3.bf16.msra.mxu1 %v629_v21  ;;  %v48_v21 = vld [vmem:[%s959_s0 + $0x108] sm:$0xff] }
  0x20   :  { %578 = vmatprep.subr.bf16.mxu1 %v630_v26  ;;  %v78_v24 = vpack.c.bf16 %v48_v21, %v45_v20 }
  0x22   :  { %296 = vmatmul.mubr.bf16.vlgmr.msra.gmra.mxu0 %v63_v31  ;;  %344 = vmatmul.mubr.bf16.vlgmr.msra.gmra.mxu1 %v81_v32 }
  0x23   :  { %579 = vmatpush3.bf16.msra.mxu1 %v630_v26  ;;  %303 = vmatprep.mubr.bf16.mxu0 %v67_v33 }
  0x24   :  { %351 = vmatprep.mubr.bf16.mxu1 %v85_v34  ;;  %580 = vmatprep.subr.bf16.mxu1 %v631_v35 }
  0x27   :  { %581 = vmatpush3.bf16.msra.mxu1 %v631_v35 }
  0x2a   :  { %304 = vmatmul.mubr.bf16.gmra.mxu0 %v66_v44  ;;  %352 = vmatmul.mubr.bf16.gmra.mxu1 %v84_v45  ;;  %v871_v44 = vld [vmem:[%s960_s2] ss:$0 sm:$0xff] }
  0x2b   :  { %311 = vmatprep.mubr.bf16.mxu0 %v70_v46  ;;  %582 = vmatprep.mubr.msk.bf16.mxu1 %vm238_vm0, %v65_v47 }
  0x32   :  { %312 = vmatmul.mubr.bf16.gmra.mxu0 %v69_v56  ;;  %583 = vmatmul.mubr.msk.bf16.vlgmr.msra.gmra.mxu1 %vm238_vm0, %v68_v57 }
  0x33   :  { %319 = vmatprep.mubr.bf16.mxu0 %v73_v58  ;;  %586 = vmatprep.mubr.msk.bf16.mxu1 %vm238_vm0, %v71_v59 }
  0x3a   :  { %320 = vmatmul.mubr.bf16.gmra.mxu0 %v72_v4  ;;  %587 = vmatmul.mubr.msk.bf16.gmra.mxu1 %vm238_vm0, %v74_v5 }
  0x3b   :  { %327 = vmatprep.mubr.bf16.mxu0 %v76_v6  ;;  %590 = vmatprep.mubr.msk.bf16.mxu1 %vm238_vm0, %v77_v7 }
  0x42   :  { %328 = vmatmul.mubr.bf16.gmra.mxu0 %v75_v16  ;;  %591 = vmatmul.mubr.msk.bf16.gmra.mxu1 %vm238_vm0, %v80_v17 }
  0x43   :  { %335 = vmatprep.mubr.bf16.mxu0 %v79_v18  ;;  %594 = vmatprep.mubr.msk.bf16.mxu1 %vm238_vm0, %v83_v19 }
  0x4a   :  { %336 = vmatmul.mubr.bf16.gmra.mxu0 %v78_v24  ;;  %595 = vmatmul.mubr.msk.bf16.gmra.mxu1 %vm238_vm0, %v86_v25 }
  0xe2   :  { %v520_v26 = vpop.f32.mrf.mxu0  ;;  %v858_v27 = vpop.f32.mrf.mxu1 }
  0xe4   :  { %v521_v28 = vpop.f32.mrf.mxu0  ;;  %v860_v29 = vpop.f32.mrf.mxu1 }
  0xe5   :  { %v522_v41 = vadd.f32 %v521_v28, %v520_v26  ;;  %v558_v28 = vadd.f32 %v860_v29, %v858_v27 }
  0xe6   :  { %v523_v30 = vpop.f32.mrf.mxu0  ;;  %v862_v31 = vpop.f32.mrf.mxu1 }
  0xe7   :  { %v298_v51 = vadd.f32 %v522_v41, %v871_v44 }
  0xe8   :  { %v524_v32 = vpop.f32.mrf.mxu0  ;;  %v864_v33 = vpop.f32.mrf.mxu1 }
  0xe9   :  { %v525_v49 = vadd.f32 %v524_v32, %v523_v30  ;;  %v561_v27 = vadd.f32 %v864_v33, %v862_v31 }
  0xea   :  { %v526_v34 = vpop.f32.mrf.mxu0  ;;  %v562_v35 = vpop.f32.mrf.mxu1 }
  0xeb   :  { %v301_v60 = vadd.f32 %v525_v49, %v871_v44 }
  0xec   :  { %v527_v36 = vpop.f32.mrf.mxu0  ;;  %v563_v37 = vpop.f32.mrf.mxu1 }
  0xed   :  { %v528_v38 = vadd.f32 %v527_v36, %v526_v34  ;;  %v564_v22 = vadd.f32 %v563_v37, %v562_v35 }
  0xee   :  { %v529_v39 = vpop.f32.mrf.mxu0  ;;  %v866_v40 = vpop.f32.mrf.mxu1 }
  0xef   :  { %v306_v46 = vadd.f32 %v528_v38, %v871_v44  ;;  %v354_v37 = vadd.f32 %v564_v22, %v871_v44 }
  0xf0   :  { %v530_v42 = vpop.f32.mrf.mxu0  ;;  %v566_v43 = vpop.f32.mrf.mxu1 }
  0xf1   :  { %v531_v45 = vadd.f32 %v530_v42, %v529_v39  ;;  %v567_v36 = vadd.f32 %v566_v43, %v866_v40 }
  0xf2   :  { %v532_v47 = vpop.f32.mrf.mxu0  ;;  %v584_v48 = vpop.f32.mrf.mxu1 }
  0xf3   :  { %v403_v50 = vadd.f32 %v584_v48, %v306_v46  ;;  %v309_v55 = vadd.f32 %v531_v45, %v871_v44  ;;  %v346_v45 = vadd.f32 %v558_v28, %v871_v44  ;;  %v357_v33 = vadd.f32 %v567_v36, %v871_v44 }
  0xf4   :  { %v533_v52 = vpop.f32.mrf.mxu0  ;;  %v394_v53 = vpop.f32.mrf.mxu1 }
  0xf5   :  { %459 = vst.msk [vmem:[%s961_s3 + $0x10] sm:$0xff] %vm238_vm0, %v403_v50  ;;  %v395_v54 = vadd.f32 %v394_v53, %v298_v51  ;;  %v534_v58 = vadd.f32 %v533_v52, %v532_v47  ;;  %v349_v52 = vadd.f32 %v561_v27, %v871_v44 }
  0xf6   :  { %v535_v56 = vpop.f32.mrf.mxu0  ;;  %v585_v57 = vpop.f32.mrf.mxu1 }
  0xf7   :  { %457 = vst.msk [vmem:[%s961_s3] sm:$0xff] %vm238_vm0, %v395_v54  ;;  %v406_v59 = vadd.f32 %v585_v57, %v309_v55  ;;  %v314_v3 = vadd.f32 %v534_v58, %v871_v44 }
  0xf8   :  { %v536_v61 = vpop.f32.mrf.mxu0  ;;  %v397_v62 = vpop.f32.mrf.mxu1 }
  0xf9   :  { %460 = vst.msk [vmem:[%s961_s3 + $0x18] sm:$0xff] %vm238_vm0, %v406_v59  ;;  %v398_v63 = vadd.f32 %v397_v62, %v301_v60  ;;  %v537_v2 = vadd.f32 %v536_v61, %v535_v56 }
  0xfa   :  { %v538_v0 = vpop.f32.mrf.mxu0  ;;  %v588_v1 = vpop.f32.mrf.mxu1 }
  0xfb   :  { %458 = vst.msk [vmem:[%s961_s3 + $0x8] sm:$0xff] %vm238_vm0, %v398_v63  ;;  %v317_v11 = vadd.f32 %v537_v2, %v871_v44 }
  0xfc   :  { %v539_v4 = vpop.f32.mrf.mxu0  ;;  %v410_v5 = vpop.f32.mrf.mxu1 }
  0xfd   :  { %v540_v6 = vadd.f32 %v539_v4, %v538_v0  ;;  %v411_v7 = vadd.f32 %v410_v5, %v314_v3 }
  0xfe   :  { %v541_v8 = vpop.f32.mrf.mxu0  ;;  %v589_v9 = vpop.f32.mrf.mxu1 }
  0xff   :  { %v322_v10 = vadd.f32 %v540_v6, %v871_v44  ;;  %461 = vst.msk [vmem:[%s961_s3 + $0x20] sm:$0xff] %vm238_vm0, %v411_v7 }
 0x100   :  { %v542_v12 = vpop.f32.mrf.mxu0  ;;  %v413_v13 = vpop.f32.mrf.mxu1 }
 0x101   :  { %v419_v14 = vadd.f32 %v588_v1, %v322_v10  ;;  %v543_v15 = vadd.f32 %v542_v12, %v541_v8  ;;  %v414_v16 = vadd.f32 %v413_v13, %v317_v11 }
 0x102   :  { %v544_v17 = vpop.f32.mrf.mxu0  ;;  %v592_v18 = vpop.f32.mrf.mxu1 }
 0x103   :  { %463 = vst.msk [vmem:[%s961_s3 + $0x30] sm:$0xff] %vm238_vm0, %v419_v14  ;;  %v325_v19 = vadd.f32 %v543_v15, %v871_v44  ;;  %462 = vst.msk [vmem:[%s961_s3 + $0x28] sm:$0xff] %vm238_vm0, %v414_v16 }
 0x104   :  { %v545_v20 = vpop.f32.mrf.mxu0  ;;  %v426_v21 = vpop.f32.mrf.mxu1 }
 0x105   :  { %v422_v23 = vadd.f32 %v589_v9, %v325_v19  ;;  %v546_v24 = vadd.f32 %v545_v20, %v544_v17 }
 0x106   :  { %v547_v25 = vpop.f32.mrf.mxu0  ;;  %v593_v26 = vpop.f32.mrf.mxu1 }
 0x107   :  { %464 = vst.msk [vmem:[%s961_s3 + $0x38] sm:$0xff] %vm238_vm0, %v422_v23  ;;  %v330_v30 = vadd.f32 %v546_v24, %v871_v44 }
 0x108   :  { %v548_v32 = vpop.f32.mrf.mxu0  ;;  %v429_v34 = vpop.f32.mrf.mxu1 }
 0x109   :  { %v427_v38 = vadd.f32 %v426_v21, %v330_v30  ;;  %v549_v35 = vadd.f32 %v548_v32, %v547_v25 }
 0x10a   :  { %v550_v39 = vpop.f32.mrf.mxu0  ;;  %v596_v41 = vpop.f32.mrf.mxu1 }
 0x10b   :  { %465 = vst.msk [vmem:[%s961_s3 + $0x40] sm:$0xff] %vm238_vm0, %v427_v38  ;;  %v333_v29 = vadd.f32 %v549_v35, %v871_v44  ;;  %v451_v42 = vadd.f32 %v596_v41, %v354_v37 }
 0x10c   :  { %v551_v40 = vpop.f32.mrf.mxu0  ;;  %v442_v43 = vpop.f32.mrf.mxu1 }
 0x10d   :  { %v430_v46 = vadd.f32 %v429_v34, %v333_v29  ;;  %471 = vst.msk [vmem:[%s961_s3 + $0x70] sm:$0xff] %vm238_vm0, %v451_v42  ;;  %v552_v47 = vadd.f32 %v551_v40, %v550_v39  ;;  %v443_v31 = vadd.f32 %v442_v43, %v346_v45 }
 0x10e   :  { %v553_v48 = vpop.f32.mrf.mxu0  ;;  %v597_v49 = vpop.f32.mrf.mxu1 }
 0x10f   :  { %466 = vst.msk [vmem:[%s961_s3 + $0x48] sm:$0xff] %vm238_vm0, %v430_v46  ;;  %v338_v50 = vadd.f32 %v552_v47, %v871_v44  ;;  %469 = vst.msk [vmem:[%s961_s3 + $0x60] sm:$0xff] %vm238_vm0, %v443_v31  ;;  %v454_v51 = vadd.f32 %v597_v49, %v357_v33 }
 0x110   :  { %v554_v53 = vpop.f32.mrf.mxu0  ;;  %v445_v54 = vpop.f32.mrf.mxu1 }
 0x111   :  { %v435_v55 = vadd.f32 %v592_v18, %v338_v50  ;;  %472 = vst.msk [vmem:[%s961_s3 + $0x78] sm:$0xff] %vm238_vm0, %v454_v51  ;;  %v555_v56 = vadd.f32 %v554_v53, %v553_v48  ;;  %v446_v57 = vadd.f32 %v445_v54, %v349_v52 }
 0x113   :  { %467 = vst.msk [vmem:[%s961_s3 + $0x50] sm:$0xff] %vm238_vm0, %v435_v55  ;;  %v341_v58 = vadd.f32 %v555_v56, %v871_v44  ;;  %470 = vst.msk [vmem:[%s961_s3 + $0x68] sm:$0xff] %vm238_vm0, %v446_v57 }
 0x115   :  { %v438_v59 = vadd.f32 %v593_v26, %v341_v58 }
 0x117   :  { %468 = vst.msk [vmem:[%s961_s3 + $0x58] sm:$0xff] %vm238_vm0, %v438_v59 }

// kernel: model_forward.36
= control target key start
LH: loop header
LB: loop body
LE: loop exit
PB: predicated region body
PF: predicated region fallthrough
CT: control target
= control target key end

     0   :  { %vm184_vm0 = vcmask 261120   ;;  %s507_s1 = inlined_call_operand.vmem [shape: bf16[288,32], index: 1, kind: input, shape index: {}]   ;;  %s508_s0 = inlined_call_operand.vmem [shape: f32[32,288], index: 0, kind: input, shape index: {}]   ;;  %s509_s2 = inlined_call_operand.vmem [shape: f32[1,32], index: 2, kind: input, shape index: {}]   ;;  %s510_s3 = inlined_call_operand.vmem [shape: f32[32,32], index: 3, kind: output, shape index: {}]  }
   0x1   :  { %v358_v0 = vld [vmem:[%s507_s1 + $0x78] sm:$0xff]   ;;  %v360_v2 = vld [vmem:[%s507_s1 + $0x70] sm:$0xff]   ;;  %v362_v4 = vld [vmem:[%s507_s1 + $0x68] sm:$0xff]  }
   0x2   :  { %v359_v1 = vld [vmem:[%s507_s1 + $0x38] sm:$0xff]   ;;  %318 = vmatprep.subr.bf16.mxu0 %v358_v0  ;;  %v361_v3 = vld [vmem:[%s507_s1 + $0x30] sm:$0xff]   ;;  %v363_v5 = vld [vmem:[%s507_s1 + $0x28] sm:$0xff]  }
   0x3   :  { %319 = vmatpush3.bf16.msra.mxu0 %v359_v1  ;;  %v364_v6 = vld [vmem:[%s507_s1 + $0x60] sm:$0xff]   ;;  %v366_v8 = vld [vmem:[%s507_s1 + $0x58] sm:$0xff]   ;;  %v373_v10 = vld [vmem:[%s507_s1 + $0x88] sm:$0xff]  }
   0x4   :  { %320 = vmatprep.subr.bf16.mxu0 %v360_v2  ;;  %v365_v7 = vld [vmem:[%s507_s1 + $0x20] sm:$0xff]   ;;  %v367_v9 = vld [vmem:[%s507_s1 + $0x18] sm:$0xff]   ;;  %v368_v11 = vld [vmem:[%s507_s1 + $0x50] sm:$0xff]   ;;  %350 = vmatprep.subr.bf16.mxu1 %v373_v10 }
   0x5   :  { %v16_v12 = vld [vmem:[%s508_s0 + $0x8] sm:$0xff]  ;;  %v19_v13 = vld [vmem:[%s508_s0 + $0x20] sm:$0xff]  ;;  %v369_v14 = vld [vmem:[%s507_s1 + $0x10] sm:$0xff]   ;;  %351 = vmatpush3.bf16.msra.mxu1 %v373_v10 }
   0x6   :  { %v28_v15 = vpack.c.bf16 %v19_v13, %v16_v12  ;;  %v375_v16 = vld [vmem:[%s507_s1 + $0x80] sm:$0xff]   ;;  %v17_v17 = vld [vmem:[%s508_s0 + $0x10] sm:$0xff]  ;;  %v20_v18 = vld [vmem:[%s508_s0 + $0x28] sm:$0xff] }
   0x7   :  { %321 = vmatpush3.bf16.msra.mxu0 %v361_v3  ;;  %v370_v19 = vld [vmem:[%s507_s1 + $0x48] sm:$0xff]   ;;  %v29_v20 = vpack.c.bf16 %v20_v18, %v17_v17  ;;  %v23_v21 = vld [vmem:[%s508_s0 + $0x40] sm:$0xff]  ;;  %v26_v22 = vld [vmem:[%s508_s0 + $0x58] sm:$0xff]  ;;  %352 = vmatprep.subr.bf16.mxu1 %v375_v16 }
   0x8   :  { %322 = vmatprep.subr.bf16.mxu0 %v362_v4  ;;  %223 = vmatprep.mubr.bf16.mxu0 %v28_v15  ;;  %v32_v23 = vpack.c.bf16 %v26_v22, %v23_v21  ;;  %v371_v24 = vld [vmem:[%s507_s1 + $0x8] sm:$0xff]   ;;  %v372_v25 = vld [vmem:[%s507_s1 + $0x40] sm:$0xff]   ;;  %v18_v28 = vld [vmem:[%s508_s0 + $0x18] sm:$0xff] }
   0x9   :  { %353 = vmatpush3.bf16.msra.mxu1 %v375_v16  ;;  %354 = vmatprep.mubr.msk.bf16.mxu1 %vm184_vm0, %v29_v20  ;;  %v374_v26 = vld [vmem:[%s507_s1] sm:$0xff]   ;;  %v22_v29 = vld [vmem:[%s508_s0 + $0x38] sm:$0xff]  ;;  %v25_v30 = vld [vmem:[%s508_s0 + $0x50] sm:$0xff] }
   0xa   :  { %v15_v27 = vld [vmem:[%s508_s0] sm:$0xff]  ;;  %v31_v32 = vpack.c.bf16 %v25_v30, %v22_v29  ;;  %v21_v33 = vld [vmem:[%s508_s0 + $0x30] sm:$0xff]  ;;  %v24_v34 = vld [vmem:[%s508_s0 + $0x48] sm:$0xff] }
   0xb   :  { %323 = vmatpush3.bf16.msra.mxu0 %v363_v5  ;;  %v27_v31 = vpack.c.bf16 %v18_v28, %v15_v27  ;;  %v30_v35 = vpack.c.bf16 %v24_v34, %v21_v33  ;;  %v297_v40 = vld [vmem:[%s509_s2] ss:$0 sm:$0xff] }
   0xc   :  { %324 = vmatprep.subr.bf16.mxu0 %v364_v6  ;;  %355 = vmatmul.mubr.msk.bf16.vlgmr.msra.gmra.mxu1 %vm184_vm0, %v32_v23 }
   0xf   :  { %325 = vmatpush3.bf16.msra.mxu0 %v365_v7 }
  0x10   :  { %326 = vmatprep.subr.bf16.mxu0 %v366_v8 }
  0x13   :  { %327 = vmatpush3.bf16.msra.mxu0 %v367_v9 }
  0x14   :  { %328 = vmatprep.subr.bf16.mxu0 %v368_v11 }
  0x17   :  { %329 = vmatpush3.bf16.msra.mxu0 %v369_v14 }
  0x18   :  { %330 = vmatprep.subr.bf16.mxu0 %v370_v19 }
  0x1b   :  { %331 = vmatpush3.bf16.msra.mxu0 %v371_v24 }
  0x1c   :  { %332 = vmatprep.subr.bf16.mxu0 %v372_v25 }
  0x1f   :  { %333 = vmatpush3.bf16.msra.mxu0 %v374_v26 }
  0x22   :  { %224 = vmatmul.mubr.bf16.vlgmr.msra.gmra.mxu0 %v27_v31 }
  0x23   :  { %231 = vmatprep.mubr.bf16.mxu0 %v31_v32 }
  0x2a   :  { %232 = vmatmul.mubr.bf16.gmra.mxu0 %v30_v35 }
  0xcc   :  { %v356_v36 = vpop.f32.mrf.mxu1 }
  0xce   :  { %v274_v38 = vpop.f32.mrf.mxu1 }
  0xd0   :  { %v357_v43 = vpop.f32.mrf.mxu1 }
  0xd2   :  { %v277_v49 = vpop.f32.mrf.mxu1 }
  0xe2   :  { %v334_v37 = vpop.f32.mrf.mxu0 }
  0xe4   :  { %v335_v39 = vpop.f32.mrf.mxu0 }
  0xe5   :  { %v336_v41 = vadd.f32 %v335_v39, %v334_v37 }
  0xe6   :  { %v337_v42 = vpop.f32.mrf.mxu0 }
  0xe7   :  { %v226_v44 = vadd.f32 %v336_v41, %v297_v40 }
  0xe8   :  { %v338_v45 = vpop.f32.mrf.mxu0 }
  0xe9   :  { %v339_v46 = vadd.f32 %v338_v45, %v337_v42  ;;  %v275_v47 = vadd.f32 %v274_v38, %v226_v44 }
  0xea   :  { %v340_v48 = vpop.f32.mrf.mxu0 }
  0xeb   :  { %289 = vst.msk [vmem:[%s510_s3] sm:$0xff] %vm184_vm0, %v275_v47  ;;  %v229_v50 = vadd.f32 %v339_v46, %v297_v40 }
  0xec   :  { %v341_v51 = vpop.f32.mrf.mxu0 }
  0xed   :  { %v342_v52 = vadd.f32 %v341_v51, %v340_v48  ;;  %v278_v53 = vadd.f32 %v277_v49, %v229_v50 }
  0xee   :  { %v343_v54 = vpop.f32.mrf.mxu0 }
  0xef   :  { %v234_v55 = vadd.f32 %v342_v52, %v297_v40  ;;  %290 = vst.msk [vmem:[%s510_s3 + $0x8] sm:$0xff] %vm184_vm0, %v278_v53 }
  0xf0   :  { %v344_v56 = vpop.f32.mrf.mxu0 }
  0xf1   :  { %v283_v57 = vadd.f32 %v356_v36, %v234_v55  ;;  %v345_v58 = vadd.f32 %v344_v56, %v343_v54 }
  0xf3   :  { %291 = vst.msk [vmem:[%s510_s3 + $0x10] sm:$0xff] %vm184_vm0, %v283_v57  ;;  %v237_v59 = vadd.f32 %v345_v58, %v297_v40 }
  0xf5   :  { %v286_v60 = vadd.f32 %v357_v43, %v237_v59 }
  0xf7   :  { %292 = vst.msk [vmem:[%s510_s3 + $0x18] sm:$0xff] %vm184_vm0, %v286_v60 }

// kernel: model_forward.37
= control target key start
LH: loop header
LB: loop body
LE: loop exit
PB: predicated region body
PF: predicated region fallthrough
CT: control target
= control target key end

     0   :  { %v1050_v1 = vmov 0.0   ;;  %vm1051_vm0 = vmmov 0   ;;  %vm268_vm1 = vcmask 261120   ;;  %vm750_vm2 = vcmask 121856   ;;  %s1617_s1 = inlined_call_operand.vmem [shape: bf16[288,32], index: 1, kind: input, shape index: {}]   ;;  %s1618_s0 = inlined_call_operand.vmem [shape: f32[168,288], index: 0, kind: input, shape index: {}]   ;;  %s1619_s3 = inlined_call_operand.vmem [shape: bf16[32,15], index: 3, kind: input, shape index: {}]   ;;  %s1620_s2 = inlined_call_operand.vmem [shape: f32[1,32], index: 2, kind: input, shape index: {}]   ;;  %s1621_s4 = inlined_call_operand.vmem [shape: f32[1,15], index: 4, kind: input, shape index: {}]   ;;  %s1622_s5 = inlined_call_operand.vmem [shape: f32[168,15], index: 5, kind: output, shape index: {}]  }
   0x1   :  { %v1030_v0 = vld [vmem:[%s1617_s1 + $0x78] sm:$0xff]   ;;  %1024 = vmatprep.subr.bf16.mxu1 %v1050_v1  ;;  %948 = vmatprep.mubr.msk.bf16.mxu1 %vm1051_vm0, %v1050_v1  ;;  %v1032_v3 = vld [vmem:[%s1617_s1 + $0x70] sm:$0xff]   ;;  %v1034_v5 = vld [vmem:[%s1617_s1 + $0x68] sm:$0xff]  }
   0x2   :  { %v1031_v2 = vld [vmem:[%s1617_s1 + $0x38] sm:$0xff]   ;;  %820 = vmatprep.subr.bf16.mxu0 %v1030_v0  ;;  %v1033_v4 = vld [vmem:[%s1617_s1 + $0x30] sm:$0xff]   ;;  %v1035_v6 = vld [vmem:[%s1617_s1 + $0x28] sm:$0xff]  }
   0x3   :  { %821 = vmatpush3.bf16.msra.mxu0 %v1031_v2  ;;  %v1036_v7 = vld [vmem:[%s1617_s1 + $0x60] sm:$0xff]   ;;  %v1038_v9 = vld [vmem:[%s1617_s1 + $0x58] sm:$0xff]   ;;  %v1040_v11 = vld [vmem:[%s1617_s1 + $0x50] sm:$0xff]  }
   0x4   :  { %822 = vmatprep.subr.bf16.mxu0 %v1032_v3  ;;  %v1037_v8 = vld [vmem:[%s1617_s1 + $0x20] sm:$0xff]   ;;  %v1039_v10 = vld [vmem:[%s1617_s1 + $0x18] sm:$0xff]   ;;  %v22_v12 = vld [vmem:[%s1618_s0 + $0x8] sm:$0xff] }
   0x5   :  { %v25_v13 = vld [vmem:[%s1618_s0 + $0x20] sm:$0xff]  ;;  %v1046_v15 = vld [vmem:[%s1617_s1 + $0x88] sm:$0xff]   ;;  %v1041_v16 = vld [vmem:[%s1617_s1 + $0x10] sm:$0xff]  }
   0x6   :  { %v85_v14 = vpack.c.bf16 %v25_v13, %v22_v12  ;;  %v1042_v17 = vld [vmem:[%s1617_s1 + $0x48] sm:$0xff]   ;;  %1026 = vmatpush3.bf16.msra.mxu1 %v1046_v15  ;;  %v1044_v19 = vld [vmem:[%s1617_s1 + $0x40] sm:$0xff]   ;;  %v47_v21 = vld [vmem:[%s1618_s0 + $0xd0] sm:$0xff] }
   0x7   :  { %823 = vmatpush3.bf16.msra.mxu0 %v1033_v4  ;;  %1025 = vmatprep.subr.bf16.mxu1 %v1050_v1  ;;  %v1043_v18 = vld [vmem:[%s1617_s1 + $0x8] sm:$0xff]   ;;  %v1047_v20 = vld [vmem:[%s1617_s1 + $0x80] sm:$0xff]   ;;  %v24_v26 = vld [vmem:[%s1618_s0 + $0x18] sm:$0xff] }
   0x8   :  { %824 = vmatprep.subr.bf16.mxu0 %v1034_v5  ;;  %334 = vmatprep.mubr.bf16.mxu0 %v85_v14  ;;  %v50_v22 = vld [vmem:[%s1618_s0 + $0xe8] sm:$0xff]  ;;  %v1045_v24 = vld [vmem:[%s1617_s1] sm:$0xff]   ;;  %v28_v27 = vld [vmem:[%s1618_s0 + $0x38] sm:$0xff] }
   0x9   :  { %v98_v23 = vpack.c.bf16 %v50_v22, %v47_v21  ;;  %v21_v25 = vld [vmem:[%s1618_s0] sm:$0xff]  ;;  %v31_v28 = vld [vmem:[%s1618_s0 + $0x50] sm:$0xff]  ;;  %v56_v31 = vld [vmem:[%s1618_s0 + $0x118] sm:$0xff] }
   0xa   :  { %1027 = vmatpush3.bf16.msra.mxu1 %v1047_v20  ;;  %v84_v29 = vpack.c.bf16 %v24_v26, %v21_v25  ;;  %v53_v30 = vld [vmem:[%s1618_s0 + $0x100] sm:$0xff]  ;;  %v88_v32 = vpack.c.bf16 %v31_v28, %v28_v27  ;;  %v27_v34 = vld [vmem:[%s1618_s0 + $0x30] sm:$0xff]  ;;  %v30_v35 = vld [vmem:[%s1618_s0 + $0x48] sm:$0xff] }
   0xb   :  { %825 = vmatpush3.bf16.msra.mxu0 %v1035_v6  ;;  %976 = vmatprep.subr.bf16.mxu1 %v1050_v1  ;;  %v101_v33 = vpack.c.bf16 %v56_v31, %v53_v30  ;;  %v34_v36 = vld [vmem:[%s1618_s0 + $0x68] sm:$0xff]  ;;  %v37_v37 = vld [vmem:[%s1618_s0 + $0x80] sm:$0xff]  ;;  %v87_v38 = vpack.c.bf16 %v30_v35, %v27_v34  ;;  %v59_v39 = vld [vmem:[%s1618_s0 + $0x130] sm:$0xff] }
   0xc   :  { %826 = vmatprep.subr.bf16.mxu0 %v1036_v7  ;;  %v62_v40 = vld [vmem:[%s1618_s0 + $0x148] sm:$0xff]  ;;  %v91_v41 = vpack.c.bf16 %v37_v37, %v34_v36  ;;  %v33_v43 = vld [vmem:[%s1618_s0 + $0x60] sm:$0xff]  ;;  %v36_v44 = vld [vmem:[%s1618_s0 + $0x78] sm:$0xff] }
   0xd   :  { %949 = vmatmul.mubr.msk.bf16.vlgmr.msra.gmra.mxu1 %vm268_vm1, %v98_v23  ;;  %v104_v42 = vpack.c.bf16 %v62_v40, %v59_v39  ;;  %v40_v45 = vld [vmem:[%s1618_s0 + $0x98] sm:$0xff]  ;;  %v43_v46 = vld [vmem:[%s1618_s0 + $0xb0] sm:$0xff]  ;;  %v90_v47 = vpack.c.bf16 %v36_v44, %v33_v43  ;;  %v65_v48 = vld [vmem:[%s1618_s0 + $0x160] sm:$0xff] }
   0xe   :  { %952 = vmatprep.mubr.msk.bf16.mxu1 %vm1051_vm0, %v1050_v1  ;;  %v68_v49 = vld [vmem:[%s1618_s0 + $0x178] sm:$0xff]  ;;  %v94_v50 = vpack.c.bf16 %v43_v46, %v40_v45  ;;  %v39_v52 = vld [vmem:[%s1618_s0 + $0x90] sm:$0xff]  ;;  %v42_v53 = vld [vmem:[%s1618_s0 + $0xa8] sm:$0xff] }
   0xf   :  { %827 = vmatpush3.bf16.msra.mxu0 %v1037_v8  ;;  %v107_v51 = vpack.c.bf16 %v68_v49, %v65_v48  ;;  %v46_v54 = vld [vmem:[%s1618_s0 + $0xc8] sm:$0xff]  ;;  %v49_v55 = vld [vmem:[%s1618_s0 + $0xe0] sm:$0xff]  ;;  %v93_v56 = vpack.c.bf16 %v42_v53, %v39_v52  ;;  %v71_v57 = vld [vmem:[%s1618_s0 + $0x190] sm:$0xff] }
  0x10   :  { %828 = vmatprep.subr.bf16.mxu0 %v1038_v9  ;;  %v74_v58 = vld [vmem:[%s1618_s0 + $0x1a8] sm:$0xff]  ;;  %v97_v59 = vpack.c.bf16 %v49_v55, %v46_v54  ;;  %v45_v61 = vld [vmem:[%s1618_s0 + $0xc0] sm:$0xff]  ;;  %v48_v62 = vld [vmem:[%s1618_s0 + $0xd8] sm:$0xff] }
  0x11   :  { %v110_v60 = vpack.c.bf16 %v74_v58, %v71_v57  ;;  %v52_v63 = vld [vmem:[%s1618_s0 + $0xf8] sm:$0xff]  ;;  %v55_v0 = vld [vmem:[%s1618_s0 + $0x110] sm:$0xff]  ;;  %v96_v2 = vpack.c.bf16 %v48_v62, %v45_v61  ;;  %v77_v3 = vld [vmem:[%s1618_s0 + $0x1c0] sm:$0xff] }
  0x12   :  { %v80_v4 = vld [vmem:[%s1618_s0 + $0x1d8] sm:$0xff]  ;;  %v100_v5 = vpack.c.bf16 %v55_v0, %v52_v63  ;;  %v51_v7 = vld [vmem:[%s1618_s0 + $0xf0] sm:$0xff]  ;;  %v54_v8 = vld [vmem:[%s1618_s0 + $0x108] sm:$0xff] }
  0x13   :  { %829 = vmatpush3.bf16.msra.mxu0 %v1039_v10  ;;  %v113_v6 = vpack.c.bf16 %v80_v4, %v77_v3  ;;  %v58_v9 = vld [vmem:[%s1618_s0 + $0x128] sm:$0xff]  ;;  %v61_v10 = vld [vmem:[%s1618_s0 + $0x140] sm:$0xff]  ;;  %v83_v12 = vld [vmem:[%s1618_s0 + $0x1f0] sm:$0xff] }
  0x14   :  { %830 = vmatprep.subr.bf16.mxu0 %v1040_v11  ;;  %v99_v11 = vpack.c.bf16 %v54_v8, %v51_v7  ;;  %v103_v13 = vpack.c.bf16 %v61_v10, %v58_v9  ;;  %v116_v14 = vpack.c.bf16 %v83_v12, %v83_v12  ;;  %v63_v21 = vld [vmem:[%s1618_s0 + $0x150] sm:$0xff]  ;;  %v66_v22 = vld [vmem:[%s1618_s0 + $0x168] sm:$0xff]  ;;  %v69_v27 = vld [vmem:[%s1618_s0 + $0x180] sm:$0xff] }
  0x15   :  { %953 = vmatmul.mubr.msk.bf16.gmra.mxu1 %vm268_vm1, %v101_v33  ;;  %v70_v23 = vld [vmem:[%s1618_s0 + $0x188] sm:$0xff]  ;;  %v105_v25 = vpack.c.bf16 %v66_v22, %v63_v21  ;;  %v72_v28 = vld [vmem:[%s1618_s0 + $0x198] sm:$0xff]  ;;  %v79_v30 = vld [vmem:[%s1618_s0 + $0x1d0] sm:$0xff] }
  0x16   :  { %956 = vmatprep.mubr.msk.bf16.mxu1 %vm1051_vm0, %v1050_v1  ;;  %v108_v31 = vpack.c.bf16 %v72_v28, %v69_v27  ;;  %v75_v33 = vld [vmem:[%s1618_s0 + $0x1b0] sm:$0xff]  ;;  %v78_v34 = vld [vmem:[%s1618_s0 + $0x1c8] sm:$0xff]  ;;  %v29_v43 = vld [vmem:[%s1618_s0 + $0x40] sm:$0xff] }
  0x17   :  { %831 = vmatpush3.bf16.msra.mxu0 %v1041_v16  ;;  %v60_v16 = vld [vmem:[%s1618_s0 + $0x138] sm:$0xff]  ;;  %v82_v35 = vld [vmem:[%s1618_s0 + $0x1e8] sm:$0xff]  ;;  %v111_v36 = vpack.c.bf16 %v78_v34, %v75_v33  ;;  %v23_v40 = vld [vmem:[%s1618_s0 + $0x10] sm:$0xff] }
  0x18   :  { %832 = vmatprep.subr.bf16.mxu0 %v1042_v17  ;;  %v64_v17 = vld [vmem:[%s1618_s0 + $0x158] sm:$0xff]  ;;  %v115_v37 = vpack.c.bf16 %v82_v35, %v82_v35  ;;  %v35_v46 = vld [vmem:[%s1618_s0 + $0x70] sm:$0xff]  ;;  %v41_v49 = vld [vmem:[%s1618_s0 + $0xa0] sm:$0xff] }
  0x19   :  { %v32_v44 = vld [vmem:[%s1618_s0 + $0x58] sm:$0xff]  ;;  %v1048_v52 = vld [vmem:[%s1619_s3 + $0x8] sm:$0xff]   ;;  %v1049_v53 = vld [vmem:[%s1619_s3] sm:$0xff]  }
  0x1a   :  { %v89_v45 = vpack.c.bf16 %v32_v44, %v29_v43  ;;  %977 = vmatpush3.bf16.msra.mxu1 %v1048_v52 }
  0x1b   :  { %833 = vmatpush3.bf16.msra.mxu0 %v1043_v18  ;;  %v67_v18 = vld [vmem:[%s1618_s0 + $0x170] sm:$0xff]  ;;  %978 = vmatprep.subr.bf16.mxu1 %v1050_v1 }
  0x1c   :  { %834 = vmatprep.subr.bf16.mxu0 %v1044_v19 }
  0x1d   :  { %957 = vmatmul.mubr.msk.bf16.gmra.mxu1 %vm268_vm1, %v104_v42 }
  0x1e   :  { %960 = vmatprep.mubr.msk.bf16.mxu1 %vm1051_vm0, %v1050_v1  ;;  %979 = vmatpush3.bf16.msra.mxu1 %v1049_v53 }
  0x1f   :  { %835 = vmatpush3.bf16.msra.mxu0 %v1045_v24  ;;  %v73_v24 = vld [vmem:[%s1618_s0 + $0x1a0] sm:$0xff] }
  0x20   :  { %928 = vmatprep.subr.bf16.mxu0 %v1050_v1  ;;  %v109_v26 = vpack.c.bf16 %v73_v24, %v70_v23 }
  0x22   :  { %335 = vmatmul.mubr.bf16.vlgmr.msra.gmra.mxu0 %v84_v29  ;;  %v76_v29 = vld [vmem:[%s1618_s0 + $0x1b8] sm:$0xff] }
  0x23   :  { %929 = vmatpush3.bf16.msra.mxu0 %v1046_v15  ;;  %342 = vmatprep.mubr.bf16.mxu0 %v88_v32  ;;  %v57_v15 = vld [vmem:[%s1618_s0 + $0x120] sm:$0xff]  ;;  %v112_v32 = vpack.c.bf16 %v79_v30, %v76_v29 }
  0x24   :  { %930 = vmatprep.subr.bf16.mxu0 %v1050_v1  ;;  %v102_v19 = vpack.c.bf16 %v60_v16, %v57_v15 }
  0x25   :  { %961 = vmatmul.mubr.msk.bf16.gmra.mxu1 %vm268_vm1, %v107_v51 }
  0x26   :  { %964 = vmatprep.mubr.msk.bf16.mxu1 %vm1051_vm0, %v1050_v1 }
  0x27   :  { %931 = vmatpush3.bf16.msra.mxu0 %v1047_v20  ;;  %v106_v20 = vpack.c.bf16 %v67_v18, %v64_v17 }
  0x2a   :  { %343 = vmatmul.mubr.bf16.gmra.mxu0 %v87_v38  ;;  %v81_v38 = vld [vmem:[%s1618_s0 + $0x1e0] sm:$0xff] }
  0x2b   :  { %350 = vmatprep.mubr.bf16.mxu0 %v91_v41  ;;  %v114_v39 = vpack.c.bf16 %v81_v38, %v81_v38  ;;  %v26_v41 = vld [vmem:[%s1618_s0 + $0x28] sm:$0xff] }
  0x2c   :  { %v86_v42 = vpack.c.bf16 %v26_v41, %v23_v40  ;;  %v1409_v40 = vld [vmem:[%s1620_s2] ss:$0 sm:$0xff] }
  0x2d   :  { %965 = vmatmul.mubr.msk.bf16.gmra.mxu1 %vm268_vm1, %v110_v60 }
  0x2e   :  { %968 = vmatprep.mubr.msk.bf16.mxu1 %vm1051_vm0, %v1050_v1 }
  0x32   :  { %351 = vmatmul.mubr.bf16.gmra.mxu0 %v90_v47  ;;  %v38_v47 = vld [vmem:[%s1618_s0 + $0x88] sm:$0xff] }
  0x33   :  { %358 = vmatprep.mubr.bf16.mxu0 %v94_v50  ;;  %v92_v48 = vpack.c.bf16 %v38_v47, %v35_v46  ;;  %v44_v50 = vld [vmem:[%s1618_s0 + $0xb8] sm:$0xff] }
  0x34   :  { %v95_v51 = vpack.c.bf16 %v44_v50, %v41_v49 }
  0x35   :  { %969 = vmatmul.mubr.msk.bf16.gmra.mxu1 %vm268_vm1, %v113_v6 }
  0x36   :  { %972 = vmatprep.mubr.msk.bf16.mxu1 %vm1051_vm0, %v1050_v1 }
  0x3a   :  { %359 = vmatmul.mubr.bf16.gmra.mxu0 %v93_v56 }
  0x3b   :  { %366 = vmatprep.mubr.bf16.mxu0 %v97_v59 }
  0x3d   :  { %973 = vmatmul.mubr.msk.bf16.gmra.mxu1 %vm268_vm1, %v116_v14 }
  0x3e   :  { %980 = vmatprep.mubr.msk.bf16.mxu1 %vm1051_vm0, %v1050_v1 }
  0x42   :  { %367 = vmatmul.mubr.bf16.gmra.mxu0 %v96_v2 }
  0x43   :  { %374 = vmatprep.mubr.bf16.mxu0 %v100_v5 }
  0x4a   :  { %375 = vmatmul.mubr.bf16.gmra.mxu0 %v99_v11 }
  0x4b   :  { %382 = vmatprep.mubr.bf16.mxu0 %v103_v13 }
  0x52   :  { %383 = vmatmul.mubr.bf16.gmra.mxu0 %v102_v19 }
  0x53   :  { %390 = vmatprep.mubr.bf16.mxu0 %v106_v20 }
  0x5a   :  { %391 = vmatmul.mubr.bf16.gmra.mxu0 %v105_v25 }
  0x5b   :  { %398 = vmatprep.mubr.bf16.mxu0 %v109_v26 }
  0x62   :  { %399 = vmatmul.mubr.bf16.gmra.mxu0 %v108_v31 }
  0x63   :  { %406 = vmatprep.mubr.bf16.mxu0 %v112_v32 }
  0x6a   :  { %407 = vmatmul.mubr.bf16.gmra.mxu0 %v111_v36 }
  0x6b   :  { %414 = vmatprep.mubr.bf16.mxu0 %v115_v37 }
  0x72   :  { %415 = vmatmul.mubr.bf16.gmra.mxu0 %v114_v39 }
  0x73   :  { %932 = vmatprep.mubr.msk.bf16.mxu0 %vm1051_vm0, %v1050_v1 }
  0x7a   :  { %933 = vmatmul.mubr.msk.bf16.vlgmr.msra.gmra.mxu0 %vm268_vm1, %v86_v42 }
  0x7b   :  { %936 = vmatprep.mubr.msk.bf16.mxu0 %vm1051_vm0, %v1050_v1 }
  0x82   :  { %937 = vmatmul.mubr.msk.bf16.gmra.mxu0 %vm268_vm1, %v89_v45 }
  0x83   :  { %940 = vmatprep.mubr.msk.bf16.mxu0 %vm1051_vm0, %v1050_v1 }
  0x8a   :  { %941 = vmatmul.mubr.msk.bf16.gmra.mxu0 %vm268_vm1, %v92_v48 }
  0x8b   :  { %944 = vmatprep.mubr.msk.bf16.mxu0 %vm1051_vm0, %v1050_v1 }
  0x92   :  { %945 = vmatmul.mubr.msk.bf16.gmra.mxu0 %vm268_vm1, %v95_v51 }
  0xcd   :  { %v488_v54 = vpop.f32.mrf.mxu1 }
  0xcf   :  { %v950_v55 = vpop.f32.mrf.mxu1 }
  0xd1   :  { %v491_v56 = vpop.f32.mrf.mxu1 }
  0xd3   :  { %v951_v58 = vpop.f32.mrf.mxu1 }
  0xd5   :  { %v1374_v61 = vpop.f32.mrf.mxu1 }
  0xd7   :  { %v954_v63 = vpop.f32.mrf.mxu1 }
  0xd9   :  { %v1378_v3 = vpop.f32.mrf.mxu1 }
  0xdb   :  { %v955_v5 = vpop.f32.mrf.mxu1 }
  0xdd   :  { %v1382_v8 = vpop.f32.mrf.mxu1 }
  0xdf   :  { %v958_v10 = vpop.f32.mrf.mxu1 }
  0xe1   :  { %v1386_v13 = vpop.f32.mrf.mxu1 }
  0xe2   :  { %v836_v57 = vpop.f32.mrf.mxu0 }
  0xe3   :  { %v959_v15 = vpop.f32.mrf.mxu1 }
  0xe4   :  { %v837_v59 = vpop.f32.mrf.mxu0 }
  0xe5   :  { %v1372_v60 = vadd.f32 %v837_v59, %v836_v57  ;;  %v1390_v18 = vpop.f32.mrf.mxu1 }
  0xe6   :  { %v839_v62 = vpop.f32.mrf.mxu0 }
  0xe7   :  { %v962_v20 = vpop.f32.mrf.mxu1 }
  0xe8   :  { %v840_v0 = vpop.f32.mrf.mxu0 }
  0xe9   :  { %v1376_v2 = vadd.f32 %v840_v0, %v839_v62  ;;  %v1394_v23 = vpop.f32.mrf.mxu1 }
  0xea   :  { %v842_v4 = vpop.f32.mrf.mxu0 }
  0xeb   :  { %v963_v25 = vpop.f32.mrf.mxu1 }
  0xec   :  { %v843_v6 = vpop.f32.mrf.mxu0 }
  0xed   :  { %v1380_v7 = vadd.f32 %v843_v6, %v842_v4  ;;  %v1398_v28 = vpop.f32.mrf.mxu1 }
  0xee   :  { %v845_v9 = vpop.f32.mrf.mxu0 }
  0xef   :  { %v966_v30 = vpop.f32.mrf.mxu1 }
  0xf0   :  { %v846_v11 = vpop.f32.mrf.mxu0 }
  0xf1   :  { %v1384_v12 = vadd.f32 %v846_v11, %v845_v9  ;;  %v1402_v33 = vpop.f32.mrf.mxu1 }
  0xf2   :  { %v848_v14 = vpop.f32.mrf.mxu0 }
  0xf3   :  { %v967_v35 = vpop.f32.mrf.mxu1 }
  0xf4   :  { %v849_v16 = vpop.f32.mrf.mxu0 }
  0xf5   :  { %v1388_v17 = vadd.f32 %v849_v16, %v848_v14  ;;  %v1404_v38 = vpop.f32.mrf.mxu1 }
  0xf6   :  { %v851_v19 = vpop.f32.mrf.mxu0 }
  0xf7   :  { %v970_v42 = vpop.f32.mrf.mxu1 }
  0xf8   :  { %v852_v21 = vpop.f32.mrf.mxu0 }
  0xf9   :  { %v1392_v22 = vadd.f32 %v852_v21, %v851_v19  ;;  %v1412_v46 = vpop.f32.mrf.mxu1 }
  0xfa   :  { %v854_v24 = vpop.f32.mrf.mxu0 }
  0xfb   :  { %v971_v49 = vpop.f32.mrf.mxu1 }
  0xfc   :  { %v855_v26 = vpop.f32.mrf.mxu0 }
  0xfd   :  { %v1396_v27 = vadd.f32 %v855_v26, %v854_v24  ;;  %v1415_v53 = vpop.f32.mrf.mxu1 }
  0xfe   :  { %v857_v29 = vpop.f32.mrf.mxu0 }
  0xff   :  { %v974_v62 = vpop.f32.mrf.mxu1 }
 0x100   :  { %v858_v31 = vpop.f32.mrf.mxu0 }
 0x101   :  { %v1400_v32 = vadd.f32 %v858_v31, %v857_v29  ;;  %v539_v5 = vpop.f32.mrf.mxu1 }
 0x102   :  { %v860_v34 = vpop.f32.mrf.mxu0 }
 0x103   :  { %v975_v10 = vpop.f32.mrf.mxu1 }
 0x104   :  { %v861_v36 = vpop.f32.mrf.mxu0 }
 0x105   :  { %v862_v37 = vadd.f32 %v861_v36, %v860_v34 }
 0x106   :  { %v863_v39 = vpop.f32.mrf.mxu0 }
 0x107   :  { %v369_v41 = vadd.f32 %v862_v37, %v1409_v40 }
 0x108   :  { %v864_v43 = vpop.f32.mrf.mxu0 }
 0x109   :  { %v865_v44 = vadd.f32 %v864_v43, %v863_v39  ;;  %v489_v45 = vadd.f32 %v488_v54, %v369_v41 }
 0x10a   :  { %v866_v47 = vpop.f32.mrf.mxu0 }
 0x10b   :  { %v372_v48 = vadd.f32 %v865_v44, %v1409_v40  ;;  %v550_v57 = vmax.f32 %v489_v45, 0.0 }
 0x10c   :  { %v867_v50 = vpop.f32.mrf.mxu0 }
 0x10d   :  { %v868_v51 = vadd.f32 %v867_v50, %v866_v47  ;;  %v492_v52 = vadd.f32 %v491_v56, %v372_v48 }
 0x10e   :  { %v869_v55 = vpop.f32.mrf.mxu0 }
 0x10f   :  { %v551_v58 = vmax.f32 %v492_v52, 0.0  ;;  %v377_v59 = vadd.f32 %v868_v51, %v1409_v40 }
 0x110   :  { %v870_v63 = vpop.f32.mrf.mxu0 }
 0x111   :  { %v1418_v0 = vpack.c.bf16 %v551_v58, %v550_v57  ;;  %v871_v54 = vadd.f32 %v870_v63, %v869_v55  ;;  %v497_v4 = vadd.f32 %v1374_v61, %v377_v59 }
 0x112   :  { %v872_v6 = vpop.f32.mrf.mxu0 }
 0x113   :  { %v380_v9 = vadd.f32 %v871_v54, %v1409_v40  ;;  %v552_v16 = vmax.f32 %v497_v4, 0.0 }
 0x114   :  { %v873_v56 = vpop.f32.mrf.mxu0 }
 0x115   :  { %v874_v11 = vadd.f32 %v873_v56, %v872_v6  ;;  %v500_v14 = vadd.f32 %v1378_v3, %v380_v9 }
 0x116   :  { %v875_v15 = vpop.f32.mrf.mxu0 }
 0x117   :  { %v553_v19 = vmax.f32 %v500_v14, 0.0  ;;  %v385_v20 = vadd.f32 %v874_v11, %v1409_v40 }
 0x118   :  { %v876_v21 = vpop.f32.mrf.mxu0 }
 0x119   :  { %v1424_v24 = vpack.c.bf16 %v553_v19, %v552_v16  ;;  %v877_v25 = vadd.f32 %v876_v21, %v875_v15  ;;  %v505_v61 = vadd.f32 %v1382_v8, %v385_v20 }
 0x11a   :  { %v878_v26 = vpop.f32.mrf.mxu0 }
 0x11b   :  { %v388_v29 = vadd.f32 %v877_v25, %v1409_v40  ;;  %v554_v3 = vmax.f32 %v505_v61, 0.0 }
 0x11c   :  { %v879_v30 = vpop.f32.mrf.mxu0 }
 0x11d   :  { %v880_v31 = vadd.f32 %v879_v30, %v878_v26  ;;  %v508_v34 = vadd.f32 %v1386_v13, %v388_v29 }
 0x11e   :  { %v881_v35 = vpop.f32.mrf.mxu0 }
 0x11f   :  { %v555_v36 = vmax.f32 %v508_v34, 0.0  ;;  %v393_v37 = vadd.f32 %v880_v31, %v1409_v40 }
 0x120   :  { %v882_v39 = vpop.f32.mrf.mxu0 }
 0x121   :  { %v1430_v41 = vpack.c.bf16 %v555_v36, %v554_v3  ;;  %v883_v42 = vadd.f32 %v882_v39, %v881_v35  ;;  %v513_v43 = vadd.f32 %v1390_v18, %v393_v37 }
 0x122   :  { %v884_v44 = vpop.f32.mrf.mxu0 }
 0x123   :  { %v396_v8 = vadd.f32 %v883_v42, %v1409_v40  ;;  %v556_v13 = vmax.f32 %v513_v43, 0.0 }
 0x124   :  { %v885_v45 = vpop.f32.mrf.mxu0 }
 0x125   :  { %v886_v47 = vadd.f32 %v885_v45, %v884_v44  ;;  %v516_v48 = vadd.f32 %v1394_v23, %v396_v8 }
 0x126   :  { %v887_v49 = vpop.f32.mrf.mxu0 }
 0x127   :  { %v557_v50 = vmax.f32 %v516_v48, 0.0  ;;  %v401_v51 = vadd.f32 %v886_v47, %v1409_v40 }
 0x128   :  { %v888_v52 = vpop.f32.mrf.mxu0 }
 0x129   :  { %v1436_v55 = vpack.c.bf16 %v557_v50, %v556_v13  ;;  %v889_v57 = vadd.f32 %v888_v52, %v887_v49  ;;  %v521_v58 = vadd.f32 %v1398_v28, %v401_v51 }
 0x12a   :  { %v890_v59 = vpop.f32.mrf.mxu0 }
 0x12b   :  { %v404_v18 = vadd.f32 %v889_v57, %v1409_v40  ;;  %v558_v23 = vmax.f32 %v521_v58, 0.0 }
 0x12c   :  { %v891_v62 = vpop.f32.mrf.mxu0 }
 0x12d   :  { %v892_v63 = vadd.f32 %v891_v62, %v890_v59  ;;  %v524_v54 = vadd.f32 %v1402_v33, %v404_v18 }
 0x12e   :  { %v893_v4 = vpop.f32.mrf.mxu0 }
 0x12f   :  { %v559_v5 = vmax.f32 %v524_v54, 0.0  ;;  %v409_v6 = vadd.f32 %v892_v63, %v1409_v40 }
 0x130   :  { %v894_v9 = vpop.f32.mrf.mxu0 }
 0x131   :  { %v1442_v10 = vpack.c.bf16 %v559_v5, %v558_v23  ;;  %v895_v56 = vadd.f32 %v894_v9, %v893_v4  ;;  %v529_v11 = vadd.f32 %v1404_v38, %v409_v6  ;;  %v337_v38 = vadd.f32 %v1372_v60, %v1409_v40 }
 0x132   :  { %v896_v14 = vpop.f32.mrf.mxu0  ;;  %v348_v60 = vadd.f32 %v1384_v12, %v1409_v40  ;;  %v356_v12 = vadd.f32 %v1392_v22, %v1409_v40  ;;  %v364_v22 = vadd.f32 %v1400_v32, %v1409_v40 }
 0x133   :  { %v412_v28 = vadd.f32 %v895_v56, %v1409_v40  ;;  %v560_v33 = vmax.f32 %v529_v11, 0.0 }
 0x134   :  { %v897_v15 = vpop.f32.mrf.mxu0 }
 0x135   :  { %v898_v16 = vadd.f32 %v897_v15, %v896_v14  ;;  %v532_v19 = vadd.f32 %v1412_v46, %v412_v28  ;;  %v340_v46 = vadd.f32 %v1376_v2, %v1409_v40 }
 0x136   :  { %v899_v20 = vpop.f32.mrf.mxu0 }
 0x137   :  { %v561_v21 = vmax.f32 %v532_v19, 0.0  ;;  %v417_v25 = vadd.f32 %v898_v16, %v1409_v40 }
 0x138   :  { %v900_v61 = vpop.f32.mrf.mxu0 }
 0x139   :  { %v1448_v26 = vpack.c.bf16 %v561_v21, %v560_v33  ;;  %v1451_v29 = vadd.f32 %v1415_v53, %v417_v25  ;;  %v345_v53 = vadd.f32 %v1380_v7, %v1409_v40  ;;  %v353_v7 = vadd.f32 %v1388_v17, %v1409_v40 }
 0x13a   :  { %v456_v30 = vpop.f32.mrf.mxu0  ;;  %v361_v17 = vadd.f32 %v1396_v27, %v1409_v40  ;;  %v1510_v40 = vld [vmem:[%s1621_s4] ss:$0 sm:$0xff] }
 0x13b   :  { %v457_v34 = vadd.f32 %v456_v30, %v337_v38  ;;  %v562_v27 = vmax.f32 %v1451_v29, 0.0 }
 0x13c   :  { %v934_v31 = vpop.f32.mrf.mxu0 }
 0x13d   :  { %v542_v37 = vmax.f32 %v457_v34, 0.0  ;;  %v573_v32 = vpack.c.bf16 %v562_v27, %v562_v27 }
 0x13e   :  { %v459_v35 = vpop.f32.mrf.mxu0 }
 0x13f   :  { %v460_v3 = vadd.f32 %v459_v35, %v340_v46 }
 0x140   :  { %v935_v36 = vpop.f32.mrf.mxu0 }
 0x141   :  { %v543_v39 = vmax.f32 %v460_v3, 0.0 }
 0x142   :  { %v464_v42 = vpop.f32.mrf.mxu0 }
 0x143   :  { %v563_v43 = vpack.c.bf16 %v543_v39, %v542_v37  ;;  %v465_v8 = vadd.f32 %v464_v42, %v345_v53 }
 0x144   :  { %v938_v44 = vpop.f32.mrf.mxu0 }
 0x145   :  { %981 = vmatmul.mubr.msk.bf16.vlgmr.msra.gmra.mxu1 %vm268_vm1, %v563_v43  ;;  %v544_v48 = vmax.f32 %v465_v8, 0.0 }
 0x146   :  { %v467_v45 = vpop.f32.mrf.mxu0  ;;  %984 = vmatprep.mubr.msk.bf16.mxu1 %vm1051_vm0, %v1050_v1 }
 0x147   :  { %v468_v2 = vadd.f32 %v467_v45, %v348_v60 }
 0x148   :  { %v939_v47 = vpop.f32.mrf.mxu0 }
 0x149   :  { %v545_v49 = vmax.f32 %v468_v2, 0.0 }
 0x14a   :  { %v472_v13 = vpop.f32.mrf.mxu0 }
 0x14b   :  { %v564_v50 = vpack.c.bf16 %v545_v49, %v544_v48  ;;  %v473_v52 = vadd.f32 %v472_v13, %v353_v7 }
 0x14c   :  { %v942_v51 = vpop.f32.mrf.mxu0 }
 0x14d   :  { %985 = vmatmul.mubr.msk.bf16.gmra.mxu1 %vm268_vm1, %v564_v50  ;;  %v546_v18 = vmax.f32 %v473_v52, 0.0 }
 0x14e   :  { %v475_v57 = vpop.f32.mrf.mxu0  ;;  %988 = vmatprep.mubr.msk.bf16.mxu1 %vm1051_vm0, %v1050_v1 }
 0x14f   :  { %v476_v58 = vadd.f32 %v475_v57, %v356_v12 }
 0x150   :  { %v943_v59 = vpop.f32.mrf.mxu0 }
 0x151   :  { %v547_v62 = vmax.f32 %v476_v58, 0.0 }
 0x152   :  { %v480_v63 = vpop.f32.mrf.mxu0 }
 0x153   :  { %v565_v54 = vpack.c.bf16 %v547_v62, %v546_v18  ;;  %v481_v23 = vadd.f32 %v480_v63, %v361_v17 }
 0x154   :  { %v946_v4 = vpop.f32.mrf.mxu0 }
 0x155   :  { %989 = vmatmul.mubr.msk.bf16.gmra.mxu1 %vm268_vm1, %v565_v54  ;;  %v548_v56 = vmax.f32 %v481_v23, 0.0 }
 0x156   :  { %v483_v5 = vpop.f32.mrf.mxu0  ;;  %992 = vmatprep.mubr.msk.bf16.mxu1 %vm1051_vm0, %v1050_v1 }
 0x157   :  { %v484_v6 = vadd.f32 %v483_v5, %v364_v22 }
 0x158   :  { %v947_v9 = vpop.f32.mrf.mxu0 }
 0x159   :  { %v549_v11 = vmax.f32 %v484_v6, 0.0 }
 0x15b   :  { %v566_v14 = vpack.c.bf16 %v549_v11, %v548_v56 }
 0x15d   :  { %993 = vmatmul.mubr.msk.bf16.gmra.mxu1 %vm268_vm1, %v566_v14 }
 0x15e   :  { %996 = vmatprep.mubr.msk.bf16.mxu1 %vm1051_vm0, %v1050_v1 }
 0x165   :  { %997 = vmatmul.mubr.msk.bf16.gmra.mxu1 %vm268_vm1, %v1418_v0 }
 0x166   :  { %1000 = vmatprep.mubr.msk.bf16.mxu1 %vm1051_vm0, %v1050_v1 }
 0x16d   :  { %1001 = vmatmul.mubr.msk.bf16.gmra.mxu1 %vm268_vm1, %v1424_v24 }
 0x16e   :  { %1004 = vmatprep.mubr.msk.bf16.mxu1 %vm1051_vm0, %v1050_v1 }
 0x175   :  { %1005 = vmatmul.mubr.msk.bf16.gmra.mxu1 %vm268_vm1, %v1430_v41 }
 0x176   :  { %1008 = vmatprep.mubr.msk.bf16.mxu1 %vm1051_vm0, %v1050_v1 }
 0x17d   :  { %1009 = vmatmul.mubr.msk.bf16.gmra.mxu1 %vm268_vm1, %v1436_v55 }
 0x17e   :  { %1012 = vmatprep.mubr.msk.bf16.mxu1 %vm1051_vm0, %v1050_v1 }
 0x185   :  { %1013 = vmatmul.mubr.msk.bf16.gmra.mxu1 %vm268_vm1, %v1442_v10 }
 0x186   :  { %1016 = vmatprep.mubr.msk.bf16.mxu1 %vm1051_vm0, %v1050_v1 }
 0x18d   :  { %1017 = vmatmul.mubr.msk.bf16.gmra.mxu1 %vm268_vm1, %v1448_v26 }
 0x18e   :  { %1020 = vmatprep.mubr.msk.bf16.mxu1 %vm1051_vm0, %v1050_v1 }
 0x195   :  { %1021 = vmatmul.mubr.msk.bf16.gmra.mxu1 %vm268_vm1, %v573_v32 }
 0x205   :  { %v664_v0 = vpop.f32.mrf.mxu1 }
 0x206   :  { %v665_v24 = vadd.f32 %v1510_v40, %v664_v0 }
 0x207   :  { %v982_v41 = vpop.f32.mrf.mxu1 }
 0x208   :  { %751 = vst.msk [vmem:[%s1622_s5] sm:$0xff] %vm750_vm2, %v665_v24 }
 0x209   :  { %v667_v1 = vpop.f32.mrf.mxu1 }
 0x20a   :  { %v668_v55 = vadd.f32 %v1510_v40, %v667_v1 }
 0x20b   :  { %v983_v10 = vpop.f32.mrf.mxu1 }
 0x20c   :  { %752 = vst.msk [vmem:[%s1622_s5 + $0x8] sm:$0xff] %vm750_vm2, %v668_v55 }
 0x20d   :  { %v672_v28 = vpop.f32.mrf.mxu1 }
 0x20e   :  { %v673_v15 = vadd.f32 %v1510_v40, %v672_v28 }
 0x20f   :  { %v986_v16 = vpop.f32.mrf.mxu1 }
 0x210   :  { %753 = vst.msk [vmem:[%s1622_s5 + $0x10] sm:$0xff] %vm750_vm2, %v673_v15 }
 0x211   :  { %v675_v19 = vpop.f32.mrf.mxu1 }
 0x212   :  { %v676_v20 = vadd.f32 %v1510_v40, %v675_v19 }
 0x213   :  { %v987_v33 = vpop.f32.mrf.mxu1 }
 0x214   :  { %754 = vst.msk [vmem:[%s1622_s5 + $0x18] sm:$0xff] %vm750_vm2, %v676_v20 }
 0x215   :  { %v680_v21 = vpop.f32.mrf.mxu1 }
 0x216   :  { %v681_v25 = vadd.f32 %v1510_v40, %v680_v21 }
 0x217   :  { %v990_v61 = vpop.f32.mrf.mxu1 }
 0x218   :  { %755 = vst.msk [vmem:[%s1622_s5 + $0x20] sm:$0xff] %vm750_vm2, %v681_v25 }
 0x219   :  { %v683_v26 = vpop.f32.mrf.mxu1 }
 0x21a   :  { %v684_v29 = vadd.f32 %v1510_v40, %v683_v26 }
 0x21b   :  { %v991_v30 = vpop.f32.mrf.mxu1 }
 0x21c   :  { %756 = vst.msk [vmem:[%s1622_s5 + $0x28] sm:$0xff] %vm750_vm2, %v684_v29 }
 0x21d   :  { %v688_v38 = vpop.f32.mrf.mxu1 }
 0x21e   :  { %v689_v31 = vadd.f32 %v1510_v40, %v688_v38 }
 0x21f   :  { %v994_v34 = vpop.f32.mrf.mxu1 }
 0x220   :  { %757 = vst.msk [vmem:[%s1622_s5 + $0x30] sm:$0xff] %vm750_vm2, %v689_v31 }
 0x221   :  { %v691_v46 = vpop.f32.mrf.mxu1 }
 0x222   :  { %v692_v35 = vadd.f32 %v1510_v40, %v691_v46 }
 0x223   :  { %v995_v3 = vpop.f32.mrf.mxu1 }
 0x224   :  { %758 = vst.msk [vmem:[%s1622_s5 + $0x38] sm:$0xff] %vm750_vm2, %v692_v35 }
 0x225   :  { %v696_v36 = vpop.f32.mrf.mxu1 }
 0x226   :  { %v697_v37 = vadd.f32 %v1510_v40, %v696_v36 }
 0x227   :  { %v998_v39 = vpop.f32.mrf.mxu1 }
 0x228   :  { %759 = vst.msk [vmem:[%s1622_s5 + $0x40] sm:$0xff] %vm750_vm2, %v697_v37 }
 0x229   :  { %v699_v42 = vpop.f32.mrf.mxu1 }
 0x22a   :  { %v700_v43 = vadd.f32 %v1510_v40, %v699_v42 }
 0x22b   :  { %v999_v53 = vpop.f32.mrf.mxu1 }
 0x22c   :  { %760 = vst.msk [vmem:[%s1622_s5 + $0x48] sm:$0xff] %vm750_vm2, %v700_v43 }
 0x22d   :  { %v704_v44 = vpop.f32.mrf.mxu1 }
 0x22e   :  { %v705_v8 = vadd.f32 %v1510_v40, %v704_v44 }
 0x22f   :  { %v1002_v60 = vpop.f32.mrf.mxu1 }
 0x230   :  { %761 = vst.msk [vmem:[%s1622_s5 + $0x50] sm:$0xff] %vm750_vm2, %v705_v8 }
 0x231   :  { %v707_v45 = vpop.f32.mrf.mxu1 }
 0x232   :  { %v708_v2 = vadd.f32 %v1510_v40, %v707_v45 }
 0x233   :  { %v1003_v47 = vpop.f32.mrf.mxu1 }
 0x234   :  { %762 = vst.msk [vmem:[%s1622_s5 + $0x58] sm:$0xff] %vm750_vm2, %v708_v2 }
 0x235   :  { %v712_v48 = vpop.f32.mrf.mxu1 }
 0x236   :  { %v713_v49 = vadd.f32 %v1510_v40, %v712_v48 }
 0x237   :  { %v1006_v13 = vpop.f32.mrf.mxu1 }
 0x238   :  { %763 = vst.msk [vmem:[%s1622_s5 + $0x60] sm:$0xff] %vm750_vm2, %v713_v49 }
 0x239   :  { %v715_v50 = vpop.f32.mrf.mxu1 }
 0x23a   :  { %v716_v7 = vadd.f32 %v1510_v40, %v715_v50 }
 0x23b   :  { %v1007_v51 = vpop.f32.mrf.mxu1 }
 0x23c   :  { %764 = vst.msk [vmem:[%s1622_s5 + $0x68] sm:$0xff] %vm750_vm2, %v716_v7 }
 0x23d   :  { %v720_v52 = vpop.f32.mrf.mxu1 }
 0x23e   :  { %v721_v12 = vadd.f32 %v1510_v40, %v720_v52 }
 0x23f   :  { %v1010_v57 = vpop.f32.mrf.mxu1 }
 0x240   :  { %765 = vst.msk [vmem:[%s1622_s5 + $0x70] sm:$0xff] %vm750_vm2, %v721_v12 }
 0x241   :  { %v723_v58 = vpop.f32.mrf.mxu1 }
 0x242   :  { %v724_v59 = vadd.f32 %v1510_v40, %v723_v58 }
 0x243   :  { %v1011_v18 = vpop.f32.mrf.mxu1 }
 0x244   :  { %766 = vst.msk [vmem:[%s1622_s5 + $0x78] sm:$0xff] %vm750_vm2, %v724_v59 }
 0x245   :  { %v728_v62 = vpop.f32.mrf.mxu1 }
 0x246   :  { %v729_v63 = vadd.f32 %v1510_v40, %v728_v62 }
 0x247   :  { %v1014_v54 = vpop.f32.mrf.mxu1 }
 0x248   :  { %767 = vst.msk [vmem:[%s1622_s5 + $0x80] sm:$0xff] %vm750_vm2, %v729_v63 }
 0x249   :  { %v731_v17 = vpop.f32.mrf.mxu1 }
 0x24a   :  { %v732_v4 = vadd.f32 %v1510_v40, %v731_v17 }
 0x24b   :  { %v1015_v23 = vpop.f32.mrf.mxu1 }
 0x24c   :  { %768 = vst.msk [vmem:[%s1622_s5 + $0x88] sm:$0xff] %vm750_vm2, %v732_v4 }
 0x24d   :  { %v736_v22 = vpop.f32.mrf.mxu1 }
 0x24e   :  { %v737_v5 = vadd.f32 %v1510_v40, %v736_v22 }
 0x24f   :  { %v1018_v6 = vpop.f32.mrf.mxu1 }
 0x250   :  { %769 = vst.msk [vmem:[%s1622_s5 + $0x90] sm:$0xff] %vm750_vm2, %v737_v5 }
 0x251   :  { %v739_v9 = vpop.f32.mrf.mxu1 }
 0x252   :  { %v740_v56 = vadd.f32 %v1510_v40, %v739_v9 }
 0x253   :  { %v1019_v11 = vpop.f32.mrf.mxu1 }
 0x254   :  { %770 = vst.msk [vmem:[%s1622_s5 + $0x98] sm:$0xff] %vm750_vm2, %v740_v56 }
 0x255   :  { %v744_v14 = vpop.f32.mrf.mxu1 }
 0x256   :  { %v745_v27 = vadd.f32 %v1510_v40, %v744_v14 }
 0x257   :  { %v1022_v32 = vpop.f32.mrf.mxu1 }
 0x258   :  { %771 = vst.msk [vmem:[%s1622_s5 + $0xa0] sm:$0xff] %vm750_vm2, %v745_v27 }
 0x259   :  { %v747_v0 = vpop.f32.mrf.mxu1 }
 0x25b   :  { %v1023_v24 = vpop.f32.mrf.mxu1 }

</bundles_post_ra>
